<compile_context>
chip_gen: v7x
topology: tpu7x:2x2x1
jax: 0.10.0
libtpu: 0.0.40
codegen_flags: <defaults>
</compile_context>

<pallas_src>
import functools

import jax
import jax.numpy as jnp
from jax.experimental import pallas as pl
from jax.experimental.pallas import tpu as pltpu


_VMEM_LIMIT = 48 * 1024 * 1024
_LEAKY_SLOPE = 0.1  # TODO(synk): confirm FConv2d's LeakyReLU slope in the source repo.
_BACKBONE_STRIDES = (2, 2)  # static Python ints (never traced) -> fixes the slice error.


def _leaky(y):
    return jnp.where(y > 0, y, _LEAKY_SLOPE * y)


def _round_up(v, m):
    return ((v + m - 1) // m) * m


def _pick_tm(m):
    """Row-tile: at least 2 grid programs when possible (v7x has 2 TCs), cap at 512."""
    if m <= 8:
        return 8
    return min(512, _round_up((m + 1) // 2, 8))


# ----------------------------------------------------------------------------
# Fused multi-input matmul kernel:  out = act( sum_i x_i @ w_i + b ) [* x_0]
# Handles: 1x1 convs, folded channel-concats (SPP -> CSP cv1/cv2, CSP tail cv4),
# the strided backbone conv (9 taps), SAM sigmoid gating, and the fused heads.
# ----------------------------------------------------------------------------

def _mmm_kernel(*refs, n, act, gate):
    x_refs = refs[:n]
    w_refs = refs[n:2 * n]
    b_ref = refs[2 * n]
    o_ref = refs[2 * n + 1]

    x0 = x_refs[0][...]                                            # bf16 tile
    acc = jnp.dot(x0, w_refs[0][...], preferred_element_type=jnp.float32)
    for i in range(1, n):
        acc = acc + jnp.dot(x_refs[i][...], w_refs[i][...],
                            preferred_element_type=jnp.float32)
    y = acc + b_ref[...]                                           # f32 epilogue
    if act == "leaky":
        y = _leaky(y)
    elif act == "sigmoid":
        y = jax.nn.sigmoid(y)
    if gate:                                                       # SAM: x * sigmoid(conv(x))
        y = y * x0.astype(jnp.float32)
    o_ref[...] = y.astype(o_ref.dtype)


def multi_matmul(xs, ws, b, act="none", gate_with_input=False,
                 out_dtype=jnp.bfloat16):
    """xs: list of (M, K_i); ws: list of (K_i, N) -> (M, N)."""
    n = len(xs)
    M = xs[0].shape[0]
    N = ws[0].shape[1]
    tm = _pick_tm(M)
    Mp = _round_up(M, tm)
    xs = [x.astype(jnp.bfloat16) for x in xs]
    if Mp != M:
        xs = [jnp.pad(x, ((0, Mp - M), (0, 0))) for x in xs]
    ws = [w.astype(jnp.bfloat16) for w in ws]
    b2 = b.reshape(1, N).astype(jnp.float32)

    in_specs = (
        [pl.BlockSpec((tm, x.shape[1]), lambda i: (i, 0)) for x in xs]
        + [pl.BlockSpec(w.shape, lambda i: (0, 0)) for w in ws]
        + [pl.BlockSpec((1, N), lambda i: (0, 0))]
    )
    out = pl.pallas_call(
        functools.partial(_mmm_kernel, n=n, act=act, gate=gate_with_input),
        out_shape=jax.ShapeDtypeStruct((Mp, N), out_dtype),
        grid_spec=pltpu.PrefetchScalarGridSpec(
            num_scalar_prefetch=0,
            grid=(Mp // tm,),
            in_specs=in_specs,
            out_specs=pl.BlockSpec((tm, N), lambda i: (i, 0)),
        ),
        compiler_params=pltpu.CompilerParams(
            dimension_semantics=("parallel",),
            vmem_limit_bytes=_VMEM_LIMIT,
        ),
    )(*xs, *ws, b2)
    return out[:M] if Mp != M else out


# ----------------------------------------------------------------------------
# 3x3 / stride-1 conv: in-kernel tap accumulation on a padded VMEM block
# (no im2col materialization in HBM).  Fused bias + LeakyReLU.
# ----------------------------------------------------------------------------

def _conv3x3_kernel(x_ref, w_ref, b_ref, o_ref, *, H, W, Cout):
    xp = x_ref[...].astype(jnp.float32)          # (H+2, W+2, Cin)
    acc = jnp.zeros((H * W, Cout), jnp.float32)
    for dy in range(3):
        for dx in range(3):
            xs = xp[dy:dy + H, dx:dx + W, :]     # shifted window (H, W, Cin)
            xs2 = xs.reshape(H * W, xs.shape[-1]).astype(jnp.bfloat16)
            acc = acc + jnp.dot(xs2, w_ref[dy, dx],
                                preferred_element_type=jnp.float32)
    y = _leaky(acc + b_ref[...])
    o_ref[...] = y.reshape(H, W, Cout).astype(o_ref.dtype)


def conv3x3_s1(x_nhwc, w, b, out_dtype=jnp.bfloat16):
    """Same-padding 3x3 stride-1 conv + bias + LeakyReLU.  (W is 8 here, so the
    in-kernel (H,W,C)->(H*W,C) reshape is layout-trivial.)"""
    B, H, W, Cin = x_nhwc.shape
    Cout = w.shape[-1]
    xp = jnp.pad(x_nhwc, ((0, 0), (1, 1), (1, 1), (0, 0)))
    return pl.pallas_call(
        functools.partial(_conv3x3_kernel, H=H, W=W, Cout=Cout),
        out_shape=jax.ShapeDtypeStruct((B, H, W, Cout), out_dtype),
        grid_spec=pltpu.PrefetchScalarGridSpec(
            num_scalar_prefetch=0,
            grid=(B,),
            in_specs=[
                pl.BlockSpec((None, H + 2, W + 2, Cin), lambda bb: (bb, 0, 0, 0)),
                pl.BlockSpec((3, 3, Cin, Cout), lambda bb: (0, 0, 0, 0)),
                pl.BlockSpec((1, Cout), lambda bb: (0, 0)),
            ],
            out_specs=pl.BlockSpec((None, H, W, Cout), lambda bb: (bb, 0, 0, 0)),
        ),
        compiler_params=pltpu.CompilerParams(
            dimension_semantics=("parallel",),
            vmem_limit_bytes=_VMEM_LIMIT,
        ),
    )(xp.astype(jnp.bfloat16), w.astype(jnp.bfloat16),
      b.reshape(1, Cout).astype(jnp.float32))


# ----------------------------------------------------------------------------
# Strided 3x3 conv (synthetic backbone): taps are extracted with *static*
# strided slices in JAX and summed in one fused multi-matmul (no concat).
# ----------------------------------------------------------------------------

def conv3x3_strided(x_nhwc, w, b, stride):
    B, H, W, Cin = x_nhwc.shape
    Cout = w.shape[-1]
    Ho = (H + 2 - 3) // stride + 1
    Wo = (W + 2 - 3) // stride + 1
    xp = jnp.pad(x_nhwc, ((0, 0), (1, 1), (1, 1), (0, 0)))
    xs, ws = [], []
    for dy in range(3):
        for dx in range(3):
            tap = xp[:, dy:dy + (Ho - 1) * stride + 1:stride,
                        dx:dx + (Wo - 1) * stride + 1:stride, :]
            xs.append(tap.reshape(B * Ho * Wo, Cin))
            ws.append(w[dy, dx])
    y = multi_matmul(xs, ws, b, act="leaky")
    return y.reshape(B, Ho, Wo, Cout)


# ----------------------------------------------------------------------------
# SPPv2: k=5/9/13 stride-1 max pools in ONE kernel, reusing the running row max
# across kernel sizes; the channel concat is folded into the next CSP matmuls.
# ----------------------------------------------------------------------------

def _spp_kernel(x_ref, o5_ref, o9_ref, o13_ref, *, H, W):
    xp = x_ref[...].astype(jnp.float32)          # (H+12, W+12, C), -inf padded
    P = 6

    def row_extend(base, offs):
        r = base
        for d in offs:
            r = jnp.maximum(r, xp[P + d:P + d + H, :, :])
        return r

    row5 = row_extend(xp[P - 2:P - 2 + H, :, :], (-1, 0, 1, 2))
    row9 = row_extend(row5, (-4, -3, 3, 4))
    row13 = row_extend(row9, (-6, -5, 5, 6))

    def col_reduce(row, half):
        out = row[:, P - half:P - half + W, :]
        for d in range(-half + 1, half + 1):
            out = jnp.maximum(out, row[:, P + d:P + d + W, :])
        return out

    o5_ref[...] = col_reduce(row5, 2).astype(o5_ref.dtype)
    o9_ref[...] = col_reduce(row9, 4).astype(o9_ref.dtype)
    o13_ref[...] = col_reduce(row13, 6).astype(o13_ref.dtype)


def sppv2_pools(x_nhwc):
    B, H, W, C = x_nhwc.shape
    xp = jnp.pad(x_nhwc, ((0, 0), (6, 6), (6, 6), (0, 0)),
                 constant_values=-jnp.inf)
    out_sd = jax.ShapeDtypeStruct((B, H, W, C), x_nhwc.dtype)
    o_spec = pl.BlockSpec((None, H, W, C), lambda bb: (bb, 0, 0, 0))
    return pl.pallas_call(
        functools.partial(_spp_kernel, H=H, W=W),
        out_shape=(out_sd, out_sd, out_sd),
        grid_spec=pltpu.PrefetchScalarGridSpec(
            num_scalar_prefetch=0,
            grid=(B,),
            in_specs=[pl.BlockSpec((None, H + 12, W + 12, C),
                                   lambda bb: (bb, 0, 0, 0))],
            out_specs=(o_spec, o_spec, o_spec),
        ),
        compiler_params=pltpu.CompilerParams(
            dimension_semantics=("parallel",),
            vmem_limit_bytes=_VMEM_LIMIT,
        ),
    )(xp)


# ----------------------------------------------------------------------------
# Parameters (deterministic synthetic init, BN already folded / pre-packed)
# ----------------------------------------------------------------------------

def make_params(key, num_classes, dim_out=32):
    nc_head = num_classes + 1  # cfg.MODE_TRAIN == 1: head_conf_cls has NUM_CLASSES + 1 ch
    kit = iter(jax.random.split(key, 128))

    def _rand_w(shape, fan):
        return jax.random.normal(next(kit), shape, jnp.float32) / jnp.sqrt(fan)

    def fconv(cin, cout, k):  # FConv2d: Conv(bias=False)+BN+LeakyReLU, BN scale folded in
        w = _rand_w((k, k, cin, cout), k * k * cin)
        s = 1.0 + 0.05 * jax.random.normal(next(kit), (cout,), jnp.float32)
        b = 0.05 * jax.random.normal(next(kit), (cout,), jnp.float32)
        w = (w * s).astype(jnp.bfloat16)
        if k == 1:
            w = w.reshape(cin, cout)
        return {"w": w, "b": b}

    def plain1x1(cin, cout):  # nn.Conv2d(cin, cout, 1) with bias
        return {"w": _rand_w((cin, cout), cin).astype(jnp.bfloat16),
                "b": 0.05 * jax.random.normal(next(kit), (cout,), jnp.float32)}

    def csp(c1, c2, n):  # BottleneckCSP(c1, c2, n, shortcut=False)
        c_ = c2 // 2
        cv1 = fconv(c1, c_, 1)
        w2 = _rand_w((c1, c_), c1)           # nn.Conv2d(c1, c_, 1, bias=False)
        w3 = _rand_w((c_, c_), c_)           # nn.Conv2d(c_, c_, 1, bias=False)
        bn_s = 1.0 + 0.05 * jax.random.normal(next(kit), (2 * c_,), jnp.float32)
        bn_b = 0.05 * jax.random.normal(next(kit), (2 * c_,), jnp.float32)
        cv4 = fconv(2 * c_, c2, 1)
        return {
            "cv1": cv1,
            # the concat-BN is folded into the bias-free / act-free cv3 and cv2:
            "cv3": {"w": (w3 * bn_s[:c_]).astype(jnp.bfloat16), "b": bn_b[:c_]},
            "cv2": {"w": (w2 * bn_s[c_:]).astype(jnp.bfloat16), "b": bn_b[c_:]},
            # cv4 split so the y1/y2 concat never has to be materialized:
            "cv4": {"w1": cv4["w"][:c_], "w2": cv4["w"][c_:], "b": cv4["b"]},
            "m": [{"cv1": fconv(c_, c_, 1), "cv2": fconv(c_, c_, 3)}
                  for _ in range(n)],
        }

    dim256 = dim_out // 2
    head_cls = plain1x1(dim_out, nc_head)
    head_box = plain1x1(dim_out, 4)          # num_reg = 1 -> 4 channels
    return {
        # synthetic stand-in for the injected torch backbone (dim_out = 32)
        "backbone": [fconv(3, dim_out // 2, 3), fconv(dim_out // 2, dim_out, 3)],
        "spp_pre": fconv(dim_out, dim256, 1),        # FConv2d(dim_layer, dim256, 1)
        "spp_csp": csp(dim256 * 4, dim_out, 1),      # BottleneckCSP(dim256*4, dim_layer, 1)
        "sam": plain1x1(dim_out, dim_out),           # SAM: 1x1 conv + sigmoid gate
        "conv_set": csp(dim_out, dim_out, 3),        # BottleneckCSP(dim_layer, dim_layer, 3)
        # both heads fused into one matmul == torch.cat([conf_cls, box], dim=1)
        "head": {"w": jnp.concatenate([head_cls["w"], head_box["w"]], axis=1),
                 "b": jnp.concatenate([head_cls["b"], head_box["b"]])},
    }


# ----------------------------------------------------------------------------
# Forward (YOLOv1_Net)
# ----------------------------------------------------------------------------

def _split_rows(w, widths):
    pieces, off = [], 0
    for c in widths:
        pieces.append(w[off:off + c])
        off += c
    return pieces


def csp_fwd(xs, p):
    """BottleneckCSP (shortcut=False).  `xs` is the channel-split input list; the
    channel concat is folded into cv1/cv2 as a sum of per-piece matmuls."""
    B, H, W, _ = xs[0].shape
    M = B * H * W
    widths = [x.shape[-1] for x in xs]
    xs2d = [x.reshape(M, -1) for x in xs]
    c_ = p["cv3"]["b"].shape[0]

    y1 = multi_matmul(xs2d, _split_rows(p["cv1"]["w"], widths),
                      p["cv1"]["b"], act="leaky")
    for bp in p["m"]:                                   # Bottleneck, shortcut=False
        y1 = multi_matmul([y1], [bp["cv1"]["w"]], bp["cv1"]["b"], act="leaky")
        y1 = conv3x3_s1(y1.reshape(B, H, W, c_),
                        bp["cv2"]["w"], bp["cv2"]["b"]).reshape(M, c_)
    a1 = multi_matmul([y1], [p["cv3"]["w"]], p["cv3"]["b"], act="leaky")   # BN folded
    a2 = multi_matmul(xs2d, _split_rows(p["cv2"]["w"], widths),
                      p["cv2"]["b"], act="leaky")                          # BN folded
    y = multi_matmul([a1, a2], [p["cv4"]["w1"], p["cv4"]["w2"]],
                     p["cv4"]["b"], act="leaky")
    c2 = p["cv4"]["b"].shape[0]
    return y.reshape(B, H, W, c2)


def sam_fwd(x, p):
    B, H, W, C = x.shape
    y = multi_matmul([x.reshape(B * H * W, C)], [p["w"]], p["b"],
                     act="sigmoid", gate_with_input=True)   # x * sigmoid(conv1x1(x))
    return y.reshape(B, H, W, C)


def yolov1_forward(params, x_nchw):
    """YOLOv1_Net.forward: returns NCHW [B, (NUM_CLASSES+1) + 4, H, W]."""
    x = jnp.transpose(x_nchw, (0, 2, 3, 1)).astype(jnp.bfloat16)   # NCHW -> NHWC
    for p, s in zip(params["backbone"], _BACKBONE_STRIDES):        # static strides
        x = conv3x3_strided(x, p["w"], p["b"], stride=s)

    B, H, W, C = x.shape
    x = multi_matmul([x.reshape(B * H * W, C)], [params["spp_pre"]["w"]],
                     params["spp_pre"]["b"], act="leaky").reshape(B, H, W, -1)

    p5, p9, p13 = sppv2_pools(x)                  # SPPv2 (concat folded downstream)
    x = csp_fwd([x, p5, p9, p13], params["spp_csp"])
    x = sam_fwd(x, params["sam"])
    x = csp_fwd([x], params["conv_set"])

    B, H, W, C = x.shape
    out = multi_matmul([x.reshape(B * H * W, C)], [params["head"]["w"]],
                       params["head"]["b"], act="none", out_dtype=jnp.float32)
    out = out.reshape(B, H, W, -1)
    # TODO(synk): LossYOLOv1 / PredictYOLOv1 post-processing not in provided source.
    return jnp.transpose(out, (0, 3, 1, 2))       # NHWC -> NCHW (torch.cat dim=1)


if __name__ == "__main__":
    NUM_CLASSES = 3
    key = jax.random.PRNGKey(0)
    kx, kp = jax.random.split(key)
    x = jax.random.normal(kx, (2, 3, 32, 32), jnp.float32)  # NCHW like torch
    params = make_params(kp, NUM_CLASSES, dim_out=32)

    out = jax.jit(yolov1_forward)(params, x)
    out = jax.block_until_ready(out)

    expected = (2, NUM_CLASSES + 1 + 4, 8, 8)  # [B, conf-1 + cls + box4, H, W]
    assert out.shape == expected, (out.shape, expected)
    assert bool(jnp.all(jnp.isfinite(out)))
    print("KERNEL_OK")
</pallas_src>

<mosaic_0001>
module attributes {stable_mosaic.version = 11 : i64} {
  func.func @_mmm_kernel(%arg0: i32, %arg1: memref<256x3xbf16, #tpu.memory_space<vmem>>, %arg2: memref<256x3xbf16, #tpu.memory_space<vmem>>, %arg3: memref<256x3xbf16, #tpu.memory_space<vmem>>, %arg4: memref<256x3xbf16, #tpu.memory_space<vmem>>, %arg5: memref<256x3xbf16, #tpu.memory_space<vmem>>, %arg6: memref<256x3xbf16, #tpu.memory_space<vmem>>, %arg7: memref<256x3xbf16, #tpu.memory_space<vmem>>, %arg8: memref<256x3xbf16, #tpu.memory_space<vmem>>, %arg9: memref<256x3xbf16, #tpu.memory_space<vmem>>, %arg10: memref<3x16xbf16, #tpu.memory_space<vmem>>, %arg11: memref<3x16xbf16, #tpu.memory_space<vmem>>, %arg12: memref<3x16xbf16, #tpu.memory_space<vmem>>, %arg13: memref<3x16xbf16, #tpu.memory_space<vmem>>, %arg14: memref<3x16xbf16, #tpu.memory_space<vmem>>, %arg15: memref<3x16xbf16, #tpu.memory_space<vmem>>, %arg16: memref<3x16xbf16, #tpu.memory_space<vmem>>, %arg17: memref<3x16xbf16, #tpu.memory_space<vmem>>, %arg18: memref<3x16xbf16, #tpu.memory_space<vmem>>, %arg19: memref<1x16xf32, #tpu.memory_space<vmem>>, %arg20: memref<256x16xbf16, #tpu.memory_space<vmem>>) attributes {dimension_semantics = [#tpu.dimension_semantics<parallel>], iteration_bounds = array<i64: 2>, scalar_prefetch = 0 : i64, scratch_operands = 0 : i64, tpu.core_type = #tpu.core_type<tc>, window_params = [{transform_indices = @transform_0, window_bounds = array<i64: 256, 3>}, {transform_indices = @transform_1, window_bounds = array<i64: 256, 3>}, {transform_indices = @transform_2, window_bounds = array<i64: 256, 3>}, {transform_indices = @transform_3, window_bounds = array<i64: 256, 3>}, {transform_indices = @transform_4, window_bounds = array<i64: 256, 3>}, {transform_indices = @transform_5, window_bounds = array<i64: 256, 3>}, {transform_indices = @transform_6, window_bounds = array<i64: 256, 3>}, {transform_indices = @transform_7, window_bounds = array<i64: 256, 3>}, {transform_indices = @transform_8, window_bounds = array<i64: 256, 3>}, {pipeline_mode = #tpu.pipeline_mode<synchronous>, transform_indices = @transform_9, window_bounds = array<i64: 3, 16>}, {pipeline_mode = #tpu.pipeline_mode<synchronous>, transform_indices = @transform_10, window_bounds = array<i64: 3, 16>}, {pipeline_mode = #tpu.pipeline_mode<synchronous>, transform_indices = @transform_11, window_bounds = array<i64: 3, 16>}, {pipeline_mode = #tpu.pipeline_mode<synchronous>, transform_indices = @transform_12, window_bounds = array<i64: 3, 16>}, {pipeline_mode = #tpu.pipeline_mode<synchronous>, transform_indices = @transform_13, window_bounds = array<i64: 3, 16>}, {pipeline_mode = #tpu.pipeline_mode<synchronous>, transform_indices = @transform_14, window_bounds = array<i64: 3, 16>}, {pipeline_mode = #tpu.pipeline_mode<synchronous>, transform_indices = @transform_15, window_bounds = array<i64: 3, 16>}, {pipeline_mode = #tpu.pipeline_mode<synchronous>, transform_indices = @transform_16, window_bounds = array<i64: 3, 16>}, {pipeline_mode = #tpu.pipeline_mode<synchronous>, transform_indices = @transform_17, window_bounds = array<i64: 3, 16>}, {pipeline_mode = #tpu.pipeline_mode<synchronous>, transform_indices = @transform_18, window_bounds = array<i64: 1, 16>}, {transform_indices = @transform_19, window_bounds = array<i64: 256, 16>}]} {
    %c0 = arith.constant 0 : index
    %c0_0 = arith.constant 0 : index
    %0 = vector.load %arg1[%c0, %c0_0] : memref<256x3xbf16, #tpu.memory_space<vmem>>, vector<256x3xbf16>
    %c0_1 = arith.constant 0 : index
    %c0_2 = arith.constant 0 : index
    %1 = vector.load %arg10[%c0_1, %c0_2] : memref<3x16xbf16, #tpu.memory_space<vmem>>, vector<3x16xbf16>
    %cst = arith.constant dense<0.000000e+00> : vector<256x16xf32>
    %2 = tpu.matmul %0, %1, %cst {dimension_numbers = #tpu.dot_dimension_numbers<[1], [0], [0], [1], [0, 0, 1, 1], [], []>} : vector<256x3xbf16>, vector<3x16xbf16>, vector<256x16xf32> -> vector<256x16xf32>
    %c0_3 = arith.constant 0 : index
    %c0_4 = arith.constant 0 : index
    %3 = vector.load %arg2[%c0_3, %c0_4] : memref<256x3xbf16, #tpu.memory_space<vmem>>, vector<256x3xbf16>
    %c0_5 = arith.constant 0 : index
    %c0_6 = arith.constant 0 : index
    %4 = vector.load %arg11[%c0_5, %c0_6] : memref<3x16xbf16, #tpu.memory_space<vmem>>, vector<3x16xbf16>
    %cst_7 = arith.constant dense<0.000000e+00> : vector<256x16xf32>
    %5 = tpu.matmul %3, %4, %cst_7 {dimension_numbers = #tpu.dot_dimension_numbers<[1], [0], [0], [1], [0, 0, 1, 1], [], []>} : vector<256x3xbf16>, vector<3x16xbf16>, vector<256x16xf32> -> vector<256x16xf32>
    %6 = arith.addf %2, %5 : vector<256x16xf32>
    %c0_8 = arith.constant 0 : index
    %c0_9 = arith.constant 0 : index
    %7 = vector.load %arg3[%c0_8, %c0_9] : memref<256x3xbf16, #tpu.memory_space<vmem>>, vector<256x3xbf16>
    %c0_10 = arith.constant 0 : index
    %c0_11 = arith.constant 0 : index
    %8 = vector.load %arg12[%c0_10, %c0_11] : memref<3x16xbf16, #tpu.memory_space<vmem>>, vector<3x16xbf16>
    %cst_12 = arith.constant dense<0.000000e+00> : vector<256x16xf32>
    %9 = tpu.matmul %7, %8, %cst_12 {dimension_numbers = #tpu.dot_dimension_numbers<[1], [0], [0], [1], [0, 0, 1, 1], [], []>} : vector<256x3xbf16>, vector<3x16xbf16>, vector<256x16xf32> -> vector<256x16xf32>
    %10 = arith.addf %6, %9 : vector<256x16xf32>
    %c0_13 = arith.constant 0 : index
    %c0_14 = arith.constant 0 : index
    %11 = vector.load %arg4[%c0_13, %c0_14] : memref<256x3xbf16, #tpu.memory_space<vmem>>, vector<256x3xbf16>
    %c0_15 = arith.constant 0 : index
    %c0_16 = arith.constant 0 : index
    %12 = vector.load %arg13[%c0_15, %c0_16] : memref<3x16xbf16, #tpu.memory_space<vmem>>, vector<3x16xbf16>
    %cst_17 = arith.constant dense<0.000000e+00> : vector<256x16xf32>
    %13 = tpu.matmul %11, %12, %cst_17 {dimension_numbers = #tpu.dot_dimension_numbers<[1], [0], [0], [1], [0, 0, 1, 1], [], []>} : vector<256x3xbf16>, vector<3x16xbf16>, vector<256x16xf32> -> vector<256x16xf32>
    %14 = arith.addf %10, %13 : vector<256x16xf32>
    %c0_18 = arith.constant 0 : index
    %c0_19 = arith.constant 0 : index
    %15 = vector.load %arg5[%c0_18, %c0_19] : memref<256x3xbf16, #tpu.memory_space<vmem>>, vector<256x3xbf16>
    %c0_20 = arith.constant 0 : index
    %c0_21 = arith.constant 0 : index
    %16 = vector.load %arg14[%c0_20, %c0_21] : memref<3x16xbf16, #tpu.memory_space<vmem>>, vector<3x16xbf16>
    %cst_22 = arith.constant dense<0.000000e+00> : vector<256x16xf32>
    %17 = tpu.matmul %15, %16, %cst_22 {dimension_numbers = #tpu.dot_dimension_numbers<[1], [0], [0], [1], [0, 0, 1, 1], [], []>} : vector<256x3xbf16>, vector<3x16xbf16>, vector<256x16xf32> -> vector<256x16xf32>
    %18 = arith.addf %14, %17 : vector<256x16xf32>
    %c0_23 = arith.constant 0 : index
    %c0_24 = arith.constant 0 : index
    %19 = vector.load %arg6[%c0_23, %c0_24] : memref<256x3xbf16, #tpu.memory_space<vmem>>, vector<256x3xbf16>
    %c0_25 = arith.constant 0 : index
    %c0_26 = arith.constant 0 : index
    %20 = vector.load %arg15[%c0_25, %c0_26] : memref<3x16xbf16, #tpu.memory_space<vmem>>, vector<3x16xbf16>
    %cst_27 = arith.constant dense<0.000000e+00> : vector<256x16xf32>
    %21 = tpu.matmul %19, %20, %cst_27 {dimension_numbers = #tpu.dot_dimension_numbers<[1], [0], [0], [1], [0, 0, 1, 1], [], []>} : vector<256x3xbf16>, vector<3x16xbf16>, vector<256x16xf32> -> vector<256x16xf32>
    %22 = arith.addf %18, %21 : vector<256x16xf32>
    %c0_28 = arith.constant 0 : index
    %c0_29 = arith.constant 0 : index
    %23 = vector.load %arg7[%c0_28, %c0_29] : memref<256x3xbf16, #tpu.memory_space<vmem>>, vector<256x3xbf16>
    %c0_30 = arith.constant 0 : index
    %c0_31 = arith.constant 0 : index
    %24 = vector.load %arg16[%c0_30, %c0_31] : memref<3x16xbf16, #tpu.memory_space<vmem>>, vector<3x16xbf16>
    %cst_32 = arith.constant dense<0.000000e+00> : vector<256x16xf32>
    %25 = tpu.matmul %23, %24, %cst_32 {dimension_numbers = #tpu.dot_dimension_numbers<[1], [0], [0], [1], [0, 0, 1, 1], [], []>} : vector<256x3xbf16>, vector<3x16xbf16>, vector<256x16xf32> -> vector<256x16xf32>
    %26 = arith.addf %22, %25 : vector<256x16xf32>
    %c0_33 = arith.constant 0 : index
    %c0_34 = arith.constant 0 : index
    %27 = vector.load %arg8[%c0_33, %c0_34] : memref<256x3xbf16, #tpu.memory_space<vmem>>, vector<256x3xbf16>
    %c0_35 = arith.constant 0 : index
    %c0_36 = arith.constant 0 : index
    %28 = vector.load %arg17[%c0_35, %c0_36] : memref<3x16xbf16, #tpu.memory_space<vmem>>, vector<3x16xbf16>
    %cst_37 = arith.constant dense<0.000000e+00> : vector<256x16xf32>
    %29 = tpu.matmul %27, %28, %cst_37 {dimension_numbers = #tpu.dot_dimension_numbers<[1], [0], [0], [1], [0, 0, 1, 1], [], []>} : vector<256x3xbf16>, vector<3x16xbf16>, vector<256x16xf32> -> vector<256x16xf32>
    %30 = arith.addf %26, %29 : vector<256x16xf32>
    %c0_38 = arith.constant 0 : index
    %c0_39 = arith.constant 0 : index
    %31 = vector.load %arg9[%c0_38, %c0_39] : memref<256x3xbf16, #tpu.memory_space<vmem>>, vector<256x3xbf16>
    %c0_40 = arith.constant 0 : index
    %c0_41 = arith.constant 0 : index
    %32 = vector.load %arg18[%c0_40, %c0_41] : memref<3x16xbf16, #tpu.memory_space<vmem>>, vector<3x16xbf16>
    %cst_42 = arith.constant dense<0.000000e+00> : vector<256x16xf32>
    %33 = tpu.matmul %31, %32, %cst_42 {dimension_numbers = #tpu.dot_dimension_numbers<[1], [0], [0], [1], [0, 0, 1, 1], [], []>} : vector<256x3xbf16>, vector<3x16xbf16>, vector<256x16xf32> -> vector<256x16xf32>
    %34 = arith.addf %30, %33 : vector<256x16xf32>
    %c0_43 = arith.constant 0 : index
    %c0_44 = arith.constant 0 : index
    %35 = vector.load %arg19[%c0_43, %c0_44] : memref<1x16xf32, #tpu.memory_space<vmem>>, vector<1x16xf32>
    %36 = vector.broadcast %35 : vector<1x16xf32> to vector<256x16xf32>
    %37 = arith.addf %34, %36 : vector<256x16xf32>
    %cst_45 = arith.constant 0.000000e+00 : f32
    %38 = vector.broadcast %cst_45 : f32 to vector<256x16xf32>
    %39 = arith.cmpf ogt, %37, %38 : vector<256x16xf32>
    %cst_46 = arith.constant 1.000000e-01 : f32
    %40 = vector.broadcast %cst_46 : f32 to vector<256x16xf32>
    %41 = arith.mulf %40, %37 : vector<256x16xf32>
    %42 = arith.select %39, %37, %41 : vector<256x16xi1>, vector<256x16xf32>
    %43 = arith.truncf %42 : vector<256x16xf32> to vector<256x16xbf16>
    %c0_47 = arith.constant 0 : index
    %c0_48 = arith.constant 0 : index
    %44 = vector.load %arg20[%c0_47, %c0_48] : memref<256x16xbf16, #tpu.memory_space<vmem>>, vector<256x16xbf16>
    tpu.vector_store %arg20[%c0_47, %c0_48], %43 {strides = array<i32>} : memref<256x16xbf16, #tpu.memory_space<vmem>>, vector<256x16xbf16>,
    return
  }
  func.func @transform_0(%arg0: i32) -> (i32, i32) {
    %c0_i32 = arith.constant 0 : i32
    %c0_i32_0 = arith.constant 0 : i32
    return %arg0, %c0_i32 : i32, i32
  }
  func.func @transform_1(%arg0: i32) -> (i32, i32) {
    %c0_i32 = arith.constant 0 : i32
    %c0_i32_0 = arith.constant 0 : i32
    return %arg0, %c0_i32 : i32, i32
  }
  func.func @transform_2(%arg0: i32) -> (i32, i32) {
    %c0_i32 = arith.constant 0 : i32
    %c0_i32_0 = arith.constant 0 : i32
    return %arg0, %c0_i32 : i32, i32
  }
  func.func @transform_3(%arg0: i32) -> (i32, i32) {
    %c0_i32 = arith.constant 0 : i32
    %c0_i32_0 = arith.constant 0 : i32
    return %arg0, %c0_i32 : i32, i32
  }
  func.func @transform_4(%arg0: i32) -> (i32, i32) {
    %c0_i32 = arith.constant 0 : i32
    %c0_i32_0 = arith.constant 0 : i32
    return %arg0, %c0_i32 : i32, i32
  }
  func.func @transform_5(%arg0: i32) -> (i32, i32) {
    %c0_i32 = arith.constant 0 : i32
    %c0_i32_0 = arith.constant 0 : i32
    return %arg0, %c0_i32 : i32, i32
  }
  func.func @transform_6(%arg0: i32) -> (i32, i32) {
    %c0_i32 = arith.constant 0 : i32
    %c0_i32_0 = arith.constant 0 : i32
    return %arg0, %c0_i32 : i32, i32
  }
  func.func @transform_7(%arg0: i32) -> (i32, i32) {
    %c0_i32 = arith.constant 0 : i32
    %c0_i32_0 = arith.constant 0 : i32
    return %arg0, %c0_i32 : i32, i32
  }
  func.func @transform_8(%arg0: i32) -> (i32, i32) {
    %c0_i32 = arith.constant 0 : i32
    %c0_i32_0 = arith.constant 0 : i32
    return %arg0, %c0_i32 : i32, i32
  }
  func.func @transform_9(%arg0: i32) -> (i32, i32) {
    %c0_i32 = arith.constant 0 : i32
    %c0_i32_0 = arith.constant 0 : i32
    %c0_i32_1 = arith.constant 0 : i32
    return %c0_i32, %c0_i32_0 : i32, i32
  }
  func.func @transform_10(%arg0: i32) -> (i32, i32) {
    %c0_i32 = arith.constant 0 : i32
    %c0_i32_0 = arith.constant 0 : i32
    %c0_i32_1 = arith.constant 0 : i32
    return %c0_i32, %c0_i32_0 : i32, i32
  }
  func.func @transform_11(%arg0: i32) -> (i32, i32) {
    %c0_i32 = arith.constant 0 : i32
    %c0_i32_0 = arith.constant 0 : i32
    %c0_i32_1 = arith.constant 0 : i32
    return %c0_i32, %c0_i32_0 : i32, i32
  }
  func.func @transform_12(%arg0: i32) -> (i32, i32) {
    %c0_i32 = arith.constant 0 : i32
    %c0_i32_0 = arith.constant 0 : i32
    %c0_i32_1 = arith.constant 0 : i32
    return %c0_i32, %c0_i32_0 : i32, i32
  }
  func.func @transform_13(%arg0: i32) -> (i32, i32) {
    %c0_i32 = arith.constant 0 : i32
    %c0_i32_0 = arith.constant 0 : i32
    %c0_i32_1 = arith.constant 0 : i32
    return %c0_i32, %c0_i32_0 : i32, i32
  }
  func.func @transform_14(%arg0: i32) -> (i32, i32) {
    %c0_i32 = arith.constant 0 : i32
    %c0_i32_0 = arith.constant 0 : i32
    %c0_i32_1 = arith.constant 0 : i32
    return %c0_i32, %c0_i32_0 : i32, i32
  }
  func.func @transform_15(%arg0: i32) -> (i32, i32) {
    %c0_i32 = arith.constant 0 : i32
    %c0_i32_0 = arith.constant 0 : i32
    %c0_i32_1 = arith.constant 0 : i32
    return %c0_i32, %c0_i32_0 : i32, i32
  }
  func.func @transform_16(%arg0: i32) -> (i32, i32) {
    %c0_i32 = arith.constant 0 : i32
    %c0_i32_0 = arith.constant 0 : i32
    %c0_i32_1 = arith.constant 0 : i32
    return %c0_i32, %c0_i32_0 : i32, i32
  }
  func.func @transform_17(%arg0: i32) -> (i32, i32) {
    %c0_i32 = arith.constant 0 : i32
    %c0_i32_0 = arith.constant 0 : i32
    %c0_i32_1 = arith.constant 0 : i32
    return %c0_i32, %c0_i32_0 : i32, i32
  }
  func.func @transform_18(%arg0: i32) -> (i32, i32) {
    %c0_i32 = arith.constant 0 : i32
    %c0_i32_0 = arith.constant 0 : i32
    %c0_i32_1 = arith.constant 0 : i32
    return %c0_i32, %c0_i32_0 : i32, i32
  }
  func.func @transform_19(%arg0: i32) -> (i32, i32) {
    %c0_i32 = arith.constant 0 : i32
    %c0_i32_0 = arith.constant 0 : i32
    return %arg0, %c0_i32 : i32, i32
  }
}

module attributes {stable_mosaic.version = 11 : i64} {
  func.func @_mmm_kernel(%arg0: i32, %arg1: memref<64x16xbf16, #tpu.memory_space<vmem>>, %arg2: memref<64x16xbf16, #tpu.memory_space<vmem>>, %arg3: memref<64x16xbf16, #tpu.memory_space<vmem>>, %arg4: memref<64x16xbf16, #tpu.memory_space<vmem>>, %arg5: memref<64x16xbf16, #tpu.memory_space<vmem>>, %arg6: memref<64x16xbf16, #tpu.memory_space<vmem>>, %arg7: memref<64x16xbf16, #tpu.memory_space<vmem>>, %arg8: memref<64x16xbf16, #tpu.memory_space<vmem>>, %arg9: memref<64x16xbf16, #tpu.memory_space<vmem>>, %arg10: memref<16x32xbf16, #tpu.memory_space<vmem>>, %arg11: memref<16x32xbf16, #tpu.memory_space<vmem>>, %arg12: memref<16x32xbf16, #tpu.memory_space<vmem>>, %arg13: memref<16x32xbf16, #tpu.memory_space<vmem>>, %arg14: memref<16x32xbf16, #tpu.memory_space<vmem>>, %arg15: memref<16x32xbf16, #tpu.memory_space<vmem>>, %arg16: memref<16x32xbf16, #tpu.memory_space<vmem>>, %arg17: memref<16x32xbf16, #tpu.memory_space<vmem>>, %arg18: memref<16x32xbf16, #tpu.memory_space<vmem>>, %arg19: memref<1x32xf32, #tpu.memory_space<vmem>>, %arg20: memref<64x32xbf16, #tpu.memory_space<vmem>>) attributes {dimension_semantics = [#tpu.dimension_semantics<parallel>], iteration_bounds = array<i64: 2>, scalar_prefetch = 0 : i64, scratch_operands = 0 : i64, tpu.core_type = #tpu.core_type<tc>, window_params = [{transform_indices = @transform_0, window_bounds = array<i64: 64, 16>}, {transform_indices = @transform_1, window_bounds = array<i64: 64, 16>}, {transform_indices = @transform_2, window_bounds = array<i64: 64, 16>}, {transform_indices = @transform_3, window_bounds = array<i64: 64, 16>}, {transform_indices = @transform_4, window_bounds = array<i64: 64, 16>}, {transform_indices = @transform_5, window_bounds = array<i64: 64, 16>}, {transform_indices = @transform_6, window_bounds = array<i64: 64, 16>}, {transform_indices = @transform_7, window_bounds = array<i64: 64, 16>}, {transform_indices = @transform_8, window_bounds = array<i64: 64, 16>}, {pipeline_mode = #tpu.pipeline_mode<synchronous>, transform_indices = @transform_9, window_bounds = array<i64: 16, 32>}, {pipeline_mode = #tpu.pipeline_mode<synchronous>, transform_indices = @transform_10, window_bounds = array<i64: 16, 32>}, {pipeline_mode = #tpu.pipeline_mode<synchronous>, transform_indices = @transform_11, window_bounds = array<i64: 16, 32>}, {pipeline_mode = #tpu.pipeline_mode<synchronous>, transform_indices = @transform_12, window_bounds = array<i64: 16, 32>}, {pipeline_mode = #tpu.pipeline_mode<synchronous>, transform_indices = @transform_13, window_bounds = array<i64: 16, 32>}, {pipeline_mode = #tpu.pipeline_mode<synchronous>, transform_indices = @transform_14, window_bounds = array<i64: 16, 32>}, {pipeline_mode = #tpu.pipeline_mode<synchronous>, transform_indices = @transform_15, window_bounds = array<i64: 16, 32>}, {pipeline_mode = #tpu.pipeline_mode<synchronous>, transform_indices = @transform_16, window_bounds = array<i64: 16, 32>}, {pipeline_mode = #tpu.pipeline_mode<synchronous>, transform_indices = @transform_17, window_bounds = array<i64: 16, 32>}, {pipeline_mode = #tpu.pipeline_mode<synchronous>, transform_indices = @transform_18, window_bounds = array<i64: 1, 32>}, {transform_indices = @transform_19, window_bounds = array<i64: 64, 32>}]} {
    %c0 = arith.constant 0 : index
    %c0_0 = arith.constant 0 : index
    %0 = vector.load %arg1[%c0, %c0_0] : memref<64x16xbf16, #tpu.memory_space<vmem>>, vector<64x16xbf16>
    %c0_1 = arith.constant 0 : index
    %c0_2 = arith.constant 0 : index
    %1 = vector.load %arg10[%c0_1, %c0_2] : memref<16x32xbf16, #tpu.memory_space<vmem>>, vector<16x32xbf16>
    %cst = arith.constant dense<0.000000e+00> : vector<64x32xf32>
    %2 = tpu.matmul %0, %1, %cst {dimension_numbers = #tpu.dot_dimension_numbers<[1], [0], [0], [1], [0, 0, 1, 1], [], []>} : vector<64x16xbf16>, vector<16x32xbf16>, vector<64x32xf32> -> vector<64x32xf32>
    %c0_3 = arith.constant 0 : index
    %c0_4 = arith.constant 0 : index
    %3 = vector.load %arg2[%c0_3, %c0_4] : memref<64x16xbf16, #tpu.memory_space<vmem>>, vector<64x16xbf16>
    %c0_5 = arith.constant 0 : index
    %c0_6 = arith.constant 0 : index
    %4 = vector.load %arg11[%c0_5, %c0_6] : memref<16x32xbf16, #tpu.memory_space<vmem>>, vector<16x32xbf16>
    %cst_7 = arith.constant dense<0.000000e+00> : vector<64x32xf32>
    %5 = tpu.matmul %3, %4, %cst_7 {dimension_numbers = #tpu.dot_dimension_numbers<[1], [0], [0], [1], [0, 0, 1, 1], [], []>} : vector<64x16xbf16>, vector<16x32xbf16>, vector<64x32xf32> -> vector<64x32xf32>
    %6 = arith.addf %2, %5 : vector<64x32xf32>
    %c0_8 = arith.constant 0 : index
    %c0_9 = arith.constant 0 : index
    %7 = vector.load %arg3[%c0_8, %c0_9] : memref<64x16xbf16, #tpu.memory_space<vmem>>, vector<64x16xbf16>
    %c0_10 = arith.constant 0 : index
    %c0_11 = arith.constant 0 : index
    %8 = vector.load %arg12[%c0_10, %c0_11] : memref<16x32xbf16, #tpu.memory_space<vmem>>, vector<16x32xbf16>
    %cst_12 = arith.constant dense<0.000000e+00> : vector<64x32xf32>
    %9 = tpu.matmul %7, %8, %cst_12 {dimension_numbers = #tpu.dot_dimension_numbers<[1], [0], [0], [1], [0, 0, 1, 1], [], []>} : vector<64x16xbf16>, vector<16x32xbf16>, vector<64x32xf32> -> vector<64x32xf32>
    %10 = arith.addf %6, %9 : vector<64x32xf32>
    %c0_13 = arith.constant 0 : index
    %c0_14 = arith.constant 0 : index
    %11 = vector.load %arg4[%c0_13, %c0_14] : memref<64x16xbf16, #tpu.memory_space<vmem>>, vector<64x16xbf16>
    %c0_15 = arith.constant 0 : index
    %c0_16 = arith.constant 0 : index
    %12 = vector.load %arg13[%c0_15, %c0_16] : memref<16x32xbf16, #tpu.memory_space<vmem>>, vector<16x32xbf16>
    %cst_17 = arith.constant dense<0.000000e+00> : vector<64x32xf32>
    %13 = tpu.matmul %11, %12, %cst_17 {dimension_numbers = #tpu.dot_dimension_numbers<[1], [0], [0], [1], [0, 0, 1, 1], [], []>} : vector<64x16xbf16>, vector<16x32xbf16>, vector<64x32xf32> -> vector<64x32xf32>
    %14 = arith.addf %10, %13 : vector<64x32xf32>
    %c0_18 = arith.constant 0 : index
    %c0_19 = arith.constant 0 : index
    %15 = vector.load %arg5[%c0_18, %c0_19] : memref<64x16xbf16, #tpu.memory_space<vmem>>, vector<64x16xbf16>
    %c0_20 = arith.constant 0 : index
    %c0_21 = arith.constant 0 : index
    %16 = vector.load %arg14[%c0_20, %c0_21] : memref<16x32xbf16, #tpu.memory_space<vmem>>, vector<16x32xbf16>
    %cst_22 = arith.constant dense<0.000000e+00> : vector<64x32xf32>
    %17 = tpu.matmul %15, %16, %cst_22 {dimension_numbers = #tpu.dot_dimension_numbers<[1], [0], [0], [1], [0, 0, 1, 1], [], []>} : vector<64x16xbf16>, vector<16x32xbf16>, vector<64x32xf32> -> vector<64x32xf32>
    %18 = arith.addf %14, %17 : vector<64x32xf32>
    %c0_23 = arith.constant 0 : index
    %c0_24 = arith.constant 0 : index
    %19 = vector.load %arg6[%c0_23, %c0_24] : memref<64x16xbf16, #tpu.memory_space<vmem>>, vector<64x16xbf16>
    %c0_25 = arith.constant 0 : index
    %c0_26 = arith.constant 0 : index
    %20 = vector.load %arg15[%c0_25, %c0_26] : memref<16x32xbf16, #tpu.memory_space<vmem>>, vector<16x32xbf16>
    %cst_27 = arith.constant dense<0.000000e+00> : vector<64x32xf32>
    %21 = tpu.matmul %19, %20, %cst_27 {dimension_numbers = #tpu.dot_dimension_numbers<[1], [0], [0], [1], [0, 0, 1, 1], [], []>} : vector<64x16xbf16>, vector<16x32xbf16>, vector<64x32xf32> -> vector<64x32xf32>
    %22 = arith.addf %18, %21 : vector<64x32xf32>
    %c0_28 = arith.constant 0 : index
    %c0_29 = arith.constant 0 : index
    %23 = vector.load %arg7[%c0_28, %c0_29] : memref<64x16xbf16, #tpu.memory_space<vmem>>, vector<64x16xbf16>
    %c0_30 = arith.constant 0 : index
    %c0_31 = arith.constant 0 : index
    %24 = vector.load %arg16[%c0_30, %c0_31] : memref<16x32xbf16, #tpu.memory_space<vmem>>, vector<16x32xbf16>
    %cst_32 = arith.constant dense<0.000000e+00> : vector<64x32xf32>
    %25 = tpu.matmul %23, %24, %cst_32 {dimension_numbers = #tpu.dot_dimension_numbers<[1], [0], [0], [1], [0, 0, 1, 1], [], []>} : vector<64x16xbf16>, vector<16x32xbf16>, vector<64x32xf32> -> vector<64x32xf32>
    %26 = arith.addf %22, %25 : vector<64x32xf32>
    %c0_33 = arith.constant 0 : index
    %c0_34 = arith.constant 0 : index
    %27 = vector.load %arg8[%c0_33, %c0_34] : memref<64x16xbf16, #tpu.memory_space<vmem>>, vector<64x16xbf16>
    %c0_35 = arith.constant 0 : index
    %c0_36 = arith.constant 0 : index
    %28 = vector.load %arg17[%c0_35, %c0_36] : memref<16x32xbf16, #tpu.memory_space<vmem>>, vector<16x32xbf16>
    %cst_37 = arith.constant dense<0.000000e+00> : vector<64x32xf32>
    %29 = tpu.matmul %27, %28, %cst_37 {dimension_numbers = #tpu.dot_dimension_numbers<[1], [0], [0], [1], [0, 0, 1, 1], [], []>} : vector<64x16xbf16>, vector<16x32xbf16>, vector<64x32xf32> -> vector<64x32xf32>
    %30 = arith.addf %26, %29 : vector<64x32xf32>
    %c0_38 = arith.constant 0 : index
    %c0_39 = arith.constant 0 : index
    %31 = vector.load %arg9[%c0_38, %c0_39] : memref<64x16xbf16, #tpu.memory_space<vmem>>, vector<64x16xbf16>
    %c0_40 = arith.constant 0 : index
    %c0_41 = arith.constant 0 : index
    %32 = vector.load %arg18[%c0_40, %c0_41] : memref<16x32xbf16, #tpu.memory_space<vmem>>, vector<16x32xbf16>
    %cst_42 = arith.constant dense<0.000000e+00> : vector<64x32xf32>
    %33 = tpu.matmul %31, %32, %cst_42 {dimension_numbers = #tpu.dot_dimension_numbers<[1], [0], [0], [1], [0, 0, 1, 1], [], []>} : vector<64x16xbf16>, vector<16x32xbf16>, vector<64x32xf32> -> vector<64x32xf32>
    %34 = arith.addf %30, %33 : vector<64x32xf32>
    %c0_43 = arith.constant 0 : index
    %c0_44 = arith.constant 0 : index
    %35 = vector.load %arg19[%c0_43, %c0_44] : memref<1x32xf32, #tpu.memory_space<vmem>>, vector<1x32xf32>
    %36 = vector.broadcast %35 : vector<1x32xf32> to vector<64x32xf32>
    %37 = arith.addf %34, %36 : vector<64x32xf32>
    %cst_45 = arith.constant 0.000000e+00 : f32
    %38 = vector.broadcast %cst_45 : f32 to vector<64x32xf32>
    %39 = arith.cmpf ogt, %37, %38 : vector<64x32xf32>
    %cst_46 = arith.constant 1.000000e-01 : f32
    %40 = vector.broadcast %cst_46 : f32 to vector<64x32xf32>
    %41 = arith.mulf %40, %37 : vector<64x32xf32>
    %42 = arith.select %39, %37, %41 : vector<64x32xi1>, vector<64x32xf32>
    %43 = arith.truncf %42 : vector<64x32xf32> to vector<64x32xbf16>
    %c0_47 = arith.constant 0 : index
    %c0_48 = arith.constant 0 : index
    %44 = vector.load %arg20[%c0_47, %c0_48] : memref<64x32xbf16, #tpu.memory_space<vmem>>, vector<64x32xbf16>
    tpu.vector_store %arg20[%c0_47, %c0_48], %43 {strides = array<i32>} : memref<64x32xbf16, #tpu.memory_space<vmem>>, vector<64x32xbf16>,
    return
  }
  func.func @transform_0(%arg0: i32) -> (i32, i32) {
    %c0_i32 = arith.constant 0 : i32
    %c0_i32_0 = arith.constant 0 : i32
    return %arg0, %c0_i32 : i32, i32
  }
  func.func @transform_1(%arg0: i32) -> (i32, i32) {
    %c0_i32 = arith.constant 0 : i32
    %c0_i32_0 = arith.constant 0 : i32
    return %arg0, %c0_i32 : i32, i32
  }
  func.func @transform_2(%arg0: i32) -> (i32, i32) {
    %c0_i32 = arith.constant 0 : i32
    %c0_i32_0 = arith.constant 0 : i32
    return %arg0, %c0_i32 : i32, i32
  }
  func.func @transform_3(%arg0: i32) -> (i32, i32) {
    %c0_i32 = arith.constant 0 : i32
    %c0_i32_0 = arith.constant 0 : i32
    return %arg0, %c0_i32 : i32, i32
  }
  func.func @transform_4(%arg0: i32) -> (i32, i32) {
    %c0_i32 = arith.constant 0 : i32
    %c0_i32_0 = arith.constant 0 : i32
    return %arg0, %c0_i32 : i32, i32
  }
  func.func @transform_5(%arg0: i32) -> (i32, i32) {
    %c0_i32 = arith.constant 0 : i32
    %c0_i32_0 = arith.constant 0 : i32
    return %arg0, %c0_i32 : i32, i32
  }
  func.func @transform_6(%arg0: i32) -> (i32, i32) {
    %c0_i32 = arith.constant 0 : i32
    %c0_i32_0 = arith.constant 0 : i32
    return %arg0, %c0_i32 : i32, i32
  }
  func.func @transform_7(%arg0: i32) -> (i32, i32) {
    %c0_i32 = arith.constant 0 : i32
    %c0_i32_0 = arith.constant 0 : i32
    return %arg0, %c0_i32 : i32, i32
  }
  func.func @transform_8(%arg0: i32) -> (i32, i32) {
    %c0_i32 = arith.constant 0 : i32
    %c0_i32_0 = arith.constant 0 : i32
    return %arg0, %c0_i32 : i32, i32
  }
  func.func @transform_9(%arg0: i32) -> (i32, i32) {
    %c0_i32 = arith.constant 0 : i32
    %c0_i32_0 = arith.constant 0 : i32
    %c0_i32_1 = arith.constant 0 : i32
    return %c0_i32, %c0_i32_0 : i32, i32
  }
  func.func @transform_10(%arg0: i32) -> (i32, i32) {
    %c0_i32 = arith.constant 0 : i32
    %c0_i32_0 = arith.constant 0 : i32
    %c0_i32_1 = arith.constant 0 : i32
    return %c0_i32, %c0_i32_0 : i32, i32
  }
  func.func @transform_11(%arg0: i32) -> (i32, i32) {
    %c0_i32 = arith.constant 0 : i32
    %c0_i32_0 = arith.constant 0 : i32
    %c0_i32_1 = arith.constant 0 : i32
    return %c0_i32, %c0_i32_0 : i32, i32
  }
  func.func @transform_12(%arg0: i32) -> (i32, i32) {
    %c0_i32 = arith.constant 0 : i32
    %c0_i32_0 = arith.constant 0 : i32
    %c0_i32_1 = arith.constant 0 : i32
    return %c0_i32, %c0_i32_0 : i32, i32
  }
  func.func @transform_13(%arg0: i32) -> (i32, i32) {
    %c0_i32 = arith.constant 0 : i32
    %c0_i32_0 = arith.constant 0 : i32
    %c0_i32_1 = arith.constant 0 : i32
    return %c0_i32, %c0_i32_0 : i32, i32
  }
  func.func @transform_14(%arg0: i32) -> (i32, i32) {
    %c0_i32 = arith.constant 0 : i32
    %c0_i32_0 = arith.constant 0 : i32
    %c0_i32_1 = arith.constant 0 : i32
    return %c0_i32, %c0_i32_0 : i32, i32
  }
  func.func @transform_15(%arg0: i32) -> (i32, i32) {
    %c0_i32 = arith.constant 0 : i32
    %c0_i32_0 = arith.constant 0 : i32
    %c0_i32_1 = arith.constant 0 : i32
    return %c0_i32, %c0_i32_0 : i32, i32
  }
  func.func @transform_16(%arg0: i32) -> (i32, i32) {
    %c0_i32 = arith.constant 0 : i32
    %c0_i32_0 = arith.constant 0 : i32
    %c0_i32_1 = arith.constant 0 : i32
    return %c0_i32, %c0_i32_0 : i32, i32
  }
  func.func @transform_17(%arg0: i32) -> (i32, i32) {
    %c0_i32 = arith.constant 0 : i32
    %c0_i32_0 = arith.constant 0 : i32
    %c0_i32_1 = arith.constant 0 : i32
    return %c0_i32, %c0_i32_0 : i32, i32
  }
  func.func @transform_18(%arg0: i32) -> (i32, i32) {
    %c0_i32 = arith.constant 0 : i32
    %c0_i32_0 = arith.constant 0 : i32
    %c0_i32_1 = arith.constant 0 : i32
    return %c0_i32, %c0_i32_0 : i32, i32
  }
  func.func @transform_19(%arg0: i32) -> (i32, i32) {
    %c0_i32 = arith.constant 0 : i32
    %c0_i32_0 = arith.constant 0 : i32
    return %arg0, %c0_i32 : i32, i32
  }
}

module attributes {stable_mosaic.version = 11 : i64} {
  func.func @_mmm_kernel(%arg0: i32, %arg1: memref<64x32xbf16, #tpu.memory_space<vmem>>, %arg2: memref<32x16xbf16, #tpu.memory_space<vmem>>, %arg3: memref<1x16xf32, #tpu.memory_space<vmem>>, %arg4: memref<64x16xbf16, #tpu.memory_space<vmem>>) attributes {dimension_semantics = [#tpu.dimension_semantics<parallel>], iteration_bounds = array<i64: 2>, scalar_prefetch = 0 : i64, scratch_operands = 0 : i64, tpu.core_type = #tpu.core_type<tc>, window_params = [{transform_indices = @transform_0, window_bounds = array<i64: 64, 32>}, {pipeline_mode = #tpu.pipeline_mode<synchronous>, transform_indices = @transform_1, window_bounds = array<i64: 32, 16>}, {pipeline_mode = #tpu.pipeline_mode<synchronous>, transform_indices = @transform_2, window_bounds = array<i64: 1, 16>}, {transform_indices = @transform_3, window_bounds = array<i64: 64, 16>}]} {
    %c0 = arith.constant 0 : index
    %c0_0 = arith.constant 0 : index
    %0 = vector.load %arg1[%c0, %c0_0] : memref<64x32xbf16, #tpu.memory_space<vmem>>, vector<64x32xbf16>
    %c0_1 = arith.constant 0 : index
    %c0_2 = arith.constant 0 : index
    %1 = vector.load %arg2[%c0_1, %c0_2] : memref<32x16xbf16, #tpu.memory_space<vmem>>, vector<32x16xbf16>
    %cst = arith.constant dense<0.000000e+00> : vector<64x16xf32>
    %2 = tpu.matmul %0, %1, %cst {dimension_numbers = #tpu.dot_dimension_numbers<[1], [0], [0], [1], [0, 0, 1, 1], [], []>} : vector<64x32xbf16>, vector<32x16xbf16>, vector<64x16xf32> -> vector<64x16xf32>
    %c0_3 = arith.constant 0 : index
    %c0_4 = arith.constant 0 : index
    %3 = vector.load %arg3[%c0_3, %c0_4] : memref<1x16xf32, #tpu.memory_space<vmem>>, vector<1x16xf32>
    %4 = vector.broadcast %3 : vector<1x16xf32> to vector<64x16xf32>
    %5 = arith.addf %2, %4 : vector<64x16xf32>
    %cst_5 = arith.constant 0.000000e+00 : f32
    %6 = vector.broadcast %cst_5 : f32 to vector<64x16xf32>
    %7 = arith.cmpf ogt, %5, %6 : vector<64x16xf32>
    %cst_6 = arith.constant 1.000000e-01 : f32
    %8 = vector.broadcast %cst_6 : f32 to vector<64x16xf32>
    %9 = arith.mulf %8, %5 : vector<64x16xf32>
    %10 = arith.select %7, %5, %9 : vector<64x16xi1>, vector<64x16xf32>
    %11 = arith.truncf %10 : vector<64x16xf32> to vector<64x16xbf16>
    %c0_7 = arith.constant 0 : index
    %c0_8 = arith.constant 0 : index
    %12 = vector.load %arg4[%c0_7, %c0_8] : memref<64x16xbf16, #tpu.memory_space<vmem>>, vector<64x16xbf16>
    tpu.vector_store %arg4[%c0_7, %c0_8], %11 {strides = array<i32>} : memref<64x16xbf16, #tpu.memory_space<vmem>>, vector<64x16xbf16>,
    return
  }
  func.func @transform_0(%arg0: i32) -> (i32, i32) {
    %c0_i32 = arith.constant 0 : i32
    %c0_i32_0 = arith.constant 0 : i32
    return %arg0, %c0_i32 : i32, i32
  }
  func.func @transform_1(%arg0: i32) -> (i32, i32) {
    %c0_i32 = arith.constant 0 : i32
    %c0_i32_0 = arith.constant 0 : i32
    %c0_i32_1 = arith.constant 0 : i32
    return %c0_i32, %c0_i32_0 : i32, i32
  }
  func.func @transform_2(%arg0: i32) -> (i32, i32) {
    %c0_i32 = arith.constant 0 : i32
    %c0_i32_0 = arith.constant 0 : i32
    %c0_i32_1 = arith.constant 0 : i32
    return %c0_i32, %c0_i32_0 : i32, i32
  }
  func.func @transform_3(%arg0: i32) -> (i32, i32) {
    %c0_i32 = arith.constant 0 : i32
    %c0_i32_0 = arith.constant 0 : i32
    return %arg0, %c0_i32 : i32, i32
  }
}

module attributes {stable_mosaic.version = 11 : i64} {
  func.func @_spp_kernel(%arg0: i32, %arg1: memref<1x20x20x16xbf16, #tpu.memory_space<vmem>>, %arg2: memref<1x8x8x16xbf16, #tpu.memory_space<vmem>>, %arg3: memref<1x8x8x16xbf16, #tpu.memory_space<vmem>>, %arg4: memref<1x8x8x16xbf16, #tpu.memory_space<vmem>>) attributes {dimension_semantics = [#tpu.dimension_semantics<parallel>], iteration_bounds = array<i64: 2>, scalar_prefetch = 0 : i64, scratch_operands = 0 : i64, tpu.core_type = #tpu.core_type<tc>, window_params = [{transform_indices = @transform_0, window_bounds = array<i64: 1, 20, 20, 16>}, {transform_indices = @transform_1, window_bounds = array<i64: 1, 8, 8, 16>}, {transform_indices = @transform_2, window_bounds = array<i64: 1, 8, 8, 16>}, {transform_indices = @transform_3, window_bounds = array<i64: 1, 8, 8, 16>}]} {
    %c0 = arith.constant 0 : index
    %c0_0 = arith.constant 0 : index
    %c0_1 = arith.constant 0 : index
    %c0_2 = arith.constant 0 : index
    %0 = vector.load %arg1[%c0, %c0_0, %c0_1, %c0_2] : memref<1x20x20x16xbf16, #tpu.memory_space<vmem>>, vector<1x20x20x16xbf16>
    %1 = vector.shape_cast %0 : vector<1x20x20x16xbf16> to vector<20x20x16xbf16>
    %2 = arith.extf %1 : vector<20x20x16xbf16> to vector<20x20x16xf32>
    %3 = vector.extract_strided_slice %2 {offsets = [4, 0, 0], sizes = [8, 20, 16], strides = [1, 1, 1]} : vector<20x20x16xf32> to vector<8x20x16xf32>
    %4 = vector.extract_strided_slice %2 {offsets = [5, 0, 0], sizes = [8, 20, 16], strides = [1, 1, 1]} : vector<20x20x16xf32> to vector<8x20x16xf32>
    %5 = arith.maximumf %3, %4 : vector<8x20x16xf32>
    %6 = vector.extract_strided_slice %2 {offsets = [6, 0, 0], sizes = [8, 20, 16], strides = [1, 1, 1]} : vector<20x20x16xf32> to vector<8x20x16xf32>
    %7 = arith.maximumf %5, %6 : vector<8x20x16xf32>
    %8 = vector.extract_strided_slice %2 {offsets = [7, 0, 0], sizes = [8, 20, 16], strides = [1, 1, 1]} : vector<20x20x16xf32> to vector<8x20x16xf32>
    %9 = arith.maximumf %7, %8 : vector<8x20x16xf32>
    %10 = vector.extract_strided_slice %2 {offsets = [8, 0, 0], sizes = [8, 20, 16], strides = [1, 1, 1]} : vector<20x20x16xf32> to vector<8x20x16xf32>
    %11 = arith.maximumf %9, %10 : vector<8x20x16xf32>
    %12 = vector.extract_strided_slice %2 {offsets = [2, 0, 0], sizes = [8, 20, 16], strides = [1, 1, 1]} : vector<20x20x16xf32> to vector<8x20x16xf32>
    %13 = arith.maximumf %11, %12 : vector<8x20x16xf32>
    %14 = vector.extract_strided_slice %2 {offsets = [3, 0, 0], sizes = [8, 20, 16], strides = [1, 1, 1]} : vector<20x20x16xf32> to vector<8x20x16xf32>
    %15 = arith.maximumf %13, %14 : vector<8x20x16xf32>
    %16 = vector.extract_strided_slice %2 {offsets = [9, 0, 0], sizes = [8, 20, 16], strides = [1, 1, 1]} : vector<20x20x16xf32> to vector<8x20x16xf32>
    %17 = arith.maximumf %15, %16 : vector<8x20x16xf32>
    %18 = vector.extract_strided_slice %2 {offsets = [10, 0, 0], sizes = [8, 20, 16], strides = [1, 1, 1]} : vector<20x20x16xf32> to vector<8x20x16xf32>
    %19 = arith.maximumf %17, %18 : vector<8x20x16xf32>
    %20 = vector.extract_strided_slice %2 {offsets = [0, 0, 0], sizes = [8, 20, 16], strides = [1, 1, 1]} : vector<20x20x16xf32> to vector<8x20x16xf32>
    %21 = arith.maximumf %19, %20 : vector<8x20x16xf32>
    %22 = vector.extract_strided_slice %2 {offsets = [1, 0, 0], sizes = [8, 20, 16], strides = [1, 1, 1]} : vector<20x20x16xf32> to vector<8x20x16xf32>
    %23 = arith.maximumf %21, %22 : vector<8x20x16xf32>
    %24 = vector.extract_strided_slice %2 {offsets = [11, 0, 0], sizes = [8, 20, 16], strides = [1, 1, 1]} : vector<20x20x16xf32> to vector<8x20x16xf32>
    %25 = arith.maximumf %23, %24 : vector<8x20x16xf32>
    %26 = vector.extract_strided_slice %2 {offsets = [12, 0, 0], sizes = [8, 20, 16], strides = [1, 1, 1]} : vector<20x20x16xf32> to vector<8x20x16xf32>
    %27 = arith.maximumf %25, %26 : vector<8x20x16xf32>
    %28 = vector.extract_strided_slice %11 {offsets = [0, 4, 0], sizes = [8, 8, 16], strides = [1, 1, 1]} : vector<8x20x16xf32> to vector<8x8x16xf32>
    %29 = vector.extract_strided_slice %11 {offsets = [0, 5, 0], sizes = [8, 8, 16], strides = [1, 1, 1]} : vector<8x20x16xf32> to vector<8x8x16xf32>
    %30 = arith.maximumf %28, %29 : vector<8x8x16xf32>
    %31 = vector.extract_strided_slice %11 {offsets = [0, 6, 0], sizes = [8, 8, 16], strides = [1, 1, 1]} : vector<8x20x16xf32> to vector<8x8x16xf32>
    %32 = arith.maximumf %30, %31 : vector<8x8x16xf32>
    %33 = vector.extract_strided_slice %11 {offsets = [0, 7, 0], sizes = [8, 8, 16], strides = [1, 1, 1]} : vector<8x20x16xf32> to vector<8x8x16xf32>
    %34 = arith.maximumf %32, %33 : vector<8x8x16xf32>
    %35 = vector.extract_strided_slice %11 {offsets = [0, 8, 0], sizes = [8, 8, 16], strides = [1, 1, 1]} : vector<8x20x16xf32> to vector<8x8x16xf32>
    %36 = arith.maximumf %34, %35 : vector<8x8x16xf32>
    %37 = arith.truncf %36 : vector<8x8x16xf32> to vector<8x8x16xbf16>
    %c0_3 = arith.constant 0 : index
    %c0_4 = arith.constant 0 : index
    %c0_5 = arith.constant 0 : index
    %c0_6 = arith.constant 0 : index
    %38 = vector.load %arg2[%c0_3, %c0_4, %c0_5, %c0_6] : memref<1x8x8x16xbf16, #tpu.memory_space<vmem>>, vector<1x8x8x16xbf16>
    %39 = vector.shape_cast %38 : vector<1x8x8x16xbf16> to vector<8x8x16xbf16>
    %40 = vector.shape_cast %37 : vector<8x8x16xbf16> to vector<1x8x8x16xbf16>
    tpu.vector_store %arg2[%c0_3, %c0_4, %c0_5, %c0_6], %40 {strides = array<i32>} : memref<1x8x8x16xbf16, #tpu.memory_space<vmem>>, vector<1x8x8x16xbf16>,
    %41 = vector.extract_strided_slice %19 {offsets = [0, 2, 0], sizes = [8, 8, 16], strides = [1, 1, 1]} : vector<8x20x16xf32> to vector<8x8x16xf32>
    %42 = vector.extract_strided_slice %19 {offsets = [0, 3, 0], sizes = [8, 8, 16], strides = [1, 1, 1]} : vector<8x20x16xf32> to vector<8x8x16xf32>
    %43 = arith.maximumf %41, %42 : vector<8x8x16xf32>
    %44 = vector.extract_strided_slice %19 {offsets = [0, 4, 0], sizes = [8, 8, 16], strides = [1, 1, 1]} : vector<8x20x16xf32> to vector<8x8x16xf32>
    %45 = arith.maximumf %43, %44 : vector<8x8x16xf32>
    %46 = vector.extract_strided_slice %19 {offsets = [0, 5, 0], sizes = [8, 8, 16], strides = [1, 1, 1]} : vector<8x20x16xf32> to vector<8x8x16xf32>
    %47 = arith.maximumf %45, %46 : vector<8x8x16xf32>
    %48 = vector.extract_strided_slice %19 {offsets = [0, 6, 0], sizes = [8, 8, 16], strides = [1, 1, 1]} : vector<8x20x16xf32> to vector<8x8x16xf32>
    %49 = arith.maximumf %47, %48 : vector<8x8x16xf32>
    %50 = vector.extract_strided_slice %19 {offsets = [0, 7, 0], sizes = [8, 8, 16], strides = [1, 1, 1]} : vector<8x20x16xf32> to vector<8x8x16xf32>
    %51 = arith.maximumf %49, %50 : vector<8x8x16xf32>
    %52 = vector.extract_strided_slice %19 {offsets = [0, 8, 0], sizes = [8, 8, 16], strides = [1, 1, 1]} : vector<8x20x16xf32> to vector<8x8x16xf32>
    %53 = arith.maximumf %51, %52 : vector<8x8x16xf32>
    %54 = vector.extract_strided_slice %19 {offsets = [0, 9, 0], sizes = [8, 8, 16], strides = [1, 1, 1]} : vector<8x20x16xf32> to vector<8x8x16xf32>
    %55 = arith.maximumf %53, %54 : vector<8x8x16xf32>
    %56 = vector.extract_strided_slice %19 {offsets = [0, 10, 0], sizes = [8, 8, 16], strides = [1, 1, 1]} : vector<8x20x16xf32> to vector<8x8x16xf32>
    %57 = arith.maximumf %55, %56 : vector<8x8x16xf32>
    %58 = arith.truncf %57 : vector<8x8x16xf32> to vector<8x8x16xbf16>
    %c0_7 = arith.constant 0 : index
    %c0_8 = arith.constant 0 : index
    %c0_9 = arith.constant 0 : index
    %c0_10 = arith.constant 0 : index
    %59 = vector.load %arg3[%c0_7, %c0_8, %c0_9, %c0_10] : memref<1x8x8x16xbf16, #tpu.memory_space<vmem>>, vector<1x8x8x16xbf16>
    %60 = vector.shape_cast %59 : vector<1x8x8x16xbf16> to vector<8x8x16xbf16>
    %61 = vector.shape_cast %58 : vector<8x8x16xbf16> to vector<1x8x8x16xbf16>
    tpu.vector_store %arg3[%c0_7, %c0_8, %c0_9, %c0_10], %61 {strides = array<i32>} : memref<1x8x8x16xbf16, #tpu.memory_space<vmem>>, vector<1x8x8x16xbf16>,
    %62 = vector.extract_strided_slice %27 {offsets = [0, 0, 0], sizes = [8, 8, 16], strides = [1, 1, 1]} : vector<8x20x16xf32> to vector<8x8x16xf32>
    %63 = vector.extract_strided_slice %27 {offsets = [0, 1, 0], sizes = [8, 8, 16], strides = [1, 1, 1]} : vector<8x20x16xf32> to vector<8x8x16xf32>
    %64 = arith.maximumf %62, %63 : vector<8x8x16xf32>
    %65 = vector.extract_strided_slice %27 {offsets = [0, 2, 0], sizes = [8, 8, 16], strides = [1, 1, 1]} : vector<8x20x16xf32> to vector<8x8x16xf32>
    %66 = arith.maximumf %64, %65 : vector<8x8x16xf32>
    %67 = vector.extract_strided_slice %27 {offsets = [0, 3, 0], sizes = [8, 8, 16], strides = [1, 1, 1]} : vector<8x20x16xf32> to vector<8x8x16xf32>
    %68 = arith.maximumf %66, %67 : vector<8x8x16xf32>
    %69 = vector.extract_strided_slice %27 {offsets = [0, 4, 0], sizes = [8, 8, 16], strides = [1, 1, 1]} : vector<8x20x16xf32> to vector<8x8x16xf32>
    %70 = arith.maximumf %68, %69 : vector<8x8x16xf32>
    %71 = vector.extract_strided_slice %27 {offsets = [0, 5, 0], sizes = [8, 8, 16], strides = [1, 1, 1]} : vector<8x20x16xf32> to vector<8x8x16xf32>
    %72 = arith.maximumf %70, %71 : vector<8x8x16xf32>
    %73 = vector.extract_strided_slice %27 {offsets = [0, 6, 0], sizes = [8, 8, 16], strides = [1, 1, 1]} : vector<8x20x16xf32> to vector<8x8x16xf32>
    %74 = arith.maximumf %72, %73 : vector<8x8x16xf32>
    %75 = vector.extract_strided_slice %27 {offsets = [0, 7, 0], sizes = [8, 8, 16], strides = [1, 1, 1]} : vector<8x20x16xf32> to vector<8x8x16xf32>
    %76 = arith.maximumf %74, %75 : vector<8x8x16xf32>
    %77 = vector.extract_strided_slice %27 {offsets = [0, 8, 0], sizes = [8, 8, 16], strides = [1, 1, 1]} : vector<8x20x16xf32> to vector<8x8x16xf32>
    %78 = arith.maximumf %76, %77 : vector<8x8x16xf32>
    %79 = vector.extract_strided_slice %27 {offsets = [0, 9, 0], sizes = [8, 8, 16], strides = [1, 1, 1]} : vector<8x20x16xf32> to vector<8x8x16xf32>
    %80 = arith.maximumf %78, %79 : vector<8x8x16xf32>
    %81 = vector.extract_strided_slice %27 {offsets = [0, 10, 0], sizes = [8, 8, 16], strides = [1, 1, 1]} : vector<8x20x16xf32> to vector<8x8x16xf32>
    %82 = arith.maximumf %80, %81 : vector<8x8x16xf32>
    %83 = vector.extract_strided_slice %27 {offsets = [0, 11, 0], sizes = [8, 8, 16], strides = [1, 1, 1]} : vector<8x20x16xf32> to vector<8x8x16xf32>
    %84 = arith.maximumf %82, %83 : vector<8x8x16xf32>
    %85 = vector.extract_strided_slice %27 {offsets = [0, 12, 0], sizes = [8, 8, 16], strides = [1, 1, 1]} : vector<8x20x16xf32> to vector<8x8x16xf32>
    %86 = arith.maximumf %84, %85 : vector<8x8x16xf32>
    %87 = arith.truncf %86 : vector<8x8x16xf32> to vector<8x8x16xbf16>
    %c0_11 = arith.constant 0 : index
    %c0_12 = arith.constant 0 : index
    %c0_13 = arith.constant 0 : index
    %c0_14 = arith.constant 0 : index
    %88 = vector.load %arg4[%c0_11, %c0_12, %c0_13, %c0_14] : memref<1x8x8x16xbf16, #tpu.memory_space<vmem>>, vector<1x8x8x16xbf16>
    %89 = vector.shape_cast %88 : vector<1x8x8x16xbf16> to vector<8x8x16xbf16>
    %90 = vector.shape_cast %87 : vector<8x8x16xbf16> to vector<1x8x8x16xbf16>
    tpu.vector_store %arg4[%c0_11, %c0_12, %c0_13, %c0_14], %90 {strides = array<i32>} : memref<1x8x8x16xbf16, #tpu.memory_space<vmem>>, vector<1x8x8x16xbf16>,
    return
  }
  func.func @transform_0(%arg0: i32) -> (i32, i32, i32, i32) {
    %c0_i32 = arith.constant 0 : i32
    %c0_i32_0 = arith.constant 0 : i32
    %c0_i32_1 = arith.constant 0 : i32
    %c0_i32_2 = arith.constant 0 : i32
    return %arg0, %c0_i32, %c0_i32_0, %c0_i32_1 : i32, i32, i32, i32
  }
  func.func @transform_1(%arg0: i32) -> (i32, i32, i32, i32) {
    %c0_i32 = arith.constant 0 : i32
    %c0_i32_0 = arith.constant 0 : i32
    %c0_i32_1 = arith.constant 0 : i32
    %c0_i32_2 = arith.constant 0 : i32
    return %arg0, %c0_i32, %c0_i32_0, %c0_i32_1 : i32, i32, i32, i32
  }
  func.func @transform_2(%arg0: i32) -> (i32, i32, i32, i32) {
    %c0_i32 = arith.constant 0 : i32
    %c0_i32_0 = arith.constant 0 : i32
    %c0_i32_1 = arith.constant 0 : i32
    %c0_i32_2 = arith.constant 0 : i32
    return %arg0, %c0_i32, %c0_i32_0, %c0_i32_1 : i32, i32, i32, i32
  }
  func.func @transform_3(%arg0: i32) -> (i32, i32, i32, i32) {
    %c0_i32 = arith.constant 0 : i32
    %c0_i32_0 = arith.constant 0 : i32
    %c0_i32_1 = arith.constant 0 : i32
    %c0_i32_2 = arith.constant 0 : i32
    return %arg0, %c0_i32, %c0_i32_0, %c0_i32_1 : i32, i32, i32, i32
  }
}

module attributes {stable_mosaic.version = 11 : i64} {
  func.func @_mmm_kernel(%arg0: i32, %arg1: memref<64x16xbf16, #tpu.memory_space<vmem>>, %arg2: memref<64x16xbf16, #tpu.memory_space<vmem>>, %arg3: memref<64x16xbf16, #tpu.memory_space<vmem>>, %arg4: memref<64x16xbf16, #tpu.memory_space<vmem>>, %arg5: memref<16x16xbf16, #tpu.memory_space<vmem>>, %arg6: memref<16x16xbf16, #tpu.memory_space<vmem>>, %arg7: memref<16x16xbf16, #tpu.memory_space<vmem>>, %arg8: memref<16x16xbf16, #tpu.memory_space<vmem>>, %arg9: memref<1x16xf32, #tpu.memory_space<vmem>>, %arg10: memref<64x16xbf16, #tpu.memory_space<vmem>>) attributes {dimension_semantics = [#tpu.dimension_semantics<parallel>], iteration_bounds = array<i64: 2>, scalar_prefetch = 0 : i64, scratch_operands = 0 : i64, tpu.core_type = #tpu.core_type<tc>, window_params = [{transform_indices = @transform_0, window_bounds = array<i64: 64, 16>}, {transform_indices = @transform_1, window_bounds = array<i64: 64, 16>}, {transform_indices = @transform_2, window_bounds = array<i64: 64, 16>}, {transform_indices = @transform_3, window_bounds = array<i64: 64, 16>}, {pipeline_mode = #tpu.pipeline_mode<synchronous>, transform_indices = @transform_4, window_bounds = array<i64: 16, 16>}, {pipeline_mode = #tpu.pipeline_mode<synchronous>, transform_indices = @transform_5, window_bounds = array<i64: 16, 16>}, {pipeline_mode = #tpu.pipeline_mode<synchronous>, transform_indices = @transform_6, window_bounds = array<i64: 16, 16>}, {pipeline_mode = #tpu.pipeline_mode<synchronous>, transform_indices = @transform_7, window_bounds = array<i64: 16, 16>}, {pipeline_mode = #tpu.pipeline_mode<synchronous>, transform_indices = @transform_8, window_bounds = array<i64: 1, 16>}, {transform_indices = @transform_9, window_bounds = array<i64: 64, 16>}]} {
    %c0 = arith.constant 0 : index
    %c0_0 = arith.constant 0 : index
    %0 = vector.load %arg1[%c0, %c0_0] : memref<64x16xbf16, #tpu.memory_space<vmem>>, vector<64x16xbf16>
    %c0_1 = arith.constant 0 : index
    %c0_2 = arith.constant 0 : index
    %1 = vector.load %arg5[%c0_1, %c0_2] : memref<16x16xbf16, #tpu.memory_space<vmem>>, vector<16x16xbf16>
    %cst = arith.constant dense<0.000000e+00> : vector<64x16xf32>
    %2 = tpu.matmul %0, %1, %cst {dimension_numbers = #tpu.dot_dimension_numbers<[1], [0], [0], [1], [0, 0, 1, 1], [], []>} : vector<64x16xbf16>, vector<16x16xbf16>, vector<64x16xf32> -> vector<64x16xf32>
    %c0_3 = arith.constant 0 : index
    %c0_4 = arith.constant 0 : index
    %3 = vector.load %arg2[%c0_3, %c0_4] : memref<64x16xbf16, #tpu.memory_space<vmem>>, vector<64x16xbf16>
    %c0_5 = arith.constant 0 : index
    %c0_6 = arith.constant 0 : index
    %4 = vector.load %arg6[%c0_5, %c0_6] : memref<16x16xbf16, #tpu.memory_space<vmem>>, vector<16x16xbf16>
    %cst_7 = arith.constant dense<0.000000e+00> : vector<64x16xf32>
    %5 = tpu.matmul %3, %4, %cst_7 {dimension_numbers = #tpu.dot_dimension_numbers<[1], [0], [0], [1], [0, 0, 1, 1], [], []>} : vector<64x16xbf16>, vector<16x16xbf16>, vector<64x16xf32> -> vector<64x16xf32>
    %6 = arith.addf %2, %5 : vector<64x16xf32>
    %c0_8 = arith.constant 0 : index
    %c0_9 = arith.constant 0 : index
    %7 = vector.load %arg3[%c0_8, %c0_9] : memref<64x16xbf16, #tpu.memory_space<vmem>>, vector<64x16xbf16>
    %c0_10 = arith.constant 0 : index
    %c0_11 = arith.constant 0 : index
    %8 = vector.load %arg7[%c0_10, %c0_11] : memref<16x16xbf16, #tpu.memory_space<vmem>>, vector<16x16xbf16>
    %cst_12 = arith.constant dense<0.000000e+00> : vector<64x16xf32>
    %9 = tpu.matmul %7, %8, %cst_12 {dimension_numbers = #tpu.dot_dimension_numbers<[1], [0], [0], [1], [0, 0, 1, 1], [], []>} : vector<64x16xbf16>, vector<16x16xbf16>, vector<64x16xf32> -> vector<64x16xf32>
    %10 = arith.addf %6, %9 : vector<64x16xf32>
    %c0_13 = arith.constant 0 : index
    %c0_14 = arith.constant 0 : index
    %11 = vector.load %arg4[%c0_13, %c0_14] : memref<64x16xbf16, #tpu.memory_space<vmem>>, vector<64x16xbf16>
    %c0_15 = arith.constant 0 : index
    %c0_16 = arith.constant 0 : index
    %12 = vector.load %arg8[%c0_15, %c0_16] : memref<16x16xbf16, #tpu.memory_space<vmem>>, vector<16x16xbf16>
    %cst_17 = arith.constant dense<0.000000e+00> : vector<64x16xf32>
    %13 = tpu.matmul %11, %12, %cst_17 {dimension_numbers = #tpu.dot_dimension_numbers<[1], [0], [0], [1], [0, 0, 1, 1], [], []>} : vector<64x16xbf16>, vector<16x16xbf16>, vector<64x16xf32> -> vector<64x16xf32>
    %14 = arith.addf %10, %13 : vector<64x16xf32>
    %c0_18 = arith.constant 0 : index
    %c0_19 = arith.constant 0 : index
    %15 = vector.load %arg9[%c0_18, %c0_19] : memref<1x16xf32, #tpu.memory_space<vmem>>, vector<1x16xf32>
    %16 = vector.broadcast %15 : vector<1x16xf32> to vector<64x16xf32>
    %17 = arith.addf %14, %16 : vector<64x16xf32>
    %cst_20 = arith.constant 0.000000e+00 : f32
    %18 = vector.broadcast %cst_20 : f32 to vector<64x16xf32>
    %19 = arith.cmpf ogt, %17, %18 : vector<64x16xf32>
    %cst_21 = arith.constant 1.000000e-01 : f32
    %20 = vector.broadcast %cst_21 : f32 to vector<64x16xf32>
    %21 = arith.mulf %20, %17 : vector<64x16xf32>
    %22 = arith.select %19, %17, %21 : vector<64x16xi1>, vector<64x16xf32>
    %23 = arith.truncf %22 : vector<64x16xf32> to vector<64x16xbf16>
    %c0_22 = arith.constant 0 : index
    %c0_23 = arith.constant 0 : index
    %24 = vector.load %arg10[%c0_22, %c0_23] : memref<64x16xbf16, #tpu.memory_space<vmem>>, vector<64x16xbf16>
    tpu.vector_store %arg10[%c0_22, %c0_23], %23 {strides = array<i32>} : memref<64x16xbf16, #tpu.memory_space<vmem>>, vector<64x16xbf16>,
    return
  }
  func.func @transform_0(%arg0: i32) -> (i32, i32) {
    %c0_i32 = arith.constant 0 : i32
    %c0_i32_0 = arith.constant 0 : i32
    return %arg0, %c0_i32 : i32, i32
  }
  func.func @transform_1(%arg0: i32) -> (i32, i32) {
    %c0_i32 = arith.constant 0 : i32
    %c0_i32_0 = arith.constant 0 : i32
    return %arg0, %c0_i32 : i32, i32
  }
  func.func @transform_2(%arg0: i32) -> (i32, i32) {
    %c0_i32 = arith.constant 0 : i32
    %c0_i32_0 = arith.constant 0 : i32
    return %arg0, %c0_i32 : i32, i32
  }
  func.func @transform_3(%arg0: i32) -> (i32, i32) {
    %c0_i32 = arith.constant 0 : i32
    %c0_i32_0 = arith.constant 0 : i32
    return %arg0, %c0_i32 : i32, i32
  }
  func.func @transform_4(%arg0: i32) -> (i32, i32) {
    %c0_i32 = arith.constant 0 : i32
    %c0_i32_0 = arith.constant 0 : i32
    %c0_i32_1 = arith.constant 0 : i32
    return %c0_i32, %c0_i32_0 : i32, i32
  }
  func.func @transform_5(%arg0: i32) -> (i32, i32) {
    %c0_i32 = arith.constant 0 : i32
    %c0_i32_0 = arith.constant 0 : i32
    %c0_i32_1 = arith.constant 0 : i32
    return %c0_i32, %c0_i32_0 : i32, i32
  }
  func.func @transform_6(%arg0: i32) -> (i32, i32) {
    %c0_i32 = arith.constant 0 : i32
    %c0_i32_0 = arith.constant 0 : i32
    %c0_i32_1 = arith.constant 0 : i32
    return %c0_i32, %c0_i32_0 : i32, i32
  }
  func.func @transform_7(%arg0: i32) -> (i32, i32) {
    %c0_i32 = arith.constant 0 : i32
    %c0_i32_0 = arith.constant 0 : i32
    %c0_i32_1 = arith.constant 0 : i32
    return %c0_i32, %c0_i32_0 : i32, i32
  }
  func.func @transform_8(%arg0: i32) -> (i32, i32) {
    %c0_i32 = arith.constant 0 : i32
    %c0_i32_0 = arith.constant 0 : i32
    %c0_i32_1 = arith.constant 0 : i32
    return %c0_i32, %c0_i32_0 : i32, i32
  }
  func.func @transform_9(%arg0: i32) -> (i32, i32) {
    %c0_i32 = arith.constant 0 : i32
    %c0_i32_0 = arith.constant 0 : i32
    return %arg0, %c0_i32 : i32, i32
  }
}

module attributes {stable_mosaic.version = 11 : i64} {
  func.func @_mmm_kernel(%arg0: i32, %arg1: memref<64x16xbf16, #tpu.memory_space<vmem>>, %arg2: memref<16x16xbf16, #tpu.memory_space<vmem>>, %arg3: memref<1x16xf32, #tpu.memory_space<vmem>>, %arg4: memref<64x16xbf16, #tpu.memory_space<vmem>>) attributes {dimension_semantics = [#tpu.dimension_semantics<parallel>], iteration_bounds = array<i64: 2>, scalar_prefetch = 0 : i64, scratch_operands = 0 : i64, tpu.core_type = #tpu.core_type<tc>, window_params = [{transform_indices = @transform_0, window_bounds = array<i64: 64, 16>}, {pipeline_mode = #tpu.pipeline_mode<synchronous>, transform_indices = @transform_1, window_bounds = array<i64: 16, 16>}, {pipeline_mode = #tpu.pipeline_mode<synchronous>, transform_indices = @transform_2, window_bounds = array<i64: 1, 16>}, {transform_indices = @transform_3, window_bounds = array<i64: 64, 16>}]} {
    %c0 = arith.constant 0 : index
    %c0_0 = arith.constant 0 : index
    %0 = vector.load %arg1[%c0, %c0_0] : memref<64x16xbf16, #tpu.memory_space<vmem>>, vector<64x16xbf16>
    %c0_1 = arith.constant 0 : index
    %c0_2 = arith.constant 0 : index
    %1 = vector.load %arg2[%c0_1, %c0_2] : memref<16x16xbf16, #tpu.memory_space<vmem>>, vector<16x16xbf16>
    %cst = arith.constant dense<0.000000e+00> : vector<64x16xf32>
    %2 = tpu.matmul %0, %1, %cst {dimension_numbers = #tpu.dot_dimension_numbers<[1], [0], [0], [1], [0, 0, 1, 1], [], []>} : vector<64x16xbf16>, vector<16x16xbf16>, vector<64x16xf32> -> vector<64x16xf32>
    %c0_3 = arith.constant 0 : index
    %c0_4 = arith.constant 0 : index
    %3 = vector.load %arg3[%c0_3, %c0_4] : memref<1x16xf32, #tpu.memory_space<vmem>>, vector<1x16xf32>
    %4 = vector.broadcast %3 : vector<1x16xf32> to vector<64x16xf32>
    %5 = arith.addf %2, %4 : vector<64x16xf32>
    %cst_5 = arith.constant 0.000000e+00 : f32
    %6 = vector.broadcast %cst_5 : f32 to vector<64x16xf32>
    %7 = arith.cmpf ogt, %5, %6 : vector<64x16xf32>
    %cst_6 = arith.constant 1.000000e-01 : f32
    %8 = vector.broadcast %cst_6 : f32 to vector<64x16xf32>
    %9 = arith.mulf %8, %5 : vector<64x16xf32>
    %10 = arith.select %7, %5, %9 : vector<64x16xi1>, vector<64x16xf32>
    %11 = arith.truncf %10 : vector<64x16xf32> to vector<64x16xbf16>
    %c0_7 = arith.constant 0 : index
    %c0_8 = arith.constant 0 : index
    %12 = vector.load %arg4[%c0_7, %c0_8] : memref<64x16xbf16, #tpu.memory_space<vmem>>, vector<64x16xbf16>
    tpu.vector_store %arg4[%c0_7, %c0_8], %11 {strides = array<i32>} : memref<64x16xbf16, #tpu.memory_space<vmem>>, vector<64x16xbf16>,
    return
  }
  func.func @transform_0(%arg0: i32) -> (i32, i32) {
    %c0_i32 = arith.constant 0 : i32
    %c0_i32_0 = arith.constant 0 : i32
    return %arg0, %c0_i32 : i32, i32
  }
  func.func @transform_1(%arg0: i32) -> (i32, i32) {
    %c0_i32 = arith.constant 0 : i32
    %c0_i32_0 = arith.constant 0 : i32
    %c0_i32_1 = arith.constant 0 : i32
    return %c0_i32, %c0_i32_0 : i32, i32
  }
  func.func @transform_2(%arg0: i32) -> (i32, i32) {
    %c0_i32 = arith.constant 0 : i32
    %c0_i32_0 = arith.constant 0 : i32
    %c0_i32_1 = arith.constant 0 : i32
    return %c0_i32, %c0_i32_0 : i32, i32
  }
  func.func @transform_3(%arg0: i32) -> (i32, i32) {
    %c0_i32 = arith.constant 0 : i32
    %c0_i32_0 = arith.constant 0 : i32
    return %arg0, %c0_i32 : i32, i32
  }
}

module attributes {stable_mosaic.version = 11 : i64} {
  func.func @_conv3x3_kernel(%arg0: i32, %arg1: memref<1x10x10x16xbf16, #tpu.memory_space<vmem>>, %arg2: memref<3x3x16x16xbf16, #tpu.memory_space<vmem>>, %arg3: memref<1x16xf32, #tpu.memory_space<vmem>>, %arg4: memref<1x8x8x16xbf16, #tpu.memory_space<vmem>>) attributes {dimension_semantics = [#tpu.dimension_semantics<parallel>], iteration_bounds = array<i64: 2>, scalar_prefetch = 0 : i64, scratch_operands = 0 : i64, tpu.core_type = #tpu.core_type<tc>, window_params = [{transform_indices = @transform_0, window_bounds = array<i64: 1, 10, 10, 16>}, {pipeline_mode = #tpu.pipeline_mode<synchronous>, transform_indices = @transform_1, window_bounds = array<i64: 3, 3, 16, 16>}, {pipeline_mode = #tpu.pipeline_mode<synchronous>, transform_indices = @transform_2, window_bounds = array<i64: 1, 16>}, {transform_indices = @transform_3, window_bounds = array<i64: 1, 8, 8, 16>}]} {
    %c0 = arith.constant 0 : index
    %c0_0 = arith.constant 0 : index
    %c0_1 = arith.constant 0 : index
    %c0_2 = arith.constant 0 : index
    %0 = vector.load %arg1[%c0, %c0_0, %c0_1, %c0_2] : memref<1x10x10x16xbf16, #tpu.memory_space<vmem>>, vector<1x10x10x16xbf16>
    %1 = vector.shape_cast %0 : vector<1x10x10x16xbf16> to vector<10x10x16xbf16>
    %2 = arith.extf %1 : vector<10x10x16xbf16> to vector<10x10x16xf32>
    %cst = arith.constant 0.000000e+00 : f32
    %3 = vector.broadcast %cst : f32 to vector<64x16xf32>
    %4 = vector.extract_strided_slice %2 {offsets = [0, 0, 0], sizes = [8, 8, 16], strides = [1, 1, 1]} : vector<10x10x16xf32> to vector<8x8x16xf32>
    %5 = vector.shape_cast %4 : vector<8x8x16xf32> to vector<64x16xf32>
    %6 = arith.truncf %5 : vector<64x16xf32> to vector<64x16xbf16>
    %c0_3 = arith.constant 0 : index
    %c0_4 = arith.constant 0 : index
    %c0_5 = arith.constant 0 : index
    %c0_6 = arith.constant 0 : index
    %7 = vector.load %arg2[%c0_3, %c0_4, %c0_5, %c0_6] : memref<3x3x16x16xbf16, #tpu.memory_space<vmem>>, vector<1x1x16x16xbf16>
    %8 = vector.shape_cast %7 : vector<1x1x16x16xbf16> to vector<16x16xbf16>
    %cst_7 = arith.constant dense<0.000000e+00> : vector<64x16xf32>
    %9 = tpu.matmul %6, %8, %cst_7 {dimension_numbers = #tpu.dot_dimension_numbers<[1], [0], [0], [1], [0, 0, 1, 1], [], []>} : vector<64x16xbf16>, vector<16x16xbf16>, vector<64x16xf32> -> vector<64x16xf32>
    %10 = arith.addf %3, %9 : vector<64x16xf32>
    %11 = vector.extract_strided_slice %2 {offsets = [0, 1, 0], sizes = [8, 8, 16], strides = [1, 1, 1]} : vector<10x10x16xf32> to vector<8x8x16xf32>
    %12 = vector.shape_cast %11 : vector<8x8x16xf32> to vector<64x16xf32>
    %13 = arith.truncf %12 : vector<64x16xf32> to vector<64x16xbf16>
    %c0_8 = arith.constant 0 : index
    %c1 = arith.constant 1 : index
    %c0_9 = arith.constant 0 : index
    %c0_10 = arith.constant 0 : index
    %14 = vector.load %arg2[%c0_8, %c1, %c0_9, %c0_10] : memref<3x3x16x16xbf16, #tpu.memory_space<vmem>>, vector<1x1x16x16xbf16>
    %15 = vector.shape_cast %14 : vector<1x1x16x16xbf16> to vector<16x16xbf16>
    %cst_11 = arith.constant dense<0.000000e+00> : vector<64x16xf32>
    %16 = tpu.matmul %13, %15, %cst_11 {dimension_numbers = #tpu.dot_dimension_numbers<[1], [0], [0], [1], [0, 0, 1, 1], [], []>} : vector<64x16xbf16>, vector<16x16xbf16>, vector<64x16xf32> -> vector<64x16xf32>
    %17 = arith.addf %10, %16 : vector<64x16xf32>
    %18 = vector.extract_strided_slice %2 {offsets = [0, 2, 0], sizes = [8, 8, 16], strides = [1, 1, 1]} : vector<10x10x16xf32> to vector<8x8x16xf32>
    %19 = vector.shape_cast %18 : vector<8x8x16xf32> to vector<64x16xf32>
    %20 = arith.truncf %19 : vector<64x16xf32> to vector<64x16xbf16>
    %c0_12 = arith.constant 0 : index
    %c2 = arith.constant 2 : index
    %c0_13 = arith.constant 0 : index
    %c0_14 = arith.constant 0 : index
    %21 = vector.load %arg2[%c0_12, %c2, %c0_13, %c0_14] : memref<3x3x16x16xbf16, #tpu.memory_space<vmem>>, vector<1x1x16x16xbf16>
    %22 = vector.shape_cast %21 : vector<1x1x16x16xbf16> to vector<16x16xbf16>
    %cst_15 = arith.constant dense<0.000000e+00> : vector<64x16xf32>
    %23 = tpu.matmul %20, %22, %cst_15 {dimension_numbers = #tpu.dot_dimension_numbers<[1], [0], [0], [1], [0, 0, 1, 1], [], []>} : vector<64x16xbf16>, vector<16x16xbf16>, vector<64x16xf32> -> vector<64x16xf32>
    %24 = arith.addf %17, %23 : vector<64x16xf32>
    %25 = vector.extract_strided_slice %2 {offsets = [1, 0, 0], sizes = [8, 8, 16], strides = [1, 1, 1]} : vector<10x10x16xf32> to vector<8x8x16xf32>
    %26 = vector.shape_cast %25 : vector<8x8x16xf32> to vector<64x16xf32>
    %27 = arith.truncf %26 : vector<64x16xf32> to vector<64x16xbf16>
    %c1_16 = arith.constant 1 : index
    %c0_17 = arith.constant 0 : index
    %c0_18 = arith.constant 0 : index
    %c0_19 = arith.constant 0 : index
    %28 = vector.load %arg2[%c1_16, %c0_17, %c0_18, %c0_19] : memref<3x3x16x16xbf16, #tpu.memory_space<vmem>>, vector<1x1x16x16xbf16>
    %29 = vector.shape_cast %28 : vector<1x1x16x16xbf16> to vector<16x16xbf16>
    %cst_20 = arith.constant dense<0.000000e+00> : vector<64x16xf32>
    %30 = tpu.matmul %27, %29, %cst_20 {dimension_numbers = #tpu.dot_dimension_numbers<[1], [0], [0], [1], [0, 0, 1, 1], [], []>} : vector<64x16xbf16>, vector<16x16xbf16>, vector<64x16xf32> -> vector<64x16xf32>
    %31 = arith.addf %24, %30 : vector<64x16xf32>
    %32 = vector.extract_strided_slice %2 {offsets = [1, 1, 0], sizes = [8, 8, 16], strides = [1, 1, 1]} : vector<10x10x16xf32> to vector<8x8x16xf32>
    %33 = vector.shape_cast %32 : vector<8x8x16xf32> to vector<64x16xf32>
    %34 = arith.truncf %33 : vector<64x16xf32> to vector<64x16xbf16>
    %c1_21 = arith.constant 1 : index
    %c1_22 = arith.constant 1 : index
    %c0_23 = arith.constant 0 : index
    %c0_24 = arith.constant 0 : index
    %35 = vector.load %arg2[%c1_21, %c1_22, %c0_23, %c0_24] : memref<3x3x16x16xbf16, #tpu.memory_space<vmem>>, vector<1x1x16x16xbf16>
    %36 = vector.shape_cast %35 : vector<1x1x16x16xbf16> to vector<16x16xbf16>
    %cst_25 = arith.constant dense<0.000000e+00> : vector<64x16xf32>
    %37 = tpu.matmul %34, %36, %cst_25 {dimension_numbers = #tpu.dot_dimension_numbers<[1], [0], [0], [1], [0, 0, 1, 1], [], []>} : vector<64x16xbf16>, vector<16x16xbf16>, vector<64x16xf32> -> vector<64x16xf32>
    %38 = arith.addf %31, %37 : vector<64x16xf32>
    %39 = vector.extract_strided_slice %2 {offsets = [1, 2, 0], sizes = [8, 8, 16], strides = [1, 1, 1]} : vector<10x10x16xf32> to vector<8x8x16xf32>
    %40 = vector.shape_cast %39 : vector<8x8x16xf32> to vector<64x16xf32>
    %41 = arith.truncf %40 : vector<64x16xf32> to vector<64x16xbf16>
    %c1_26 = arith.constant 1 : index
    %c2_27 = arith.constant 2 : index
    %c0_28 = arith.constant 0 : index
    %c0_29 = arith.constant 0 : index
    %42 = vector.load %arg2[%c1_26, %c2_27, %c0_28, %c0_29] : memref<3x3x16x16xbf16, #tpu.memory_space<vmem>>, vector<1x1x16x16xbf16>
    %43 = vector.shape_cast %42 : vector<1x1x16x16xbf16> to vector<16x16xbf16>
    %cst_30 = arith.constant dense<0.000000e+00> : vector<64x16xf32>
    %44 = tpu.matmul %41, %43, %cst_30 {dimension_numbers = #tpu.dot_dimension_numbers<[1], [0], [0], [1], [0, 0, 1, 1], [], []>} : vector<64x16xbf16>, vector<16x16xbf16>, vector<64x16xf32> -> vector<64x16xf32>
    %45 = arith.addf %38, %44 : vector<64x16xf32>
    %46 = vector.extract_strided_slice %2 {offsets = [2, 0, 0], sizes = [8, 8, 16], strides = [1, 1, 1]} : vector<10x10x16xf32> to vector<8x8x16xf32>
    %47 = vector.shape_cast %46 : vector<8x8x16xf32> to vector<64x16xf32>
    %48 = arith.truncf %47 : vector<64x16xf32> to vector<64x16xbf16>
    %c2_31 = arith.constant 2 : index
    %c0_32 = arith.constant 0 : index
    %c0_33 = arith.constant 0 : index
    %c0_34 = arith.constant 0 : index
    %49 = vector.load %arg2[%c2_31, %c0_32, %c0_33, %c0_34] : memref<3x3x16x16xbf16, #tpu.memory_space<vmem>>, vector<1x1x16x16xbf16>
    %50 = vector.shape_cast %49 : vector<1x1x16x16xbf16> to vector<16x16xbf16>
    %cst_35 = arith.constant dense<0.000000e+00> : vector<64x16xf32>
    %51 = tpu.matmul %48, %50, %cst_35 {dimension_numbers = #tpu.dot_dimension_numbers<[1], [0], [0], [1], [0, 0, 1, 1], [], []>} : vector<64x16xbf16>, vector<16x16xbf16>, vector<64x16xf32> -> vector<64x16xf32>
    %52 = arith.addf %45, %51 : vector<64x16xf32>
    %53 = vector.extract_strided_slice %2 {offsets = [2, 1, 0], sizes = [8, 8, 16], strides = [1, 1, 1]} : vector<10x10x16xf32> to vector<8x8x16xf32>
    %54 = vector.shape_cast %53 : vector<8x8x16xf32> to vector<64x16xf32>
    %55 = arith.truncf %54 : vector<64x16xf32> to vector<64x16xbf16>
    %c2_36 = arith.constant 2 : index
    %c1_37 = arith.constant 1 : index
    %c0_38 = arith.constant 0 : index
    %c0_39 = arith.constant 0 : index
    %56 = vector.load %arg2[%c2_36, %c1_37, %c0_38, %c0_39] : memref<3x3x16x16xbf16, #tpu.memory_space<vmem>>, vector<1x1x16x16xbf16>
    %57 = vector.shape_cast %56 : vector<1x1x16x16xbf16> to vector<16x16xbf16>
    %cst_40 = arith.constant dense<0.000000e+00> : vector<64x16xf32>
    %58 = tpu.matmul %55, %57, %cst_40 {dimension_numbers = #tpu.dot_dimension_numbers<[1], [0], [0], [1], [0, 0, 1, 1], [], []>} : vector<64x16xbf16>, vector<16x16xbf16>, vector<64x16xf32> -> vector<64x16xf32>
    %59 = arith.addf %52, %58 : vector<64x16xf32>
    %60 = vector.extract_strided_slice %2 {offsets = [2, 2, 0], sizes = [8, 8, 16], strides = [1, 1, 1]} : vector<10x10x16xf32> to vector<8x8x16xf32>
    %61 = vector.shape_cast %60 : vector<8x8x16xf32> to vector<64x16xf32>
    %62 = arith.truncf %61 : vector<64x16xf32> to vector<64x16xbf16>
    %c2_41 = arith.constant 2 : index
    %c2_42 = arith.constant 2 : index
    %c0_43 = arith.constant 0 : index
    %c0_44 = arith.constant 0 : index
    %63 = vector.load %arg2[%c2_41, %c2_42, %c0_43, %c0_44] : memref<3x3x16x16xbf16, #tpu.memory_space<vmem>>, vector<1x1x16x16xbf16>
    %64 = vector.shape_cast %63 : vector<1x1x16x16xbf16> to vector<16x16xbf16>
    %cst_45 = arith.constant dense<0.000000e+00> : vector<64x16xf32>
    %65 = tpu.matmul %62, %64, %cst_45 {dimension_numbers = #tpu.dot_dimension_numbers<[1], [0], [0], [1], [0, 0, 1, 1], [], []>} : vector<64x16xbf16>, vector<16x16xbf16>, vector<64x16xf32> -> vector<64x16xf32>
    %66 = arith.addf %59, %65 : vector<64x16xf32>
    %c0_46 = arith.constant 0 : index
    %c0_47 = arith.constant 0 : index
    %67 = vector.load %arg3[%c0_46, %c0_47] : memref<1x16xf32, #tpu.memory_space<vmem>>, vector<1x16xf32>
    %68 = vector.broadcast %67 : vector<1x16xf32> to vector<64x16xf32>
    %69 = arith.addf %66, %68 : vector<64x16xf32>
    %cst_48 = arith.constant 0.000000e+00 : f32
    %70 = vector.broadcast %cst_48 : f32 to vector<64x16xf32>
    %71 = arith.cmpf ogt, %69, %70 : vector<64x16xf32>
    %cst_49 = arith.constant 1.000000e-01 : f32
    %72 = vector.broadcast %cst_49 : f32 to vector<64x16xf32>
    %73 = arith.mulf %72, %69 : vector<64x16xf32>
    %74 = arith.select %71, %69, %73 : vector<64x16xi1>, vector<64x16xf32>
    %75 = vector.shape_cast %74 : vector<64x16xf32> to vector<8x8x16xf32>
    %76 = arith.truncf %75 : vector<8x8x16xf32> to vector<8x8x16xbf16>
    %c0_50 = arith.constant 0 : index
    %c0_51 = arith.constant 0 : index
    %c0_52 = arith.constant 0 : index
    %c0_53 = arith.constant 0 : index
    %77 = vector.load %arg4[%c0_50, %c0_51, %c0_52, %c0_53] : memref<1x8x8x16xbf16, #tpu.memory_space<vmem>>, vector<1x8x8x16xbf16>
    %78 = vector.shape_cast %77 : vector<1x8x8x16xbf16> to vector<8x8x16xbf16>
    %79 = vector.shape_cast %76 : vector<8x8x16xbf16> to vector<1x8x8x16xbf16>
    tpu.vector_store %arg4[%c0_50, %c0_51, %c0_52, %c0_53], %79 {strides = array<i32>} : memref<1x8x8x16xbf16, #tpu.memory_space<vmem>>, vector<1x8x8x16xbf16>,
    return
  }
  func.func @transform_0(%arg0: i32) -> (i32, i32, i32, i32) {
    %c0_i32 = arith.constant 0 : i32
    %c0_i32_0 = arith.constant 0 : i32
    %c0_i32_1 = arith.constant 0 : i32
    %c0_i32_2 = arith.constant 0 : i32
    return %arg0, %c0_i32, %c0_i32_0, %c0_i32_1 : i32, i32, i32, i32
  }
  func.func @transform_1(%arg0: i32) -> (i32, i32, i32, i32) {
    %c0_i32 = arith.constant 0 : i32
    %c0_i32_0 = arith.constant 0 : i32
    %c0_i32_1 = arith.constant 0 : i32
    %c0_i32_2 = arith.constant 0 : i32
    %c0_i32_3 = arith.constant 0 : i32
    return %c0_i32, %c0_i32_0, %c0_i32_1, %c0_i32_2 : i32, i32, i32, i32
  }
  func.func @transform_2(%arg0: i32) -> (i32, i32) {
    %c0_i32 = arith.constant 0 : i32
    %c0_i32_0 = arith.constant 0 : i32
    %c0_i32_1 = arith.constant 0 : i32
    return %c0_i32, %c0_i32_0 : i32, i32
  }
  func.func @transform_3(%arg0: i32) -> (i32, i32, i32, i32) {
    %c0_i32 = arith.constant 0 : i32
    %c0_i32_0 = arith.constant 0 : i32
    %c0_i32_1 = arith.constant 0 : i32
    %c0_i32_2 = arith.constant 0 : i32
    return %arg0, %c0_i32, %c0_i32_0, %c0_i32_1 : i32, i32, i32, i32
  }
}

module attributes {stable_mosaic.version = 11 : i64} {
  func.func @_mmm_kernel(%arg0: i32, %arg1: memref<64x16xbf16, #tpu.memory_space<vmem>>, %arg2: memref<64x16xbf16, #tpu.memory_space<vmem>>, %arg3: memref<16x32xbf16, #tpu.memory_space<vmem>>, %arg4: memref<16x32xbf16, #tpu.memory_space<vmem>>, %arg5: memref<1x32xf32, #tpu.memory_space<vmem>>, %arg6: memref<64x32xbf16, #tpu.memory_space<vmem>>) attributes {dimension_semantics = [#tpu.dimension_semantics<parallel>], iteration_bounds = array<i64: 2>, scalar_prefetch = 0 : i64, scratch_operands = 0 : i64, tpu.core_type = #tpu.core_type<tc>, window_params = [{transform_indices = @transform_0, window_bounds = array<i64: 64, 16>}, {transform_indices = @transform_1, window_bounds = array<i64: 64, 16>}, {pipeline_mode = #tpu.pipeline_mode<synchronous>, transform_indices = @transform_2, window_bounds = array<i64: 16, 32>}, {pipeline_mode = #tpu.pipeline_mode<synchronous>, transform_indices = @transform_3, window_bounds = array<i64: 16, 32>}, {pipeline_mode = #tpu.pipeline_mode<synchronous>, transform_indices = @transform_4, window_bounds = array<i64: 1, 32>}, {transform_indices = @transform_5, window_bounds = array<i64: 64, 32>}]} {
    %c0 = arith.constant 0 : index
    %c0_0 = arith.constant 0 : index
    %0 = vector.load %arg1[%c0, %c0_0] : memref<64x16xbf16, #tpu.memory_space<vmem>>, vector<64x16xbf16>
    %c0_1 = arith.constant 0 : index
    %c0_2 = arith.constant 0 : index
    %1 = vector.load %arg3[%c0_1, %c0_2] : memref<16x32xbf16, #tpu.memory_space<vmem>>, vector<16x32xbf16>
    %cst = arith.constant dense<0.000000e+00> : vector<64x32xf32>
    %2 = tpu.matmul %0, %1, %cst {dimension_numbers = #tpu.dot_dimension_numbers<[1], [0], [0], [1], [0, 0, 1, 1], [], []>} : vector<64x16xbf16>, vector<16x32xbf16>, vector<64x32xf32> -> vector<64x32xf32>
    %c0_3 = arith.constant 0 : index
    %c0_4 = arith.constant 0 : index
    %3 = vector.load %arg2[%c0_3, %c0_4] : memref<64x16xbf16, #tpu.memory_space<vmem>>, vector<64x16xbf16>
    %c0_5 = arith.constant 0 : index
    %c0_6 = arith.constant 0 : index
    %4 = vector.load %arg4[%c0_5, %c0_6] : memref<16x32xbf16, #tpu.memory_space<vmem>>, vector<16x32xbf16>
    %cst_7 = arith.constant dense<0.000000e+00> : vector<64x32xf32>
    %5 = tpu.matmul %3, %4, %cst_7 {dimension_numbers = #tpu.dot_dimension_numbers<[1], [0], [0], [1], [0, 0, 1, 1], [], []>} : vector<64x16xbf16>, vector<16x32xbf16>, vector<64x32xf32> -> vector<64x32xf32>
    %6 = arith.addf %2, %5 : vector<64x32xf32>
    %c0_8 = arith.constant 0 : index
    %c0_9 = arith.constant 0 : index
    %7 = vector.load %arg5[%c0_8, %c0_9] : memref<1x32xf32, #tpu.memory_space<vmem>>, vector<1x32xf32>
    %8 = vector.broadcast %7 : vector<1x32xf32> to vector<64x32xf32>
    %9 = arith.addf %6, %8 : vector<64x32xf32>
    %cst_10 = arith.constant 0.000000e+00 : f32
    %10 = vector.broadcast %cst_10 : f32 to vector<64x32xf32>
    %11 = arith.cmpf ogt, %9, %10 : vector<64x32xf32>
    %cst_11 = arith.constant 1.000000e-01 : f32
    %12 = vector.broadcast %cst_11 : f32 to vector<64x32xf32>
    %13 = arith.mulf %12, %9 : vector<64x32xf32>
    %14 = arith.select %11, %9, %13 : vector<64x32xi1>, vector<64x32xf32>
    %15 = arith.truncf %14 : vector<64x32xf32> to vector<64x32xbf16>
    %c0_12 = arith.constant 0 : index
    %c0_13 = arith.constant 0 : index
    %16 = vector.load %arg6[%c0_12, %c0_13] : memref<64x32xbf16, #tpu.memory_space<vmem>>, vector<64x32xbf16>
    tpu.vector_store %arg6[%c0_12, %c0_13], %15 {strides = array<i32>} : memref<64x32xbf16, #tpu.memory_space<vmem>>, vector<64x32xbf16>,
    return
  }
  func.func @transform_0(%arg0: i32) -> (i32, i32) {
    %c0_i32 = arith.constant 0 : i32
    %c0_i32_0 = arith.constant 0 : i32
    return %arg0, %c0_i32 : i32, i32
  }
  func.func @transform_1(%arg0: i32) -> (i32, i32) {
    %c0_i32 = arith.constant 0 : i32
    %c0_i32_0 = arith.constant 0 : i32
    return %arg0, %c0_i32 : i32, i32
  }
  func.func @transform_2(%arg0: i32) -> (i32, i32) {
    %c0_i32 = arith.constant 0 : i32
    %c0_i32_0 = arith.constant 0 : i32
    %c0_i32_1 = arith.constant 0 : i32
    return %c0_i32, %c0_i32_0 : i32, i32
  }
  func.func @transform_3(%arg0: i32) -> (i32, i32) {
    %c0_i32 = arith.constant 0 : i32
    %c0_i32_0 = arith.constant 0 : i32
    %c0_i32_1 = arith.constant 0 : i32
    return %c0_i32, %c0_i32_0 : i32, i32
  }
  func.func @transform_4(%arg0: i32) -> (i32, i32) {
    %c0_i32 = arith.constant 0 : i32
    %c0_i32_0 = arith.constant 0 : i32
    %c0_i32_1 = arith.constant 0 : i32
    return %c0_i32, %c0_i32_0 : i32, i32
  }
  func.func @transform_5(%arg0: i32) -> (i32, i32) {
    %c0_i32 = arith.constant 0 : i32
    %c0_i32_0 = arith.constant 0 : i32
    return %arg0, %c0_i32 : i32, i32
  }
}

module attributes {stable_mosaic.version = 11 : i64} {
  func.func @_mmm_kernel(%arg0: i32, %arg1: memref<64x32xbf16, #tpu.memory_space<vmem>>, %arg2: memref<32x32xbf16, #tpu.memory_space<vmem>>, %arg3: memref<1x32xf32, #tpu.memory_space<vmem>>, %arg4: memref<64x32xbf16, #tpu.memory_space<vmem>>) attributes {dimension_semantics = [#tpu.dimension_semantics<parallel>], iteration_bounds = array<i64: 2>, scalar_prefetch = 0 : i64, scratch_operands = 0 : i64, tpu.core_type = #tpu.core_type<tc>, window_params = [{transform_indices = @transform_0, window_bounds = array<i64: 64, 32>}, {pipeline_mode = #tpu.pipeline_mode<synchronous>, transform_indices = @transform_1, window_bounds = array<i64: 32, 32>}, {pipeline_mode = #tpu.pipeline_mode<synchronous>, transform_indices = @transform_2, window_bounds = array<i64: 1, 32>}, {transform_indices = @transform_3, window_bounds = array<i64: 64, 32>}]} {
    %c0 = arith.constant 0 : index
    %c0_0 = arith.constant 0 : index
    %0 = vector.load %arg1[%c0, %c0_0] : memref<64x32xbf16, #tpu.memory_space<vmem>>, vector<64x32xbf16>
    %c0_1 = arith.constant 0 : index
    %c0_2 = arith.constant 0 : index
    %1 = vector.load %arg2[%c0_1, %c0_2] : memref<32x32xbf16, #tpu.memory_space<vmem>>, vector<32x32xbf16>
    %cst = arith.constant dense<0.000000e+00> : vector<64x32xf32>
    %2 = tpu.matmul %0, %1, %cst {dimension_numbers = #tpu.dot_dimension_numbers<[1], [0], [0], [1], [0, 0, 1, 1], [], []>} : vector<64x32xbf16>, vector<32x32xbf16>, vector<64x32xf32> -> vector<64x32xf32>
    %c0_3 = arith.constant 0 : index
    %c0_4 = arith.constant 0 : index
    %3 = vector.load %arg3[%c0_3, %c0_4] : memref<1x32xf32, #tpu.memory_space<vmem>>, vector<1x32xf32>
    %4 = vector.broadcast %3 : vector<1x32xf32> to vector<64x32xf32>
    %5 = arith.addf %2, %4 : vector<64x32xf32>
    %6 = arith.negf %5 : vector<64x32xf32>
    %7 = math.exp %6 : vector<64x32xf32>
    %cst_5 = arith.constant 1.000000e+00 : f32
    %8 = vector.broadcast %cst_5 : f32 to vector<64x32xf32>
    %9 = arith.addf %8, %7 : vector<64x32xf32>
    %10 = arith.divf %8, %9 : vector<64x32xf32>
    %11 = arith.extf %0 : vector<64x32xbf16> to vector<64x32xf32>
    %12 = arith.mulf %10, %11 : vector<64x32xf32>
    %13 = arith.truncf %12 : vector<64x32xf32> to vector<64x32xbf16>
    %c0_6 = arith.constant 0 : index
    %c0_7 = arith.constant 0 : index
    %14 = vector.load %arg4[%c0_6, %c0_7] : memref<64x32xbf16, #tpu.memory_space<vmem>>, vector<64x32xbf16>
    tpu.vector_store %arg4[%c0_6, %c0_7], %13 {strides = array<i32>} : memref<64x32xbf16, #tpu.memory_space<vmem>>, vector<64x32xbf16>,
    return
  }
  func.func @transform_0(%arg0: i32) -> (i32, i32) {
    %c0_i32 = arith.constant 0 : i32
    %c0_i32_0 = arith.constant 0 : i32
    return %arg0, %c0_i32 : i32, i32
  }
  func.func @transform_1(%arg0: i32) -> (i32, i32) {
    %c0_i32 = arith.constant 0 : i32
    %c0_i32_0 = arith.constant 0 : i32
    %c0_i32_1 = arith.constant 0 : i32
    return %c0_i32, %c0_i32_0 : i32, i32
  }
  func.func @transform_2(%arg0: i32) -> (i32, i32) {
    %c0_i32 = arith.constant 0 : i32
    %c0_i32_0 = arith.constant 0 : i32
    %c0_i32_1 = arith.constant 0 : i32
    return %c0_i32, %c0_i32_0 : i32, i32
  }
  func.func @transform_3(%arg0: i32) -> (i32, i32) {
    %c0_i32 = arith.constant 0 : i32
    %c0_i32_0 = arith.constant 0 : i32
    return %arg0, %c0_i32 : i32, i32
  }
}

module attributes {stable_mosaic.version = 11 : i64} {
  func.func @_mmm_kernel(%arg0: i32, %arg1: memref<64x32xbf16, #tpu.memory_space<vmem>>, %arg2: memref<32x8xbf16, #tpu.memory_space<vmem>>, %arg3: memref<1x8xf32, #tpu.memory_space<vmem>>, %arg4: memref<64x8xf32, #tpu.memory_space<vmem>>) attributes {dimension_semantics = [#tpu.dimension_semantics<parallel>], iteration_bounds = array<i64: 2>, scalar_prefetch = 0 : i64, scratch_operands = 0 : i64, tpu.core_type = #tpu.core_type<tc>, window_params = [{transform_indices = @transform_0, window_bounds = array<i64: 64, 32>}, {pipeline_mode = #tpu.pipeline_mode<synchronous>, transform_indices = @transform_1, window_bounds = array<i64: 32, 8>}, {pipeline_mode = #tpu.pipeline_mode<synchronous>, transform_indices = @transform_2, window_bounds = array<i64: 1, 8>}, {transform_indices = @transform_3, window_bounds = array<i64: 64, 8>}]} {
    %c0 = arith.constant 0 : index
    %c0_0 = arith.constant 0 : index
    %0 = vector.load %arg1[%c0, %c0_0] : memref<64x32xbf16, #tpu.memory_space<vmem>>, vector<64x32xbf16>
    %c0_1 = arith.constant 0 : index
    %c0_2 = arith.constant 0 : index
    %1 = vector.load %arg2[%c0_1, %c0_2] : memref<32x8xbf16, #tpu.memory_space<vmem>>, vector<32x8xbf16>
    %cst = arith.constant dense<0.000000e+00> : vector<64x8xf32>
    %2 = tpu.matmul %0, %1, %cst {dimension_numbers = #tpu.dot_dimension_numbers<[1], [0], [0], [1], [0, 0, 1, 1], [], []>} : vector<64x32xbf16>, vector<32x8xbf16>, vector<64x8xf32> -> vector<64x8xf32>
    %c0_3 = arith.constant 0 : index
    %c0_4 = arith.constant 0 : index
    %3 = vector.load %arg3[%c0_3, %c0_4] : memref<1x8xf32, #tpu.memory_space<vmem>>, vector<1x8xf32>
    %4 = vector.broadcast %3 : vector<1x8xf32> to vector<64x8xf32>
    %5 = arith.addf %2, %4 : vector<64x8xf32>
    %c0_5 = arith.constant 0 : index
    %c0_6 = arith.constant 0 : index
    %6 = vector.load %arg4[%c0_5, %c0_6] : memref<64x8xf32, #tpu.memory_space<vmem>>, vector<64x8xf32>
    tpu.vector_store %arg4[%c0_5, %c0_6], %5 {strides = array<i32>} : memref<64x8xf32, #tpu.memory_space<vmem>>, vector<64x8xf32>,
    return
  }
  func.func @transform_0(%arg0: i32) -> (i32, i32) {
    %c0_i32 = arith.constant 0 : i32
    %c0_i32_0 = arith.constant 0 : i32
    return %arg0, %c0_i32 : i32, i32
  }
  func.func @transform_1(%arg0: i32) -> (i32, i32) {
    %c0_i32 = arith.constant 0 : i32
    %c0_i32_0 = arith.constant 0 : i32
    %c0_i32_1 = arith.constant 0 : i32
    return %c0_i32, %c0_i32_0 : i32, i32
  }
  func.func @transform_2(%arg0: i32) -> (i32, i32) {
    %c0_i32 = arith.constant 0 : i32
    %c0_i32_0 = arith.constant 0 : i32
    %c0_i32_1 = arith.constant 0 : i32
    return %c0_i32, %c0_i32_0 : i32, i32
  }
  func.func @transform_3(%arg0: i32) -> (i32, i32) {
    %c0_i32 = arith.constant 0 : i32
    %c0_i32_0 = arith.constant 0 : i32
    return %arg0, %c0_i32 : i32, i32
  }
}

</mosaic_0001>

<bundles_post_ra>
// kernel: yolov1_forward.24
= control target key start
LH: loop header
LB: loop body
LE: loop exit
PB: predicated region body
PF: predicated region fallthrough
CT: control target
= control target key end

     0   :  { %s527_s12 = smov 0   ;;  %s578_s0 = inlined_call_operand.vmem [shape: bf16[128,32], index: 0, kind: input, shape index: {}]   ;;  %s579_s1 = inlined_call_operand.vmem [shape: bf16[32,16], index: 1, kind: input, shape index: {}]   ;;  %s580_s2 = inlined_call_operand.vmem [shape: f32[1,16], index: 2, kind: input, shape index: {}]   ;;  %s581_s3 = inlined_call_operand.vmem [shape: bf16[128,16], index: 3, kind: output, shape index: {}]  }
   0x1 LB: > { %s425_s13 = sadd.s32 4294967295, %s505_s12   ;;  %p429_p0 = scmp.ge.s32.totalorder %s505_s12, 1  ;;  %s505_s12 = sphi %s527_s12, %s13_s12  }
   0x2   : > { %p138_p1 = scmp.lt.s32.totalorder %s505_s12, 3 }
   0x4   : > { %p139_p2 = pnand %p429_p0, %p138_p1 }
   0x5   : > { %v493_v0 = vld [vmem:[%s579_s1] sm:$0xff] (!%p139_p2)   ;;  %s430_s16 = sshll.u32 (!%p139_p2), %s425_s13, 3  ;;  %v494_v1 = vld [vmem:[%s579_s1 + $0x8] sm:$0xff] (!%p139_p2)   ;;  %vm226_vm0 = vcmask (!%p139_p2), 261120   ;;  %vm360_vm1 = vcmask (!%p139_p2), 125952  }
   0x6   : > { %142 = sbr.rel (%p139_p2) target bundleno = 246 (0xf6), region = 32  ;;  %p163_p3 = scmp.lt.s32.totalorder (!%p139_p2), %s430_s16, 15  ;;  %469 = vmatprep.subr.bf16.mxu0 (!%p139_p2), %v493_v0  ;;  %481 = vmatprep.subr.bf16.mxu1 (!%p139_p2), %v493_v0  ;;  %v434_v6 = vld [vmem:[%s580_s2] ss:$0 sm:$0xff] (!%p139_p2) }
   0x7   : > { %470 = vmatpush3.bf16.msra.mxu0 (!%p139_p2), %v493_v0  ;;  %483 = vmatpush3.bf16.msra.mxu1 (!%p139_p2), %v493_v0 }
   0x8   : > { %471 = vmatprep.subr.bf16.mxu0 (!%p139_p2), %v494_v1  ;;  %482 = vmatprep.subr.bf16.mxu1 (!%p139_p2), %v494_v1 }
   0xb   : > { %472 = vmatpush3.bf16.msra.mxu0 (!%p139_p2), %v494_v1  ;;  %484 = vmatpush3.bf16.msra.mxu1 (!%p139_p2), %v494_v1 }
   0xd   : > { %s583_s16 = smov (!%p163_p3, %s430_s16), 15 }
   0xe   : > { %s431_s19 = sshll.u32 %s583_s16, 2 }
   0xf   : > { %s166_s22 = scalar_lea.vmem %s578_s0, %s431_s19  ;;  %s557_s27 = scalar_lea.vmem %s581_s3, %s431_s19 }
  0x10   : > { %v495_v2 = vld [vmem:[%s166_s22] sm:$0xff]   ;;  %v496_v3 = vld [vmem:[%s166_s22 + $0x10] sm:$0xff]   ;;  %v497_v4 = vld [vmem:[%s166_s22 + $0x8] sm:$0xff]  }
  0x11   : > { %473 = vmatprep.mubr.msk.bf16.mxu0 %vm226_vm0, %v495_v2  ;;  %477 = vmatprep.mubr.msk.bf16.mxu1 %vm226_vm0, %v496_v3  ;;  %v498_v5 = vld [vmem:[%s166_s22 + $0x18] sm:$0xff]  }
  0x12   : > { %474 = vmatmul.mubr.msk.bf16.vlgmr.msra.gmra.mrb[0].mxu0 %vm226_vm0, %v497_v4  ;;  %478 = vmatmul.mubr.msk.bf16.vlgmr.msra.gmra.mrb[0].mxu1 %vm226_vm0, %v498_v5 }
  0xe5   : > { %v475_v7 = vpop.f32.mrb[0].mxu0  ;;  %v479_v9 = vpop.f32.mrb[0].mxu1 }
  0xe6   : > { %v282_v8 = vadd.f32 %v475_v7, %v434_v6  ;;  %v273_v10 = vpop.f32.mrb[1].mxu0  ;;  %v298_v11 = vadd.f32 %v479_v9, %v434_v6  ;;  %v289_v13 = vpop.f32.mrb[1].mxu1 }
  0xe7   : > { %v274_v12 = vadd.f32 %v434_v6, %v273_v10  ;;  %v476_v14 = vpop.f32.mrb[2].mxu0  ;;  %v290_v16 = vadd.f32 %v434_v6, %v289_v13  ;;  %v480_v18 = vpop.f32.mrb[2].mxu1 }
  0xe8   : > { %vm306_vm2 = vcmp.gt.f32.partialorder %v282_v8, 0.0  ;;  %v314_v15 = vmul.f32 0.1, %v282_v8  ;;  %v285_v17 = vadd.f32 %v476_v14, %v434_v6  ;;  %v276_v19 = vpop.f32.mrb[3].mxu0  ;;  %vm310_vm3 = vcmp.gt.f32.partialorder %v298_v11, 0.0  ;;  %v292_v24 = vpop.f32.mrb[3].mxu1 }
  0xe9   : > { %v318_v20 = vmul.f32 0.1, %v298_v11  ;;  %vm304_vm4 = vcmp.gt.f32.partialorder %v274_v12, 0.0  ;;  %v312_v21 = vmul.f32 0.1, %v274_v12  ;;  %vm308_vm5 = vcmp.gt.f32.partialorder %v290_v16, 0.0 }
  0xea   : > { %v322_v22 = vsel %vm306_vm2, %v282_v8, %v314_v15  ;;  %v316_v23 = vmul.f32 0.1, %v290_v16  ;;  %vm307_vm6 = vcmp.gt.f32.partialorder %v285_v17, 0.0  ;;  %v315_v28 = vmul.f32 0.1, %v285_v17 }
  0xeb   : > { %v457_v25 = vpack.c.bf16 %v322_v22, %v322_v22  ;;  %v326_v26 = vsel %vm310_vm3, %v298_v11, %v318_v20  ;;  %v320_v27 = vsel %vm304_vm4, %v274_v12, %v312_v21  ;;  %v301_v32 = vadd.f32 %v480_v18, %v434_v6 }
  0xec   : > { %v461_v29 = vpack.c.bf16 %v326_v26, %v326_v26  ;;  %v455_v30 = vpack.c.bf16 %v320_v27, %v320_v27  ;;  %v324_v31 = vsel %vm308_vm5, %v290_v16, %v316_v23  ;;  %v323_v34 = vsel %vm307_vm6, %v285_v17, %v315_v28 }
  0xed   : > { %363 = vst.msk [vmem:[%s557_s27 + $0x8] sm:$0xf] %vm360_vm1, %v457_v25  ;;  %v459_v33 = vpack.c.bf16 %v324_v31, %v324_v31  ;;  %v277_v35 = vadd.f32 %v434_v6, %v276_v19  ;;  %v293_v36 = vadd.f32 %v434_v6, %v292_v24  ;;  %v458_v37 = vpack.c.bf16 %v323_v34, %v323_v34 }
  0xee   : > { %367 = vst.msk [vmem:[%s557_s27 + $0x18] sm:$0xf] %vm360_vm1, %v461_v29  ;;  %361 = vst.msk [vmem:[%s557_s27] sm:$0xf] %vm360_vm1, %v455_v30  ;;  %vm311_vm7 = vcmp.gt.f32.partialorder %v301_v32, 0.0 }
  0xef   : > { %v319_v38 = vmul.f32 0.1, %v301_v32  ;;  %365 = vst.msk [vmem:[%s557_s27 + $0x10] sm:$0xf] %vm360_vm1, %v459_v33  ;;  %vm305_vm8 = vcmp.gt.f32.partialorder %v277_v35, 0.0  ;;  %vm309_vm9 = vcmp.gt.f32.partialorder %v293_v36, 0.0 }
  0xf0   : > { %v313_v39 = vmul.f32 0.1, %v277_v35  ;;  %v317_v40 = vmul.f32 0.1, %v293_v36  ;;  %364 = vst.msk [vmem:[%s557_s27 + $0xc] sm:$0xf] %vm360_vm1, %v458_v37 }
  0xf1   : > { %v327_v41 = vsel %vm311_vm7, %v301_v32, %v319_v38 }
  0xf2   : > { %v462_v42 = vpack.c.bf16 %v327_v41, %v327_v41  ;;  %v321_v43 = vsel %vm305_vm8, %v277_v35, %v313_v39  ;;  %v325_v44 = vsel %vm309_vm9, %v293_v36, %v317_v40 }
  0xf3   : > { %v456_v45 = vpack.c.bf16 %v321_v43, %v321_v43  ;;  %v460_v46 = vpack.c.bf16 %v325_v44, %v325_v44 }
  0xf4   : > { %368 = vst.msk [vmem:[%s557_s27 + $0x1c] sm:$0xf] %vm360_vm1, %v462_v42 }
  0xf5   : > { %362 = vst.msk [vmem:[%s557_s27 + $0x4] sm:$0xf] %vm360_vm1, %v456_v45  ;;  %366 = vst.msk [vmem:[%s557_s27 + $0x14] sm:$0xf] %vm360_vm1, %v460_v46 }
  0xf6 PF: > { %s13_s12 = sadd.s32 1, %s505_s12  }
  0xf7   : > { %p10_p4 = scmp.ge.s32.totalorder %s13_s12, 4  }
  0xf9   :  { %12 = sbr.rel (!%p10_p4) target bundleno = 1 (0x1), region = 62 }

// kernel: yolov1_forward.23
= control target key start
LH: loop header
LB: loop body
LE: loop exit
PB: predicated region body
PF: predicated region fallthrough
CT: control target
= control target key end

     0   :  { %s2755_s0 = inlined_call_operand.vmem [shape: bf16[128,16], index: 0, kind: input, shape index: {}]   ;;  %s2756_s1 = inlined_call_operand.vmem [shape: bf16[128,16], index: 1, kind: input, shape index: {}]   ;;  %s2757_s2 = inlined_call_operand.vmem [shape: bf16[128,16], index: 2, kind: input, shape index: {}]   ;;  %s2758_s3 = inlined_call_operand.vmem [shape: bf16[128,16], index: 3, kind: input, shape index: {}]   ;;  %s2759_s4 = inlined_call_operand.vmem [shape: bf16[128,16], index: 4, kind: input, shape index: {}]   ;;  %s2760_s5 = inlined_call_operand.vmem [shape: bf16[128,16], index: 5, kind: input, shape index: {}]   ;;  %s2761_s6 = inlined_call_operand.vmem [shape: bf16[128,16], index: 6, kind: input, shape index: {}]   ;;  %s2762_s7 = inlined_call_operand.vmem [shape: bf16[128,16], index: 7, kind: input, shape index: {}]   ;;  %s2763_s8 = inlined_call_operand.vmem [shape: bf16[128,16], index: 8, kind: input, shape index: {}]   ;;  %s2764_s9 = inlined_call_operand.vmem [shape: bf16[16,32], index: 9, kind: input, shape index: {}]   ;;  %s2765_s10 = inlined_call_operand.vmem [shape: bf16[16,32], index: 10, kind: input, shape index: {}]   ;;  %s2766_s11 = inlined_call_operand.vmem [shape: bf16[16,32], index: 11, kind: input, shape index: {}]   ;;  %s2767_s12 = inlined_call_operand.vmem [shape: bf16[16,32], index: 12, kind: input, shape index: {}]   ;;  %s2768_s13 = inlined_call_operand.vmem [shape: bf16[16,32], index: 13, kind: input, shape index: {}]   ;;  %s2769_s14 = inlined_call_operand.vmem [shape: bf16[16,32], index: 14, kind: input, shape index: {}]   ;;  %s2770_s15 = inlined_call_operand.vmem [shape: bf16[16,32], index: 15, kind: input, shape index: {}]   ;;  %s2771_s16 = inlined_call_operand.vmem [shape: bf16[16,32], index: 16, kind: input, shape index: {}]   ;;  %s2772_s17 = inlined_call_operand.vmem [shape: bf16[16,32], index: 17, kind: input, shape index: {}]   ;;  %s2773_s18 = inlined_call_operand.vmem [shape: f32[1,32], index: 18, kind: input, shape index: {}]   ;;  %s2774_s19 = inlined_call_operand.vmem [shape: bf16[128,32], index: 19, kind: output, shape index: {}]  }
   0x1   :  { %2775 = sst [smem:[#allocation2_spill]] %s2755_s0  ;;  %s2576_s0 = smov 0  }
   0x2   :  { %2776 = sst [smem:[#allocation3_spill]] %s2756_s1 }
   0x3   :  { %2777 = sst [smem:[#allocation4_spill]] %s2757_s2 }
   0x4   :  { %2778 = sst [smem:[#allocation5_spill]] %s2758_s3 }
   0x5 LB: > { %s2089_s30 = sadd.s32 4294967295, %s2474_s0   ;;  %p2093_p0 = scmp.ge.s32.totalorder %s2474_s0, 1  ;;  %s2474_s0 = sphi %s2576_s0, %s29_s0  }
   0x6   : > { %p626_p1 = scmp.lt.s32.totalorder %s2474_s0, 3 }
   0x8   : > { %p627_p2 = pnand %p2093_p0, %p626_p1 }
   0x9   : > { %v2423_v0 = vld [vmem:[%s2765_s10] sm:$0xff] (!%p627_p2)   ;;  %s2094_s1 = sshll.u32 (!%p627_p2), %s2089_s30, 3  ;;  %s2779_s29 = sld [smem:[#allocation3_spill]] (!%p627_p2)  ;;  %vm829_vm0 = vcmask (!%p627_p2), 130048   ;;  %vm1928_vm3 = vcmask (!%p627_p2), 257024  }
   0xa   : > { %630 = sbr.rel (%p627_p2) target bundleno = 316 (0x13c), region = 96  ;;  %v2590_v1 = vld [vmem:[%s2768_s13] sm:$0xff] (!%p627_p2)   ;;  %p723_p3 = scmp.lt.s32.totalorder (!%p627_p2), %s2094_s1, 15  ;;  %2259 = vmatprep.subr.bf16.mxu1 (!%p627_p2), %v2423_v0 }
   0xb   : > { %v2426_v2 = vld [vmem:[%s2764_s9] sm:$0xff] (!%p627_p2)   ;;  %2299 = vmatprep.subr.bf16.mxu0 (!%p627_p2), %v2590_v1  ;;  %2260 = vmatpush3.bf16.msra.mxu1 (!%p627_p2), %v2423_v0  ;;  %s2780_s20 = sld [smem:[#allocation2_spill]] (!%p627_p2)  ;;  %s2781_s28 = sld [smem:[#allocation4_spill]] (!%p627_p2) }
   0xc   : > { %v2428_v3 = vld [vmem:[%s2769_s14] sm:$0xff] (!%p627_p2)   ;;  %2300 = vmatpush3.bf16.msra.mxu0 (!%p627_p2), %v2590_v1  ;;  %2269 = vmatprep.subr.bf16.mxu1 (!%p627_p2), %v2426_v2 }
   0xd   : > { %2309 = vmatprep.subr.bf16.mxu0 (!%p627_p2), %v2428_v3  ;;  %v2434_v6 = vld [vmem:[%s2770_s15] sm:$0xff] (!%p627_p2)  }
   0xe   : > { %v2437_v7 = vld [vmem:[%s2766_s11] sm:$0xff] (!%p627_p2)  }
   0xf   : > { %v2444_v16 = vld [vmem:[%s2771_s16] sm:$0xff] (!%p627_p2)  }
  0x10   : > { %v2447_v19 = vld [vmem:[%s2767_s12] sm:$0xff] (!%p627_p2)  }
  0x11   : > { %s2784_s1 = smov (!%p723_p3, %s2094_s1), 15  ;;  %v2454_v26 = vld [vmem:[%s2772_s17] sm:$0xff]  }
  0x12   : > { %s2600_s26 = sshll.u32 %s2784_s1, 2  ;;  %v2195_v50 = vld [vmem:[%s2773_s18] ss:$0 sm:$0xff] }
  0x13   : > { %s732_s30 = scalar_lea.vmem %s2779_s29, %s2600_s26  ;;  %s2610_s22 = scalar_lea.vmem %s2759_s4, %s2600_s26 }
  0x14   : > { %v2425_v4 = vld [vmem:[%s732_s30] sm:$0xff]   ;;  %v2429_v8 = vld [vmem:[%s732_s30 + $0x8] sm:$0xff]   ;;  %s756_s27 = scalar_lea.vmem %s2760_s5, %s2600_s26  ;;  %v2431_v10 = vld [vmem:[%s732_s30 + $0x10] sm:$0xff]   ;;  %s726_s21 = scalar_lea.vmem %s2780_s20, %s2600_s26 }
  0x15   : > { %v2427_v5 = vld [vmem:[%s2610_s22] sm:$0xff]   ;;  %2261 = vmatprep.mubr.msk.bf16.mxu1 %vm829_vm0, %v2425_v4  ;;  %v2430_v9 = vld [vmem:[%s2610_s22 + $0x8] sm:$0xff]   ;;  %v2432_v12 = vld [vmem:[%s732_s30 + $0x18] sm:$0xff]   ;;  %s2640_s23 = scalar_lea.vmem %s2761_s6, %s2600_s26  ;;  %s2649_s29 = scalar_lea.vmem %s2781_s28, %s2600_s26 }
  0x16   : > { %2301 = vmatprep.mubr.msk.bf16.mxu0 %vm829_vm0, %v2427_v5  ;;  %2262 = vmatmul.mubr.msk.bf16.vlgmr.msra.gmra.mrb[0].mxu1 %vm829_vm0, %v2429_v8  ;;  %v2433_v11 = vld [vmem:[%s756_s27] sm:$0xff]   ;;  %v2435_v14 = vld [vmem:[%s756_s27 + $0x8] sm:$0xff]   ;;  %v2439_v15 = vld [vmem:[%s756_s27 + $0x10] sm:$0xff]   ;;  %s2663_s25 = scalar_lea.vmem %s2762_s7, %s2600_s26  ;;  %s2782_s28 = sld [smem:[#allocation5_spill]] }
  0x17   : > { %2270 = vmatpush3.bf16.msra.mxu1 %v2426_v2  ;;  %2302 = vmatmul.mubr.msk.bf16.vlgmr.msra.gmra.mrb[0].mxu0 %vm829_vm0, %v2430_v9  ;;  %v2436_v13 = vld [vmem:[%s726_s21] sm:$0xff]   ;;  %v2438_v17 = vld [vmem:[%s726_s21 + $0x8] sm:$0xff]   ;;  %v2441_v18 = vld [vmem:[%s726_s21 + $0x10] sm:$0xff]   ;;  %s2685_s24 = scalar_lea.vmem %s2763_s8, %s2600_s26  ;;  %s2734_s30 = scalar_lea.vmem %s2774_s19, %s2600_s26 }
  0x18   : > { %2310 = vmatpush3.bf16.msra.mxu0 %v2428_v3  ;;  %2265 = vmatprep.mubr.msk.bf16.mxu1 %vm829_vm0, %v2431_v10  ;;  %v2440_v20 = vld [vmem:[%s756_s27 + $0x18] sm:$0xff]   ;;  %v2443_v21 = vld [vmem:[%s2640_s23] sm:$0xff]   ;;  %v2445_v24 = vld [vmem:[%s2640_s23 + $0x8] sm:$0xff]  }
  0x19   : > { %2319 = vmatprep.subr.bf16.mxu0 %v2434_v6  ;;  %2279 = vmatprep.subr.bf16.mxu1 %v2437_v7  ;;  %v2442_v22 = vld [vmem:[%s726_s21 + $0x18] sm:$0xff]   ;;  %v2446_v23 = vld [vmem:[%s2649_s29] sm:$0xff]   ;;  %v2449_v25 = vld [vmem:[%s2640_s23 + $0x10] sm:$0xff]  }
  0x1a   : > { %2311 = vmatprep.mubr.msk.bf16.mxu0 %vm829_vm0, %v2433_v11  ;;  %v2448_v27 = vld [vmem:[%s2649_s29 + $0x8] sm:$0xff]   ;;  %v2451_v28 = vld [vmem:[%s2649_s29 + $0x10] sm:$0xff]   ;;  %v2450_v29 = vld [vmem:[%s2640_s23 + $0x18] sm:$0xff]  }
  0x1b   : > { %v2453_v30 = vld [vmem:[%s2663_s25] sm:$0xff]   ;;  %v2452_v31 = vld [vmem:[%s2649_s29 + $0x18] sm:$0xff]   ;;  %v2455_v33 = vld [vmem:[%s2663_s25 + $0x8] sm:$0xff]  }
  0x1c   : > { %s2671_s20 = scalar_lea.vmem %s2782_s28, %s2600_s26  ;;  %v2458_v34 = vld [vmem:[%s2663_s25 + $0x10] sm:$0xff]   ;;  %v2459_v37 = vld [vmem:[%s2663_s25 + $0x18] sm:$0xff]   ;;  %v2462_v38 = vld [vmem:[%s2685_s24] sm:$0xff]  }
  0x1d   : > { %v2456_v32 = vld [vmem:[%s2671_s20] sm:$0xff]   ;;  %v2457_v35 = vld [vmem:[%s2671_s20 + $0x8] sm:$0xff]   ;;  %v2460_v36 = vld [vmem:[%s2671_s20 + $0x10] sm:$0xff]  }
  0x1e   : > { %2266 = vmatmul.mubr.msk.bf16.gmra.mrb[4].mxu1 %vm829_vm0, %v2432_v12  ;;  %v2461_v39 = vld [vmem:[%s2671_s20 + $0x18] sm:$0xff]   ;;  %v2464_v40 = vld [vmem:[%s2610_s22 + $0x10] sm:$0xff]   ;;  %v2463_v41 = vld [vmem:[%s2685_s24 + $0x8] sm:$0xff]  }
  0x1f   : > { %2271 = vmatprep.mubr.msk.bf16.mxu1 %vm829_vm0, %v2436_v13  ;;  %v2465_v42 = vld [vmem:[%s2685_s24 + $0x10] sm:$0xff]   ;;  %v2466_v43 = vld [vmem:[%s2610_s22 + $0x18] sm:$0xff]  }
  0x20   : > { %v2467_v44 = vld [vmem:[%s2685_s24 + $0x18] sm:$0xff]  }
  0x23   : > { %2312 = vmatmul.mubr.msk.bf16.vlgmr.msra.gmra.mrb[0].mxu0 %vm829_vm0, %v2435_v14 }
  0x24   : > { %2320 = vmatpush3.bf16.msra.mxu0 %v2434_v6  ;;  %2315 = vmatprep.mubr.msk.bf16.mxu0 %vm829_vm0, %v2439_v15 }
  0x25   : > { %2329 = vmatprep.subr.bf16.mxu0 %v2444_v16 }
  0x26   : > { %2272 = vmatmul.mubr.msk.bf16.vlgmr.msra.gmra.mrb[0].mxu1 %vm829_vm0, %v2438_v17 }
  0x27   : > { %2280 = vmatpush3.bf16.msra.mxu1 %v2437_v7  ;;  %2275 = vmatprep.mubr.msk.bf16.mxu1 %vm829_vm0, %v2441_v18 }
  0x28   : > { %2289 = vmatprep.subr.bf16.mxu1 %v2447_v19 }
  0x2b   : > { %2316 = vmatmul.mubr.msk.bf16.gmra.mrb[4].mxu0 %vm829_vm0, %v2440_v20 }
  0x2c   : > { %2321 = vmatprep.mubr.msk.bf16.mxu0 %vm829_vm0, %v2443_v21 }
  0x2e   : > { %2276 = vmatmul.mubr.msk.bf16.gmra.mrb[4].mxu1 %vm829_vm0, %v2442_v22 }
  0x2f   : > { %2281 = vmatprep.mubr.msk.bf16.mxu1 %vm829_vm0, %v2446_v23 }
  0x33   : > { %2322 = vmatmul.mubr.msk.bf16.vlgmr.msra.gmra.mrb[0].mxu0 %vm829_vm0, %v2445_v24 }
  0x34   : > { %2330 = vmatpush3.bf16.msra.mxu0 %v2444_v16  ;;  %2325 = vmatprep.mubr.msk.bf16.mxu0 %vm829_vm0, %v2449_v25 }
  0x35   : > { %2339 = vmatprep.subr.bf16.mxu0 %v2454_v26 }
  0x36   : > { %2282 = vmatmul.mubr.msk.bf16.vlgmr.msra.gmra.mrb[0].mxu1 %vm829_vm0, %v2448_v27 }
  0x37   : > { %2290 = vmatpush3.bf16.msra.mxu1 %v2447_v19  ;;  %2285 = vmatprep.mubr.msk.bf16.mxu1 %vm829_vm0, %v2451_v28 }
  0x38   : > { %2349 = vmatprep.subr.bf16.mxu1 %v2590_v1 }
  0x3b   : > { %2326 = vmatmul.mubr.msk.bf16.gmra.mrb[4].mxu0 %vm829_vm0, %v2450_v29 }
  0x3c   : > { %2331 = vmatprep.mubr.msk.bf16.mxu0 %vm829_vm0, %v2453_v30 }
  0x3e   : > { %2286 = vmatmul.mubr.msk.bf16.gmra.mrb[4].mxu1 %vm829_vm0, %v2452_v31 }
  0x3f   : > { %2291 = vmatprep.mubr.msk.bf16.mxu1 %vm829_vm0, %v2456_v32 }
  0x43   : > { %2332 = vmatmul.mubr.msk.bf16.vlgmr.msra.gmra.mrb[0].mxu0 %vm829_vm0, %v2455_v33 }
  0x44   : > { %2340 = vmatpush3.bf16.msra.mxu0 %v2454_v26  ;;  %2335 = vmatprep.mubr.msk.bf16.mxu0 %vm829_vm0, %v2458_v34 }
  0x46   : > { %2292 = vmatmul.mubr.msk.bf16.vlgmr.msra.gmra.mrb[0].mxu1 %vm829_vm0, %v2457_v35 }
  0x47   : > { %2350 = vmatpush3.bf16.msra.mxu1 %v2590_v1  ;;  %2295 = vmatprep.mubr.msk.bf16.mxu1 %vm829_vm0, %v2460_v36 }
  0x4b   : > { %2336 = vmatmul.mubr.msk.bf16.gmra.mrb[4].mxu0 %vm829_vm0, %v2459_v37 }
  0x4c   : > { %2341 = vmatprep.mubr.msk.bf16.mxu0 %vm829_vm0, %v2462_v38 }
  0x4e   : > { %2296 = vmatmul.mubr.msk.bf16.gmra.mrb[4].mxu1 %vm829_vm0, %v2461_v39 }
  0x4f   : > { %2305 = vmatprep.mubr.msk.bf16.mxu1 %vm829_vm0, %v2464_v40 }
  0x53   : > { %2342 = vmatmul.mubr.msk.bf16.vlgmr.msra.gmra.mrb[0].mxu0 %vm829_vm0, %v2463_v41 }
  0x54   : > { %2345 = vmatprep.mubr.msk.bf16.mxu0 %vm829_vm0, %v2465_v42 }
  0x5a   : > { %2306 = vmatmul.mubr.msk.bf16.vlgmr.msra.gmra.mrb[4].mxu1 %vm829_vm0, %v2466_v43 }
  0x5b   : > { %2346 = vmatmul.mubr.msk.bf16.gmra.mrb[4].mxu0 %vm829_vm0, %v2467_v44 }
 0x119   : > { %v2293_v45 = vpop.f32.mrb[0].mxu1 }
 0x11a   : > { %v1213_v46 = vpop.f32.mrb[1].mxu1 }
 0x11b   : > { %v2294_v47 = vpop.f32.mrb[2].mxu1 }
 0x11c   : > { %v1216_v48 = vpop.f32.mrb[3].mxu1 }
 0x126   : > { %v2343_v49 = vpop.f32.mrb[0].mxu0 }
 0x127   : > { %v2351_v51 = vadd.f32 %v2343_v49, %v2293_v45  ;;  %v1818_v52 = vpop.f32.mrb[1].mxu0 }
 0x128   : > { %v2352_v53 = vadd.f32 %v1818_v52, %v1213_v46  ;;  %v2344_v54 = vpop.f32.mrb[2].mxu0 }
 0x129   : > { %v1866_v55 = vadd.f32 %v2351_v51, %v2195_v50  ;;  %v2353_v56 = vadd.f32 %v2344_v54, %v2294_v47  ;;  %v1821_v57 = vpop.f32.mrb[3].mxu0 }
 0x12a   : > { %v1864_v58 = vadd.f32 %v2352_v53, %v2195_v50  ;;  %v2354_v59 = vadd.f32 %v1821_v57, %v1216_v48 }
 0x12b   : > { %vm1874_vm1 = vcmp.gt.f32.partialorder %v1866_v55, 0.0  ;;  %v1882_v60 = vmul.f32 0.1, %v1866_v55  ;;  %v1867_v61 = vadd.f32 %v2353_v56, %v2195_v50 }
 0x12c   : > { %vm1872_vm2 = vcmp.gt.f32.partialorder %v1864_v58, 0.0  ;;  %v1880_v62 = vmul.f32 0.1, %v1864_v58  ;;  %v1865_v63 = vadd.f32 %v2354_v59, %v2195_v50 }
 0x12d   : > { %v1890_v0 = vsel %vm1874_vm1, %v1866_v55, %v1882_v60  ;;  %vm1875_vm4 = vcmp.gt.f32.partialorder %v1867_v61, 0.0  ;;  %v1883_v1 = vmul.f32 0.1, %v1867_v61  ;;  %v2307_v2 = vpop.f32.mrb[4].mxu1 }
 0x12e   : > { %v2208_v3 = vpack.c.bf16 %v1890_v0, %v1890_v0  ;;  %v1888_v4 = vsel %vm1872_vm2, %v1864_v58, %v1880_v62  ;;  %vm1873_vm5 = vcmp.gt.f32.partialorder %v1865_v63, 0.0  ;;  %v1881_v5 = vmul.f32 0.1, %v1865_v63  ;;  %v2347_v6 = vpop.f32.mrb[4].mxu0  ;;  %v1350_v7 = vpop.f32.mrb[5].mxu1 }
 0x12f   : > { %v2206_v8 = vpack.c.bf16 %v1888_v4, %v1888_v4  ;;  %v1891_v9 = vsel %vm1875_vm4, %v1867_v61, %v1883_v1  ;;  %v2355_v10 = vadd.f32 %v2347_v6, %v2307_v2  ;;  %v1834_v11 = vpop.f32.mrb[5].mxu0  ;;  %v2308_v12 = vpop.f32.mrb[6].mxu1 }
 0x130   : > { %1931 = vst.msk [vmem:[%s2734_s30 + $0x8] sm:$0xf] %vm1928_vm3, %v2208_v3  ;;  %v2209_v13 = vpack.c.bf16 %v1891_v9, %v1891_v9  ;;  %v1889_v14 = vsel %vm1873_vm5, %v1865_v63, %v1881_v5  ;;  %v2356_v15 = vadd.f32 %v1834_v11, %v1350_v7  ;;  %v2348_v16 = vpop.f32.mrb[6].mxu0  ;;  %v1353_v17 = vpop.f32.mrb[7].mxu1 }
 0x131   : > { %1929 = vst.msk [vmem:[%s2734_s30] sm:$0xf] %vm1928_vm3, %v2206_v8  ;;  %v2207_v18 = vpack.c.bf16 %v1889_v14, %v1889_v14  ;;  %v1870_v19 = vadd.f32 %v2355_v10, %v2195_v50  ;;  %v2357_v20 = vadd.f32 %v2348_v16, %v2308_v12  ;;  %v1837_v21 = vpop.f32.mrb[7].mxu0 }
 0x132   : > { %1932 = vst.msk [vmem:[%s2734_s30 + $0xc] sm:$0xf] %vm1928_vm3, %v2209_v13  ;;  %v1868_v22 = vadd.f32 %v2356_v15, %v2195_v50  ;;  %v2358_v23 = vadd.f32 %v1837_v21, %v1353_v17 }
 0x133   : > { %1930 = vst.msk [vmem:[%s2734_s30 + $0x4] sm:$0xf] %vm1928_vm3, %v2207_v18  ;;  %vm1878_vm6 = vcmp.gt.f32.partialorder %v1870_v19, 0.0  ;;  %v1886_v24 = vmul.f32 0.1, %v1870_v19  ;;  %v1871_v25 = vadd.f32 %v2357_v20, %v2195_v50 }
 0x134   : > { %vm1876_vm7 = vcmp.gt.f32.partialorder %v1868_v22, 0.0  ;;  %v1884_v26 = vmul.f32 0.1, %v1868_v22  ;;  %v1869_v27 = vadd.f32 %v2358_v23, %v2195_v50 }
 0x135   : > { %v1894_v28 = vsel %vm1878_vm6, %v1870_v19, %v1886_v24  ;;  %vm1879_vm8 = vcmp.gt.f32.partialorder %v1871_v25, 0.0  ;;  %v1887_v29 = vmul.f32 0.1, %v1871_v25 }
 0x136   : > { %v2212_v30 = vpack.c.bf16 %v1894_v28, %v1894_v28  ;;  %v1892_v31 = vsel %vm1876_vm7, %v1868_v22, %v1884_v26  ;;  %vm1877_vm9 = vcmp.gt.f32.partialorder %v1869_v27, 0.0  ;;  %v1885_v32 = vmul.f32 0.1, %v1869_v27 }
 0x137   : > { %v2210_v33 = vpack.c.bf16 %v1892_v31, %v1892_v31  ;;  %v1895_v34 = vsel %vm1879_vm8, %v1871_v25, %v1887_v29 }
 0x138   : > { %1935 = vst.msk [vmem:[%s2734_s30 + $0x18] sm:$0xf] %vm1928_vm3, %v2212_v30  ;;  %v2213_v35 = vpack.c.bf16 %v1895_v34, %v1895_v34  ;;  %v1893_v36 = vsel %vm1877_vm9, %v1869_v27, %v1885_v32 }
 0x139   : > { %1933 = vst.msk [vmem:[%s2734_s30 + $0x10] sm:$0xf] %vm1928_vm3, %v2210_v33  ;;  %v2211_v37 = vpack.c.bf16 %v1893_v36, %v1893_v36 }
 0x13a   : > { %1936 = vst.msk [vmem:[%s2734_s30 + $0x1c] sm:$0xf] %vm1928_vm3, %v2213_v35 }
 0x13b   : > { %1934 = vst.msk [vmem:[%s2734_s30 + $0x14] sm:$0xf] %vm1928_vm3, %v2211_v37 }
 0x13c PF: > { %s29_s0 = sadd.s32 1, %s2474_s0  }
 0x13d   : > { %p26_p4 = scmp.ge.s32.totalorder %s29_s0, 4  }
 0x13f   :  { %28 = sbr.rel (!%p26_p4) target bundleno = 5 (0x5), region = 150 }

// kernel: yolov1_forward.27
= control target key start
LH: loop header
LB: loop body
LE: loop exit
PB: predicated region body
PF: predicated region fallthrough
CT: control target
= control target key end

     0   :  { %s512_s12 = smov 0   ;;  %s560_s0 = inlined_call_operand.vmem [shape: bf16[128,16], index: 0, kind: input, shape index: {}]   ;;  %s561_s1 = inlined_call_operand.vmem [shape: bf16[16,16], index: 1, kind: input, shape index: {}]   ;;  %s562_s2 = inlined_call_operand.vmem [shape: f32[1,16], index: 2, kind: input, shape index: {}]   ;;  %s563_s3 = inlined_call_operand.vmem [shape: bf16[128,16], index: 3, kind: output, shape index: {}]  }
   0x1 LB: > { %s417_s13 = sadd.s32 4294967295, %s490_s12   ;;  %p421_p0 = scmp.ge.s32.totalorder %s490_s12, 1  ;;  %s490_s12 = sphi %s512_s12, %s13_s12  }
   0x2   : > { %p138_p1 = scmp.lt.s32.totalorder %s490_s12, 3 }
   0x4   : > { %p139_p2 = pnand %p421_p0, %p138_p1 }
   0x5   : > { %v479_v0 = vld [vmem:[%s561_s1] sm:$0xff] (!%p139_p2)   ;;  %s422_s16 = sshll.u32 (!%p139_p2), %s417_s13, 3  ;;  %vm218_vm0 = vcmask (!%p139_p2), 130048   ;;  %vm352_vm1 = vcmask (!%p139_p2), 125952  }
   0x6   : > { %142 = sbr.rel (%p139_p2) target bundleno = 246 (0xf6), region = 32  ;;  %p163_p3 = scmp.lt.s32.totalorder (!%p139_p2), %s422_s16, 15  ;;  %459 = vmatprep.subr.bf16.mxu0 (!%p139_p2), %v479_v0  ;;  %469 = vmatprep.subr.bf16.mxu1 (!%p139_p2), %v479_v0  ;;  %v426_v5 = vld [vmem:[%s562_s2] ss:$0 sm:$0xff] (!%p139_p2) }
   0x7   : > { %460 = vmatpush3.bf16.msra.mxu0 (!%p139_p2), %v479_v0  ;;  %470 = vmatpush3.bf16.msra.mxu1 (!%p139_p2), %v479_v0 }
   0xd   : > { %s565_s16 = smov (!%p163_p3, %s422_s16), 15 }
   0xe   : > { %s423_s17 = sshll.u32 %s565_s16, 2 }
   0xf   : > { %s166_s20 = scalar_lea.vmem %s560_s0, %s423_s17  ;;  %s539_s25 = scalar_lea.vmem %s563_s3, %s423_s17 }
  0x10   : > { %v480_v1 = vld [vmem:[%s166_s20] sm:$0xff]   ;;  %v481_v2 = vld [vmem:[%s166_s20 + $0x10] sm:$0xff]   ;;  %v482_v3 = vld [vmem:[%s166_s20 + $0x8] sm:$0xff]  }
  0x11   : > { %461 = vmatprep.mubr.msk.bf16.mxu0 %vm218_vm0, %v480_v1  ;;  %465 = vmatprep.mubr.msk.bf16.mxu1 %vm218_vm0, %v481_v2  ;;  %v483_v4 = vld [vmem:[%s166_s20 + $0x18] sm:$0xff]  }
  0x12   : > { %462 = vmatmul.mubr.msk.bf16.vlgmr.msra.gmra.mrb[0].mxu0 %vm218_vm0, %v482_v3  ;;  %466 = vmatmul.mubr.msk.bf16.vlgmr.msra.gmra.mrb[0].mxu1 %vm218_vm0, %v483_v4 }
  0xe5   : > { %v463_v6 = vpop.f32.mrb[0].mxu0  ;;  %v467_v8 = vpop.f32.mrb[0].mxu1 }
  0xe6   : > { %v274_v7 = vadd.f32 %v463_v6, %v426_v5  ;;  %v265_v9 = vpop.f32.mrb[1].mxu0  ;;  %v290_v10 = vadd.f32 %v467_v8, %v426_v5  ;;  %v281_v12 = vpop.f32.mrb[1].mxu1 }
  0xe7   : > { %v266_v11 = vadd.f32 %v426_v5, %v265_v9  ;;  %v464_v13 = vpop.f32.mrb[2].mxu0  ;;  %v282_v15 = vadd.f32 %v426_v5, %v281_v12  ;;  %v468_v17 = vpop.f32.mrb[2].mxu1 }
  0xe8   : > { %vm298_vm2 = vcmp.gt.f32.partialorder %v274_v7, 0.0  ;;  %v306_v14 = vmul.f32 0.1, %v274_v7  ;;  %v277_v16 = vadd.f32 %v464_v13, %v426_v5  ;;  %v268_v18 = vpop.f32.mrb[3].mxu0  ;;  %vm302_vm3 = vcmp.gt.f32.partialorder %v290_v10, 0.0  ;;  %v284_v23 = vpop.f32.mrb[3].mxu1 }
  0xe9   : > { %v310_v19 = vmul.f32 0.1, %v290_v10  ;;  %vm296_vm4 = vcmp.gt.f32.partialorder %v266_v11, 0.0  ;;  %v304_v20 = vmul.f32 0.1, %v266_v11  ;;  %vm300_vm5 = vcmp.gt.f32.partialorder %v282_v15, 0.0 }
  0xea   : > { %v314_v21 = vsel %vm298_vm2, %v274_v7, %v306_v14  ;;  %v308_v22 = vmul.f32 0.1, %v282_v15  ;;  %vm299_vm6 = vcmp.gt.f32.partialorder %v277_v16, 0.0  ;;  %v307_v27 = vmul.f32 0.1, %v277_v16 }
  0xeb   : > { %v448_v24 = vpack.c.bf16 %v314_v21, %v314_v21  ;;  %v318_v25 = vsel %vm302_vm3, %v290_v10, %v310_v19  ;;  %v312_v26 = vsel %vm296_vm4, %v266_v11, %v304_v20  ;;  %v293_v31 = vadd.f32 %v468_v17, %v426_v5 }
  0xec   : > { %v452_v28 = vpack.c.bf16 %v318_v25, %v318_v25  ;;  %v446_v29 = vpack.c.bf16 %v312_v26, %v312_v26  ;;  %v316_v30 = vsel %vm300_vm5, %v282_v15, %v308_v22  ;;  %v315_v33 = vsel %vm299_vm6, %v277_v16, %v307_v27 }
  0xed   : > { %355 = vst.msk [vmem:[%s539_s25 + $0x8] sm:$0xf] %vm352_vm1, %v448_v24  ;;  %v450_v32 = vpack.c.bf16 %v316_v30, %v316_v30  ;;  %v269_v34 = vadd.f32 %v426_v5, %v268_v18  ;;  %v285_v35 = vadd.f32 %v426_v5, %v284_v23  ;;  %v449_v36 = vpack.c.bf16 %v315_v33, %v315_v33 }
  0xee   : > { %359 = vst.msk [vmem:[%s539_s25 + $0x18] sm:$0xf] %vm352_vm1, %v452_v28  ;;  %353 = vst.msk [vmem:[%s539_s25] sm:$0xf] %vm352_vm1, %v446_v29  ;;  %vm303_vm7 = vcmp.gt.f32.partialorder %v293_v31, 0.0 }
  0xef   : > { %v311_v37 = vmul.f32 0.1, %v293_v31  ;;  %357 = vst.msk [vmem:[%s539_s25 + $0x10] sm:$0xf] %vm352_vm1, %v450_v32  ;;  %vm297_vm8 = vcmp.gt.f32.partialorder %v269_v34, 0.0  ;;  %vm301_vm9 = vcmp.gt.f32.partialorder %v285_v35, 0.0 }
  0xf0   : > { %v305_v38 = vmul.f32 0.1, %v269_v34  ;;  %v309_v39 = vmul.f32 0.1, %v285_v35  ;;  %356 = vst.msk [vmem:[%s539_s25 + $0xc] sm:$0xf] %vm352_vm1, %v449_v36 }
  0xf1   : > { %v319_v40 = vsel %vm303_vm7, %v293_v31, %v311_v37 }
  0xf2   : > { %v453_v41 = vpack.c.bf16 %v319_v40, %v319_v40  ;;  %v313_v42 = vsel %vm297_vm8, %v269_v34, %v305_v38  ;;  %v317_v43 = vsel %vm301_vm9, %v285_v35, %v309_v39 }
  0xf3   : > { %v447_v44 = vpack.c.bf16 %v313_v42, %v313_v42  ;;  %v451_v45 = vpack.c.bf16 %v317_v43, %v317_v43 }
  0xf4   : > { %360 = vst.msk [vmem:[%s539_s25 + $0x1c] sm:$0xf] %vm352_vm1, %v453_v41 }
  0xf5   : > { %354 = vst.msk [vmem:[%s539_s25 + $0x4] sm:$0xf] %vm352_vm1, %v447_v44  ;;  %358 = vst.msk [vmem:[%s539_s25 + $0x14] sm:$0xf] %vm352_vm1, %v451_v45 }
  0xf6 PF: > { %s13_s12 = sadd.s32 1, %s490_s12  }
  0xf7   : > { %p10_p4 = scmp.ge.s32.totalorder %s13_s12, 4  }
  0xf9   :  { %12 = sbr.rel (!%p10_p4) target bundleno = 1 (0x1), region = 62 }

// kernel: yolov1_forward.30
= control target key start
LH: loop header
LB: loop body
LE: loop exit
PB: predicated region body
PF: predicated region fallthrough
CT: control target
= control target key end

     0   :  { %s1284_s30 = smov 0   ;;  %s1366_s0 = inlined_call_operand.vmem [shape: bf16[128,16], index: 0, kind: input, shape index: {}]   ;;  %s1367_s1 = inlined_call_operand.vmem [shape: bf16[128,16], index: 1, kind: input, shape index: {}]   ;;  %s1368_s2 = inlined_call_operand.vmem [shape: bf16[128,16], index: 2, kind: input, shape index: {}]   ;;  %s1369_s3 = inlined_call_operand.vmem [shape: bf16[128,16], index: 3, kind: input, shape index: {}]   ;;  %s1370_s4 = inlined_call_operand.vmem [shape: bf16[16,16], index: 4, kind: input, shape index: {}]   ;;  %s1371_s5 = inlined_call_operand.vmem [shape: bf16[16,16], index: 5, kind: input, shape index: {}]   ;;  %s1372_s6 = inlined_call_operand.vmem [shape: bf16[16,16], index: 6, kind: input, shape index: {}]   ;;  %s1373_s7 = inlined_call_operand.vmem [shape: bf16[16,16], index: 7, kind: input, shape index: {}]   ;;  %s1374_s8 = inlined_call_operand.vmem [shape: f32[1,16], index: 8, kind: input, shape index: {}]   ;;  %s1375_s9 = inlined_call_operand.vmem [shape: bf16[128,16], index: 9, kind: output, shape index: {}]  }
   0x1 LB: > { %s1044_s10 = sadd.s32 4294967295, %s1232_s30   ;;  %p1048_p0 = scmp.ge.s32.totalorder %s1232_s30, 1  ;;  %s1232_s30 = sphi %s1284_s30, %s19_s30  }
   0x2   : > { %p321_p1 = scmp.lt.s32.totalorder %s1232_s30, 3 }
   0x4   : > { %p322_p2 = pnand %p1048_p0, %p321_p1 }
   0x5   : > { %v1206_v0 = vld [vmem:[%s1371_s5] sm:$0xff] (!%p322_p2)   ;;  %s1049_s13 = sshll.u32 (!%p322_p2), %s1044_s10, 3  ;;  %vm449_vm0 = vcmask (!%p322_p2), 130048   ;;  %vm943_vm3 = vcmask (!%p322_p2), 125952  }
   0x6   : > { %325 = sbr.rel (%p322_p2) target bundleno = 268 (0x10c), region = 56  ;;  %v1207_v1 = vld [vmem:[%s1372_s6] sm:$0xff] (!%p322_p2)   ;;  %p373_p3 = scmp.lt.s32.totalorder (!%p322_p2), %s1049_s13, 15  ;;  %1134 = vmatprep.subr.bf16.mxu1 (!%p322_p2), %v1206_v0 }
   0x7   : > { %v1209_v2 = vld [vmem:[%s1370_s4] sm:$0xff] (!%p322_p2)   ;;  %1154 = vmatprep.subr.bf16.mxu0 (!%p322_p2), %v1207_v1  ;;  %1135 = vmatpush3.bf16.msra.mxu1 (!%p322_p2), %v1206_v0 }
   0x8   : > { %v1211_v3 = vld [vmem:[%s1373_s7] sm:$0xff] (!%p322_p2)   ;;  %1155 = vmatpush3.bf16.msra.mxu0 (!%p322_p2), %v1207_v1  ;;  %1144 = vmatprep.subr.bf16.mxu1 (!%p322_p2), %v1209_v2 }
   0x9   : > { %1164 = vmatprep.subr.bf16.mxu0 (!%p322_p2), %v1211_v3  ;;  %v1095_v22 = vld [vmem:[%s1374_s8] ss:$0 sm:$0xff] (!%p322_p2) }
   0xd   : > { %s1377_s13 = smov (!%p373_p3, %s1049_s13), 15 }
   0xe   : > { %s1304_s20 = sshll.u32 %s1377_s13, 2 }
   0xf   : > { %s382_s23 = scalar_lea.vmem %s1367_s1, %s1304_s20  ;;  %s388_s26 = scalar_lea.vmem %s1368_s2, %s1304_s20 }
  0x10   : > { %v1208_v4 = vld [vmem:[%s382_s23] sm:$0xff]   ;;  %v1212_v6 = vld [vmem:[%s382_s23 + $0x8] sm:$0xff]   ;;  %v1214_v8 = vld [vmem:[%s382_s23 + $0x10] sm:$0xff]   ;;  %s376_s29 = scalar_lea.vmem %s1366_s0, %s1304_s20  ;;  %s394_s12 = scalar_lea.vmem %s1369_s3, %s1304_s20 }
  0x11   : > { %v1210_v5 = vld [vmem:[%s388_s26] sm:$0xff]   ;;  %1136 = vmatprep.mubr.msk.bf16.mxu1 %vm449_vm0, %v1208_v4  ;;  %v1213_v7 = vld [vmem:[%s388_s26 + $0x8] sm:$0xff]   ;;  %v1215_v9 = vld [vmem:[%s388_s26 + $0x10] sm:$0xff]   ;;  %s1345_s17 = scalar_lea.vmem %s1375_s9, %s1304_s20 }
  0x12   : > { %1156 = vmatprep.mubr.msk.bf16.mxu0 %vm449_vm0, %v1210_v5  ;;  %1137 = vmatmul.mubr.msk.bf16.vlgmr.msra.gmra.mrb[0].mxu1 %vm449_vm0, %v1212_v6  ;;  %v1216_v10 = vld [vmem:[%s382_s23 + $0x18] sm:$0xff]   ;;  %v1218_v12 = vld [vmem:[%s376_s29] sm:$0xff]   ;;  %v1220_v14 = vld [vmem:[%s376_s29 + $0x8] sm:$0xff]  }
  0x13   : > { %1145 = vmatpush3.bf16.msra.mxu1 %v1209_v2  ;;  %1157 = vmatmul.mubr.msk.bf16.vlgmr.msra.gmra.mrb[0].mxu0 %vm449_vm0, %v1213_v7  ;;  %v1217_v11 = vld [vmem:[%s388_s26 + $0x18] sm:$0xff]   ;;  %v1219_v13 = vld [vmem:[%s394_s12] sm:$0xff]   ;;  %v1221_v15 = vld [vmem:[%s394_s12 + $0x8] sm:$0xff]  }
  0x14   : > { %1165 = vmatpush3.bf16.msra.mxu0 %v1211_v3  ;;  %1140 = vmatprep.mubr.msk.bf16.mxu1 %vm449_vm0, %v1214_v8  ;;  %v1222_v16 = vld [vmem:[%s376_s29 + $0x10] sm:$0xff]   ;;  %v1224_v18 = vld [vmem:[%s376_s29 + $0x18] sm:$0xff]  }
  0x15   : > { %1160 = vmatprep.mubr.msk.bf16.mxu0 %vm449_vm0, %v1215_v9  ;;  %v1223_v17 = vld [vmem:[%s394_s12 + $0x10] sm:$0xff]   ;;  %v1225_v19 = vld [vmem:[%s394_s12 + $0x18] sm:$0xff]  }
  0x1a   : > { %1141 = vmatmul.mubr.msk.bf16.gmra.mrb[4].mxu1 %vm449_vm0, %v1216_v10 }
  0x1b   : > { %1161 = vmatmul.mubr.msk.bf16.gmra.mrb[4].mxu0 %vm449_vm0, %v1217_v11  ;;  %1146 = vmatprep.mubr.msk.bf16.mxu1 %vm449_vm0, %v1218_v12 }
  0x1c   : > { %1166 = vmatprep.mubr.msk.bf16.mxu0 %vm449_vm0, %v1219_v13 }
  0x22   : > { %1147 = vmatmul.mubr.msk.bf16.vlgmr.msra.gmra.mrb[0].mxu1 %vm449_vm0, %v1220_v14 }
  0x23   : > { %1167 = vmatmul.mubr.msk.bf16.vlgmr.msra.gmra.mrb[0].mxu0 %vm449_vm0, %v1221_v15  ;;  %1150 = vmatprep.mubr.msk.bf16.mxu1 %vm449_vm0, %v1222_v16 }
  0x24   : > { %1170 = vmatprep.mubr.msk.bf16.mxu0 %vm449_vm0, %v1223_v17 }
  0x2a   : > { %1151 = vmatmul.mubr.msk.bf16.gmra.mrb[4].mxu1 %vm449_vm0, %v1224_v18 }
  0x2b   : > { %1171 = vmatmul.mubr.msk.bf16.gmra.mrb[4].mxu0 %vm449_vm0, %v1225_v19 }
  0xf5   : > { %v1148_v20 = vpop.f32.mrb[0].mxu1 }
  0xf6   : > { %v1168_v21 = vpop.f32.mrb[0].mxu0  ;;  %v599_v23 = vpop.f32.mrb[1].mxu1 }
  0xf7   : > { %v1174_v24 = vadd.f32 %v1168_v21, %v1148_v20  ;;  %v833_v25 = vpop.f32.mrb[1].mxu0  ;;  %v1149_v26 = vpop.f32.mrb[2].mxu1 }
  0xf8   : > { %v1175_v27 = vadd.f32 %v833_v25, %v599_v23  ;;  %v1169_v28 = vpop.f32.mrb[2].mxu0  ;;  %v602_v29 = vpop.f32.mrb[3].mxu1 }
  0xf9   : > { %v881_v30 = vadd.f32 %v1174_v24, %v1095_v22  ;;  %v1176_v31 = vadd.f32 %v1169_v28, %v1149_v26  ;;  %v836_v32 = vpop.f32.mrb[3].mxu0 }
  0xfa   : > { %v879_v33 = vadd.f32 %v1175_v27, %v1095_v22  ;;  %v1177_v34 = vadd.f32 %v836_v32, %v602_v29 }
  0xfb   : > { %vm889_vm1 = vcmp.gt.f32.partialorder %v881_v30, 0.0  ;;  %v897_v35 = vmul.f32 0.1, %v881_v30  ;;  %v882_v36 = vadd.f32 %v1176_v31, %v1095_v22 }
  0xfc   : > { %vm887_vm2 = vcmp.gt.f32.partialorder %v879_v33, 0.0  ;;  %v895_v37 = vmul.f32 0.1, %v879_v33  ;;  %v880_v38 = vadd.f32 %v1177_v34, %v1095_v22 }
  0xfd   : > { %v905_v39 = vsel %vm889_vm1, %v881_v30, %v897_v35  ;;  %vm890_vm4 = vcmp.gt.f32.partialorder %v882_v36, 0.0  ;;  %v898_v40 = vmul.f32 0.1, %v882_v36  ;;  %v1152_v41 = vpop.f32.mrb[4].mxu1 }
  0xfe   : > { %v1108_v42 = vpack.c.bf16 %v905_v39, %v905_v39  ;;  %v903_v43 = vsel %vm887_vm2, %v879_v33, %v895_v37  ;;  %vm888_vm5 = vcmp.gt.f32.partialorder %v880_v38, 0.0  ;;  %v896_v44 = vmul.f32 0.1, %v880_v38  ;;  %v1172_v45 = vpop.f32.mrb[4].mxu0  ;;  %v615_v46 = vpop.f32.mrb[5].mxu1 }
  0xff   : > { %v1106_v47 = vpack.c.bf16 %v903_v43, %v903_v43  ;;  %v906_v48 = vsel %vm890_vm4, %v882_v36, %v898_v40  ;;  %v1178_v49 = vadd.f32 %v1172_v45, %v1152_v41  ;;  %v849_v50 = vpop.f32.mrb[5].mxu0  ;;  %v1153_v51 = vpop.f32.mrb[6].mxu1 }
 0x100   : > { %946 = vst.msk [vmem:[%s1345_s17 + $0x8] sm:$0xf] %vm943_vm3, %v1108_v42  ;;  %v1109_v52 = vpack.c.bf16 %v906_v48, %v906_v48  ;;  %v904_v53 = vsel %vm888_vm5, %v880_v38, %v896_v44  ;;  %v1179_v54 = vadd.f32 %v849_v50, %v615_v46  ;;  %v1173_v55 = vpop.f32.mrb[6].mxu0  ;;  %v618_v56 = vpop.f32.mrb[7].mxu1 }
 0x101   : > { %944 = vst.msk [vmem:[%s1345_s17] sm:$0xf] %vm943_vm3, %v1106_v47  ;;  %v1107_v57 = vpack.c.bf16 %v904_v53, %v904_v53  ;;  %v885_v58 = vadd.f32 %v1178_v49, %v1095_v22  ;;  %v1180_v59 = vadd.f32 %v1173_v55, %v1153_v51  ;;  %v852_v60 = vpop.f32.mrb[7].mxu0 }
 0x102   : > { %947 = vst.msk [vmem:[%s1345_s17 + $0xc] sm:$0xf] %vm943_vm3, %v1109_v52  ;;  %v883_v61 = vadd.f32 %v1179_v54, %v1095_v22  ;;  %v1181_v62 = vadd.f32 %v852_v60, %v618_v56 }
 0x103   : > { %945 = vst.msk [vmem:[%s1345_s17 + $0x4] sm:$0xf] %vm943_vm3, %v1107_v57  ;;  %vm893_vm6 = vcmp.gt.f32.partialorder %v885_v58, 0.0  ;;  %v901_v63 = vmul.f32 0.1, %v885_v58  ;;  %v886_v0 = vadd.f32 %v1180_v59, %v1095_v22 }
 0x104   : > { %vm891_vm7 = vcmp.gt.f32.partialorder %v883_v61, 0.0  ;;  %v899_v1 = vmul.f32 0.1, %v883_v61  ;;  %v884_v2 = vadd.f32 %v1181_v62, %v1095_v22 }
 0x105   : > { %v909_v3 = vsel %vm893_vm6, %v885_v58, %v901_v63  ;;  %vm894_vm8 = vcmp.gt.f32.partialorder %v886_v0, 0.0  ;;  %v902_v4 = vmul.f32 0.1, %v886_v0 }
 0x106   : > { %v1112_v5 = vpack.c.bf16 %v909_v3, %v909_v3  ;;  %v907_v6 = vsel %vm891_vm7, %v883_v61, %v899_v1  ;;  %vm892_vm9 = vcmp.gt.f32.partialorder %v884_v2, 0.0  ;;  %v900_v7 = vmul.f32 0.1, %v884_v2 }
 0x107   : > { %v1110_v8 = vpack.c.bf16 %v907_v6, %v907_v6  ;;  %v910_v9 = vsel %vm894_vm8, %v886_v0, %v902_v4 }
 0x108   : > { %950 = vst.msk [vmem:[%s1345_s17 + $0x18] sm:$0xf] %vm943_vm3, %v1112_v5  ;;  %v1113_v10 = vpack.c.bf16 %v910_v9, %v910_v9  ;;  %v908_v11 = vsel %vm892_vm9, %v884_v2, %v900_v7 }
 0x109   : > { %948 = vst.msk [vmem:[%s1345_s17 + $0x10] sm:$0xf] %vm943_vm3, %v1110_v8  ;;  %v1111_v12 = vpack.c.bf16 %v908_v11, %v908_v11 }
 0x10a   : > { %951 = vst.msk [vmem:[%s1345_s17 + $0x1c] sm:$0xf] %vm943_vm3, %v1113_v10 }
 0x10b   : > { %949 = vst.msk [vmem:[%s1345_s17 + $0x14] sm:$0xf] %vm943_vm3, %v1111_v12 }
 0x10c PF: > { %s19_s30 = sadd.s32 1, %s1232_s30  }
 0x10d   : > { %p16_p4 = scmp.ge.s32.totalorder %s19_s30, 4  }
 0x10f   :  { %18 = sbr.rel (!%p16_p4) target bundleno = 1 (0x1), region = 95 }

// kernel: yolov1_forward.25
= control target key start
LH: loop header
LB: loop body
LE: loop exit
PB: predicated region body
PF: predicated region fallthrough
CT: control target
= control target key end

     0   :  { %s2194_s12 = smov 0   ;;  %s3421_s0 = inlined_call_operand.vmem [shape: bf16[2,20,20,16], index: 0, kind: input, shape index: {}]   ;;  %s3422_s1 = inlined_call_operand.vmem [shape: bf16[2,8,8,16], index: 1, kind: output, shape index: {0}]   ;;  %s3423_s2 = inlined_call_operand.vmem [shape: bf16[2,8,8,16], index: 2, kind: output, shape index: {1}]   ;;  %s3424_s3 = inlined_call_operand.vmem [shape: bf16[2,8,8,16], index: 3, kind: output, shape index: {2}]  }
   0x1 LB: > { %s2011_s13 = sadd.s32 4294967295, %s2172_s12   ;;  %p2015_p0 = scmp.ge.s32.totalorder %s2172_s12, 1  ;;  %s2172_s12 = sphi %s2194_s12, %s14_s12  }
   0x2   : > { %p142_p1 = scmp.lt.s32.totalorder %s2172_s12, 3 }
   0x4   : > { %p143_p2 = pnand %p2015_p0, %p142_p1 }
   0x6   : > { %146 = sbr.rel (%p143_p2) target bundleno = 335 (0x14f), region = 24 }
   0xd   : > { %p176_p3 = scmp.lt.s32.totalorder %s2011_s13, 1  ;;  %vm620_vm0 = vcmask 1046528   ;;  %vm677_vm1 = vcmask 1045504   ;;  %vm734_vm2 = vcmask 1044480   ;;  %vm872_vm3 = vcmask 1045508  }
   0xe   : > { %vm871_vm4 = vcmask 1041408   ;;  %vm914_vm5 = vcmask 125952   ;;  %vm1107_vm7 = vcmask 1043456   ;;  %vm1164_vm8 = vcmask 1042432  }
   0xf   : > { %s3551_s13 = smov (!%p176_p3, %s2011_s13), 1  ;;  %vm2342_vm6 = vmor %vm871_vm4, %vm872_vm3  ;;  %vm1261_vm9 = vcmask 1040384   ;;  %vm1383_vm10 = vcmask 1046532  }
  0x10   : > { %s2157_s14 = smul.u32 240, %s3551_s13  ;;  %s2329_s18 = sshll.u32 %s3551_s13, 5  ;;  %vm2674_vm11 = vmor %vm1164_vm8, %vm1383_vm10 }
  0x11   : > { %s2353_s21 = scalar_lea.vmem %s3422_s1, %s2329_s18  ;;  %s2685_s24 = scalar_lea.vmem %s3423_s2, %s2329_s18 }
  0x12   : > { %s2208_s17 = scalar_lea.vmem %s3421_s0, %s2157_s14  ;;  %s3130_s27 = scalar_lea.vmem %s3424_s3, %s2329_s18 }
  0x13   : > { %v2149_v0 = vld [vmem:[%s2208_s17 + $0x30] sm:$0xff]   ;;  %v211_v2 = vld [vmem:[%s2208_s17 + $0x3c] sm:$0xff]   ;;  %v2150_v3 = vld [vmem:[%s2208_s17 + $0x48] sm:$0xff]  }
  0x14   : > { %v2211_v1 = vunpack.c.l.bf16 %v2149_v0  ;;  %v217_v4 = vld [vmem:[%s2208_s17 + $0x54] sm:$0xff]   ;;  %v205_v6 = vld [vmem:[%s2208_s17 + $0x24] sm:$0xff]   ;;  %v2218_v7 = vunpack.c.h.bf16 %v2149_v0  ;;  %v2220_v8 = vunpack.c.l.bf16 %v2150_v3  ;;  %v2222_v9 = vunpack.c.h.bf16 %v2150_v3  ;;  %v223_v19 = vld [vmem:[%s2208_s17 + $0x6c] sm:$0xff]  }
  0x15   : > { %v2148_v5 = vld [vmem:[%s2208_s17 + $0x18] sm:$0xff]   ;;  %v2224_v10 = vunpack.c.l.bf16 %v211_v2  ;;  %v2151_v11 = vld [vmem:[%s2208_s17 + $0x60] sm:$0xff]   ;;  %v2227_v12 = vunpack.c.h.bf16 %v211_v2  ;;  %v2229_v13 = vunpack.c.l.bf16 %v217_v4  ;;  %v2231_v14 = vunpack.c.h.bf16 %v217_v4  ;;  %v2153_v34 = vld [vmem:[%s2208_s17 + $0x90] sm:$0xff]  }
  0x16   : > { %3472 = vst [vmem:[#allocation2_spill] sm:$0xff] %v2211_v1  ;;  %3473 = vst [vmem:[#allocation3_spill] sm:$0xff] %v2218_v7  ;;  %v2233_v15 = vunpack.c.l.bf16 %v2148_v5  ;;  %v2235_v16 = vunpack.c.h.bf16 %v2148_v5  ;;  %v2237_v17 = vunpack.c.l.bf16 %v205_v6  ;;  %v2152_v20 = vld [vmem:[%s2208_s17 + $0x78] sm:$0xff]   ;;  %v2243_v21 = vunpack.c.h.bf16 %v205_v6  ;;  %v230_v27 = vld [vmem:[%s2208_s17 + $0x84] sm:$0xff]  }
  0x17   : > { %3474 = vst [vmem:[#allocation4_spill] sm:$0xff] %v2220_v8  ;;  %3475 = vst [vmem:[#allocation5_spill] sm:$0xff] %v2222_v9  ;;  %v316_v18 = vmax.f32 %v2211_v1, %v2224_v10  ;;  %v317_v22 = vmax.f32 %v2218_v7, %v2227_v12  ;;  %v319_v23 = vmax.f32 %v2224_v10, %v2220_v8  ;;  %v2251_v25 = vunpack.c.l.bf16 %v2151_v11  ;;  %v2291_v51 = vld [vmem:[%s2208_s17 + $0x9c] sm:$0xff]  }
  0x18   : > { %3476 = vst [vmem:[#allocation6_spill] sm:$0xff] %v2224_v10  ;;  %3477 = vst [vmem:[#allocation7_spill] sm:$0xff] %v2227_v12  ;;  %v320_v24 = vmax.f32 %v2227_v12, %v2222_v9  ;;  %v322_v28 = vmax.f32 %v2220_v8, %v2229_v13  ;;  %v323_v29 = vmax.f32 %v2222_v9, %v2231_v14  ;;  %v2259_v30 = vunpack.c.h.bf16 %v2151_v11 }
  0x19   : > { %3478 = vst [vmem:[#allocation8_spill] sm:$0xff] %v2229_v13  ;;  %3479 = vst [vmem:[#allocation9_spill] sm:$0xff] %v2231_v14  ;;  %v340_v26 = vmax.f32 %v316_v18, %v2220_v8  ;;  %v341_v31 = vmax.f32 %v317_v22, %v2222_v9  ;;  %v343_v32 = vmax.f32 %v319_v23, %v2229_v13  ;;  %v2265_v35 = vunpack.c.h.bf16 %v2152_v20 }
  0x1a   : > { %3480 = vst [vmem:[#allocation10_spill] sm:$0xff] %v2233_v15  ;;  %3481 = vst [vmem:[#allocation11_spill] sm:$0xff] %v2235_v16  ;;  %v344_v33 = vmax.f32 %v320_v24, %v2231_v14  ;;  %v2267_v36 = vunpack.c.l.bf16 %v223_v19  ;;  %v2269_v37 = vunpack.c.h.bf16 %v223_v19  ;;  %v2273_v40 = vunpack.c.l.bf16 %v2152_v20 }
  0x1b   : > { %3482 = vst [vmem:[#allocation12_spill] sm:$0xff] %v2237_v17  ;;  %3483 = vst [vmem:[#allocation13_spill] sm:$0xff] %v2243_v21  ;;  %v364_v38 = vmax.f32 %v340_v26, %v2229_v13  ;;  %v365_v39 = vmax.f32 %v341_v31, %v2231_v14  ;;  %v2275_v41 = vunpack.c.h.bf16 %v230_v27  ;;  %v2279_v44 = vunpack.c.h.bf16 %v2153_v34 }
  0x1c   : > { %3484 = vst [vmem:[#allocation14_spill] sm:$0xff] %v2251_v25  ;;  %3485 = vst [vmem:[#allocation15_spill] sm:$0xff] %v2259_v30  ;;  %v368_v42 = vmax.f32 %v344_v33, %v2259_v30  ;;  %v346_v45 = vmax.f32 %v322_v28, %v2251_v25  ;;  %v347_v46 = vmax.f32 %v323_v29, %v2259_v30  ;;  %v2288_v50 = vunpack.c.l.bf16 %v230_v27 }
  0x1d   : > { %3486 = vst [vmem:[#allocation16_spill] sm:$0xff] %v2275_v41  ;;  %v388_v43 = vmax.f32 %v364_v38, %v2251_v25  ;;  %3487 = vst [vmem:[#allocation17_spill] sm:$0xff] %v2279_v44  ;;  %v389_v47 = vmax.f32 %v365_v39, %v2259_v30  ;;  %v367_v48 = vmax.f32 %v343_v32, %v2251_v25  ;;  %v2293_v54 = vunpack.c.l.bf16 %v2153_v34 }
  0x1e   : > { %v2286_v49 = vmax.f32 %v368_v42, %v2269_v37  ;;  %v325_v55 = vmax.f32 %v2229_v13, %v2251_v25  ;;  %v370_v61 = vmax.f32 %v346_v45, %v2267_v36  ;;  %v371_v62 = vmax.f32 %v347_v46, %v2269_v37 }
  0x1f   : > { %v621_v52 = vrot.slane %v388_v43, 1  ;;  %v678_v53 = vrot.slane %v388_v43, 2  ;;  %v622_v56 = vrot.slane %v389_v47, 1  ;;  %v679_v57 = vrot.slane %v389_v47, 2 }
  0x20   : > { %v735_v58 = vrot.slane %v388_v43, 3  ;;  %v736_v59 = vrot.slane %v389_v47, 3  ;;  %v416_v60 = vmax.f32 %v2286_v49, %v2243_v21  ;;  %v2302_v63 = vunpack.c.h.bf16 %v2291_v51 }
  0x21   : > { %v623_v0 = vsel %vm620_vm0, %v621_v52, %v622_v56  ;;  %v662_v2 = vmax.f32 %v389_v47, %v622_v56  ;;  %v680_v3 = vsel %vm677_vm1, %v678_v53, %v679_v57  ;;  %v391_v4 = vmax.f32 %v367_v48, %v2267_v36 }
  0x22   : > { %v661_v5 = vmax.f32 %v388_v43, %v623_v0  ;;  %v791_v6 = vrot.slane %v389_v47, 4  ;;  %v326_v11 = vmax.f32 %v2231_v14, %v2259_v30  ;;  %v2310_v18 = vmax.f32 %v325_v55, %v2267_v36 }
  0x23   : > { %v719_v19 = vmax.f32 %v662_v2, %v679_v57  ;;  %v737_v20 = vsel %vm734_vm2, %v735_v58, %v736_v59  ;;  %v2314_v22 = vmax.f32 %v416_v60, %v2218_v7  ;;  %v624_v23 = vrot.slane %v391_v4, 1 }
  0x24   : > { %v412_v24 = vmax.f32 %v388_v43, %v2233_v15  ;;  %v718_v26 = vmax.f32 %v661_v5, %v680_v3  ;;  %v625_v27 = vrot.slane %v2286_v49, 1  ;;  %v681_v28 = vrot.slane %v391_v4, 2 }
  0x25   : > { %v413_v29 = vmax.f32 %v389_v47, %v2235_v16  ;;  %v776_v31 = vmax.f32 %v719_v19, %v736_v59  ;;  %v464_v32 = vmax.f32 %v2314_v22, %v2265_v35  ;;  %v682_v33 = vrot.slane %v2286_v49, 2 }
  0x26   : > { %v775_v34 = vmax.f32 %v718_v26, %v737_v20  ;;  %v626_v38 = vsel %vm620_vm0, %v624_v23, %v625_v27  ;;  %v664_v39 = vmax.f32 %v2286_v49, %v625_v27  ;;  %v738_v42 = vrot.slane %v391_v4, 3 }
  0x27   : > { %v808_v43 = vmax.f32 %v776_v31, %v791_v6  ;;  %v415_v45 = vmax.f32 %v391_v4, %v2237_v17  ;;  %v663_v46 = vmax.f32 %v391_v4, %v626_v38  ;;  %v683_v48 = vsel %vm677_vm1, %v681_v28, %v682_v33 }
  0x28   : > { %v807_v47 = vmax.f32 %v775_v34, %v791_v6  ;;  %v721_v52 = vmax.f32 %v664_v39, %v682_v33  ;;  %v739_v53 = vrot.slane %v2286_v49, 3  ;;  %v792_v55 = vrot.slane %v2286_v49, 4 }
  0x29   : > { %v2332_v56 = vmax.f32 %v412_v24, %v2237_v17  ;;  %v2077_v57 = vpack.c.bf16 %v808_v43, %v808_v43  ;;  %v720_v58 = vmax.f32 %v663_v46, %v683_v48  ;;  %v2335_v59 = vmax.f32 %v370_v61, %v2273_v40 }
  0x2a   : > { %v2076_v60 = vpack.c.bf16 %v807_v47, %v807_v47  ;;  %v740_v0 = vsel %vm734_vm2, %v738_v42, %v739_v53  ;;  %v778_v2 = vmax.f32 %v721_v52, %v739_v53  ;;  %v395_v3 = vmax.f32 %v371_v62, %v2265_v35 }
  0x2b   : > { %v437_v4 = vmax.f32 %v413_v29, %v2243_v21  ;;  %v876_v5 = vrot.slane %v2077_v57, 6  ;;  %v2347_v6 = vmax.f32 %v415_v45, %v2211_v1  ;;  %v777_v61 = vmax.f32 %v720_v58, %v740_v0 }
  0x2c   : > { %v2039_v62 = vrot.slane %v2076_v60, 10  ;;  %v810_v19 = vmax.f32 %v778_v2, %v792_v55  ;;  %v627_v20 = vrot.slane %v2335_v59, 1  ;;  %v628_v22 = vrot.slane %v395_v3, 1 }
  0x2d   : > { %v809_v24 = vmax.f32 %v777_v61, %v792_v55  ;;  %v684_v26 = vrot.slane %v2335_v59, 2  ;;  %v350_v27 = vmax.f32 %v326_v11, %v2269_v37  ;;  %v461_v34 = vmax.f32 %v437_v4, %v2269_v37 }
  0x2e   : > { %v877_v28 = vsel %vm2342_vm6, %v2039_v62, %v876_v5  ;;  %v2079_v29 = vpack.c.bf16 %v810_v19, %v810_v19  ;;  %v629_v31 = vsel %vm620_vm0, %v627_v20, %v628_v22  ;;  %v666_v33 = vmax.f32 %v395_v3, %v628_v22 }
  0x2f   : > { %915 = vst.msk [vmem:[%s2353_s21] sm:$0xf] %vm914_vm5, %v877_v28  ;;  %v2078_v39 = vpack.c.bf16 %v809_v24, %v809_v24  ;;  %v665_v42 = vmax.f32 %v2335_v59, %v629_v31  ;;  %v685_v45 = vrot.slane %v395_v3, 2  ;;  %v741_v11 = vrot.slane %v2335_v59, 3 }
  0x30   : > { %v880_v43 = vrot.slane %v2079_v29, 6  ;;  %v742_v46 = vrot.slane %v395_v3, 3  ;;  %v419_v47 = vmax.f32 %v395_v3, %v2218_v7  ;;  %v793_v52 = vrot.slane %v395_v3, 4 }
  0x31   : > { %v2040_v48 = vrot.slane %v2078_v39, 10  ;;  %v373_v53 = vmax.f32 %v2310_v18, %v2273_v40  ;;  %v686_v55 = vsel %vm677_vm1, %v684_v26, %v685_v45  ;;  %v723_v57 = vmax.f32 %v666_v33, %v685_v45 }
  0x32   : > { %v743_v58 = vsel %vm734_vm2, %v741_v11, %v742_v46  ;;  %v374_v60 = vmax.f32 %v350_v27, %v2265_v35  ;;  %v2377_v0 = vmax.f32 %v461_v34, %v2265_v35  ;;  %v722_v4 = vmax.f32 %v665_v42, %v686_v55 }
  0x33   : > { %v881_v2 = vsel %vm2342_vm6, %v2040_v48, %v880_v43  ;;  %v397_v5 = vmax.f32 %v373_v53, %v2288_v50  ;;  %v2383_v3 = vmax.f32 %v464_v32, %v2275_v41  ;;  %v418_v18 = vmax.f32 %v2335_v59, %v2211_v1  ;;  %v225_v1 = vld [vmem:[%s2208_s17 + $0x74] sm:$0x3] }
  0x34   : > { %916 = vst.msk [vmem:[%s2353_s21 + $0x4] sm:$0xf] %vm914_vm5, %v881_v2  ;;  %v780_v61 = vmax.f32 %v723_v57, %v742_v46  ;;  %v398_v62 = vmax.f32 %v374_v60, %v2275_v41  ;;  %v443_v19 = vmax.f32 %v419_v47, %v2227_v12  ;;  %v779_v20 = vmax.f32 %v722_v4, %v743_v58 }
  0x35   : > { %v630_v22 = vrot.slane %v397_v5, 1  ;;  %v687_v24 = vrot.slane %v397_v5, 2  ;;  %v328_v32 = vmax.f32 %v2251_v25, %v2267_v36  ;;  %v744_v31 = vrot.slane %v397_v5, 3 }
  0x36   : > { %v812_v26 = vmax.f32 %v780_v61, %v793_v52  ;;  %v631_v27 = vrot.slane %v398_v62, 1  ;;  %v688_v28 = vrot.slane %v398_v62, 2  ;;  %v811_v29 = vmax.f32 %v779_v20, %v793_v52 }
  0x37   : > { %v745_v33 = vrot.slane %v398_v62, 3  ;;  %v329_v59 = vmax.f32 %v2259_v30, %v2269_v37  ;;  %v422_v39 = vmax.f32 %v398_v62, %v2227_v12  ;;  %v2398_v45 = vmax.f32 %v418_v18, %v2224_v10 }
  0x38   : > { %v2081_v34 = vpack.c.bf16 %v812_v26, %v812_v26  ;;  %v632_v42 = vsel %vm620_vm0, %v630_v22, %v631_v27  ;;  %v668_v43 = vmax.f32 %v398_v62, %v631_v27  ;;  %v2080_v11 = vpack.c.bf16 %v811_v29, %v811_v29 }
  0x39   : > { %v667_v46 = vmax.f32 %v397_v5, %v632_v42  ;;  %v689_v48 = vsel %vm677_vm1, %v687_v24, %v688_v28  ;;  %v467_v47 = vmax.f32 %v443_v19, %v2275_v41  ;;  %v746_v55 = vsel %vm734_vm2, %v744_v31, %v745_v33 }
  0x3a   : > { %v884_v52 = vrot.slane %v2081_v34, 6  ;;  %v725_v53 = vmax.f32 %v668_v43, %v688_v28  ;;  %v2041_v57 = vrot.slane %v2080_v11, 10  ;;  %v794_v60 = vrot.slane %v398_v62, 4 }
  0x3b   : > { %v724_v58 = vmax.f32 %v667_v46, %v689_v48  ;;  %v352_v2 = vmax.f32 %v328_v32, %v2273_v40  ;;  %v421_v4 = vmax.f32 %v397_v5, %v2224_v10  ;;  %v446_v18 = vmax.f32 %v422_v39, %v2222_v9 }
  0x3c   : > { %v782_v61 = vmax.f32 %v725_v53, %v745_v33  ;;  %v353_v20 = vmax.f32 %v329_v59, %v2265_v35  ;;  %v885_v19 = vsel %vm2342_vm6, %v2041_v57, %v884_v52  ;;  %v331_v26 = vmax.f32 %v2267_v36, %v2273_v40 }
  0x3d   : > { %v781_v22 = vmax.f32 %v724_v58, %v746_v55  ;;  %v376_v24 = vmax.f32 %v352_v2, %v2288_v50  ;;  %v2415_v27 = vmax.f32 %v467_v47, %v2279_v44  ;;  %917 = vst.msk [vmem:[%s2353_s21 + $0x8] sm:$0xf] %vm914_vm5, %v885_v19  ;;  %v2421_v29 = vunpack.c.l.bf16 %v2291_v51 }
  0x3e   : > { %v814_v5 = vmax.f32 %v782_v61, %v794_v60  ;;  %v377_v28 = vmax.f32 %v353_v20, %v2275_v41  ;;  %v332_v33 = vmax.f32 %v2269_v37, %v2265_v35  ;;  %v2427_v59 = vmax.f32 %v421_v4, %v2220_v8 }
  0x3f   : > { %v813_v32 = vmax.f32 %v781_v22, %v794_v60  ;;  %v400_v31 = vmax.f32 %v376_v24, %v2293_v54  ;;  %v470_v34 = vmax.f32 %v446_v18, %v2279_v44  ;;  %v355_v48 = vmax.f32 %v331_v26, %v2288_v50  ;;  %v2154_v26 = vld [vmem:[%s2208_s17 + $0xa8] sm:$0xff]  }
  0x40   : > { %v2083_v39 = vpack.c.bf16 %v814_v5, %v814_v5  ;;  %v401_v42 = vmax.f32 %v377_v28, %v2279_v44  ;;  %v334_v53 = vmax.f32 %v2273_v40, %v2288_v50  ;;  %v356_v60 = vmax.f32 %v332_v33, %v2275_v41 }
  0x41   : > { %v2082_v43 = vpack.c.bf16 %v813_v32, %v813_v32  ;;  %v633_v11 = vrot.slane %v400_v31, 1  ;;  %v690_v46 = vrot.slane %v400_v31, 2  ;;  %v747_v57 = vrot.slane %v400_v31, 3 }
  0x42   : > { %v888_v51 = vrot.slane %v2083_v39, 6  ;;  %v634_v47 = vrot.slane %v401_v42, 1  ;;  %v691_v52 = vrot.slane %v401_v42, 2  ;;  %v748_v58 = vrot.slane %v401_v42, 3 }
  0x43   : > { %v2042_v55 = vrot.slane %v2082_v43, 10  ;;  %v335_v61 = vmax.f32 %v2265_v35, %v2275_v41  ;;  %v424_v22 = vmax.f32 %v400_v31, %v2220_v8  ;;  %v795_v32 = vrot.slane %v401_v42, 4  ;;  %v222_v8 = vld [vmem:[%s2208_s17 + $0x68] sm:$0x3] }
  0x44   : > { %v635_v2 = vsel %vm620_vm0, %v633_v11, %v634_v47  ;;  %v670_v4 = vmax.f32 %v401_v42, %v634_v47  ;;  %v692_v18 = vsel %vm677_vm1, %v690_v46, %v691_v52  ;;  %v749_v28 = vsel %vm734_vm2, %v747_v57, %v748_v58 }
  0x45   : > { %v889_v19 = vsel %vm2342_vm6, %v2042_v55, %v888_v51  ;;  %v669_v24 = vmax.f32 %v400_v31, %v635_v2  ;;  %v379_v33 = vmax.f32 %v355_v48, %v2293_v54  ;;  %v2450_v39 = vmax.f32 %v470_v34, %v2302_v63 }
  0x46   : > { %918 = vst.msk [vmem:[%s2353_s21 + $0xc] sm:$0xf] %vm914_vm5, %v889_v19  ;;  %v727_v5 = vmax.f32 %v670_v4, %v691_v52  ;;  %v380_v11 = vmax.f32 %v356_v60, %v2279_v44  ;;  %v358_v46 = vmax.f32 %v334_v53, %v2293_v54  ;;  %v2454_v47 = vunpack.c.l.bf16 %v2154_v26 }
  0x47   : > { %v726_v43 = vmax.f32 %v669_v24, %v692_v18  ;;  %v403_v31 = vmax.f32 %v379_v33, %v2421_v29  ;;  %v359_v52 = vmax.f32 %v335_v61, %v2279_v44  ;;  %v425_v55 = vmax.f32 %v401_v42, %v2222_v9 }
  0x48   : > { %v784_v51 = vmax.f32 %v727_v5, %v748_v58  ;;  %v2460_v48 = vmax.f32 %v380_v11, %v2302_v63  ;;  %v2462_v34 = vunpack.c.h.bf16 %v2154_v26  ;;  %v2465_v2 = vmax.f32 %v424_v22, %v2229_v13 }
  0x49   : > { %v783_v57 = vmax.f32 %v726_v43, %v749_v28  ;;  %v636_v53 = vrot.slane %v403_v31, 1  ;;  %v693_v58 = vrot.slane %v403_v31, 2  ;;  %v382_v61 = vmax.f32 %v358_v46, %v2421_v29 }
  0x4a   : > { %v816_v60 = vmax.f32 %v784_v51, %v795_v32  ;;  %v637_v18 = vrot.slane %v2460_v48, 1  ;;  %v694_v19 = vrot.slane %v2460_v48, 2  ;;  %v750_v24 = vrot.slane %v403_v31, 3 }
  0x4b   : > { %v815_v4 = vmax.f32 %v783_v57, %v795_v32  ;;  %v751_v5 = vrot.slane %v2460_v48, 3  ;;  %v383_v26 = vmax.f32 %v359_v52, %v2302_v63  ;;  %v2473_v28 = vmax.f32 %v425_v55, %v2231_v14 }
  0x4c   : > { %v2085_v42 = vpack.c.bf16 %v816_v60, %v816_v60  ;;  %v638_v33 = vsel %vm620_vm0, %v636_v53, %v637_v18  ;;  %v672_v32 = vmax.f32 %v2460_v48, %v637_v18  ;;  %v427_v11 = vmax.f32 %v403_v31, %v2229_v13 }
  0x4d   : > { %v2084_v22 = vpack.c.bf16 %v815_v4, %v815_v4  ;;  %v671_v46 = vmax.f32 %v403_v31, %v638_v33  ;;  %v695_v51 = vsel %vm677_vm1, %v693_v58, %v694_v19  ;;  %v752_v52 = vsel %vm734_vm2, %v750_v24, %v751_v5  ;;  %v241_v24 = vld [vmem:[%s2208_s17 + $0xb4] sm:$0xff]  }
  0x4e   : > { %v892_v43 = vrot.slane %v2085_v42, 6  ;;  %v729_v60 = vmax.f32 %v672_v32, %v694_v19  ;;  %v796_v55 = vrot.slane %v2460_v48, 4  ;;  %v406_v18 = vmax.f32 %v382_v61, %v2454_v47 }
  0x4f   : > { %v2043_v57 = vrot.slane %v2084_v22, 10  ;;  %v728_v53 = vmax.f32 %v671_v46, %v695_v51  ;;  %v407_v42 = vmax.f32 %v383_v26, %v2462_v34  ;;  %v428_v58 = vmax.f32 %v2460_v48, %v2231_v14  ;;  %v2155_v14 = vld [vmem:[%s2208_s17 + $0xc0] sm:$0xff]  }
  0x50   : > { %v786_v19 = vmax.f32 %v729_v60, %v751_v5  ;;  %v2495_v22 = vmax.f32 %v427_v11, %v2251_v25  ;;  %v639_v26 = vrot.slane %v406_v18, 1  ;;  %v696_v51 = vrot.slane %v406_v18, 2 }
  0x51   : > { %v893_v31 = vsel %vm2342_vm6, %v2043_v57, %v892_v43  ;;  %v785_v33 = vmax.f32 %v728_v53, %v752_v52  ;;  %v431_v61 = vmax.f32 %v407_v42, %v2259_v30  ;;  %v640_v46 = vrot.slane %v407_v42, 1 }
  0x52   : > { %919 = vst.msk [vmem:[%s2353_s21 + $0x10] sm:$0xf] %vm914_vm5, %v893_v31  ;;  %v818_v32 = vmax.f32 %v786_v19, %v796_v55  ;;  %v697_v20 = vrot.slane %v407_v42, 2  ;;  %v753_v48 = vrot.slane %v406_v18, 3  ;;  %v2499_v5 = vunpack.c.l.bf16 %v241_v24 }
  0x53   : > { %v817_v43 = vmax.f32 %v785_v33, %v796_v55  ;;  %v455_v57 = vmax.f32 %v431_v61, %v2269_v37  ;;  %v641_v31 = vsel %vm620_vm0, %v639_v26, %v640_v46  ;;  %v674_v11 = vmax.f32 %v407_v42, %v640_v46 }
  0x54   : > { %v2087_v60 = vpack.c.bf16 %v818_v32, %v818_v32  ;;  %v698_v52 = vsel %vm677_vm1, %v696_v51, %v697_v20  ;;  %v673_v4 = vmax.f32 %v406_v18, %v641_v31  ;;  %v754_v19 = vrot.slane %v407_v42, 3 }
  0x55   : > { %v2086_v53 = vpack.c.bf16 %v817_v43, %v817_v43  ;;  %v797_v62 = vrot.slane %v407_v42, 4  ;;  %v731_v23 = vmax.f32 %v674_v11, %v697_v20  ;;  %v337_v55 = vmax.f32 %v2288_v50, %v2293_v54  ;;  %v248_v20 = vld [vmem:[%s2208_s17 + $0xd0] sm:$0xf] }
  0x56   : > { %v896_v38 = vrot.slane %v2087_v60, 6  ;;  %v338_v33 = vmax.f32 %v2275_v41, %v2279_v44  ;;  %v730_v26 = vmax.f32 %v673_v4, %v698_v52  ;;  %v755_v32 = vsel %vm734_vm2, %v753_v48, %v754_v19 }
  0x57   : > { %v2044_v61 = vrot.slane %v2086_v53, 10  ;;  %v2509_v46 = vunpack.c.h.bf16 %v241_v24  ;;  %v430_v42 = vmax.f32 %v406_v18, %v2251_v25  ;;  %v788_v51 = vmax.f32 %v731_v23, %v754_v19  ;;  %v2527_v53 = vld [vmem:[%s2208_s17 + $0x8] sm:$0x3]  ;;  %v210_v19 = vld [vmem:[%s2208_s17 + $0x38] sm:$0x3] }
  0x58   : > { %v361_v43 = vmax.f32 %v337_v55, %v2421_v29  ;;  %v362_v60 = vmax.f32 %v338_v33, %v2302_v63  ;;  %v787_v11 = vmax.f32 %v730_v26, %v755_v32  ;;  %v2517_v4 = vunpack.c.l.bf16 %v2155_v14  ;;  %3490 = vst [vmem:[#allocation18_spill] sm:$0xff] %v2527_v53  ;;  %v219_v25 = vld [vmem:[%s2208_s17 + $0x5c] sm:$0x3] }
  0x59   : > { %v897_v31 = vsel %vm2342_vm6, %v2044_v61, %v896_v38  ;;  %v479_v48 = vmax.f32 %v455_v57, %v2509_v46  ;;  %v820_v24 = vmax.f32 %v788_v51, %v797_v62  ;;  %v2522_v52 = vunpack.c.h.bf16 %v2155_v14  ;;  %v213_v14 = vld [vmem:[%s2208_s17 + $0x44] sm:$0x3] }
  0x5a   : > { %920 = vst.msk [vmem:[%s2353_s21 + $0x14] sm:$0xf] %vm914_vm5, %v897_v31  ;;  %v385_v23 = vmax.f32 %v361_v43, %v2454_v47  ;;  %v386_v18 = vmax.f32 %v362_v60, %v2462_v34  ;;  %v2531_v38 = vmax.f32 %v428_v58, %v2259_v30  ;;  %v819_v57 = vmax.f32 %v787_v11, %v797_v62  ;;  %v204_v60 = vld [vmem:[%s2208_s17 + $0x20] sm:$0x3] }
  0x5b   : > { %v2535_v33 = vunpack.c.l.bf16 %v248_v20  ;;  %v2539_v61 = vmax.f32 %v430_v42, %v2267_v36  ;;  %v2089_v26 = vpack.c.bf16 %v820_v24, %v820_v24  ;;  %v2546_v43 = vmax.f32 %v479_v48, %v2522_v52  ;;  %v207_v24 = vld [vmem:[%s2208_s17 + $0x2c] sm:$0x3] }
  0x5c   : > { %v2542_v32 = vmax.f32 %v385_v23, %v2499_v5  ;;  %v410_v51 = vmax.f32 %v386_v18, %v2509_v46  ;;  %v2088_v58 = vpack.c.bf16 %v819_v57, %v819_v57  ;;  %v2550_v20 = vunpack.c.l.bf16 %v210_v19  ;;  %v216_v23 = vld [vmem:[%s2208_s17 + $0x50] sm:$0x3] }
  0x5d   : > { %3491 = vst [vmem:[#allocation19_spill] sm:$0xff] %v2535_v33  ;;  %3492 = vst [vmem:[#allocation20_spill] sm:$0xff] %v2546_v43  ;;  %v900_v31 = vrot.slane %v2089_v26, 6  ;;  %v2556_v18 = vunpack.c.l.bf16 %v213_v14  ;;  %v2564_v62 = vunpack.c.l.bf16 %v204_v60  ;;  %v2578_v10 = vunpack.c.l.bf16 %v219_v25 }
  0x5e   : > { %3493 = vst [vmem:[#allocation21_spill] sm:$0xff] %v2550_v20  ;;  %v434_v42 = vmax.f32 %v410_v51, %v2269_v37  ;;  %v642_v11 = vrot.slane %v2542_v32, 1  ;;  %v2045_v57 = vrot.slane %v2088_v58, 10  ;;  %v643_v55 = vrot.slane %v410_v51, 1 }
  0x5f   : > { %v699_v48 = vrot.slane %v2542_v32, 2  ;;  %v700_v30 = vrot.slane %v410_v51, 2  ;;  %v756_v26 = vrot.slane %v2542_v32, 3  ;;  %v757_v37 = vrot.slane %v410_v51, 3  ;;  %3494 = vst [vmem:[#allocation22_spill] sm:$0xff] %v2564_v62  ;;  %3495 = vst [vmem:[#allocation23_spill] sm:$0xff] %v2578_v10 }
  0x60   : > { %v2561_v19 = vmax.f32 %v434_v42, %v2265_v35  ;;  %v901_v13 = vsel %vm2342_vm6, %v2045_v57, %v900_v31  ;;  %v644_v14 = vsel %vm620_vm0, %v642_v11, %v643_v55  ;;  %v676_v9 = vmax.f32 %v410_v51, %v643_v55 }
  0x61   : > { %v701_v58 = vsel %vm677_vm1, %v699_v48, %v700_v30  ;;  %921 = vst.msk [vmem:[%s2353_s21 + $0x18] sm:$0xf] %vm914_vm5, %v901_v13  ;;  %v675_v12 = vmax.f32 %v2542_v32, %v644_v14  ;;  %v2574_v35 = vunpack.c.l.bf16 %v207_v24  ;;  %v2576_v42 = vunpack.c.l.bf16 %v216_v23 }
  0x62   : > { %v733_v60 = vmax.f32 %v676_v9, %v700_v30  ;;  %v758_v7 = vsel %vm734_vm2, %v756_v26, %v757_v37  ;;  %v798_v31 = vrot.slane %v410_v51, 4  ;;  %v318_v55 = vmax.f32 %v2550_v20, %v2556_v18 }
  0x63   : > { %v732_v11 = vmax.f32 %v675_v12, %v701_v58  ;;  %v2583_v57 = vunpack.c.l.bf16 %v222_v8  ;;  %v3497_v13 = vmax.f32 %v2332_v56, %v2267_v36  ;;  %v940_v25 = vrot.slane %v2377_v0, 1 }
  0x64   : > { %v790_v23 = vmax.f32 %v733_v60, %v757_v37  ;;  %v342_v9 = vmax.f32 %v318_v55, %v2576_v42  ;;  %v996_v30 = vrot.slane %v2377_v0, 2  ;;  %v1052_v51 = vrot.slane %v2377_v0, 3 }
  0x65   : > { %3496 = vst [vmem:[#allocation24_spill] sm:$0xff] %v2583_v57  ;;  %v2589_v24 = vmax.f32 %v3497_v13, %v2273_v40  ;;  %v789_v12 = vmax.f32 %v732_v11, %v758_v7  ;;  %v980_v48 = vmax.f32 %v2377_v0, %v940_v25  ;;  %v1109_v44 = vrot.slane %v2377_v0, 4 }
  0x66   : > { %v822_v26 = vmax.f32 %v790_v23, %v798_v31  ;;  %v366_v14 = vmax.f32 %v342_v9, %v2578_v10  ;;  %v228_v9 = vld [vmem:[%s2208_s17 + $0x80] sm:$0x3]  ;;  %v943_v49 = vrot.slane %v2383_v3, 1 }
  0x67   : > { %3498 = vst [vmem:[#allocation25_spill] sm:$0xff] %v2589_v24  ;;  %v939_v8 = vrot.slane %v2589_v24, 1  ;;  %v995_v56 = vrot.slane %v2589_v24, 2  ;;  %v1051_v37 = vrot.slane %v2589_v24, 3  ;;  %v1108_v58 = vrot.slane %v2589_v24, 4 }
  0x68   : > { %v821_v60 = vmax.f32 %v789_v12, %v798_v31  ;;  %v1036_v7 = vmax.f32 %v980_v48, %v996_v30  ;;  %v2091_v11 = vpack.c.bf16 %v822_v26, %v822_v26  ;;  %v390_v21 = vmax.f32 %v366_v14, %v2583_v57 }
  0x69   : > { %v941_v55 = vsel %vm620_vm0, %v939_v8, %v940_v25  ;;  %v997_v13 = vsel %vm677_vm1, %v995_v56, %v996_v30  ;;  %v1053_v23 = vsel %vm734_vm2, %v1051_v37, %v1052_v51  ;;  %v1165_v31 = vrot.slane %v2589_v24, 5 }
  0x6a   : > { %v979_v17 = vmax.f32 %v2589_v24, %v941_v55  ;;  %v2090_v16 = vpack.c.bf16 %v821_v60, %v821_v60  ;;  %v1092_v15 = vmax.f32 %v1036_v7, %v1052_v51  ;;  %v904_v12 = vrot.slane %v2091_v11, 6  ;;  %v2635_v7 = vld [vmem:[%s2208_s17 + $0x14] sm:$0x3] }
  0x6b   : > { %v414_v25 = vmax.f32 %v390_v21, %v2564_v62  ;;  %v1166_v8 = vrot.slane %v2377_v0, 5  ;;  %v2612_v56 = vunpack.c.l.bf16 %v225_v1  ;;  %v1110_v26 = vsel %vm1107_vm7, %v1108_v58, %v1109_v44 }
  0x6c   : > { %v1035_v30 = vmax.f32 %v979_v17, %v997_v13  ;;  %v2046_v48 = vrot.slane %v2090_v16, 10  ;;  %v1149_v14 = vmax.f32 %v1092_v15, %v1109_v44  ;;  %v2615_v51 = vunpack.c.l.bf16 %v228_v9 }
  0x6d   : > { %v438_v37 = vmax.f32 %v414_v25, %v2574_v35  ;;  %v1221_v55 = vrot.slane %v2377_v0, 6  ;;  %v1167_v21 = vsel %vm1164_vm8, %v1165_v31, %v1166_v8  ;;  %v321_v1 = vmax.f32 %v2556_v18, %v2576_v42 }
  0x6e   : > { %v1091_v60 = vmax.f32 %v1035_v30, %v1053_v23  ;;  %v905_v17 = vsel %vm2342_vm6, %v2046_v48, %v904_v12  ;;  %v1206_v16 = vmax.f32 %v1149_v14, %v1166_v8  ;;  %v3499_v58 = vmax.f32 %v2347_v6, %v2273_v40 }
  0x6f   : > { %922 = vst.msk [vmem:[%s2353_s21 + $0x1c] sm:$0xf] %vm914_vm5, %v905_v17  ;;  %v462_v15 = vmax.f32 %v438_v37, %v2612_v56  ;;  %v1262_v11 = vrot.slane %v2377_v0, 7  ;;  %v345_v23 = vmax.f32 %v321_v1, %v2578_v10  ;;  %v999_v9 = vrot.slane %v2383_v3, 2 }
  0x70   : > { %v1148_v44 = vmax.f32 %v1091_v60, %v1110_v26  ;;  %v2631_v13 = vmax.f32 %v3499_v58, %v2288_v50  ;;  %v1055_v31 = vrot.slane %v2383_v3, 3  ;;  %v982_v30 = vmax.f32 %v2383_v3, %v943_v49 }
  0x71   : > { %v2642_v12 = vmax.f32 %v462_v15, %v2615_v51  ;;  %v1238_v8 = vmax.f32 %v1206_v16, %v1221_v55  ;;  %v369_v48 = vmax.f32 %v345_v23, %v2583_v57 }
  0x72   : > { %v1205_v25 = vmax.f32 %v1148_v44, %v1167_v21  ;;  %v942_v6 = vrot.slane %v2631_v13, 1  ;;  %v998_v26 = vrot.slane %v2631_v13, 2  ;;  %v1054_v14 = vrot.slane %v2631_v13, 3 }
  0x73   : > { %v1263_v17 = vrot.slane %v2642_v12, 7  ;;  %v393_v21 = vmax.f32 %v369_v48, %v2612_v56  ;;  %v1038_v44 = vmax.f32 %v982_v30, %v999_v9  ;;  %v1111_v37 = vrot.slane %v2631_v13, 4 }
  0x74   : > { %v1237_v60 = vmax.f32 %v1205_v25, %v1221_v55  ;;  %v944_v1 = vsel %vm620_vm0, %v942_v6, %v943_v49  ;;  %v1000_v16 = vsel %vm677_vm1, %v998_v26, %v999_v9  ;;  %v1056_v41 = vsel %vm734_vm2, %v1054_v14, %v1055_v31  ;;  %v231_v6 = vld [vmem:[%s2208_s17 + $0x8c] sm:$0x3] }
  0x75   : > { %v981_v15 = vmax.f32 %v2631_v13, %v944_v1  ;;  %v1264_v58 = vsel %vm1261_vm9, %v1262_v11, %v1263_v17  ;;  %v417_v25 = vmax.f32 %v393_v21, %v2574_v35  ;;  %v1094_v53 = vmax.f32 %v1038_v44, %v1055_v31 }
  0x76   : > { %v1302_v23 = vmax.f32 %v1237_v60, %v1262_v11  ;;  %v1303_v55 = vmax.f32 %v1238_v8, %v1264_v58  ;;  %v1112_v48 = vrot.slane %v2383_v3, 4  ;;  %v1168_v26 = vrot.slane %v2631_v13, 5 }
  0x77   : > { %v1037_v24 = vmax.f32 %v981_v15, %v1000_v16  ;;  %v1169_v9 = vrot.slane %v2383_v3, 5  ;;  %v441_v30 = vmax.f32 %v417_v25, %v2550_v20  ;;  %v1222_v8 = vrot.slane %v2383_v3, 6 }
  0x78   : > { %v1318_v49 = vmax.f32 %v1302_v23, %v2377_v0  ;;  %v1319_v11 = vmax.f32 %v1303_v55, %v2642_v12  ;;  %v1113_v31 = vsel %vm1107_vm7, %v1111_v37, %v1112_v48  ;;  %v1151_v17 = vmax.f32 %v1094_v53, %v1112_v48 }
  0x79   : > { %v1093_v14 = vmax.f32 %v1037_v24, %v1056_v41  ;;  %v1170_v1 = vsel %vm1164_vm8, %v1168_v26, %v1169_v9  ;;  %v2669_v15 = vunpack.c.l.bf16 %v231_v6  ;;  %v465_v16 = vmax.f32 %v441_v30, %v2615_v51 }
  0x7a   : > { %v2092_v60 = vpack.c.bf16 %v1318_v49, %v1318_v49  ;;  %v2093_v21 = vpack.c.bf16 %v1319_v11, %v1319_v11  ;;  %v1208_v24 = vmax.f32 %v1151_v17, %v1169_v9  ;;  %v1265_v23 = vrot.slane %v2383_v3, 7 }
  0x7b   : > { %v1150_v44 = vmax.f32 %v1093_v14, %v1113_v31  ;;  %v324_v53 = vmax.f32 %v2576_v42, %v2578_v10  ;;  %v489_v55 = vmax.f32 %v465_v16, %v2669_v15  ;;  %v3502_v49 = vmax.f32 %v2398_v45, %v2288_v50 }
  0x7c   : > { %v2063_v41 = vrot.slane %v2092_v60, 9  ;;  %v1387_v37 = vrot.slane %v2093_v21, 5  ;;  %v1240_v48 = vmax.f32 %v1208_v24, %v1222_v8  ;;  %v946_v9 = vrot.slane %v2415_v27, 1 }
  0x7d   : > { %v1207_v25 = vmax.f32 %v1150_v44, %v1170_v1  ;;  %v2692_v6 = vmax.f32 %v3502_v49, %v2293_v54  ;;  %v348_v26 = vmax.f32 %v324_v53, %v2583_v57  ;;  %v1002_v11 = vrot.slane %v2415_v27, 2 }
  0x7e   : > { %v1388_v30 = vsel %vm2674_vm11, %v2063_v41, %v1387_v37  ;;  %v3504_v14 = vunpack.c.l.bf16 %v2635_v7  ;;  %v1266_v17 = vrot.slane %v489_v55, 7  ;;  %v984_v21 = vmax.f32 %v2415_v27, %v946_v9 }
  0x7f   : > { %3503 = vst [vmem:[#allocation26_spill] sm:$0xff] %v2692_v6  ;;  %v1239_v31 = vmax.f32 %v1207_v25, %v1222_v8  ;;  %1425 = vst.msk [vmem:[%s2685_s24] sm:$0xf] %vm914_vm5, %v1388_v30  ;;  %v372_v45 = vmax.f32 %v348_v26, %v2612_v56  ;;  %v945_v1 = vrot.slane %v2692_v6, 1  ;;  %v1001_v16 = vrot.slane %v2692_v6, 2 }
  0x80   : > { %v2701_v60 = vmax.f32 %v489_v55, %v3504_v14  ;;  %v1267_v41 = vsel %vm1261_vm9, %v1265_v23, %v1266_v17  ;;  %v1057_v8 = vrot.slane %v2692_v6, 3  ;;  %v1040_v14 = vmax.f32 %v984_v21, %v1002_v11 }
  0x81   : > { %v1304_v24 = vmax.f32 %v1239_v31, %v1265_v23  ;;  %v1305_v53 = vmax.f32 %v1240_v48, %v1267_v41  ;;  %v396_v37 = vmax.f32 %v372_v45, %v2615_v51  ;;  %v947_v25 = vsel %vm620_vm0, %v945_v1, %v946_v9  ;;  %v234_v45 = vld [vmem:[%s2208_s17 + $0x98] sm:$0x3] }
  0x82   : > { %3505 = vst [vmem:[#allocation27_spill] sm:$0xff] %v2701_v60  ;;  %v1003_v49 = vsel %vm677_vm1, %v1001_v16, %v1002_v11  ;;  %v983_v30 = vmax.f32 %v2692_v6, %v947_v25  ;;  %v1058_v44 = vrot.slane %v2415_v27, 3  ;;  %v1114_v23 = vrot.slane %v2692_v6, 4 }
  0x83   : > { %v1320_v26 = vmax.f32 %v1304_v24, %v2383_v3  ;;  %v1321_v60 = vmax.f32 %v1305_v53, %v489_v55  ;;  %v420_v17 = vmax.f32 %v396_v37, %v2550_v20  ;;  %v1115_v48 = vrot.slane %v2415_v27, 4 }
  0x84   : > { %v1039_v41 = vmax.f32 %v983_v30, %v1003_v49  ;;  %v1059_v9 = vsel %vm734_vm2, %v1057_v8, %v1058_v44  ;;  %v1096_v1 = vmax.f32 %v1040_v14, %v1058_v44  ;;  %v1171_v21 = vrot.slane %v2692_v6, 5 }
  0x85   : > { %v2094_v31 = vpack.c.bf16 %v1320_v26, %v1320_v26  ;;  %v2095_v16 = vpack.c.bf16 %v1321_v60, %v1321_v60  ;;  %v444_v24 = vmax.f32 %v420_v17, %v2556_v18  ;;  %v1116_v11 = vsel %vm1107_vm7, %v1114_v23, %v1115_v48 }
  0x86   : > { %v1095_v53 = vmax.f32 %v1039_v41, %v1059_v9  ;;  %v1153_v37 = vmax.f32 %v1096_v1, %v1115_v48  ;;  %v1172_v25 = vrot.slane %v2415_v27, 5  ;;  %v2728_v26 = vunpack.c.l.bf16 %v234_v45 }
  0x87   : > { %v2064_v55 = vrot.slane %v2094_v31, 9  ;;  %v1391_v20 = vrot.slane %v2095_v16, 5  ;;  %v468_v49 = vmax.f32 %v444_v24, %v2669_v15  ;;  %v1223_v44 = vrot.slane %v2415_v27, 6 }
  0x88   : > { %v1152_v60 = vmax.f32 %v1095_v53, %v1116_v11  ;;  %v1173_v8 = vsel %vm1164_vm8, %v1171_v21, %v1172_v25  ;;  %v1210_v30 = vmax.f32 %v1153_v37, %v1172_v25  ;;  %v1268_v14 = vrot.slane %v2415_v27, 7 }
  0x89   : > { %v1392_v17 = vsel %vm2674_vm11, %v2064_v55, %v1391_v20  ;;  %v492_v23 = vmax.f32 %v468_v49, %v2728_v26  ;;  %v327_v48 = vmax.f32 %v2578_v10, %v2583_v57  ;;  %v3506_v31 = vmax.f32 %v2427_v59, %v2293_v54 }
  0x8a   : > { %1426 = vst.msk [vmem:[%s2685_s24 + $0x4] sm:$0xf] %vm914_vm5, %v1392_v17  ;;  %v1209_v41 = vmax.f32 %v1152_v60, %v1173_v8  ;;  %v1242_v9 = vmax.f32 %v1210_v30, %v1223_v44  ;;  %v949_v1 = vrot.slane %v2450_v39, 1  ;;  %v1005_v16 = vrot.slane %v2450_v39, 2 }
  0x8b   : > { %v2743_v45 = vmax.f32 %v3506_v31, %v2421_v29  ;;  %v516_v20 = vmax.f32 %v492_v23, %v2564_v62  ;;  %v1269_v24 = vrot.slane %v492_v23, 7  ;;  %v351_v11 = vmax.f32 %v327_v48, %v2612_v56 }
  0x8c   : > { %v1241_v55 = vmax.f32 %v1209_v41, %v1223_v44  ;;  %v986_v59 = vmax.f32 %v2450_v39, %v949_v1  ;;  %v1061_v6 = vrot.slane %v2450_v39, 3 }
  0x8d   : > { %v948_v21 = vrot.slane %v2743_v45, 1  ;;  %v1004_v53 = vrot.slane %v2743_v45, 2  ;;  %v1060_v37 = vrot.slane %v2743_v45, 3  ;;  %v2756_v25 = vmax.f32 %v516_v20, %v2574_v35 }
  0x8e   : > { %v1270_v49 = vsel %vm1261_vm9, %v1268_v14, %v1269_v24  ;;  %v375_v60 = vmax.f32 %v351_v11, %v2615_v51  ;;  %v1306_v30 = vmax.f32 %v1241_v55, %v1268_v14  ;;  %v1042_v41 = vmax.f32 %v986_v59, %v1005_v16 }
  0x8f   : > { %3507 = vst [vmem:[#allocation28_spill] sm:$0xff] %v2756_v25  ;;  %v950_v8 = vsel %vm620_vm0, %v948_v21, %v949_v1  ;;  %v1307_v17 = vmax.f32 %v1242_v9, %v1270_v49  ;;  %v1006_v48 = vsel %vm677_vm1, %v1004_v53, %v1005_v16  ;;  %v1117_v20 = vrot.slane %v2743_v45, 4  ;;  %v237_v1 = vld [vmem:[%s2208_s17 + $0xa4] sm:$0x3] }
  0x90   : > { %v985_v44 = vmax.f32 %v2743_v45, %v950_v8  ;;  %v399_v31 = vmax.f32 %v375_v60, %v2669_v15  ;;  %v1322_v25 = vmax.f32 %v1306_v30, %v2415_v27  ;;  %v1118_v11 = vrot.slane %v2450_v39, 4 }
  0x91   : > { %v1323_v24 = vmax.f32 %v1307_v17, %v492_v23  ;;  %v1062_v9 = vsel %vm734_vm2, %v1060_v37, %v1061_v6  ;;  %v1098_v21 = vmax.f32 %v1042_v41, %v1061_v6  ;;  %v1174_v55 = vrot.slane %v2743_v45, 5 }
  0x92   : > { %v1041_v62 = vmax.f32 %v985_v44, %v1006_v48  ;;  %v423_v14 = vmax.f32 %v399_v31, %v2556_v18  ;;  %v2096_v53 = vpack.c.bf16 %v1322_v25, %v1322_v25  ;;  %v1119_v49 = vsel %vm1107_vm7, %v1117_v20, %v1118_v11 }
  0x93   : > { %v2097_v16 = vpack.c.bf16 %v1323_v24, %v1323_v24  ;;  %v1155_v8 = vmax.f32 %v1098_v21, %v1118_v11  ;;  %v1175_v23 = vrot.slane %v2450_v39, 5  ;;  %v1224_v30 = vrot.slane %v2450_v39, 6 }
  0x94   : > { %v1097_v59 = vmax.f32 %v1041_v62, %v1062_v9  ;;  %v447_v60 = vmax.f32 %v423_v14, %v2576_v42  ;;  %v2065_v17 = vrot.slane %v2096_v53, 9  ;;  %v2776_v48 = vunpack.c.l.bf16 %v237_v1 }
  0x95   : > { %v1395_v44 = vrot.slane %v2097_v16, 5  ;;  %v1176_v25 = vsel %vm1164_vm8, %v1174_v55, %v1175_v23  ;;  %v1212_v62 = vmax.f32 %v1155_v8, %v1175_v23  ;;  %v1271_v31 = vrot.slane %v2450_v39, 7 }
  0x96   : > { %v1154_v6 = vmax.f32 %v1097_v59, %v1119_v49  ;;  %v471_v37 = vmax.f32 %v447_v60, %v2728_v26  ;;  %v330_v24 = vmax.f32 %v2583_v57, %v2612_v56  ;;  %v3508_v11 = vmax.f32 %v2465_v2, %v2421_v29 }
  0x97   : > { %v1396_v41 = vsel %vm2674_vm11, %v2065_v17, %v1395_v44  ;;  %v433_v14 = vmax.f32 %v2542_v32, %v2267_v36  ;;  %v1244_v21 = vmax.f32 %v1212_v62, %v1224_v30  ;;  %v3509_v55 = vmax.f32 %v2473_v28, %v2302_v63 }
  0x98   : > { %v1211_v20 = vmax.f32 %v1154_v6, %v1176_v25  ;;  %v2789_v1 = vmax.f32 %v3508_v11, %v2454_v47  ;;  %1427 = vst.msk [vmem:[%s2685_s24 + $0x8] sm:$0xf] %vm914_vm5, %v1396_v41  ;;  %v2796_v9 = vmax.f32 %v471_v37, %v2776_v48  ;;  %v354_v2 = vmax.f32 %v330_v24, %v2615_v51 }
  0x99   : > { %v2802_v53 = vmax.f32 %v3509_v55, %v2462_v34  ;;  %v2816_v44 = vmax.f32 %v433_v14, %v2273_v40 }
  0x9a   : > { %v1243_v16 = vmax.f32 %v1211_v20, %v1224_v30  ;;  %v951_v59 = vrot.slane %v2789_v1, 1  ;;  %v1007_v49 = vrot.slane %v2789_v1, 2  ;;  %v1272_v32 = vrot.slane %v2796_v9, 7 }
  0x9b   : > { %v952_v60 = vrot.slane %v2802_v53, 1  ;;  %v1008_v8 = vrot.slane %v2802_v53, 2  ;;  %v378_v28 = vmax.f32 %v354_v2, %v2669_v15  ;;  %v1063_v30 = vrot.slane %v2789_v1, 3 }
  0x9c   : > { %v1308_v23 = vmax.f32 %v1243_v16, %v1271_v31  ;;  %v1064_v17 = vrot.slane %v2802_v53, 3  ;;  %v1273_v6 = vsel %vm1261_vm9, %v1271_v31, %v1272_v32  ;;  %v1120_v14 = vrot.slane %v2789_v1, 4 }
  0x9d   : > { %v953_v37 = vsel %vm620_vm0, %v951_v59, %v952_v60  ;;  %v988_v25 = vmax.f32 %v2802_v53, %v952_v60  ;;  %v1309_v62 = vmax.f32 %v1244_v21, %v1273_v6  ;;  %v402_v20 = vmax.f32 %v378_v28, %v2728_v26  ;;  %v240_v21 = vld [vmem:[%s2208_s17 + $0xb0] sm:$0x3] }
  0x9e   : > { %v1324_v41 = vmax.f32 %v1308_v23, %v2450_v39  ;;  %v987_v24 = vmax.f32 %v2789_v1, %v953_v37  ;;  %v1009_v11 = vsel %vm677_vm1, %v1007_v49, %v1008_v8  ;;  %v1065_v40 = vsel %vm734_vm2, %v1063_v30, %v1064_v17 }
  0x9f   : > { %v1044_v55 = vmax.f32 %v988_v25, %v1008_v8  ;;  %v1325_v31 = vmax.f32 %v1309_v62, %v2796_v9  ;;  %v426_v2 = vmax.f32 %v402_v20, %v2576_v42  ;;  %v1121_v60 = vrot.slane %v2802_v53, 4 }
  0xa0   : > { %v2098_v16 = vpack.c.bf16 %v1324_v41, %v1324_v41  ;;  %v1043_v59 = vmax.f32 %v987_v24, %v1009_v11  ;;  %v1177_v23 = vrot.slane %v2789_v1, 5  ;;  %v1178_v28 = vrot.slane %v2802_v53, 5 }
  0xa1   : > { %v1100_v32 = vmax.f32 %v1044_v55, %v1064_v17  ;;  %v2099_v49 = vpack.c.bf16 %v1325_v31, %v1325_v31  ;;  %v450_v30 = vmax.f32 %v426_v2, %v2578_v10  ;;  %v1122_v37 = vsel %vm1107_vm7, %v1120_v14, %v1121_v60 }
  0xa2   : > { %v2066_v8 = vrot.slane %v2098_v16, 9  ;;  %v1099_v6 = vmax.f32 %v1043_v59, %v1065_v40  ;;  %v1179_v62 = vsel %vm1164_vm8, %v1177_v23, %v1178_v28  ;;  %v1225_v17 = vrot.slane %v2802_v53, 6  ;;  %v243_v23 = vld [vmem:[%s2208_s17 + $0xbc] sm:$0x3] }
  0xa3   : > { %v1157_v25 = vmax.f32 %v1100_v32, %v1121_v60  ;;  %v1399_v41 = vrot.slane %v2099_v49, 5  ;;  %v2837_v20 = vunpack.c.l.bf16 %v240_v21  ;;  %v474_v24 = vmax.f32 %v450_v30, %v2776_v48 }
  0xa4   : > { %v1156_v11 = vmax.f32 %v1099_v6, %v1122_v37  ;;  %v333_v31 = vmax.f32 %v2612_v56, %v2615_v51  ;;  %v476_v40 = vmax.f32 %v2531_v38, %v2462_v34  ;;  %v3510_v14 = vmax.f32 %v2495_v22, %v2454_v47 }
  0xa5   : > { %v1214_v55 = vmax.f32 %v1157_v25, %v1178_v28  ;;  %v1400_v2 = vsel %vm2674_vm11, %v2066_v8, %v1399_v41  ;;  %v2853_v59 = vmax.f32 %v474_v24, %v2837_v20  ;;  %v1274_v32 = vrot.slane %v2802_v53, 7 }
  0xa6   : > { %v2848_v16 = vmax.f32 %v3510_v14, %v2499_v5  ;;  %v1213_v21 = vmax.f32 %v1156_v11, %v1179_v62  ;;  %1428 = vst.msk [vmem:[%s2685_s24 + $0xc] sm:$0xf] %vm914_vm5, %v1400_v2  ;;  %v357_v38 = vmax.f32 %v333_v31, %v2669_v15  ;;  %v2861_v28 = vmax.f32 %v476_v40, %v2509_v46 }
  0xa7   : > { %v1246_v60 = vmax.f32 %v1214_v55, %v1225_v17  ;;  %v482_v49 = vmax.f32 %v2561_v19, %v2522_v52  ;;  %v1275_v30 = vrot.slane %v2853_v59, 7  ;;  %v2873_v55 = vunpack.c.l.bf16 %v243_v23 }
  0xa8   : > { %v954_v22 = vrot.slane %v2848_v16, 1  ;;  %v1245_v8 = vmax.f32 %v1213_v21, %v1225_v17  ;;  %v1010_v6 = vrot.slane %v2848_v16, 2  ;;  %v381_v37 = vmax.f32 %v357_v38, %v2728_v26 }
  0xa9   : > { %v955_v25 = vrot.slane %v2861_v28, 1  ;;  %v1011_v62 = vrot.slane %v2861_v28, 2  ;;  %v1066_v41 = vrot.slane %v2848_v16, 3  ;;  %v1276_v24 = vsel %vm1261_vm9, %v1274_v32, %v1275_v30 }
  0xaa   : > { %v1310_v11 = vmax.f32 %v1245_v8, %v1274_v32  ;;  %v1067_v19 = vrot.slane %v2861_v28, 3  ;;  %v1311_v17 = vmax.f32 %v1246_v60, %v1276_v24  ;;  %v405_v31 = vmax.f32 %v381_v37, %v2776_v48 }
  0xab   : > { %v956_v40 = vsel %vm620_vm0, %v954_v22, %v955_v25  ;;  %v990_v14 = vmax.f32 %v2861_v28, %v955_v25  ;;  %v1012_v38 = vsel %vm677_vm1, %v1010_v6, %v1011_v62  ;;  %v1123_v60 = vrot.slane %v2848_v16, 4 }
  0xac   : > { %v1326_v2 = vmax.f32 %v1310_v11, %v2802_v53  ;;  %v989_v21 = vmax.f32 %v2848_v16, %v956_v40  ;;  %v1068_v30 = vsel %vm734_vm2, %v1066_v41, %v1067_v19  ;;  %v1327_v32 = vmax.f32 %v1311_v17, %v2853_v59 }
  0xad   : > { %v429_v23 = vmax.f32 %v405_v31, %v2578_v10  ;;  %v1046_v8 = vmax.f32 %v990_v14, %v1011_v62  ;;  %v1124_v22 = vrot.slane %v2861_v28, 4  ;;  %v1180_v25 = vrot.slane %v2848_v16, 5 }
  0xae   : > { %v2100_v37 = vpack.c.bf16 %v1326_v2, %v1326_v2  ;;  %v1045_v24 = vmax.f32 %v989_v21, %v1012_v38  ;;  %v2101_v11 = vpack.c.bf16 %v1327_v32, %v1327_v32  ;;  %v1181_v6 = vrot.slane %v2861_v28, 5 }
  0xaf   : > { %v453_v40 = vmax.f32 %v429_v23, %v2583_v57  ;;  %v1102_v36 = vmax.f32 %v1046_v8, %v1067_v19  ;;  %v1125_v31 = vsel %vm1107_vm7, %v1123_v60, %v1124_v22  ;;  %v1226_v62 = vrot.slane %v2861_v28, 6 }
  0xb0   : > { %v2067_v41 = vrot.slane %v2100_v37, 9  ;;  %v1101_v17 = vmax.f32 %v1045_v24, %v1068_v30  ;;  %v1403_v14 = vrot.slane %v2101_v11, 5  ;;  %v1182_v38 = vsel %vm1164_vm8, %v1180_v25, %v1181_v6 }
  0xb1   : > { %v477_v2 = vmax.f32 %v453_v40, %v2837_v20  ;;  %v1159_v21 = vmax.f32 %v1102_v36, %v1124_v22  ;;  %v1277_v32 = vrot.slane %v2861_v28, 7  ;;  %v336_v19 = vmax.f32 %v2615_v51, %v2669_v15 }
  0xb2   : > { %v1158_v10 = vmax.f32 %v1101_v17, %v1125_v31  ;;  %v478_v23 = vmax.f32 %v2539_v61, %v2499_v5  ;;  %v1404_v30 = vsel %vm2674_vm11, %v2067_v41, %v1403_v14  ;;  %v958_v36 = vrot.slane %v2546_v43, 1 }
  0xb3   : > { %v2902_v8 = vmax.f32 %v477_v2, %v2873_v55  ;;  %v1216_v60 = vmax.f32 %v1159_v21, %v1181_v6  ;;  %1429 = vst.msk [vmem:[%s2685_s24 + $0x10] sm:$0xf] %vm914_vm5, %v1404_v30  ;;  %v360_v24 = vmax.f32 %v336_v19, %v2728_v26  ;;  %v1014_v25 = vrot.slane %v2546_v43, 2 }
  0xb4   : > { %v1215_v37 = vmax.f32 %v1158_v10, %v1182_v38  ;;  %v2909_v22 = vmax.f32 %v478_v23, %v2517_v4  ;;  %v481_v61 = vmax.f32 %v2816_v44, %v2517_v4  ;;  %v992_v6 = vmax.f32 %v2546_v43, %v958_v36 }
  0xb5   : > { %v1248_v11 = vmax.f32 %v1216_v60, %v1226_v62  ;;  %v1278_v40 = vrot.slane %v2902_v8, 7  ;;  %v384_v17 = vmax.f32 %v360_v24, %v2776_v48  ;;  %v2920_v14 = vmax.f32 %v482_v49, %v2535_v33 }
  0xb6   : > { %3511 = vst [vmem:[#allocation29_spill] sm:$0xff] %v2909_v22  ;;  %v1247_v41 = vmax.f32 %v1215_v37, %v1226_v62  ;;  %v957_v10 = vrot.slane %v2909_v22, 1  ;;  %v1013_v31 = vrot.slane %v2909_v22, 2  ;;  %v1048_v21 = vmax.f32 %v992_v6, %v1014_v25  ;;  %v246_v6 = vld [vmem:[%s2208_s17 + $0xc8] sm:$0x3] }
  0xb7   : > { %3512 = vst [vmem:[#allocation30_spill] sm:$0xff] %v2920_v14  ;;  %v1279_v2 = vsel %vm1261_vm9, %v1277_v32, %v1278_v40  ;;  %v1069_v44 = vrot.slane %v2909_v22, 3  ;;  %v408_v23 = vmax.f32 %v384_v17, %v2837_v20  ;;  %v1070_v49 = vrot.slane %v2546_v43, 3 }
  0xb8   : > { %v1312_v38 = vmax.f32 %v1247_v41, %v1277_v32  ;;  %v1313_v19 = vmax.f32 %v1248_v11, %v1279_v2  ;;  %v959_v62 = vsel %vm620_vm0, %v957_v10, %v958_v36  ;;  %v1015_v60 = vsel %vm677_vm1, %v1013_v31, %v1014_v25 }
  0xb9   : > { %v991_v30 = vmax.f32 %v2909_v22, %v959_v62  ;;  %v1126_v37 = vrot.slane %v2909_v22, 4  ;;  %v432_v32 = vmax.f32 %v408_v23, %v2583_v57  ;;  %v1127_v11 = vrot.slane %v2546_v43, 4 }
  0xba   : > { %v1328_v24 = vmax.f32 %v1312_v38, %v2861_v28  ;;  %v1329_v40 = vmax.f32 %v1313_v19, %v2902_v8  ;;  %v1071_v36 = vsel %vm734_vm2, %v1069_v44, %v1070_v49  ;;  %v1104_v17 = vmax.f32 %v1048_v21, %v1070_v49  ;;  %v247_v38 = vld [vmem:[%s2208_s17 + $0xcc] sm:$0xf] }
  0xbb   : > { %v1047_v41 = vmax.f32 %v991_v30, %v1015_v60  ;;  %v1183_v25 = vrot.slane %v2909_v22, 5  ;;  %v456_v2 = vmax.f32 %v432_v32, %v2612_v56  ;;  %v1128_v62 = vsel %vm1107_vm7, %v1126_v37, %v1127_v11 }
  0xbc   : > { %v2102_v10 = vpack.c.bf16 %v1328_v24, %v1328_v24  ;;  %v2103_v31 = vpack.c.bf16 %v1329_v40, %v1329_v40  ;;  %v1161_v19 = vmax.f32 %v1104_v17, %v1127_v11  ;;  %v1184_v23 = vrot.slane %v2546_v43, 5  ;;  %v249_v17 = vld [vmem:[%s2208_s17 + $0xd4] sm:$0x3] }
  0xbd   : > { %v1103_v33 = vmax.f32 %v1047_v41, %v1071_v36  ;;  %v1227_v57 = vrot.slane %v2546_v43, 6  ;;  %v2942_v21 = vunpack.c.l.bf16 %v246_v6  ;;  %v480_v60 = vmax.f32 %v456_v2, %v2873_v55 }
  0xbe   : > { %v2068_v30 = vrot.slane %v2102_v10, 9  ;;  %v1407_v44 = vrot.slane %v2103_v31, 5  ;;  %v1185_v24 = vsel %vm1164_vm8, %v1183_v25, %v1184_v23  ;;  %v1218_v40 = vmax.f32 %v1161_v19, %v1184_v23  ;;  %v3514_v31 = vld [vmem:[#allocation18_spill] sm:$0xff] }
  0xbf   : > { %v1160_v49 = vmax.f32 %v1103_v33, %v1128_v62  ;;  %v2946_v37 = vunpack.c.l.bf16 %v247_v38  ;;  %v2951_v11 = vmax.f32 %v480_v60, %v2942_v21  ;;  %v1280_v41 = vrot.slane %v2546_v43, 7 }
  0xc0   : > { %v1408_v32 = vsel %vm2674_vm11, %v2068_v30, %v1407_v44  ;;  %v339_v6 = vmax.f32 %v2669_v15, %v2728_v26  ;;  %v1250_v33 = vmax.f32 %v1218_v40, %v1227_v57  ;;  %v961_v10 = vrot.slane %v2920_v14, 1 }
  0xc1   : > { %3513 = vst [vmem:[#allocation31_spill] sm:$0xff] %v2946_v37  ;;  %1430 = vst.msk [vmem:[%s2685_s24 + $0x14] sm:$0xf] %vm914_vm5, %v1408_v32  ;;  %v1217_v36 = vmax.f32 %v1160_v49, %v1185_v24  ;;  %v2960_v25 = vmax.f32 %v481_v61, %v2946_v37  ;;  %v3515_v2 = vunpack.c.l.bf16 %v3514_v31  ;;  %v1281_v38 = vrot.slane %v2951_v11, 7 }
  0xc2   : > { %v363_v19 = vmax.f32 %v339_v6, %v2776_v48  ;;  %v1017_v23 = vrot.slane %v2920_v14, 2  ;;  %v994_v60 = vmax.f32 %v2920_v14, %v961_v10  ;;  %v2973_v24 = vunpack.c.l.bf16 %v249_v17 }
  0xc3   : > { %v510_v62 = vmax.f32 %v2642_v12, %v3515_v2  ;;  %v1249_v30 = vmax.f32 %v1217_v36, %v1227_v57  ;;  %v960_v44 = vrot.slane %v2960_v25, 1  ;;  %v1016_v61 = vrot.slane %v2960_v25, 2 }
  0xc4   : > { %v1282_v49 = vsel %vm1261_vm9, %v1280_v41, %v1281_v38  ;;  %v387_v40 = vmax.f32 %v363_v19, %v2837_v20  ;;  %v1072_v12 = vrot.slane %v2960_v25, 3  ;;  %v1050_v22 = vmax.f32 %v994_v60, %v1017_v23 }
  0xc5   : > { %v1314_v32 = vmax.f32 %v1249_v30, %v1280_v41  ;;  %v1315_v31 = vmax.f32 %v1250_v33, %v1282_v49  ;;  %v962_v6 = vsel %vm620_vm0, %v960_v44, %v961_v10  ;;  %v1018_v57 = vsel %vm677_vm1, %v1016_v61, %v1017_v23 }
  0xc6   : > { %v411_v36 = vmax.f32 %v387_v40, %v2873_v55  ;;  %v993_v2 = vmax.f32 %v2960_v25, %v962_v6  ;;  %v1073_v37 = vrot.slane %v2920_v14, 3  ;;  %v1129_v19 = vrot.slane %v2960_v25, 4 }
  0xc7   : > { %v1330_v17 = vmax.f32 %v1314_v32, %v2546_v43  ;;  %v1331_v38 = vmax.f32 %v1315_v31, %v2951_v11  ;;  %v1130_v41 = vrot.slane %v2920_v14, 4  ;;  %v1186_v49 = vrot.slane %v2960_v25, 5  ;;  %v2109_v43 = vld [vmem:[%s2208_s17] sm:$0xff]  }
  0xc8   : > { %v435_v33 = vmax.f32 %v411_v36, %v2612_v56  ;;  %v1049_v10 = vmax.f32 %v993_v2, %v1018_v57  ;;  %v1074_v30 = vsel %vm734_vm2, %v1072_v12, %v1073_v37  ;;  %v1106_v44 = vmax.f32 %v1050_v22, %v1073_v37  ;;  %v199_v37 = vld [vmem:[%s2208_s17 + $0xc] sm:$0xff]  }
  0xc9   : > { %v2104_v61 = vpack.c.bf16 %v1330_v17, %v1330_v17  ;;  %v2105_v23 = vpack.c.bf16 %v1331_v38, %v1331_v38  ;;  %v1131_v60 = vsel %vm1107_vm7, %v1129_v19, %v1130_v41  ;;  %v1187_v6 = vrot.slane %v2920_v14, 5 }
  0xca   : > { %v459_v40 = vmax.f32 %v435_v33, %v2615_v51  ;;  %v1105_v32 = vmax.f32 %v1049_v10, %v1074_v30  ;;  %v1163_v31 = vmax.f32 %v1106_v44, %v1130_v41  ;;  %v3516_v56 = vunpack.c.l.bf16 %v2635_v7 }
  0xcb   : > { %v2069_v36 = vrot.slane %v2104_v61, 9  ;;  %v1411_v12 = vrot.slane %v2105_v23, 5  ;;  %v1228_v22 = vrot.slane %v2920_v14, 6  ;;  %v1188_v38 = vsel %vm1164_vm8, %v1186_v49, %v1187_v6  ;;  %v3517_v23 = vld [vmem:[#allocation25_spill] sm:$0xff] }
  0xcc   : > { %v534_v57 = vmax.f32 %v510_v62, %v3516_v56  ;;  %v483_v2 = vmax.f32 %v459_v40, %v2942_v21  ;;  %v1162_v17 = vmax.f32 %v1105_v32, %v1131_v60  ;;  %v1220_v51 = vmax.f32 %v1163_v31, %v1187_v6 }
  0xcd   : > { %v1412_v19 = vsel %vm2674_vm11, %v2069_v36, %v1411_v12  ;;  %v1283_v41 = vrot.slane %v2920_v14, 7  ;;  %v2110_v33 = vunpack.c.l.bf16 %v2109_v43  ;;  %v2111_v10 = vunpack.c.h.bf16 %v2109_v43 }
  0xce   : > { %1431 = vst.msk [vmem:[%s2685_s24 + $0x18] sm:$0xf] %vm914_vm5, %v1412_v19  ;;  %v3005_v7 = vmax.f32 %v483_v2, %v2973_v24  ;;  %v1219_v62 = vmax.f32 %v1162_v17, %v1188_v38  ;;  %v259_v30 = vunpack.c.l.bf16 %v199_v37  ;;  %v260_v44 = vunpack.c.h.bf16 %v199_v37  ;;  %v3518_v38 = vld [vmem:[#allocation16_spill] sm:$0xff] }
  0xcf   : > { %v1252_v61 = vmax.f32 %v1220_v51, %v1228_v22  ;;  %v508_v60 = vmax.f32 %v3517_v23, %v2110_v33  ;;  %v509_v49 = vmax.f32 %v2377_v0, %v2111_v10  ;;  %v558_v43 = vmax.f32 %v534_v57, %v2669_v15  ;;  %v3519_v0 = vld [vmem:[#allocation21_spill] sm:$0xff] }
  0xd0   : > { %v1251_v40 = vmax.f32 %v1219_v62, %v1228_v22  ;;  %v1284_v32 = vrot.slane %v3005_v7, 7  ;;  %v511_v12 = vmax.f32 %v2631_v13, %v259_v30  ;;  %v512_v2 = vmax.f32 %v2383_v3, %v260_v44  ;;  %v3522_v62 = vld [vmem:[#allocation10_spill] sm:$0xff] }
  0xd1   : > { %v532_v31 = vmax.f32 %v508_v60, %v259_v30  ;;  %v533_v6 = vmax.f32 %v509_v49, %v260_v44  ;;  %v3520_v22 = vmax.f32 %v2796_v9, %v2574_v35  ;;  %v522_v57 = vmax.f32 %v2853_v59, %v3519_v0  ;;  %v3523_v9 = vld [vmem:[#allocation11_spill] sm:$0xff] }
  0xd2   : > { %v1285_v56 = vsel %vm1261_vm9, %v1283_v41, %v1284_v32  ;;  %v1316_v36 = vmax.f32 %v1251_v40, %v1283_v41  ;;  %v3521_v41 = vld [vmem:[#allocation17_spill] sm:$0xff]  ;;  %v3031_v10 = vmax.f32 %v558_v43, %v2728_v26  ;;  %v535_v35 = vmax.f32 %v511_v12, %v3522_v62 }
  0xd3   : > { %v1317_v37 = vmax.f32 %v1252_v61, %v1285_v56  ;;  %v556_v17 = vmax.f32 %v532_v31, %v2288_v50  ;;  %v557_v51 = vmax.f32 %v533_v6, %v3518_v38  ;;  %v3020_v19 = vmax.f32 %v3520_v22, %v3519_v0 }
  0xd4   : > { %v1332_v15 = vmax.f32 %v1316_v36, %v2920_v14  ;;  %v536_v30 = vmax.f32 %v512_v2, %v3523_v9  ;;  %v559_v2 = vmax.f32 %v535_v35, %v2293_v54  ;;  %v3048_v22 = vmax.f32 %v522_v57, %v2556_v18 }
  0xd5   : > { %v1333_v13 = vmax.f32 %v1317_v37, %v3005_v7  ;;  %v580_v3 = vmax.f32 %v556_v17, %v2293_v54  ;;  %v3028_v33 = vmax.f32 %v557_v51, %v3521_v41  ;;  %v1778_v35 = vrot.slane %v3031_v10, 2 }
  0xd6   : > { %v2106_v50 = vpack.c.bf16 %v1332_v15, %v1332_v15  ;;  %v560_v37 = vmax.f32 %v536_v30, %v3521_v41  ;;  %v1746_v41 = vrot.slane %v3031_v10, 1 }
  0xd7   : > { %v2107_v44 = vpack.c.bf16 %v1333_v13, %v1333_v13  ;;  %v1449_v61 = vrot.slane %v580_v3, 1  ;;  %v1450_v23 = vrot.slane %v3028_v33, 1  ;;  %v1489_v59 = vrot.slane %v580_v3, 2 }
  0xd8   : > { %v2070_v60 = vrot.slane %v2106_v50, 9  ;;  %v1490_v49 = vrot.slane %v3028_v33, 2  ;;  %v1529_v40 = vrot.slane %v580_v3, 3  ;;  %v1530_v32 = vrot.slane %v3028_v33, 3 }
  0xd9   : > { %v1415_v31 = vrot.slane %v2107_v44, 5  ;;  %v1451_v6 = vsel %vm620_vm0, %v1449_v61, %v1450_v23  ;;  %v1569_v43 = vrot.slane %v580_v3, 4  ;;  %v1570_v56 = vrot.slane %v3028_v33, 4 }
  0xda   : > { %v1481_v36 = vmax.f32 %v580_v3, %v1451_v6  ;;  %v1491_v12 = vsel %vm677_vm1, %v1489_v59, %v1490_v49  ;;  %v1531_v38 = vsel %vm734_vm2, %v1529_v40, %v1530_v32  ;;  %v1609_v51 = vrot.slane %v580_v3, 5 }
  0xdb   : > { %v1416_v17 = vsel %vm2674_vm11, %v2070_v60, %v1415_v31  ;;  %v1610_v0 = vrot.slane %v3028_v33, 5  ;;  %v1650_v13 = vrot.slane %v580_v3, 6  ;;  %v1651_v50 = vrot.slane %v3028_v33, 6 }
  0xdc   : > { %1432 = vst.msk [vmem:[%s2685_s24 + $0x1c] sm:$0xf] %vm914_vm5, %v1416_v17  ;;  %v1521_v15 = vmax.f32 %v1481_v36, %v1491_v12  ;;  %v1571_v58 = vsel %vm1107_vm7, %v1569_v43, %v1570_v56  ;;  %v1690_v44 = vrot.slane %v580_v3, 7  ;;  %v1691_v57 = vrot.slane %v3028_v33, 7  ;;  %v3524_v36 = vld [vmem:[#allocation27_spill] sm:$0xff]  ;;  %v3525_v12 = vld [vmem:[#allocation22_spill] sm:$0xff] }
  0xdd   : > { %v1810_v61 = vrot.slane %v3031_v10, 3  ;;  %v1611_v59 = vsel %vm1164_vm8, %v1609_v51, %v1610_v0  ;;  %v1842_v60 = vrot.slane %v3031_v10, 4  ;;  %v583_v40 = vmax.f32 %v559_v2, %v2421_v29 }
  0xde   : > { %v1561_v30 = vmax.f32 %v1521_v15, %v1531_v38  ;;  %v3064_v31 = vmax.f32 %v560_v37, %v2302_v63  ;;  %v1652_v43 = vsel %vm871_vm4, %v1650_v13, %v1651_v50  ;;  %v3526_v3 = vmax.f32 %v3524_v36, %v3525_v12  ;;  %v3527_v38 = vld [vmem:[#allocation26_spill] sm:$0xff] }
  0xdf   : > { %v514_v15 = vmax.f32 %v3527_v38, %v3522_v62  ;;  %v1452_v54 = vrot.slane %v583_v40, 1  ;;  %v1492_v10 = vrot.slane %v583_v40, 2  ;;  %v1692_v37 = vsel %vm1261_vm9, %v1690_v44, %v1691_v57 }
  0xe0   : > { %v1601_v6 = vmax.f32 %v1561_v30, %v1571_v58  ;;  %v561_v17 = vmax.f32 %v3526_v3, %v2728_v26  ;;  %v1453_v51 = vrot.slane %v3064_v31, 1  ;;  %v1493_v2 = vrot.slane %v3064_v31, 2 }
  0xe1   : > { %v1532_v58 = vrot.slane %v583_v40, 3  ;;  %v3470_v13 = vrot.slane %v3064_v31, 3  ;;  %v1572_v26 = vrot.slane %v583_v40, 4  ;;  %v1573_v36 = vrot.slane %v3064_v31, 4 }
  0xe2   : > { %v1641_v0 = vmax.f32 %v1601_v6, %v1611_v59  ;;  %v1454_v50 = vsel %vm620_vm0, %v1452_v54, %v1453_v51  ;;  %v1494_v30 = vsel %vm677_vm1, %v1492_v10, %v1493_v2  ;;  %v1747_v12 = vsel %vm620_vm0, %v1450_v23, %v1746_v41 }
  0xe3   : > { %v3082_v3 = vmax.f32 %v561_v17, %v2776_v48  ;;  %v1482_v38 = vmax.f32 %v583_v40, %v1454_v50  ;;  %v1534_v44 = vsel %vm734_vm2, %v1532_v58, %v3470_v13  ;;  %v1612_v57 = vrot.slane %v583_v40, 5 }
  0xe4   : > { %v1682_v62 = vmax.f32 %v1641_v0, %v1652_v43  ;;  %v1613_v59 = vrot.slane %v3064_v31, 5  ;;  %v515_v54 = vmax.f32 %v2415_v27, %v3523_v9  ;;  %v1779_v10 = vsel %vm677_vm1, %v1490_v49, %v1778_v35  ;;  %v3528_v0 = vld [vmem:[#allocation12_spill] sm:$0xff] }
  0xe5   : > { %v1522_v43 = vmax.f32 %v1482_v38, %v1494_v30  ;;  %v538_v23 = vmax.f32 %v514_v15, %v3528_v0  ;;  %v1811_v41 = vsel %vm734_vm2, %v1530_v32, %v1810_v61  ;;  %v1574_v17 = vsel %vm1107_vm7, %v1572_v26, %v1573_v36  ;;  %v3529_v32 = vld [vmem:[#allocation13_spill] sm:$0xff] }
  0xe6   : > { %v1722_v6 = vmax.f32 %v1682_v62, %v1692_v37  ;;  %v1653_v50 = vrot.slane %v583_v40, 6  ;;  %v1654_v58 = vrot.slane %v3064_v31, 6  ;;  %v1843_v14 = vsel %vm1107_vm7, %v1570_v56, %v1842_v60  ;;  %v3530_v62 = vld [vmem:[#allocation28_spill] sm:$0xff] }
  0xe7   : > { %v1562_v27 = vmax.f32 %v1522_v43, %v1534_v44  ;;  %v1693_v9 = vrot.slane %v583_v40, 7  ;;  %v1614_v49 = vsel %vm1164_vm8, %v1612_v57, %v1613_v59  ;;  %v1694_v35 = vrot.slane %v3064_v31, 7 }
  0xe8   : > { %v1730_v13 = vmax.f32 %v1722_v6, %v3028_v33  ;;  %v1748_v15 = vrot.slane %v3082_v3, 1  ;;  %v539_v61 = vmax.f32 %v515_v54, %v3529_v32  ;;  %v562_v26 = vmax.f32 %v538_v23, %v2421_v29 }
  0xe9   : > { %v1602_v30 = vmax.f32 %v1562_v27, %v1574_v17  ;;  %v564_v38 = vmax.f32 %v3530_v62, %v2776_v48  ;;  %v1655_v33 = vsel %vm871_vm4, %v1653_v50, %v1654_v58  ;;  %v1780_v56 = vrot.slane %v3082_v3, 2 }
  0xea   : > { %v1770_v37 = vmax.f32 %v1730_v13, %v1747_v12  ;;  %v563_v60 = vmax.f32 %v539_v61, %v2302_v63  ;;  %v517_v40 = vmax.f32 %v2743_v45, %v3528_v0  ;;  %v1812_v59 = vrot.slane %v3082_v3, 3 }
  0xeb   : > { %v1642_v57 = vmax.f32 %v1602_v30, %v1614_v49  ;;  %v586_v13 = vmax.f32 %v562_v26, %v2454_v47  ;;  %v1695_v29 = vsel %vm1261_vm9, %v1693_v9, %v1694_v35  ;;  %v1749_v48 = vsel %vm620_vm0, %v1453_v51, %v1748_v15  ;;  %v3531_v26 = vld [vmem:[#allocation2_spill] sm:$0xff] }
  0xec   : > { %v1802_v44 = vmax.f32 %v1770_v37, %v1779_v10  ;;  %v1844_v12 = vrot.slane %v3082_v3, 4  ;;  %v3117_v54 = vmax.f32 %v563_v60, %v2462_v34  ;;  %v1781_v51 = vsel %vm677_vm1, %v1493_v2, %v1780_v56 }
  0xed   : > { %v1683_v6 = vmax.f32 %v1642_v57, %v1655_v33  ;;  %v1455_v43 = vrot.slane %v586_v13, 1  ;;  %v1495_v45 = vrot.slane %v586_v13, 2  ;;  %v1535_v23 = vrot.slane %v586_v13, 3 }
  0xee   : > { %v1834_v63 = vmax.f32 %v1802_v44, %v1811_v41  ;;  %v1456_v10 = vrot.slane %v3117_v54, 1  ;;  %v1496_v0 = vrot.slane %v3117_v54, 2  ;;  %v1536_v17 = vrot.slane %v3117_v54, 3 }
  0xef   : > { %v1723_v58 = vmax.f32 %v1683_v6, %v1695_v29  ;;  %v3124_v3 = vmax.f32 %v564_v38, %v2837_v20  ;;  %v1575_v9 = vrot.slane %v586_v13, 4  ;;  %v1576_v49 = vrot.slane %v3117_v54, 4 }
  0xf0   : > { %v1866_v50 = vmax.f32 %v1834_v63, %v1843_v14  ;;  %v1457_v41 = vsel %vm620_vm0, %v1455_v43, %v1456_v10  ;;  %v1497_v27 = vsel %vm677_vm1, %v1495_v45, %v1496_v0  ;;  %v518_v15 = vmax.f32 %v2450_v39, %v3529_v32 }
  0xf1   : > { %v1731_v35 = vmax.f32 %v1723_v58, %v3064_v31  ;;  %v1483_v2 = vmax.f32 %v586_v13, %v1457_v41  ;;  %v1537_v61 = vsel %vm734_vm2, %v1535_v23, %v1536_v17  ;;  %v1615_v37 = vrot.slane %v586_v13, 5 }
  0xf2   : > { %v1874_v14 = vpack.c.bf16 %v1866_v50, %v1866_v50  ;;  %v1616_v30 = vrot.slane %v3117_v54, 5  ;;  %v541_v62 = vmax.f32 %v517_v40, %v3531_v26  ;;  %v3532_v38 = vmax.f32 %v2902_v8, %v2556_v18 }
  0xf3   : > { %v1771_v56 = vmax.f32 %v1731_v35, %v1749_v48  ;;  %v3533_v60 = vrot.slane %v3064_v31, 3  ;;  %v1523_v32 = vmax.f32 %v1483_v2, %v1497_v27  ;;  %v1845_v44 = vsel %vm1107_vm7, %v1573_v36, %v1844_v12 }
  0xf4   : > { %v3145_v33 = vmax.f32 %v3532_v38, %v2576_v42  ;;  %1882 = vst.msk [vmem:[%s3130_s27] sm:$0xf] %vm914_vm5, %v1874_v14  ;;  %v1577_v40 = vsel %vm1107_vm7, %v1575_v9, %v1576_v49  ;;  %v1656_v57 = vrot.slane %v586_v13, 6  ;;  %v1657_v29 = vrot.slane %v3117_v54, 6 }
  0xf5   : > { %v1813_v39 = vsel %vm734_vm2, %v3533_v60, %v1812_v59  ;;  %v1803_v18 = vmax.f32 %v1771_v56, %v1781_v51  ;;  %v1563_v8 = vmax.f32 %v1523_v32, %v1537_v61  ;;  %v1696_v63 = vrot.slane %v586_v13, 7  ;;  %v3534_v59 = vld [vmem:[#allocation3_spill] sm:$0xff] }
  0xf6   : > { %v1750_v6 = vrot.slane %v3124_v3, 1  ;;  %v1617_v48 = vsel %vm1164_vm8, %v1615_v37, %v1616_v30  ;;  %v1697_v43 = vrot.slane %v3117_v54, 7  ;;  %v542_v45 = vmax.f32 %v518_v15, %v3534_v59 }
  0xf7   : > { %v565_v31 = vmax.f32 %v541_v62, %v2454_v47  ;;  %v528_v36 = vmax.f32 %v2951_v11, %v2576_v42  ;;  %v1835_v12 = vmax.f32 %v1803_v18, %v1813_v39  ;;  %v1603_v23 = vmax.f32 %v1563_v8, %v1577_v40 }
  0xf8   : > { %v1782_v50 = vrot.slane %v3124_v3, 2  ;;  %v1658_v58 = vsel %vm871_vm4, %v1656_v57, %v1657_v29  ;;  %v566_v13 = vmax.f32 %v542_v45, %v2462_v34  ;;  %v567_v51 = vmax.f32 %v3020_v19, %v2837_v20 }
  0xf9   : > { %v589_v41 = vmax.f32 %v565_v31, %v2499_v5  ;;  %v1867_v27 = vmax.f32 %v1835_v12, %v1845_v44  ;;  %v1643_v9 = vmax.f32 %v1603_v23, %v1617_v48  ;;  %v1751_v47 = vsel %vm620_vm0, %v1456_v10, %v1750_v6  ;;  %v3536_v31 = vld [vmem:[#allocation7_spill] sm:$0xff] }
  0xfa   : > { %v1814_v14 = vrot.slane %v3124_v3, 3  ;;  %v1698_v35 = vsel %vm1261_vm9, %v1696_v63, %v1697_v43  ;;  %v3174_v2 = vmax.f32 %v566_v13, %v2509_v46  ;;  %v1783_v20 = vsel %vm677_vm1, %v1496_v0, %v1782_v50 }
  0xfb   : > { %v1458_v15 = vrot.slane %v589_v41, 1  ;;  %v1498_v61 = vrot.slane %v589_v41, 2  ;;  %v1875_v34 = vpack.c.bf16 %v1867_v27, %v1867_v27  ;;  %v1684_v37 = vmax.f32 %v1643_v9, %v1658_v58 }
  0xfc   : > { %v1846_v19 = vrot.slane %v3124_v3, 4  ;;  %v1459_v30 = vrot.slane %v3174_v2, 1  ;;  %v1499_v62 = vrot.slane %v3174_v2, 2  ;;  %v1538_v10 = vrot.slane %v589_v41, 3 }
  0xfd   : > { %v1539_v38 = vrot.slane %v3174_v2, 3  ;;  %1883 = vst.msk [vmem:[%s3130_s27 + $0x4] sm:$0xf] %vm914_vm5, %v1875_v34  ;;  %v1724_v56 = vmax.f32 %v1684_v37, %v1698_v35  ;;  %v1815_v60 = vsel %vm734_vm2, %v1536_v17, %v1814_v14  ;;  %v1578_v39 = vrot.slane %v589_v41, 4 }
  0xfe   : > { %v1579_v32 = vrot.slane %v3174_v2, 4  ;;  %v1460_v0 = vsel %vm620_vm0, %v1458_v15, %v1459_v30  ;;  %v1500_v3 = vsel %vm677_vm1, %v1498_v61, %v1499_v62  ;;  %v520_v44 = vmax.f32 %v2789_v1, %v3531_v26 }
  0xff   : > { %v521_v40 = vmax.f32 %v2802_v53, %v3534_v59  ;;  %v1732_v57 = vmax.f32 %v1724_v56, %v3117_v54  ;;  %v1847_v17 = vsel %vm1107_vm7, %v1576_v49, %v1846_v19  ;;  %v3198_v29 = vmax.f32 %v567_v51, %v2873_v55  ;;  %v3535_v59 = vld [vmem:[#allocation6_spill] sm:$0xff] }
 0x100   : > { %v1484_v18 = vmax.f32 %v589_v41, %v1460_v0  ;;  %v1540_v8 = vsel %vm734_vm2, %v1538_v10, %v1539_v38  ;;  %v1618_v63 = vrot.slane %v589_v41, 5  ;;  %v1619_v6 = vrot.slane %v3174_v2, 5 }
 0x101   : > { %v1659_v48 = vrot.slane %v589_v41, 6  ;;  %v1772_v1 = vmax.f32 %v1732_v57, %v1751_v47  ;;  %v1580_v53 = vsel %vm1107_vm7, %v1578_v39, %v1579_v32  ;;  %v1660_v54 = vrot.slane %v3174_v2, 6 }
 0x102   : > { %v1524_v26 = vmax.f32 %v1484_v18, %v1500_v3  ;;  %v1699_v49 = vrot.slane %v589_v41, 7  ;;  %v1700_v43 = vrot.slane %v3174_v2, 7  ;;  %v544_v45 = vmax.f32 %v520_v44, %v3535_v59 }
 0x103   : > { %v545_v12 = vmax.f32 %v521_v40, %v3536_v31  ;;  %v1804_v23 = vmax.f32 %v1772_v1, %v1783_v20  ;;  %v1752_v58 = vrot.slane %v3198_v29, 1  ;;  %v1784_v13 = vrot.slane %v3198_v29, 2 }
 0x104   : > { %v1564_v50 = vmax.f32 %v1524_v26, %v1540_v8  ;;  %v1620_v51 = vsel %vm1164_vm8, %v1618_v63, %v1619_v6  ;;  %v1816_v27 = vrot.slane %v3198_v29, 3  ;;  %v568_v9 = vmax.f32 %v544_v45, %v2499_v5  ;;  %v3537_v8 = vld [vmem:[#allocation4_spill] sm:$0xff]  ;;  %v3538_v26 = vld [vmem:[#allocation5_spill] sm:$0xff] }
 0x105   : > { %v569_v41 = vmax.f32 %v545_v12, %v2509_v46  ;;  %v1836_v47 = vmax.f32 %v1804_v23, %v1815_v60  ;;  %v1661_v35 = vsel %vm871_vm4, %v1659_v48, %v1660_v54  ;;  %v1848_v15 = vrot.slane %v3198_v29, 4 }
 0x106   : > { %v1604_v14 = vmax.f32 %v1564_v50, %v1580_v53  ;;  %v1701_v61 = vsel %vm1261_vm9, %v1699_v49, %v1700_v43  ;;  %v570_v34 = vmax.f32 %v3048_v22, %v2873_v55  ;;  %v592_v37 = vmax.f32 %v568_v9, %v2517_v4 }
 0x107   : > { %v3224_v20 = vmax.f32 %v569_v41, %v2522_v52  ;;  %v1868_v19 = vmax.f32 %v1836_v47, %v1847_v17  ;;  %v523_v46 = vmax.f32 %v2848_v16, %v3535_v59  ;;  %v524_v10 = vmax.f32 %v2861_v28, %v3536_v31 }
 0x108   : > { %v1644_v5 = vmax.f32 %v1604_v14, %v1620_v51  ;;  %v1461_v56 = vrot.slane %v592_v37, 1  ;;  %v1501_v39 = vrot.slane %v592_v37, 2  ;;  %v1541_v3 = vrot.slane %v592_v37, 3 }
 0x109   : > { %v1462_v60 = vrot.slane %v3224_v20, 1  ;;  %v1502_v55 = vrot.slane %v3224_v20, 2  ;;  %v1876_v22 = vpack.c.bf16 %v1868_v19, %v1868_v19  ;;  %v1542_v44 = vrot.slane %v3224_v20, 3 }
 0x10a   : > { %v1685_v0 = vmax.f32 %v1644_v5, %v1661_v35  ;;  %v1581_v28 = vrot.slane %v592_v37, 4  ;;  %v1582_v57 = vrot.slane %v3224_v20, 4  ;;  %v1753_v29 = vsel %vm620_vm0, %v1459_v30, %v1752_v58 }
 0x10b   : > { %v1463_v40 = vsel %vm620_vm0, %v1461_v56, %v1462_v60  ;;  %v1503_v16 = vsel %vm677_vm1, %v1501_v39, %v1502_v55  ;;  %1884 = vst.msk [vmem:[%s3130_s27 + $0x8] sm:$0xf] %vm914_vm5, %v1876_v22  ;;  %v547_v63 = vmax.f32 %v523_v46, %v3537_v8  ;;  %v1543_v6 = vsel %vm734_vm2, %v1541_v3, %v1542_v44 }
 0x10c   : > { %v1725_v17 = vmax.f32 %v1685_v0, %v1701_v61  ;;  %v1485_v18 = vmax.f32 %v592_v37, %v1463_v40  ;;  %v1621_v48 = vrot.slane %v592_v37, 5  ;;  %v1622_v1 = vrot.slane %v3224_v20, 5 }
 0x10d   : > { %v548_v53 = vmax.f32 %v524_v10, %v3538_v26  ;;  %v1785_v49 = vsel %vm677_vm1, %v1499_v62, %v1784_v13  ;;  %v594_v30 = vmax.f32 %v570_v34, %v2942_v21  ;;  %v1817_v59 = vsel %vm734_vm2, %v1539_v38, %v1816_v27  ;;  %v3539_v34 = vld [vmem:[#allocation31_spill] sm:$0xff] }
 0x10e   : > { %v1733_v54 = vmax.f32 %v1725_v17, %v3174_v2  ;;  %v1525_v43 = vmax.f32 %v1485_v18, %v1503_v16  ;;  %v1583_v45 = vsel %vm1107_vm7, %v1581_v28, %v1582_v57  ;;  %v1662_v31 = vrot.slane %v592_v37, 6  ;;  %v3540_v2 = vld [vmem:[#allocation19_spill] sm:$0xff] }
 0x10f   : > { %v1663_v12 = vrot.slane %v3224_v20, 6  ;;  %v1702_v58 = vrot.slane %v592_v37, 7  ;;  %v1703_v51 = vrot.slane %v3224_v20, 7  ;;  %v1849_v62 = vsel %vm1107_vm7, %v1579_v32, %v1848_v15 }
 0x110   : > { %v1773_v23 = vmax.f32 %v1733_v54, %v1753_v29  ;;  %v1565_v50 = vmax.f32 %v1525_v43, %v1543_v6  ;;  %v1623_v13 = vsel %vm1164_vm8, %v1621_v48, %v1622_v1  ;;  %v571_v38 = vmax.f32 %v547_v63, %v2517_v4  ;;  %v3302_v43 = vld [vmem:[%s2208_s17 + $0xd8] sm:$0xff]  }
 0x111   : > { %v572_v27 = vmax.f32 %v548_v53, %v2522_v52  ;;  %v1754_v47 = vrot.slane %v594_v30, 1  ;;  %v573_v14 = vmax.f32 %v3145_v33, %v2942_v21  ;;  %v1664_v35 = vsel %vm871_vm4, %v1662_v31, %v1663_v12  ;;  %v3541_v53 = vld [vmem:[#allocation23_spill] sm:$0xff] }
 0x112   : > { %v1805_v9 = vmax.f32 %v1773_v23, %v1785_v49  ;;  %v1605_v41 = vmax.f32 %v1565_v50, %v1583_v45  ;;  %v1786_v61 = vrot.slane %v594_v30, 2  ;;  %v595_v37 = vmax.f32 %v571_v38, %v3539_v34  ;;  %v3542_v38 = vld [vmem:[#allocation29_spill] sm:$0xff] }
 0x113   : > { %v3275_v19 = vmax.f32 %v572_v27, %v3540_v2  ;;  %v1704_v4 = vsel %vm1261_vm9, %v1702_v58, %v1703_v51  ;;  %v1818_v5 = vrot.slane %v594_v30, 3  ;;  %v1850_v29 = vrot.slane %v594_v30, 4 }
 0x114   : > { %v1837_v32 = vmax.f32 %v1805_v9, %v1817_v59  ;;  %v1645_v15 = vmax.f32 %v1605_v41, %v1623_v13  ;;  %v1464_v52 = vrot.slane %v595_v37, 1  ;;  %v1504_v10 = vrot.slane %v595_v37, 2  ;;  %v3543_v9 = vld [vmem:[#allocation20_spill] sm:$0xff] }
 0x115   : > { %v1465_v46 = vrot.slane %v3275_v19, 1  ;;  %v1505_v56 = vrot.slane %v3275_v19, 2  ;;  %v1544_v39 = vrot.slane %v595_v37, 3  ;;  %v1545_v22 = vrot.slane %v3275_v19, 3 }
 0x116   : > { %v1869_v21 = vmax.f32 %v1837_v32, %v1849_v62  ;;  %v1686_v33 = vmax.f32 %v1645_v15, %v1664_v35  ;;  %v1584_v40 = vrot.slane %v595_v37, 4  ;;  %v1585_v16 = vrot.slane %v3275_v19, 4  ;;  %v3545_v32 = vld [vmem:[#allocation9_spill] sm:$0xff] }
 0x117   : > { %v1466_v0 = vsel %vm620_vm0, %v1464_v52, %v1465_v46  ;;  %v1506_v3 = vsel %vm677_vm1, %v1504_v10, %v1505_v56  ;;  %v1755_v63 = vsel %vm620_vm0, %v1462_v60, %v1754_v47  ;;  %v1546_v6 = vsel %vm734_vm2, %v1544_v39, %v1545_v22  ;;  %v3544_v47 = vld [vmem:[#allocation8_spill] sm:$0xff] }
 0x118   : > { %v1877_v28 = vpack.c.bf16 %v1869_v21, %v1869_v21  ;;  %v1726_v17 = vmax.f32 %v1686_v33, %v1704_v4  ;;  %v1486_v18 = vmax.f32 %v595_v37, %v1466_v0  ;;  %v1624_v48 = vrot.slane %v595_v37, 5  ;;  %v253_v21 = vld [vmem:[%s2208_s17 + $0xe4] sm:$0xff]  }
 0x119   : > { %v1625_v1 = vrot.slane %v3275_v19, 5  ;;  %v3293_v54 = vmax.f32 %v528_v36, %v3541_v53  ;;  %v1787_v30 = vsel %vm677_vm1, %v1502_v55, %v1786_v61  ;;  %v597_v59 = vmax.f32 %v573_v14, %v2973_v24 }
 0x11a   : > { %1885 = vst.msk [vmem:[%s3130_s27 + $0xc] sm:$0xf] %vm914_vm5, %v1877_v28  ;;  %v1734_v49 = vmax.f32 %v1726_v17, %v3224_v20  ;;  %v1526_v60 = vmax.f32 %v1486_v18, %v1506_v3  ;;  %v1586_v45 = vsel %vm1107_vm7, %v1584_v40, %v1585_v16  ;;  %v1665_v31 = vrot.slane %v595_v37, 6  ;;  %v3546_v40 = vld [vmem:[#allocation14_spill] sm:$0xff] }
 0x11b   : > { %v1666_v42 = vrot.slane %v3275_v19, 6  ;;  %v1819_v36 = vsel %vm734_vm2, %v1542_v44, %v1818_v5  ;;  %v1851_v12 = vsel %vm1107_vm7, %v1582_v57, %v1850_v29  ;;  %v1626_v23 = vsel %vm1164_vm8, %v1624_v48, %v1625_v1  ;;  %v3547_v48 = vld [vmem:[#allocation30_spill] sm:$0xff] }
 0x11c   : > { %v1774_v11 = vmax.f32 %v1734_v49, %v1755_v63  ;;  %v1566_v55 = vmax.f32 %v1526_v60, %v1546_v6  ;;  %v1705_v50 = vrot.slane %v595_v37, 7  ;;  %v1706_v58 = vrot.slane %v3275_v19, 7 }
 0x11d   : > { %v2146_v51 = vunpack.c.l.bf16 %v3302_v43  ;;  %v526_v27 = vmax.f32 %v3542_v38, %v3537_v8  ;;  %v527_v44 = vmax.f32 %v3543_v9, %v3538_v26  ;;  %v1667_v20 = vsel %vm871_vm4, %v1665_v31, %v1666_v42 }
 0x11e   : > { %v1806_v62 = vmax.f32 %v1774_v11, %v1787_v30  ;;  %v1606_v13 = vmax.f32 %v1566_v55, %v1586_v45  ;;  %v1756_v57 = vrot.slane %v597_v59, 1  ;;  %v1788_v41 = vrot.slane %v597_v59, 2 }
 0x11f   : > { %v529_v14 = vmax.f32 %v2960_v25, %v3544_v47  ;;  %v550_v37 = vmax.f32 %v526_v27, %v3544_v47  ;;  %v551_v15 = vmax.f32 %v527_v44, %v3545_v32  ;;  %v1707_v4 = vsel %vm1261_vm9, %v1705_v50, %v1706_v58 }
 0x120   : > { %v1838_v35 = vmax.f32 %v1806_v62, %v1819_v36  ;;  %v1646_v61 = vmax.f32 %v1606_v13, %v1626_v23  ;;  %v1820_v8 = vrot.slane %v597_v59, 3  ;;  %v1852_v5 = vrot.slane %v597_v59, 4  ;;  %v3548_v36 = vld [vmem:[#allocation15_spill] sm:$0xff] }
 0x121   : > { %v2147_v52 = vunpack.c.h.bf16 %v3302_v43  ;;  %v574_v33 = vmax.f32 %v550_v37, %v3539_v34  ;;  %v575_v25 = vmax.f32 %v551_v15, %v3540_v2  ;;  %v531_v39 = vmax.f32 %v3005_v7, %v3541_v53  ;;  %v255_v15 = vld [vmem:[%s2208_s17 + $0xec] sm:$0x3] }
 0x122   : > { %v1870_v26 = vmax.f32 %v1838_v35, %v1851_v12  ;;  %v1687_v10 = vmax.f32 %v1646_v61, %v1667_v20  ;;  %v1757_v0 = vsel %vm620_vm0, %v1465_v46, %v1756_v57  ;;  %v1789_v3 = vsel %vm677_vm1, %v1505_v56, %v1788_v41 }
 0x123   : > { %v553_v28 = vmax.f32 %v529_v14, %v3546_v40  ;;  %v598_v18 = vmax.f32 %v574_v33, %v2146_v51  ;;  %v3335_v63 = vmax.f32 %v575_v25, %v2147_v52  ;;  %v1821_v6 = vsel %vm734_vm2, %v1545_v22, %v1820_v8 }
 0x124   : > { %v1878_v17 = vpack.c.bf16 %v1870_v26, %v1870_v26  ;;  %v1727_v29 = vmax.f32 %v1687_v10, %v1707_v4  ;;  %v1853_v34 = vsel %vm1107_vm7, %v1585_v16, %v1852_v5  ;;  %v313_v2 = vunpack.c.l.bf16 %v253_v21  ;;  %v252_v16 = vld [vmem:[%s2208_s17 + $0xe0] sm:$0x3]  ;;  %v3549_v26 = vld [vmem:[#allocation24_spill] sm:$0xff] }
 0x125   : > { %v530_v7 = vmax.f32 %v3547_v48, %v3545_v32  ;;  %v1467_v56 = vrot.slane %v598_v18, 1  ;;  %v1468_v1 = vrot.slane %v3335_v63, 1  ;;  %v1507_v53 = vrot.slane %v598_v18, 2 }
 0x126   : > { %1886 = vst.msk [vmem:[%s3130_s27 + $0x10] sm:$0xf] %vm914_vm5, %v1878_v17  ;;  %v1735_v46 = vmax.f32 %v1727_v29, %v3275_v19  ;;  %v577_v49 = vmax.f32 %v553_v28, %v2146_v51  ;;  %v1508_v30 = vrot.slane %v3335_v63, 2  ;;  %v1547_v60 = vrot.slane %v598_v18, 3 }
 0x127   : > { %v1548_v22 = vrot.slane %v3335_v63, 3  ;;  %v1469_v59 = vsel %vm620_vm0, %v1467_v56, %v1468_v1  ;;  %v1587_v45 = vrot.slane %v598_v18, 4  ;;  %v1588_v31 = vrot.slane %v3335_v63, 4 }
 0x128   : > { %v1775_v43 = vmax.f32 %v1735_v46, %v1757_v0  ;;  %v576_v19 = vmax.f32 %v3293_v54, %v2973_v24  ;;  %v1487_v42 = vmax.f32 %v598_v18, %v1469_v59  ;;  %v1509_v11 = vsel %vm677_vm1, %v1507_v53, %v1508_v30 }
 0x129   : > { %v554_v12 = vmax.f32 %v530_v7, %v3548_v36  ;;  %v1549_v23 = vsel %vm734_vm2, %v1547_v60, %v1548_v22  ;;  %v1627_v50 = vrot.slane %v598_v18, 5  ;;  %v1628_v58 = vrot.slane %v3335_v63, 5 }
 0x12a   : > { %v1807_v55 = vmax.f32 %v1775_v43, %v1789_v3  ;;  %v312_v51 = vunpack.c.l.bf16 %v252_v16  ;;  %v1527_v62 = vmax.f32 %v1487_v42, %v1509_v11  ;;  %v1668_v13 = vrot.slane %v598_v18, 6 }
 0x12b   : > { %v1669_v24 = vrot.slane %v3335_v63, 6  ;;  %v3361_v38 = vmax.f32 %v577_v49, %v313_v2  ;;  %v1589_v27 = vsel %vm1107_vm7, %v1587_v45, %v1588_v31  ;;  %v314_v9 = vunpack.c.h.bf16 %v253_v21 }
 0x12c   : > { %v1839_v54 = vmax.f32 %v1807_v55, %v1821_v6  ;;  %v600_v44 = vmax.f32 %v576_v19, %v312_v51  ;;  %v1567_v20 = vmax.f32 %v1527_v62, %v1549_v23  ;;  %v1708_v57 = vrot.slane %v598_v18, 7 }
 0x12d   : > { %v1709_v41 = vrot.slane %v3335_v63, 7  ;;  %v1629_v14 = vsel %vm1164_vm8, %v1627_v50, %v1628_v58  ;;  %v578_v35 = vmax.f32 %v554_v12, %v2147_v52  ;;  %v1670_v37 = vsel %vm871_vm4, %v1668_v13, %v1669_v24 }
 0x12e   : > { %v1871_v47 = vmax.f32 %v1839_v54, %v1853_v34  ;;  %v1607_v61 = vmax.f32 %v1567_v20, %v1589_v27  ;;  %v1470_v8 = vrot.slane %v3361_v38, 1  ;;  %v1510_v5 = vrot.slane %v3361_v38, 2 }
 0x12f   : > { %v3370_v4 = vmax.f32 %v578_v35, %v314_v9  ;;  %v555_v10 = vmax.f32 %v531_v39, %v3549_v26  ;;  %v1710_v33 = vsel %vm1261_vm9, %v1708_v57, %v1709_v41  ;;  %v1758_v25 = vrot.slane %v600_v44, 1 }
 0x130   : > { %v1879_v32 = vpack.c.bf16 %v1871_v47, %v1871_v47  ;;  %v1647_v21 = vmax.f32 %v1607_v61, %v1629_v14  ;;  %v1550_v3 = vrot.slane %v3361_v38, 3  ;;  %v1790_v17 = vrot.slane %v600_v44, 2 }
 0x131   : > { %v1471_v52 = vrot.slane %v3370_v4, 1  ;;  %v1511_v0 = vrot.slane %v3370_v4, 2  ;;  %v1551_v40 = vrot.slane %v3370_v4, 3  ;;  %v315_v29 = vunpack.c.l.bf16 %v255_v15 }
 0x132   : > { %1887 = vst.msk [vmem:[%s3130_s27 + $0x14] sm:$0xf] %vm914_vm5, %v1879_v32  ;;  %v1688_v28 = vmax.f32 %v1647_v21, %v1670_v37  ;;  %v1590_v6 = vrot.slane %v3361_v38, 4  ;;  %v1591_v34 = vrot.slane %v3370_v4, 4  ;;  %v1822_v48 = vrot.slane %v600_v44, 3 }
 0x133   : > { %v1472_v18 = vsel %vm620_vm0, %v1470_v8, %v1471_v52  ;;  %v1512_v39 = vsel %vm677_vm1, %v1510_v5, %v1511_v0  ;;  %v579_v7 = vmax.f32 %v555_v10, %v312_v51  ;;  %v1759_v56 = vsel %vm620_vm0, %v1468_v1, %v1758_v25 }
 0x134   : > { %v1728_v2 = vmax.f32 %v1688_v28, %v1710_v33  ;;  %v1488_v46 = vmax.f32 %v3361_v38, %v1472_v18  ;;  %v1552_v53 = vsel %vm734_vm2, %v1550_v3, %v1551_v40  ;;  %v1630_v49 = vrot.slane %v3361_v38, 5 }
 0x135   : > { %v1631_v60 = vrot.slane %v3370_v4, 5  ;;  %v1854_v16 = vrot.slane %v600_v44, 4  ;;  %v1791_v45 = vsel %vm677_vm1, %v1508_v30, %v1790_v17  ;;  %v1592_v19 = vsel %vm1107_vm7, %v1590_v6, %v1591_v34 }
 0x136   : > { %v1736_v43 = vmax.f32 %v1728_v2, %v3335_v63  ;;  %v1528_v59 = vmax.f32 %v1488_v46, %v1512_v39  ;;  %v1671_v42 = vrot.slane %v3361_v38, 6  ;;  %v1672_v1 = vrot.slane %v3370_v4, 6 }
 0x137   : > { %v603_v36 = vmax.f32 %v579_v7, %v315_v29  ;;  %v1823_v55 = vsel %vm734_vm2, %v1548_v22, %v1822_v48  ;;  %v1632_v23 = vsel %vm1164_vm8, %v1630_v49, %v1631_v60  ;;  %v1711_v50 = vrot.slane %v3361_v38, 7 }
 0x138   : > { %v1776_v11 = vmax.f32 %v1736_v43, %v1759_v56  ;;  %v1568_v12 = vmax.f32 %v1528_v59, %v1552_v53  ;;  %v1712_v58 = vrot.slane %v3370_v4, 7  ;;  %v1855_v62 = vsel %vm1107_vm7, %v1588_v31, %v1854_v16 }
 0x139   : > { %v1673_v13 = vsel %vm871_vm4, %v1671_v42, %v1672_v1  ;;  %v1760_v22 = vrot.slane %v603_v36, 1  ;;  %v1792_v20 = vrot.slane %v603_v36, 2  ;;  %v1824_v47 = vrot.slane %v603_v36, 3 }
 0x13a   : > { %v1808_v30 = vmax.f32 %v1776_v11, %v1791_v45  ;;  %v1608_v51 = vmax.f32 %v1568_v12, %v1592_v19  ;;  %v1713_v27 = vsel %vm1261_vm9, %v1711_v50, %v1712_v58  ;;  %v1856_v14 = vrot.slane %v603_v36, 4 }
 0x13b   : > { %v1761_v41 = vsel %vm620_vm0, %v1471_v52, %v1760_v22  ;;  %v1793_v31 = vsel %vm677_vm1, %v1511_v0, %v1792_v20  ;;  %v1825_v61 = vsel %vm734_vm2, %v1551_v40, %v1824_v47 }
 0x13c   : > { %v1840_v24 = vmax.f32 %v1808_v30, %v1823_v55  ;;  %v1648_v54 = vmax.f32 %v1608_v51, %v1632_v23  ;;  %v1857_v32 = vsel %vm1107_vm7, %v1591_v34, %v1856_v14 }
 0x13e   : > { %v1872_v9 = vmax.f32 %v1840_v24, %v1855_v62  ;;  %v1689_v44 = vmax.f32 %v1648_v54, %v1673_v13 }
 0x140   : > { %v1880_v38 = vpack.c.bf16 %v1872_v9, %v1872_v9  ;;  %v1729_v57 = vmax.f32 %v1689_v44, %v1713_v27 }
 0x142   : > { %1888 = vst.msk [vmem:[%s3130_s27 + $0x18] sm:$0xf] %vm914_vm5, %v1880_v38  ;;  %v1737_v63 = vmax.f32 %v1729_v57, %v3370_v4 }
 0x144   : > { %v1777_v35 = vmax.f32 %v1737_v63, %v1761_v41 }
 0x146   : > { %v1809_v37 = vmax.f32 %v1777_v35, %v1793_v31 }
 0x148   : > { %v1841_v15 = vmax.f32 %v1809_v37, %v1825_v61 }
 0x14a   : > { %v1873_v8 = vmax.f32 %v1841_v15, %v1857_v32 }
 0x14c   : > { %v1881_v5 = vpack.c.bf16 %v1873_v8, %v1873_v8 }
 0x14e   : > { %1889 = vst.msk [vmem:[%s3130_s27 + $0x1c] sm:$0xf] %vm914_vm5, %v1881_v5 }
 0x14f PF: > { %s14_s12 = sadd.s32 1, %s2172_s12  }
 0x150   : > { %p11_p4 = scmp.ge.s32.totalorder %s14_s12, 4  }
 0x152   :  { %13 = sbr.rel (!%p11_p4) target bundleno = 1 (0x1), region = 78 }

// kernel: yolov1_forward.22
= control target key start
LH: loop header
LB: loop body
LE: loop exit
PB: predicated region body
PF: predicated region fallthrough
CT: control target
= control target key end

     0   :  { %s6290_s0 = inlined_call_operand.vmem [shape: bf16[512,3], index: 0, kind: input, shape index: {}]   ;;  %s6291_s1 = inlined_call_operand.vmem [shape: bf16[512,3], index: 1, kind: input, shape index: {}]   ;;  %s6292_s2 = inlined_call_operand.vmem [shape: bf16[512,3], index: 2, kind: input, shape index: {}]   ;;  %s6293_s3 = inlined_call_operand.vmem [shape: bf16[512,3], index: 3, kind: input, shape index: {}]   ;;  %s6294_s4 = inlined_call_operand.vmem [shape: bf16[512,3], index: 4, kind: input, shape index: {}]   ;;  %s6295_s5 = inlined_call_operand.vmem [shape: bf16[512,3], index: 5, kind: input, shape index: {}]   ;;  %s6296_s6 = inlined_call_operand.vmem [shape: bf16[512,3], index: 6, kind: input, shape index: {}]   ;;  %s6297_s7 = inlined_call_operand.vmem [shape: bf16[512,3], index: 7, kind: input, shape index: {}]   ;;  %s6298_s8 = inlined_call_operand.vmem [shape: bf16[512,3], index: 8, kind: input, shape index: {}]   ;;  %s6299_s9 = inlined_call_operand.vmem [shape: bf16[3,16], index: 9, kind: input, shape index: {}]   ;;  %s6300_s10 = inlined_call_operand.vmem [shape: bf16[3,16], index: 10, kind: input, shape index: {}]   ;;  %s6301_s11 = inlined_call_operand.vmem [shape: bf16[3,16], index: 11, kind: input, shape index: {}]   ;;  %s6302_s12 = inlined_call_operand.vmem [shape: bf16[3,16], index: 12, kind: input, shape index: {}]   ;;  %s6303_s13 = inlined_call_operand.vmem [shape: bf16[3,16], index: 13, kind: input, shape index: {}]   ;;  %s6304_s14 = inlined_call_operand.vmem [shape: bf16[3,16], index: 14, kind: input, shape index: {}]   ;;  %s6305_s15 = inlined_call_operand.vmem [shape: bf16[3,16], index: 15, kind: input, shape index: {}]   ;;  %s6306_s16 = inlined_call_operand.vmem [shape: bf16[3,16], index: 16, kind: input, shape index: {}]   ;;  %s6307_s17 = inlined_call_operand.vmem [shape: bf16[3,16], index: 17, kind: input, shape index: {}]   ;;  %s6308_s18 = inlined_call_operand.vmem [shape: f32[1,16], index: 18, kind: input, shape index: {}]   ;;  %s6309_s19 = inlined_call_operand.vmem [shape: bf16[512,16], index: 19, kind: output, shape index: {}]  }
   0x1   :  { %6310 = sst [smem:[#allocation2_spill]] %s6290_s0  ;;  %s5744_s0 = smov 0  }
   0x2   :  { %6311 = sst [smem:[#allocation3_spill]] %s6291_s1 }
   0x3   :  { %6312 = sst [smem:[#allocation4_spill]] %s6292_s2 }
   0x4   :  { %6313 = sst [smem:[#allocation5_spill]] %s6293_s3 }
   0x5 LB: > { %s4385_s30 = sadd.s32 4294967295, %s5641_s0   ;;  %p4389_p0 = scmp.ge.s32.totalorder %s5641_s0, 1  ;;  %s5641_s0 = sphi %s5744_s0, %s29_s0  }
   0x6   : > { %p626_p1 = scmp.lt.s32.totalorder %s5641_s0, 3 }
   0x8   : > { %p627_p2 = pnand %p4389_p0, %p626_p1 }
   0x9   : > { %v848_v0 = vld [vmem:[%s6300_s10] sm:$0x3] (!%p627_p2)  ;;  %vm978_vm0 = vcmask (!%p627_p2), 1040384   ;;  %vm979_vm1 = vcmask (!%p627_p2), 1041408   ;;  %s4390_s1 = sshll.u32 (!%p627_p2), %s4385_s30, 5  ;;  %v5643_v1 = vmov (!%p627_p2), 65535  }
   0xa   : > { %630 = sbr.rel (%p627_p2) target bundleno = 528 (0x210), region = 96  ;;  %v980_v2 = vsel (!%p627_p2), %vm978_vm0, 4294967295, %v5643_v1  ;;  %v2184_v3 = vld [vmem:[%s6303_s13] sm:$0x3] (!%p627_p2)  ;;  %p723_p3 = scmp.lt.s32.totalorder (!%p627_p2), %s4390_s1, 63  ;;  %vm929_vm2 = vcmask (!%p627_p2), 23552  }
   0xb   : > { %v5758_v4 = vsel (!%p627_p2), %vm979_vm1, %v980_v2, 0  ;;  %v815_v5 = vld [vmem:[%s6299_s9] sm:$0x3] (!%p627_p2)  ;;  %s6314_s29 = sld [smem:[#allocation3_spill]] (!%p627_p2)  ;;  %s6316_s20 = sld [smem:[#allocation4_spill]] (!%p627_p2)  ;;  %vm4200_vm5 = vcmask (!%p627_p2), 125952  }
   0xc   : > { %v2541_v6 = vld [vmem:[%s6304_s14] sm:$0x3] (!%p627_p2)  ;;  %v983_v7 = vand.u32 (!%p627_p2), %v5758_v4, %v848_v0  ;;  %v5768_v8 = vand.u32 (!%p627_p2), %v2184_v3, %v5758_v4  ;;  %v1275_v9 = vand.u32 (!%p627_p2), %v5758_v4, %v815_v5 }
   0xd   : > { %v2671_v10 = vand.u32 (!%p627_p2), %v2541_v6, %v5758_v4  ;;  %v2898_v11 = vld [vmem:[%s6305_s15] sm:$0x3] (!%p627_p2) }
   0xe   : > { %4918 = vmatprep.subr.bf16.mxu1 (!%p627_p2), %v983_v7  ;;  %5054 = vmatprep.subr.bf16.mxu0 (!%p627_p2), %v5768_v8  ;;  %v1470_v12 = vld [vmem:[%s6301_s11] sm:$0x3] (!%p627_p2)  ;;  %v3028_v17 = vand.u32 (!%p627_p2), %v2898_v11, %v5758_v4 }
   0xf   : > { %4919 = vmatpush3.bf16.msra.mxu1 (!%p627_p2), %v983_v7  ;;  %5055 = vmatpush3.bf16.msra.mxu0 (!%p627_p2), %v5768_v8  ;;  %v5804_v19 = vand.u32 (!%p627_p2), %v1470_v12, %v5758_v4  ;;  %v3255_v33 = vld [vmem:[%s6306_s16] sm:$0x3] (!%p627_p2) }
  0x10   : > { %4952 = vmatprep.subr.bf16.mxu1 (!%p627_p2), %v1275_v9  ;;  %5088 = vmatprep.subr.bf16.mxu0 (!%p627_p2), %v2671_v10  ;;  %v5855_v38 = vand.u32 (!%p627_p2), %v3255_v33, %v5758_v4  ;;  %v1827_v51 = vld [vmem:[%s6302_s12] sm:$0x3] (!%p627_p2) }
  0x11   : > { %s6319_s1 = smov (!%p723_p3, %s4390_s1), 63  ;;  %v5906_v56 = vand.u32 %v1827_v51, %v5758_v4 }
  0x12   : > { %s5773_s26 = sshll.u32 %s6319_s1, 2  ;;  %s6315_s1 = sld [smem:[#allocation2_spill]] }
  0x13   : > { %s5780_s30 = scalar_lea.vmem %s6314_s29, %s5773_s26  ;;  %s5786_s22 = scalar_lea.vmem %s6294_s4, %s5773_s26 }
  0x14   : > { %v5491_v13 = vld [vmem:[%s5780_s30] sm:$0xff]   ;;  %v5493_v15 = vld [vmem:[%s5780_s30 + $0x8] sm:$0xff]   ;;  %v5495_v18 = vld [vmem:[%s5780_s30 + $0x10] sm:$0xff]   ;;  %s5825_s27 = scalar_lea.vmem %s6295_s5, %s5773_s26  ;;  %s5876_s25 = scalar_lea.vmem %s6296_s6, %s5773_s26 }
  0x15   : > { %v5492_v14 = vld [vmem:[%s5786_s22] sm:$0xff]   ;;  %4920 = vmatprep.mubr.msk.bf16.mxu1 %vm929_vm2, %v5491_v13  ;;  %v5494_v16 = vld [vmem:[%s5786_s22 + $0x8] sm:$0xff]   ;;  %v5496_v20 = vld [vmem:[%s5786_s22 + $0x10] sm:$0xff]   ;;  %s5900_s21 = scalar_lea.vmem %s6316_s20, %s5773_s26  ;;  %s5928_s24 = scalar_lea.vmem %s6297_s7, %s5773_s26 }
  0x16   : > { %5056 = vmatprep.mubr.msk.bf16.mxu0 %vm929_vm2, %v5492_v14  ;;  %4921 = vmatmul.mubr.msk.bf16.vlgmr.msra.gmra.mrb[0].mxu1 %vm929_vm2, %v5493_v15  ;;  %v5497_v21 = vld [vmem:[%s5780_s30 + $0x18] sm:$0xff]   ;;  %v5499_v23 = vld [vmem:[%s5780_s30 + $0x20] sm:$0xff]   ;;  %v5501_v25 = vld [vmem:[%s5780_s30 + $0x28] sm:$0xff]   ;;  %s5980_s3 = scalar_lea.vmem %s6298_s8, %s5773_s26 }
  0x17   : > { %4953 = vmatpush3.bf16.msra.mxu1 %v1275_v9  ;;  %5057 = vmatmul.mubr.msk.bf16.vlgmr.msra.gmra.mrb[0].mxu0 %vm929_vm2, %v5494_v16  ;;  %v5498_v22 = vld [vmem:[%s5786_s22 + $0x18] sm:$0xff]   ;;  %v5500_v24 = vld [vmem:[%s5786_s22 + $0x20] sm:$0xff]   ;;  %v5502_v26 = vld [vmem:[%s5786_s22 + $0x28] sm:$0xff]  }
  0x18   : > { %5089 = vmatpush3.bf16.msra.mxu0 %v2671_v10  ;;  %4924 = vmatprep.mubr.msk.bf16.mxu1 %vm929_vm2, %v5495_v18  ;;  %v5503_v27 = vld [vmem:[%s5780_s30 + $0x30] sm:$0xff]   ;;  %v5505_v29 = vld [vmem:[%s5780_s30 + $0x38] sm:$0xff]   ;;  %v5507_v31 = vld [vmem:[%s5780_s30 + $0x40] sm:$0xff]   ;;  %s5849_s2 = scalar_lea.vmem %s6315_s1, %s5773_s26 }
  0x19   : > { %5060 = vmatprep.mubr.msk.bf16.mxu0 %vm929_vm2, %v5496_v20  ;;  %5122 = vmatprep.subr.bf16.mxu0 %v3028_v17  ;;  %v5504_v28 = vld [vmem:[%s5786_s22 + $0x30] sm:$0xff]   ;;  %v5506_v30 = vld [vmem:[%s5786_s22 + $0x38] sm:$0xff]   ;;  %v5508_v32 = vld [vmem:[%s5825_s27] sm:$0xff]  }
  0x1a   : > { %4986 = vmatprep.subr.bf16.mxu1 %v5804_v19  ;;  %v5509_v34 = vld [vmem:[%s5780_s30 + $0x48] sm:$0xff]   ;;  %v5511_v36 = vld [vmem:[%s5780_s30 + $0x50] sm:$0xff]   ;;  %v5513_v39 = vld [vmem:[%s5780_s30 + $0x58] sm:$0xff]  }
  0x1b   : > { %v5510_v35 = vld [vmem:[%s5825_s27 + $0x8] sm:$0xff]   ;;  %v5512_v37 = vld [vmem:[%s5825_s27 + $0x10] sm:$0xff]   ;;  %v5514_v40 = vld [vmem:[%s5825_s27 + $0x18] sm:$0xff]  }
  0x1c   : > { %v5515_v41 = vld [vmem:[%s5780_s30 + $0x60] sm:$0xff]   ;;  %v5517_v43 = vld [vmem:[%s5780_s30 + $0x68] sm:$0xff]   ;;  %v5519_v45 = vld [vmem:[%s5780_s30 + $0x70] sm:$0xff]  }
  0x1d   : > { %v5516_v42 = vld [vmem:[%s5825_s27 + $0x20] sm:$0xff]   ;;  %v5518_v44 = vld [vmem:[%s5825_s27 + $0x28] sm:$0xff]   ;;  %v5520_v46 = vld [vmem:[%s5825_s27 + $0x30] sm:$0xff]  }
  0x1e   : > { %4925 = vmatmul.mubr.msk.bf16.gmra.mrb[4].mxu1 %vm929_vm2, %v5497_v21  ;;  %v5521_v47 = vld [vmem:[%s5780_s30 + $0x78] sm:$0xff]   ;;  %v5523_v49 = vld [vmem:[%s5849_s2] sm:$0xff]   ;;  %v5525_v52 = vld [vmem:[%s5849_s2 + $0x8] sm:$0xff]   ;;  %s6317_s30 = sld [smem:[#allocation5_spill]] }
  0x1f   : > { %5061 = vmatmul.mubr.msk.bf16.gmra.mrb[4].mxu0 %vm929_vm2, %v5498_v22  ;;  %4928 = vmatprep.mubr.msk.bf16.mxu1 %vm929_vm2, %v5499_v23  ;;  %v5522_v48 = vld [vmem:[%s5825_s27 + $0x38] sm:$0xff]   ;;  %v5524_v50 = vld [vmem:[%s5825_s27 + $0x40] sm:$0xff]   ;;  %v5526_v53 = vld [vmem:[%s5825_s27 + $0x48] sm:$0xff]  }
  0x20   : > { %5064 = vmatprep.mubr.msk.bf16.mxu0 %vm929_vm2, %v5500_v24  ;;  %v5527_v54 = vld [vmem:[%s5849_s2 + $0x10] sm:$0xff]   ;;  %v5529_v57 = vld [vmem:[%s5849_s2 + $0x18] sm:$0xff]   ;;  %v5531_v59 = vld [vmem:[%s5849_s2 + $0x20] sm:$0xff]  }
  0x21   : > { %v5528_v55 = vld [vmem:[%s5825_s27 + $0x50] sm:$0xff]   ;;  %v5530_v58 = vld [vmem:[%s5825_s27 + $0x58] sm:$0xff]   ;;  %v5532_v60 = vld [vmem:[%s5825_s27 + $0x60] sm:$0xff]  }
  0x22   : > { %v5533_v61 = vld [vmem:[%s5849_s2 + $0x28] sm:$0xff]   ;;  %v5535_v63 = vld [vmem:[%s5849_s2 + $0x30] sm:$0xff]   ;;  %v5537_v1 = vld [vmem:[%s5849_s2 + $0x38] sm:$0xff]  }
  0x23   : > { %v5534_v62 = vld [vmem:[%s5825_s27 + $0x68] sm:$0xff]   ;;  %v5536_v0 = vld [vmem:[%s5825_s27 + $0x70] sm:$0xff]   ;;  %v5538_v2 = vld [vmem:[%s5825_s27 + $0x78] sm:$0xff]  }
  0x24   : > { %v5539_v3 = vld [vmem:[%s5849_s2 + $0x40] sm:$0xff]   ;;  %v5541_v6 = vld [vmem:[%s5849_s2 + $0x48] sm:$0xff]   ;;  %s5950_s27 = scalar_lea.vmem %s6317_s30, %s5773_s26  ;;  %v5543_v10 = vld [vmem:[%s5849_s2 + $0x50] sm:$0xff]  }
  0x25   : > { %v5540_v5 = vld [vmem:[%s5876_s25] sm:$0xff]   ;;  %v5542_v7 = vld [vmem:[%s5876_s25 + $0x8] sm:$0xff]   ;;  %v5544_v11 = vld [vmem:[%s5876_s25 + $0x10] sm:$0xff]  }
  0x26   : > { %4929 = vmatmul.mubr.msk.bf16.gmra.mrb[8].mxu1 %vm929_vm2, %v5501_v25  ;;  %v3612_v9 = vld [vmem:[%s6307_s17] sm:$0x3]  ;;  %v5545_v13 = vld [vmem:[%s5849_s2 + $0x58] sm:$0xff]   ;;  %v5549_v16 = vld [vmem:[%s5849_s2 + $0x68] sm:$0xff]  }
  0x27   : > { %5065 = vmatmul.mubr.msk.bf16.gmra.mrb[8].mxu0 %vm929_vm2, %v5502_v26  ;;  %4932 = vmatprep.mubr.msk.bf16.mxu1 %vm929_vm2, %v5503_v27  ;;  %v5958_v12 = vand.u32 %v3612_v9, %v5758_v4  ;;  %v5546_v14 = vld [vmem:[%s5876_s25 + $0x18] sm:$0xff]   ;;  %v5547_v4 = vld [vmem:[%s5849_s2 + $0x60] sm:$0xff]   ;;  %v5551_v18 = vld [vmem:[%s5849_s2 + $0x70] sm:$0xff]  }
  0x28   : > { %5068 = vmatprep.mubr.msk.bf16.mxu0 %vm929_vm2, %v5504_v28  ;;  %v5548_v15 = vld [vmem:[%s5876_s25 + $0x20] sm:$0xff]   ;;  %v5553_v20 = vld [vmem:[%s5849_s2 + $0x78] sm:$0xff]   ;;  %v5557_v24 = vld [vmem:[%s5900_s21 + $0x8] sm:$0xff]  }
  0x29   : > { %v5554_v21 = vld [vmem:[%s5876_s25 + $0x38] sm:$0xff]   ;;  %v5555_v22 = vld [vmem:[%s5900_s21] sm:$0xff]   ;;  %v5558_v25 = vld [vmem:[%s5876_s25 + $0x48] sm:$0xff]  }
  0x2a   : > { %v5556_v23 = vld [vmem:[%s5876_s25 + $0x40] sm:$0xff]   ;;  %v5559_v26 = vld [vmem:[%s5900_s21 + $0x10] sm:$0xff]   ;;  %v5561_v28 = vld [vmem:[%s5900_s21 + $0x18] sm:$0xff]  }
  0x2b   : > { %v5560_v27 = vld [vmem:[%s5876_s25 + $0x50] sm:$0xff]   ;;  %v5566_v33 = vld [vmem:[%s5876_s25 + $0x68] sm:$0xff]  }
  0x2c   : > { %v5584_v51 = vld [vmem:[%s5928_s24 + $0x30] sm:$0xff]   ;;  %v5605_v9 = vld [vmem:[%s5950_s27 + $0x48] sm:$0xff]  }
  0x2e   : > { %4933 = vmatmul.mubr.msk.bf16.gmra.mrb[12].mxu1 %vm929_vm2, %v5505_v29  ;;  %v5562_v29 = vld [vmem:[%s5876_s25 + $0x58] sm:$0xff]  }
  0x2f   : > { %5069 = vmatmul.mubr.msk.bf16.gmra.mrb[12].mxu0 %vm929_vm2, %v5506_v30  ;;  %4936 = vmatprep.mubr.msk.bf16.mxu1 %vm929_vm2, %v5507_v31  ;;  %v5563_v30 = vld [vmem:[%s5900_s21 + $0x20] sm:$0xff]  }
  0x30   : > { %5090 = vmatprep.mubr.msk.bf16.mxu0 %vm929_vm2, %v5508_v32  ;;  %v5564_v31 = vld [vmem:[%s5876_s25 + $0x60] sm:$0xff]   ;;  %v5565_v32 = vld [vmem:[%s5900_s21 + $0x28] sm:$0xff]  }
  0x36   : > { %4937 = vmatmul.mubr.msk.bf16.gmra.mrb[16].mxu1 %vm929_vm2, %v5509_v34  ;;  %v5567_v34 = vld [vmem:[%s5900_s21 + $0x30] sm:$0xff]  }
  0x37   : > { %5091 = vmatmul.mubr.msk.bf16.vlgmr.msra.gmra.mrb[0].mxu0 %vm929_vm2, %v5510_v35  ;;  %4940 = vmatprep.mubr.msk.bf16.mxu1 %vm929_vm2, %v5511_v36  ;;  %v5568_v35 = vld [vmem:[%s5876_s25 + $0x70] sm:$0xff]   ;;  %v5569_v36 = vld [vmem:[%s5900_s21 + $0x38] sm:$0xff]  }
  0x38   : > { %5123 = vmatpush3.bf16.msra.mxu0 %v3028_v17  ;;  %5094 = vmatprep.mubr.msk.bf16.mxu0 %vm929_vm2, %v5512_v37  ;;  %v5550_v17 = vld [vmem:[%s5876_s25 + $0x28] sm:$0xff]   ;;  %v5570_v37 = vld [vmem:[%s5876_s25 + $0x78] sm:$0xff]  }
  0x39   : > { %5156 = vmatprep.subr.bf16.mxu0 %v5855_v38 }
  0x3e   : > { %4941 = vmatmul.mubr.msk.bf16.gmra.mrb[20].mxu1 %vm929_vm2, %v5513_v39  ;;  %v5572_v39 = vld [vmem:[%s5928_s24] sm:$0xff]  }
  0x3f   : > { %5095 = vmatmul.mubr.msk.bf16.gmra.mrb[4].mxu0 %vm929_vm2, %v5514_v40  ;;  %4944 = vmatprep.mubr.msk.bf16.mxu1 %vm929_vm2, %v5515_v41  ;;  %v5573_v40 = vld [vmem:[%s5900_s21 + $0x48] sm:$0xff]  }
  0x40   : > { %5098 = vmatprep.mubr.msk.bf16.mxu0 %vm929_vm2, %v5516_v42  ;;  %v5574_v41 = vld [vmem:[%s5928_s24 + $0x8] sm:$0xff]   ;;  %v5575_v42 = vld [vmem:[%s5900_s21 + $0x50] sm:$0xff]  }
  0x46   : > { %4945 = vmatmul.mubr.msk.bf16.gmra.mrb[24].mxu1 %vm929_vm2, %v5517_v43  ;;  %v5576_v43 = vld [vmem:[%s5928_s24 + $0x10] sm:$0xff]  }
  0x47   : > { %5099 = vmatmul.mubr.msk.bf16.gmra.mrb[8].mxu0 %vm929_vm2, %v5518_v44  ;;  %4948 = vmatprep.mubr.msk.bf16.mxu1 %vm929_vm2, %v5519_v45  ;;  %v5577_v44 = vld [vmem:[%s5900_s21 + $0x58] sm:$0xff]  }
  0x48   : > { %5102 = vmatprep.mubr.msk.bf16.mxu0 %vm929_vm2, %v5520_v46  ;;  %v5578_v45 = vld [vmem:[%s5928_s24 + $0x18] sm:$0xff]   ;;  %v5579_v46 = vld [vmem:[%s5900_s21 + $0x60] sm:$0xff]  }
  0x4e   : > { %4949 = vmatmul.mubr.msk.bf16.gmra.mrb[28].mxu1 %vm929_vm2, %v5521_v47  ;;  %v5580_v47 = vld [vmem:[%s5928_s24 + $0x20] sm:$0xff]  }
  0x4f   : > { %5103 = vmatmul.mubr.msk.bf16.gmra.mrb[12].mxu0 %vm929_vm2, %v5522_v48  ;;  %4954 = vmatprep.mubr.msk.bf16.mxu1 %vm929_vm2, %v5523_v49  ;;  %v5581_v48 = vld [vmem:[%s5900_s21 + $0x68] sm:$0xff]  }
  0x50   : > { %5106 = vmatprep.mubr.msk.bf16.mxu0 %vm929_vm2, %v5524_v50  ;;  %v5582_v49 = vld [vmem:[%s5928_s24 + $0x28] sm:$0xff]   ;;  %v5583_v50 = vld [vmem:[%s5900_s21 + $0x70] sm:$0xff]  }
  0x56   : > { %4955 = vmatmul.mubr.msk.bf16.vlgmr.msra.gmra.mrb[0].mxu1 %vm929_vm2, %v5525_v52  ;;  %v5585_v52 = vld [vmem:[%s5900_s21 + $0x78] sm:$0xff]  }
  0x57   : > { %4987 = vmatpush3.bf16.msra.mxu1 %v5804_v19  ;;  %5107 = vmatmul.mubr.msk.bf16.gmra.mrb[16].mxu0 %vm929_vm2, %v5526_v53  ;;  %v5552_v19 = vld [vmem:[%s5876_s25 + $0x30] sm:$0xff]   ;;  %v5586_v53 = vld [vmem:[%s5928_s24 + $0x38] sm:$0xff]  }
  0x58   : > { %4958 = vmatprep.mubr.msk.bf16.mxu1 %vm929_vm2, %v5527_v54  ;;  %5110 = vmatprep.mubr.msk.bf16.mxu0 %vm929_vm2, %v5528_v55  ;;  %v5587_v54 = vld [vmem:[%s5950_s27] sm:$0xff]  }
  0x59   : > { %5020 = vmatprep.subr.bf16.mxu1 %v5906_v56  ;;  %v5588_v55 = vld [vmem:[%s5928_s24 + $0x40] sm:$0xff]  }
  0x5e   : > { %4959 = vmatmul.mubr.msk.bf16.gmra.mrb[4].mxu1 %vm929_vm2, %v5529_v57  ;;  %v5590_v57 = vld [vmem:[%s5928_s24 + $0x48] sm:$0xff]  }
  0x5f   : > { %5111 = vmatmul.mubr.msk.bf16.gmra.mrb[20].mxu0 %vm929_vm2, %v5530_v58  ;;  %4962 = vmatprep.mubr.msk.bf16.mxu1 %vm929_vm2, %v5531_v59  ;;  %v5591_v58 = vld [vmem:[%s5950_s27 + $0x10] sm:$0xff]  }
  0x60   : > { %5114 = vmatprep.mubr.msk.bf16.mxu0 %vm929_vm2, %v5532_v60  ;;  %v5592_v59 = vld [vmem:[%s5928_s24 + $0x50] sm:$0xff]   ;;  %v5593_v60 = vld [vmem:[%s5950_s27 + $0x18] sm:$0xff]  }
  0x66   : > { %4963 = vmatmul.mubr.msk.bf16.gmra.mrb[8].mxu1 %vm929_vm2, %v5533_v61  ;;  %v5594_v61 = vld [vmem:[%s5928_s24 + $0x58] sm:$0xff]  }
  0x67   : > { %5115 = vmatmul.mubr.msk.bf16.gmra.mrb[24].mxu0 %vm929_vm2, %v5534_v62  ;;  %4966 = vmatprep.mubr.msk.bf16.mxu1 %vm929_vm2, %v5535_v63  ;;  %v5595_v62 = vld [vmem:[%s5950_s27 + $0x20] sm:$0xff]  }
  0x68   : > { %5118 = vmatprep.mubr.msk.bf16.mxu0 %vm929_vm2, %v5536_v0  ;;  %v5596_v63 = vld [vmem:[%s5928_s24 + $0x60] sm:$0xff]   ;;  %v5598_v0 = vld [vmem:[%s5928_s24 + $0x68] sm:$0xff]  }
  0x6e   : > { %4967 = vmatmul.mubr.msk.bf16.gmra.mrb[12].mxu1 %vm929_vm2, %v5537_v1  ;;  %v5599_v1 = vld [vmem:[%s5950_s27 + $0x30] sm:$0xff]  }
  0x6f   : > { %5119 = vmatmul.mubr.msk.bf16.gmra.mrb[28].mxu0 %vm929_vm2, %v5538_v2  ;;  %4970 = vmatprep.mubr.msk.bf16.mxu1 %vm929_vm2, %v5539_v3  ;;  %v5600_v2 = vld [vmem:[%s5928_s24 + $0x70] sm:$0xff]   ;;  %v5601_v3 = vld [vmem:[%s5950_s27 + $0x38] sm:$0xff]  }
  0x70   : > { %5124 = vmatprep.mubr.msk.bf16.mxu0 %vm929_vm2, %v5540_v5  ;;  %v5602_v5 = vld [vmem:[%s5928_s24 + $0x78] sm:$0xff]   ;;  %s6185_s24 = scalar_lea.vmem %s6309_s19, %s5773_s26 }
  0x76   : > { %4971 = vmatmul.mubr.msk.bf16.gmra.mrb[16].mxu1 %vm929_vm2, %v5541_v6  ;;  %v5603_v6 = vld [vmem:[%s5950_s27 + $0x40] sm:$0xff]  }
  0x77   : > { %5125 = vmatmul.mubr.msk.bf16.vlgmr.msra.gmra.mrb[0].mxu0 %vm929_vm2, %v5542_v7  ;;  %4974 = vmatprep.mubr.msk.bf16.mxu1 %vm929_vm2, %v5543_v10  ;;  %v5604_v7 = vld [vmem:[%s5980_s3] sm:$0xff]   ;;  %v5606_v10 = vld [vmem:[%s5980_s3 + $0x8] sm:$0xff]  }
  0x78   : > { %5157 = vmatpush3.bf16.msra.mxu0 %v5855_v38  ;;  %5128 = vmatprep.mubr.msk.bf16.mxu0 %vm929_vm2, %v5544_v11  ;;  %v5571_v38 = vld [vmem:[%s5900_s21 + $0x40] sm:$0xff]   ;;  %v5607_v11 = vld [vmem:[%s5950_s27 + $0x50] sm:$0xff]  }
  0x79   : > { %5190 = vmatprep.subr.bf16.mxu0 %v5958_v12 }
  0x7e   : > { %4975 = vmatmul.mubr.msk.bf16.gmra.mrb[20].mxu1 %vm929_vm2, %v5545_v13  ;;  %v5609_v13 = vld [vmem:[%s5950_s27 + $0x58] sm:$0xff]  }
  0x7f   : > { %5129 = vmatmul.mubr.msk.bf16.gmra.mrb[4].mxu0 %vm929_vm2, %v5546_v14  ;;  %4978 = vmatprep.mubr.msk.bf16.mxu1 %vm929_vm2, %v5547_v4  ;;  %v5610_v14 = vld [vmem:[%s5980_s3 + $0x18] sm:$0xff]   ;;  %v5611_v4 = vld [vmem:[%s5950_s27 + $0x60] sm:$0xff]  }
  0x80   : > { %5132 = vmatprep.mubr.msk.bf16.mxu0 %vm929_vm2, %v5548_v15  ;;  %v5612_v15 = vld [vmem:[%s5980_s3 + $0x20] sm:$0xff]  }
  0x86   : > { %4979 = vmatmul.mubr.msk.bf16.gmra.mrb[24].mxu1 %vm929_vm2, %v5549_v16  ;;  %v5613_v16 = vld [vmem:[%s5950_s27 + $0x68] sm:$0xff]  }
  0x87   : > { %5133 = vmatmul.mubr.msk.bf16.gmra.mrb[8].mxu0 %vm929_vm2, %v5550_v17  ;;  %4982 = vmatprep.mubr.msk.bf16.mxu1 %vm929_vm2, %v5551_v18  ;;  %v5614_v17 = vld [vmem:[%s5980_s3 + $0x28] sm:$0xff]   ;;  %v5615_v18 = vld [vmem:[%s5950_s27 + $0x70] sm:$0xff]  }
  0x88   : > { %5136 = vmatprep.mubr.msk.bf16.mxu0 %vm929_vm2, %v5552_v19  ;;  %v5616_v19 = vld [vmem:[%s5980_s3 + $0x30] sm:$0xff]  }
  0x8e   : > { %4983 = vmatmul.mubr.msk.bf16.gmra.mrb[28].mxu1 %vm929_vm2, %v5553_v20  ;;  %v5617_v20 = vld [vmem:[%s5950_s27 + $0x78] sm:$0xff]  }
  0x8f   : > { %5137 = vmatmul.mubr.msk.bf16.gmra.mrb[12].mxu0 %vm929_vm2, %v5554_v21  ;;  %4988 = vmatprep.mubr.msk.bf16.mxu1 %vm929_vm2, %v5555_v22  ;;  %v5618_v21 = vld [vmem:[%s5980_s3 + $0x38] sm:$0xff]   ;;  %v5619_v22 = vld [vmem:[%s5786_s22 + $0x40] sm:$0xff]  }
  0x90   : > { %5140 = vmatprep.mubr.msk.bf16.mxu0 %vm929_vm2, %v5556_v23  ;;  %v5620_v23 = vld [vmem:[%s5980_s3 + $0x40] sm:$0xff]  }
  0x96   : > { %4989 = vmatmul.mubr.msk.bf16.vlgmr.msra.gmra.mrb[0].mxu1 %vm929_vm2, %v5557_v24  ;;  %v5621_v24 = vld [vmem:[%s5786_s22 + $0x48] sm:$0xff]  }
  0x97   : > { %5021 = vmatpush3.bf16.msra.mxu1 %v5906_v56  ;;  %5141 = vmatmul.mubr.msk.bf16.gmra.mrb[16].mxu0 %vm929_vm2, %v5558_v25  ;;  %v5589_v56 = vld [vmem:[%s5950_s27 + $0x8] sm:$0xff]  }
  0x98   : > { %4992 = vmatprep.mubr.msk.bf16.mxu1 %vm929_vm2, %v5559_v26  ;;  %5144 = vmatprep.mubr.msk.bf16.mxu0 %vm929_vm2, %v5560_v27  ;;  %v5622_v25 = vld [vmem:[%s5980_s3 + $0x48] sm:$0xff]   ;;  %v5623_v26 = vld [vmem:[%s5786_s22 + $0x50] sm:$0xff]  }
  0x99   : > { %5224 = vmatprep.subr.bf16.mxu1 %v5768_v8  ;;  %v5624_v27 = vld [vmem:[%s5980_s3 + $0x50] sm:$0xff]  }
  0x9e   : > { %4993 = vmatmul.mubr.msk.bf16.gmra.mrb[4].mxu1 %vm929_vm2, %v5561_v28  ;;  %v5625_v28 = vld [vmem:[%s5786_s22 + $0x58] sm:$0xff]  }
  0x9f   : > { %5145 = vmatmul.mubr.msk.bf16.gmra.mrb[20].mxu0 %vm929_vm2, %v5562_v29  ;;  %4996 = vmatprep.mubr.msk.bf16.mxu1 %vm929_vm2, %v5563_v30  ;;  %v5626_v29 = vld [vmem:[%s5980_s3 + $0x58] sm:$0xff]   ;;  %v5627_v30 = vld [vmem:[%s5786_s22 + $0x60] sm:$0xff]  }
  0xa0   : > { %5148 = vmatprep.mubr.msk.bf16.mxu0 %vm929_vm2, %v5564_v31  ;;  %v5628_v31 = vld [vmem:[%s5980_s3 + $0x60] sm:$0xff]  }
  0xa6   : > { %4997 = vmatmul.mubr.msk.bf16.gmra.mrb[8].mxu1 %vm929_vm2, %v5565_v32  ;;  %v5629_v32 = vld [vmem:[%s5786_s22 + $0x68] sm:$0xff]  }
  0xa7   : > { %5149 = vmatmul.mubr.msk.bf16.gmra.mrb[24].mxu0 %vm929_vm2, %v5566_v33  ;;  %5000 = vmatprep.mubr.msk.bf16.mxu1 %vm929_vm2, %v5567_v34  ;;  %v5630_v33 = vld [vmem:[%s5980_s3 + $0x68] sm:$0xff]   ;;  %v5631_v34 = vld [vmem:[%s5786_s22 + $0x70] sm:$0xff]  }
  0xa8   : > { %5152 = vmatprep.mubr.msk.bf16.mxu0 %vm929_vm2, %v5568_v35  ;;  %v5632_v35 = vld [vmem:[%s5980_s3 + $0x70] sm:$0xff]  }
  0xae   : > { %5001 = vmatmul.mubr.msk.bf16.gmra.mrb[12].mxu1 %vm929_vm2, %v5569_v36  ;;  %v5633_v36 = vld [vmem:[%s5786_s22 + $0x78] sm:$0xff]  }
  0xaf   : > { %5153 = vmatmul.mubr.msk.bf16.gmra.mrb[28].mxu0 %vm929_vm2, %v5570_v37  ;;  %5004 = vmatprep.mubr.msk.bf16.mxu1 %vm929_vm2, %v5571_v38  ;;  %v5634_v37 = vld [vmem:[%s5980_s3 + $0x78] sm:$0xff]  }
  0xb0   : > { %5158 = vmatprep.mubr.msk.bf16.mxu0 %vm929_vm2, %v5572_v39 }
  0xb6   : > { %5005 = vmatmul.mubr.msk.bf16.gmra.mrb[16].mxu1 %vm929_vm2, %v5573_v40 }
  0xb7   : > { %5159 = vmatmul.mubr.msk.bf16.vlgmr.msra.gmra.mrb[0].mxu0 %vm929_vm2, %v5574_v41  ;;  %5008 = vmatprep.mubr.msk.bf16.mxu1 %vm929_vm2, %v5575_v42 }
  0xb8   : > { %5191 = vmatpush3.bf16.msra.mxu0 %v5958_v12  ;;  %5162 = vmatprep.mubr.msk.bf16.mxu0 %vm929_vm2, %v5576_v43  ;;  %v5608_v12 = vld [vmem:[%s5980_s3 + $0x10] sm:$0xff]  }
  0xbe   : > { %5009 = vmatmul.mubr.msk.bf16.gmra.mrb[20].mxu1 %vm929_vm2, %v5577_v44 }
  0xbf   : > { %5163 = vmatmul.mubr.msk.bf16.gmra.mrb[4].mxu0 %vm929_vm2, %v5578_v45  ;;  %5012 = vmatprep.mubr.msk.bf16.mxu1 %vm929_vm2, %v5579_v46 }
  0xc0   : > { %5166 = vmatprep.mubr.msk.bf16.mxu0 %vm929_vm2, %v5580_v47 }
  0xc6   : > { %5013 = vmatmul.mubr.msk.bf16.gmra.mrb[24].mxu1 %vm929_vm2, %v5581_v48 }
  0xc7   : > { %5167 = vmatmul.mubr.msk.bf16.gmra.mrb[8].mxu0 %vm929_vm2, %v5582_v49  ;;  %5016 = vmatprep.mubr.msk.bf16.mxu1 %vm929_vm2, %v5583_v50 }
  0xc8   : > { %5170 = vmatprep.mubr.msk.bf16.mxu0 %vm929_vm2, %v5584_v51 }
  0xce   : > { %5017 = vmatmul.mubr.msk.bf16.gmra.mrb[28].mxu1 %vm929_vm2, %v5585_v52 }
  0xcf   : > { %5171 = vmatmul.mubr.msk.bf16.gmra.mrb[12].mxu0 %vm929_vm2, %v5586_v53  ;;  %5022 = vmatprep.mubr.msk.bf16.mxu1 %vm929_vm2, %v5587_v54 }
  0xd0   : > { %5174 = vmatprep.mubr.msk.bf16.mxu0 %vm929_vm2, %v5588_v55  ;;  %v6175_v55 = vld [vmem:[%s6308_s18] ss:$0 sm:$0xff] }
  0xd6   : > { %5023 = vmatmul.mubr.msk.bf16.vlgmr.msra.gmra.mrb[0].mxu1 %vm929_vm2, %v5589_v56 }
  0xd7   : > { %5225 = vmatpush3.bf16.msra.mxu1 %v5768_v8  ;;  %5175 = vmatmul.mubr.msk.bf16.gmra.mrb[16].mxu0 %vm929_vm2, %v5590_v57  ;;  %v5597_v8 = vld [vmem:[%s5950_s27 + $0x28] sm:$0xff]  }
  0xd8   : > { %5026 = vmatprep.mubr.msk.bf16.mxu1 %vm929_vm2, %v5591_v58  ;;  %5178 = vmatprep.mubr.msk.bf16.mxu0 %vm929_vm2, %v5592_v59 }
  0xde   : > { %5027 = vmatmul.mubr.msk.bf16.gmra.mrb[4].mxu1 %vm929_vm2, %v5593_v60 }
  0xdf   : > { %5179 = vmatmul.mubr.msk.bf16.gmra.mrb[20].mxu0 %vm929_vm2, %v5594_v61  ;;  %5030 = vmatprep.mubr.msk.bf16.mxu1 %vm929_vm2, %v5595_v62 }
  0xe0   : > { %5182 = vmatprep.mubr.msk.bf16.mxu0 %vm929_vm2, %v5596_v63 }
  0xe6   : > { %5031 = vmatmul.mubr.msk.bf16.gmra.mrb[8].mxu1 %vm929_vm2, %v5597_v8 }
  0xe7   : > { %5183 = vmatmul.mubr.msk.bf16.gmra.mrb[24].mxu0 %vm929_vm2, %v5598_v0  ;;  %5034 = vmatprep.mubr.msk.bf16.mxu1 %vm929_vm2, %v5599_v1 }
  0xe8   : > { %5186 = vmatprep.mubr.msk.bf16.mxu0 %vm929_vm2, %v5600_v2 }
  0xee   : > { %5035 = vmatmul.mubr.msk.bf16.gmra.mrb[12].mxu1 %vm929_vm2, %v5601_v3 }
  0xef   : > { %5187 = vmatmul.mubr.msk.bf16.gmra.mrb[28].mxu0 %vm929_vm2, %v5602_v5  ;;  %5038 = vmatprep.mubr.msk.bf16.mxu1 %vm929_vm2, %v5603_v6 }
  0xf0   : > { %5192 = vmatprep.mubr.msk.bf16.mxu0 %vm929_vm2, %v5604_v7 }
  0xf6   : > { %5039 = vmatmul.mubr.msk.bf16.gmra.mrb[16].mxu1 %vm929_vm2, %v5605_v9 }
  0xf7   : > { %5193 = vmatmul.mubr.msk.bf16.vlgmr.msra.gmra.mrb[0].mxu0 %vm929_vm2, %v5606_v10  ;;  %5042 = vmatprep.mubr.msk.bf16.mxu1 %vm929_vm2, %v5607_v11 }
  0xf8   : > { %5196 = vmatprep.mubr.msk.bf16.mxu0 %vm929_vm2, %v5608_v12 }
  0xfe   : > { %5043 = vmatmul.mubr.msk.bf16.gmra.mrb[20].mxu1 %vm929_vm2, %v5609_v13 }
  0xff   : > { %5197 = vmatmul.mubr.msk.bf16.gmra.mrb[4].mxu0 %vm929_vm2, %v5610_v14  ;;  %5046 = vmatprep.mubr.msk.bf16.mxu1 %vm929_vm2, %v5611_v4 }
 0x100   : > { %5200 = vmatprep.mubr.msk.bf16.mxu0 %vm929_vm2, %v5612_v15 }
 0x106   : > { %5047 = vmatmul.mubr.msk.bf16.gmra.mrb[24].mxu1 %vm929_vm2, %v5613_v16 }
 0x107   : > { %5201 = vmatmul.mubr.msk.bf16.gmra.mrb[8].mxu0 %vm929_vm2, %v5614_v17  ;;  %5050 = vmatprep.mubr.msk.bf16.mxu1 %vm929_vm2, %v5615_v18 }
 0x108   : > { %5204 = vmatprep.mubr.msk.bf16.mxu0 %vm929_vm2, %v5616_v19 }
 0x10e   : > { %5051 = vmatmul.mubr.msk.bf16.gmra.mrb[28].mxu1 %vm929_vm2, %v5617_v20 }
 0x10f   : > { %5205 = vmatmul.mubr.msk.bf16.gmra.mrb[12].mxu0 %vm929_vm2, %v5618_v21  ;;  %5072 = vmatprep.mubr.msk.bf16.mxu1 %vm929_vm2, %v5619_v22 }
 0x110   : > { %5208 = vmatprep.mubr.msk.bf16.mxu0 %vm929_vm2, %v5620_v23 }
 0x116   : > { %5073 = vmatmul.mubr.msk.bf16.vlgmr.msra.gmra.mrb[16].mxu1 %vm929_vm2, %v5621_v24 }
 0x117   : > { %5209 = vmatmul.mubr.msk.bf16.gmra.mrb[16].mxu0 %vm929_vm2, %v5622_v25  ;;  %5076 = vmatprep.mubr.msk.bf16.mxu1 %vm929_vm2, %v5623_v26 }
 0x118   : > { %5212 = vmatprep.mubr.msk.bf16.mxu0 %vm929_vm2, %v5624_v27 }
 0x11e   : > { %5077 = vmatmul.mubr.msk.bf16.gmra.mrb[20].mxu1 %vm929_vm2, %v5625_v28 }
 0x11f   : > { %5213 = vmatmul.mubr.msk.bf16.gmra.mrb[20].mxu0 %vm929_vm2, %v5626_v29  ;;  %5080 = vmatprep.mubr.msk.bf16.mxu1 %vm929_vm2, %v5627_v30 }
 0x120   : > { %5216 = vmatprep.mubr.msk.bf16.mxu0 %vm929_vm2, %v5628_v31 }
 0x126   : > { %5081 = vmatmul.mubr.msk.bf16.gmra.mrb[24].mxu1 %vm929_vm2, %v5629_v32 }
 0x127   : > { %5217 = vmatmul.mubr.msk.bf16.gmra.mrb[24].mxu0 %vm929_vm2, %v5630_v33  ;;  %5084 = vmatprep.mubr.msk.bf16.mxu1 %vm929_vm2, %v5631_v34 }
 0x128   : > { %5220 = vmatprep.mubr.msk.bf16.mxu0 %vm929_vm2, %v5632_v35 }
 0x12e   : > { %5085 = vmatmul.mubr.msk.bf16.gmra.mrb[28].mxu1 %vm929_vm2, %v5633_v36 }
 0x12f   : > { %5221 = vmatmul.mubr.msk.bf16.gmra.mrb[28].mxu0 %vm929_vm2, %v5634_v37 }
 0x1a9   : > { %v5024_v38 = vpop.f32.mrb[0].mxu1 }
 0x1aa   : > { %v1993_v39 = vpop.f32.mrb[1].mxu1 }
 0x1ab   : > { %v5025_v40 = vpop.f32.mrb[2].mxu1 }
 0x1ac   : > { %v1996_v41 = vpop.f32.mrb[3].mxu1 }
 0x1b1   : > { %v5028_v42 = vpop.f32.mrb[4].mxu1 }
 0x1b2   : > { %v2009_v43 = vpop.f32.mrb[5].mxu1 }
 0x1b3   : > { %v5029_v44 = vpop.f32.mrb[6].mxu1 }
 0x1b4   : > { %v2012_v45 = vpop.f32.mrb[7].mxu1 }
 0x1b9   : > { %v6156_v46 = vpop.f32.mrb[8].mxu1 }
 0x1ba   : > { %v6158_v47 = vpop.f32.mrb[9].mxu1 }
 0x1bb   : > { %v6160_v48 = vpop.f32.mrb[10].mxu1 }
 0x1bc   : > { %v6162_v49 = vpop.f32.mrb[11].mxu1 }
 0x1c1   : > { %v6164_v50 = vpop.f32.mrb[12].mxu1 }
 0x1c2   : > { %v6166_v51 = vpop.f32.mrb[13].mxu1 }
 0x1c3   : > { %v6168_v52 = vpop.f32.mrb[14].mxu1 }
 0x1c4   : > { %v6170_v53 = vpop.f32.mrb[15].mxu1 }
 0x1ca   : > { %v5194_v54 = vpop.f32.mrb[0].mxu0 }
 0x1cb   : > { %v5226_v56 = vadd.f32 %v5194_v54, %v5024_v38  ;;  %v3778_v57 = vpop.f32.mrb[1].mxu0 }
 0x1cc   : > { %v5227_v58 = vadd.f32 %v3778_v57, %v1993_v39  ;;  %v5195_v59 = vpop.f32.mrb[2].mxu0 }
 0x1cd   : > { %v3946_v60 = vadd.f32 %v5226_v56, %v6175_v55  ;;  %v5228_v61 = vadd.f32 %v5195_v59, %v5025_v40  ;;  %v3781_v62 = vpop.f32.mrb[3].mxu0 }
 0x1ce   : > { %v3944_v63 = vadd.f32 %v5227_v58, %v6175_v55  ;;  %v5229_v8 = vadd.f32 %v3781_v62, %v1996_v41 }
 0x1cf   : > { %vm3978_vm3 = vcmp.gt.f32.partialorder %v3946_v60, 0.0  ;;  %v4010_v0 = vmul.f32 0.1, %v3946_v60  ;;  %v3947_v1 = vadd.f32 %v5228_v61, %v6175_v55 }
 0x1d0   : > { %vm3976_vm4 = vcmp.gt.f32.partialorder %v3944_v63, 0.0  ;;  %v4008_v2 = vmul.f32 0.1, %v3944_v63  ;;  %v3945_v3 = vadd.f32 %v5229_v8, %v6175_v55 }
 0x1d1   : > { %v4042_v5 = vsel %vm3978_vm3, %v3946_v60, %v4010_v0  ;;  %vm3979_vm6 = vcmp.gt.f32.partialorder %v3947_v1, 0.0  ;;  %v4011_v6 = vmul.f32 0.1, %v3947_v1 }
 0x1d2   : > { %v4735_v7 = vpack.c.bf16 %v4042_v5, %v4042_v5  ;;  %v4040_v9 = vsel %vm3976_vm4, %v3944_v63, %v4008_v2  ;;  %vm3977_vm7 = vcmp.gt.f32.partialorder %v3945_v3, 0.0  ;;  %v4009_v10 = vmul.f32 0.1, %v3945_v3  ;;  %v5198_v11 = vpop.f32.mrb[4].mxu0 }
 0x1d3   : > { %v4733_v12 = vpack.c.bf16 %v4040_v9, %v4040_v9  ;;  %v4043_v13 = vsel %vm3979_vm6, %v3947_v1, %v4011_v6  ;;  %v5230_v14 = vadd.f32 %v5198_v11, %v5028_v42  ;;  %v3794_v4 = vpop.f32.mrb[5].mxu0 }
 0x1d4   : > { %4203 = vst.msk [vmem:[%s6185_s24 + $0x8] sm:$0xf] %vm4200_vm5, %v4735_v7  ;;  %v4736_v15 = vpack.c.bf16 %v4043_v13, %v4043_v13  ;;  %v4041_v16 = vsel %vm3977_vm7, %v3945_v3, %v4009_v10  ;;  %v5231_v17 = vadd.f32 %v3794_v4, %v2009_v43  ;;  %v5199_v18 = vpop.f32.mrb[6].mxu0 }
 0x1d5   : > { %4201 = vst.msk [vmem:[%s6185_s24] sm:$0xf] %vm4200_vm5, %v4733_v12  ;;  %v4734_v19 = vpack.c.bf16 %v4041_v16, %v4041_v16  ;;  %v3950_v20 = vadd.f32 %v5230_v14, %v6175_v55  ;;  %v5232_v21 = vadd.f32 %v5199_v18, %v5029_v44  ;;  %v3797_v22 = vpop.f32.mrb[7].mxu0 }
 0x1d6   : > { %4204 = vst.msk [vmem:[%s6185_s24 + $0xc] sm:$0xf] %vm4200_vm5, %v4736_v15  ;;  %v3948_v23 = vadd.f32 %v5231_v17, %v6175_v55  ;;  %v5233_v24 = vadd.f32 %v3797_v22, %v2012_v45 }
 0x1d7   : > { %4202 = vst.msk [vmem:[%s6185_s24 + $0x4] sm:$0xf] %vm4200_vm5, %v4734_v19  ;;  %vm3982_vm8 = vcmp.gt.f32.partialorder %v3950_v20, 0.0  ;;  %v4014_v25 = vmul.f32 0.1, %v3950_v20  ;;  %v3951_v26 = vadd.f32 %v5232_v21, %v6175_v55 }
 0x1d8   : > { %vm3980_vm9 = vcmp.gt.f32.partialorder %v3948_v23, 0.0  ;;  %v4012_v27 = vmul.f32 0.1, %v3948_v23  ;;  %v3949_v28 = vadd.f32 %v5233_v24, %v6175_v55 }
 0x1d9   : > { %v4046_v29 = vsel %vm3982_vm8, %v3950_v20, %v4014_v25  ;;  %vm3983_vm10 = vcmp.gt.f32.partialorder %v3951_v26, 0.0  ;;  %v4015_v30 = vmul.f32 0.1, %v3951_v26 }
 0x1da   : > { %v4739_v31 = vpack.c.bf16 %v4046_v29, %v4046_v29  ;;  %v4044_v32 = vsel %vm3980_vm9, %v3948_v23, %v4012_v27  ;;  %vm3981_vm11 = vcmp.gt.f32.partialorder %v3949_v28, 0.0  ;;  %v4013_v33 = vmul.f32 0.1, %v3949_v28  ;;  %v5202_v34 = vpop.f32.mrb[8].mxu0 }
 0x1db   : > { %v4737_v35 = vpack.c.bf16 %v4044_v32, %v4044_v32  ;;  %v4047_v36 = vsel %vm3983_vm10, %v3951_v26, %v4015_v30  ;;  %v5234_v37 = vadd.f32 %v5202_v34, %v6156_v46  ;;  %v3810_v38 = vpop.f32.mrb[9].mxu0 }
 0x1dc   : > { %4207 = vst.msk [vmem:[%s6185_s24 + $0x18] sm:$0xf] %vm4200_vm5, %v4739_v31  ;;  %v4740_v39 = vpack.c.bf16 %v4047_v36, %v4047_v36  ;;  %v4045_v40 = vsel %vm3981_vm11, %v3949_v28, %v4013_v33  ;;  %v5235_v41 = vadd.f32 %v3810_v38, %v6158_v47  ;;  %v5203_v42 = vpop.f32.mrb[10].mxu0 }
 0x1dd   : > { %4205 = vst.msk [vmem:[%s6185_s24 + $0x10] sm:$0xf] %vm4200_vm5, %v4737_v35  ;;  %v4738_v43 = vpack.c.bf16 %v4045_v40, %v4045_v40  ;;  %v3954_v44 = vadd.f32 %v5234_v37, %v6175_v55  ;;  %v5236_v45 = vadd.f32 %v5203_v42, %v6160_v48  ;;  %v3813_v54 = vpop.f32.mrb[11].mxu0 }
 0x1de   : > { %4208 = vst.msk [vmem:[%s6185_s24 + $0x1c] sm:$0xf] %vm4200_vm5, %v4740_v39  ;;  %v3952_v46 = vadd.f32 %v5235_v41, %v6175_v55  ;;  %v5237_v56 = vadd.f32 %v3813_v54, %v6162_v49 }
 0x1df   : > { %4206 = vst.msk [vmem:[%s6185_s24 + $0x14] sm:$0xf] %vm4200_vm5, %v4738_v43  ;;  %vm3986_vm12 = vcmp.gt.f32.partialorder %v3954_v44, 0.0  ;;  %v4018_v57 = vmul.f32 0.1, %v3954_v44  ;;  %v3955_v47 = vadd.f32 %v5236_v45, %v6175_v55 }
 0x1e0   : > { %vm3984_vm13 = vcmp.gt.f32.partialorder %v3952_v46, 0.0  ;;  %v4016_v58 = vmul.f32 0.1, %v3952_v46  ;;  %v3953_v59 = vadd.f32 %v5237_v56, %v6175_v55 }
 0x1e1   : > { %v4050_v60 = vsel %vm3986_vm12, %v3954_v44, %v4018_v57  ;;  %vm3987_vm14 = vcmp.gt.f32.partialorder %v3955_v47, 0.0  ;;  %v4019_v48 = vmul.f32 0.1, %v3955_v47 }
 0x1e2   : > { %v4743_v61 = vpack.c.bf16 %v4050_v60, %v4050_v60  ;;  %v4048_v62 = vsel %vm3984_vm13, %v3952_v46, %v4016_v58  ;;  %vm3985_vm15 = vcmp.gt.f32.partialorder %v3953_v59, 0.0  ;;  %v4017_v63 = vmul.f32 0.1, %v3953_v59  ;;  %v5206_v49 = vpop.f32.mrb[12].mxu0 }
 0x1e3   : > { %v4741_v8 = vpack.c.bf16 %v4048_v62, %v4048_v62  ;;  %v4051_v0 = vsel %vm3987_vm14, %v3955_v47, %v4019_v48  ;;  %v5238_v1 = vadd.f32 %v5206_v49, %v6164_v50  ;;  %v3826_v2 = vpop.f32.mrb[13].mxu0 }
 0x1e4   : > { %4211 = vst.msk [vmem:[%s6185_s24 + $0x28] sm:$0xf] %vm4200_vm5, %v4743_v61  ;;  %v4744_v3 = vpack.c.bf16 %v4051_v0, %v4051_v0  ;;  %v4049_v5 = vsel %vm3985_vm15, %v3953_v59, %v4017_v63  ;;  %v5239_v6 = vadd.f32 %v3826_v2, %v6166_v51  ;;  %v5207_v7 = vpop.f32.mrb[14].mxu0 }
 0x1e5   : > { %4209 = vst.msk [vmem:[%s6185_s24 + $0x20] sm:$0xf] %vm4200_vm5, %v4741_v8  ;;  %v4742_v9 = vpack.c.bf16 %v4049_v5, %v4049_v5  ;;  %v3958_v10 = vadd.f32 %v5238_v1, %v6175_v55  ;;  %v5240_v11 = vadd.f32 %v5207_v7, %v6168_v52  ;;  %v3829_v12 = vpop.f32.mrb[15].mxu0 }
 0x1e6   : > { %4212 = vst.msk [vmem:[%s6185_s24 + $0x2c] sm:$0xf] %vm4200_vm5, %v4744_v3  ;;  %v3956_v50 = vadd.f32 %v5239_v6, %v6175_v55  ;;  %v5241_v13 = vadd.f32 %v3829_v12, %v6170_v53 }
 0x1e7   : > { %4210 = vst.msk [vmem:[%s6185_s24 + $0x24] sm:$0xf] %vm4200_vm5, %v4742_v9  ;;  %vm3990_vm0 = vcmp.gt.f32.partialorder %v3958_v10, 0.0  ;;  %v4022_v14 = vmul.f32 0.1, %v3958_v10  ;;  %v3959_v51 = vadd.f32 %v5240_v11, %v6175_v55 }
 0x1e8   : > { %vm3988_vm1 = vcmp.gt.f32.partialorder %v3956_v50, 0.0  ;;  %v4020_v4 = vmul.f32 0.1, %v3956_v50  ;;  %v3957_v15 = vadd.f32 %v5241_v13, %v6175_v55 }
 0x1e9   : > { %v4054_v16 = vsel %vm3990_vm0, %v3958_v10, %v4022_v14  ;;  %vm3991_vm2 = vcmp.gt.f32.partialorder %v3959_v51, 0.0  ;;  %v4023_v52 = vmul.f32 0.1, %v3959_v51  ;;  %v5074_v17 = vpop.f32.mrb[16].mxu1 }
 0x1ea   : > { %v4747_v18 = vpack.c.bf16 %v4054_v16, %v4054_v16  ;;  %v4052_v19 = vsel %vm3988_vm1, %v3956_v50, %v4020_v4  ;;  %vm3989_vm3 = vcmp.gt.f32.partialorder %v3957_v15, 0.0  ;;  %v4021_v53 = vmul.f32 0.1, %v3957_v15  ;;  %v5210_v20 = vpop.f32.mrb[16].mxu0  ;;  %v2414_v21 = vpop.f32.mrb[17].mxu1 }
 0x1eb   : > { %v4745_v22 = vpack.c.bf16 %v4052_v19, %v4052_v19  ;;  %v4055_v23 = vsel %vm3991_vm2, %v3959_v51, %v4023_v52  ;;  %v5242_v24 = vadd.f32 %v5210_v20, %v5074_v17  ;;  %v3842_v25 = vpop.f32.mrb[17].mxu0  ;;  %v5075_v26 = vpop.f32.mrb[18].mxu1 }
 0x1ec   : > { %4215 = vst.msk [vmem:[%s6185_s24 + $0x38] sm:$0xf] %vm4200_vm5, %v4747_v18  ;;  %v4748_v27 = vpack.c.bf16 %v4055_v23, %v4055_v23  ;;  %v4053_v28 = vsel %vm3989_vm3, %v3957_v15, %v4021_v53  ;;  %v5243_v29 = vadd.f32 %v3842_v25, %v2414_v21  ;;  %v5211_v30 = vpop.f32.mrb[18].mxu0  ;;  %v2417_v31 = vpop.f32.mrb[19].mxu1 }
 0x1ed   : > { %4213 = vst.msk [vmem:[%s6185_s24 + $0x30] sm:$0xf] %vm4200_vm5, %v4745_v22  ;;  %v4746_v32 = vpack.c.bf16 %v4053_v28, %v4053_v28  ;;  %v3962_v33 = vadd.f32 %v5242_v24, %v6175_v55  ;;  %v5244_v34 = vadd.f32 %v5211_v30, %v5075_v26  ;;  %v3845_v35 = vpop.f32.mrb[19].mxu0 }
 0x1ee   : > { %4216 = vst.msk [vmem:[%s6185_s24 + $0x3c] sm:$0xf] %vm4200_vm5, %v4748_v27  ;;  %v3960_v36 = vadd.f32 %v5243_v29, %v6175_v55  ;;  %v5245_v37 = vadd.f32 %v3845_v35, %v2417_v31 }
 0x1ef   : > { %4214 = vst.msk [vmem:[%s6185_s24 + $0x34] sm:$0xf] %vm4200_vm5, %v4746_v32  ;;  %vm3994_vm4 = vcmp.gt.f32.partialorder %v3962_v33, 0.0  ;;  %v4026_v38 = vmul.f32 0.1, %v3962_v33  ;;  %v3963_v39 = vadd.f32 %v5244_v34, %v6175_v55 }
 0x1f0   : > { %vm3992_vm6 = vcmp.gt.f32.partialorder %v3960_v36, 0.0  ;;  %v4024_v40 = vmul.f32 0.1, %v3960_v36  ;;  %v3961_v41 = vadd.f32 %v5245_v37, %v6175_v55 }
 0x1f1   : > { %v4058_v42 = vsel %vm3994_vm4, %v3962_v33, %v4026_v38  ;;  %vm3995_vm7 = vcmp.gt.f32.partialorder %v3963_v39, 0.0  ;;  %v4027_v43 = vmul.f32 0.1, %v3963_v39  ;;  %v5078_v44 = vpop.f32.mrb[20].mxu1 }
 0x1f2   : > { %v4751_v45 = vpack.c.bf16 %v4058_v42, %v4058_v42  ;;  %v4056_v54 = vsel %vm3992_vm6, %v3960_v36, %v4024_v40  ;;  %vm3993_vm8 = vcmp.gt.f32.partialorder %v3961_v41, 0.0  ;;  %v4025_v46 = vmul.f32 0.1, %v3961_v41  ;;  %v5214_v56 = vpop.f32.mrb[20].mxu0  ;;  %v2430_v57 = vpop.f32.mrb[21].mxu1 }
 0x1f3   : > { %v4749_v47 = vpack.c.bf16 %v4056_v54, %v4056_v54  ;;  %v4059_v58 = vsel %vm3995_vm7, %v3963_v39, %v4027_v43  ;;  %v5246_v59 = vadd.f32 %v5214_v56, %v5078_v44  ;;  %v3858_v60 = vpop.f32.mrb[21].mxu0  ;;  %v5079_v48 = vpop.f32.mrb[22].mxu1 }
 0x1f4   : > { %4219 = vst.msk [vmem:[%s6185_s24 + $0x48] sm:$0xf] %vm4200_vm5, %v4751_v45  ;;  %v4752_v61 = vpack.c.bf16 %v4059_v58, %v4059_v58  ;;  %v4057_v62 = vsel %vm3993_vm8, %v3961_v41, %v4025_v46  ;;  %v5247_v63 = vadd.f32 %v3858_v60, %v2430_v57  ;;  %v5215_v49 = vpop.f32.mrb[22].mxu0  ;;  %v2433_v8 = vpop.f32.mrb[23].mxu1 }
 0x1f5   : > { %4217 = vst.msk [vmem:[%s6185_s24 + $0x40] sm:$0xf] %vm4200_vm5, %v4749_v47  ;;  %v4750_v0 = vpack.c.bf16 %v4057_v62, %v4057_v62  ;;  %v3966_v1 = vadd.f32 %v5246_v59, %v6175_v55  ;;  %v5248_v2 = vadd.f32 %v5215_v49, %v5079_v48  ;;  %v3861_v3 = vpop.f32.mrb[23].mxu0 }
 0x1f6   : > { %4220 = vst.msk [vmem:[%s6185_s24 + $0x4c] sm:$0xf] %vm4200_vm5, %v4752_v61  ;;  %v3964_v5 = vadd.f32 %v5247_v63, %v6175_v55  ;;  %v5249_v6 = vadd.f32 %v3861_v3, %v2433_v8 }
 0x1f7   : > { %4218 = vst.msk [vmem:[%s6185_s24 + $0x44] sm:$0xf] %vm4200_vm5, %v4750_v0  ;;  %vm3998_vm9 = vcmp.gt.f32.partialorder %v3966_v1, 0.0  ;;  %v4030_v7 = vmul.f32 0.1, %v3966_v1  ;;  %v3967_v9 = vadd.f32 %v5248_v2, %v6175_v55 }
 0x1f8   : > { %vm3996_vm10 = vcmp.gt.f32.partialorder %v3964_v5, 0.0  ;;  %v4028_v10 = vmul.f32 0.1, %v3964_v5  ;;  %v3965_v11 = vadd.f32 %v5249_v6, %v6175_v55 }
 0x1f9   : > { %v4062_v12 = vsel %vm3998_vm9, %v3966_v1, %v4030_v7  ;;  %vm3999_vm11 = vcmp.gt.f32.partialorder %v3967_v9, 0.0  ;;  %v4031_v50 = vmul.f32 0.1, %v3967_v9  ;;  %v5082_v13 = vpop.f32.mrb[24].mxu1 }
 0x1fa   : > { %v4755_v14 = vpack.c.bf16 %v4062_v12, %v4062_v12  ;;  %v4060_v51 = vsel %vm3996_vm10, %v3964_v5, %v4028_v10  ;;  %vm3997_vm12 = vcmp.gt.f32.partialorder %v3965_v11, 0.0  ;;  %v4029_v4 = vmul.f32 0.1, %v3965_v11  ;;  %v5218_v15 = vpop.f32.mrb[24].mxu0  ;;  %v2446_v16 = vpop.f32.mrb[25].mxu1 }
 0x1fb   : > { %v4753_v52 = vpack.c.bf16 %v4060_v51, %v4060_v51  ;;  %v4063_v17 = vsel %vm3999_vm11, %v3967_v9, %v4031_v50  ;;  %v5250_v18 = vadd.f32 %v5218_v15, %v5082_v13  ;;  %v3874_v19 = vpop.f32.mrb[25].mxu0  ;;  %v5083_v53 = vpop.f32.mrb[26].mxu1 }
 0x1fc   : > { %4223 = vst.msk [vmem:[%s6185_s24 + $0x58] sm:$0xf] %vm4200_vm5, %v4755_v14  ;;  %v4756_v20 = vpack.c.bf16 %v4063_v17, %v4063_v17  ;;  %v4061_v21 = vsel %vm3997_vm12, %v3965_v11, %v4029_v4  ;;  %v5251_v22 = vadd.f32 %v3874_v19, %v2446_v16  ;;  %v5219_v23 = vpop.f32.mrb[26].mxu0  ;;  %v2449_v24 = vpop.f32.mrb[27].mxu1 }
 0x1fd   : > { %4221 = vst.msk [vmem:[%s6185_s24 + $0x50] sm:$0xf] %vm4200_vm5, %v4753_v52  ;;  %v4754_v25 = vpack.c.bf16 %v4061_v21, %v4061_v21  ;;  %v3970_v26 = vadd.f32 %v5250_v18, %v6175_v55  ;;  %v5252_v27 = vadd.f32 %v5219_v23, %v5083_v53  ;;  %v3877_v28 = vpop.f32.mrb[27].mxu0 }
 0x1fe   : > { %4224 = vst.msk [vmem:[%s6185_s24 + $0x5c] sm:$0xf] %vm4200_vm5, %v4756_v20  ;;  %v3968_v29 = vadd.f32 %v5251_v22, %v6175_v55  ;;  %v5253_v30 = vadd.f32 %v3877_v28, %v2449_v24 }
 0x1ff   : > { %4222 = vst.msk [vmem:[%s6185_s24 + $0x54] sm:$0xf] %vm4200_vm5, %v4754_v25  ;;  %vm4002_vm13 = vcmp.gt.f32.partialorder %v3970_v26, 0.0  ;;  %v4034_v31 = vmul.f32 0.1, %v3970_v26  ;;  %v3971_v32 = vadd.f32 %v5252_v27, %v6175_v55 }
 0x200   : > { %vm4000_vm14 = vcmp.gt.f32.partialorder %v3968_v29, 0.0  ;;  %v4032_v33 = vmul.f32 0.1, %v3968_v29  ;;  %v3969_v34 = vadd.f32 %v5253_v30, %v6175_v55 }
 0x201   : > { %v4066_v35 = vsel %vm4002_vm13, %v3970_v26, %v4034_v31  ;;  %vm4003_vm15 = vcmp.gt.f32.partialorder %v3971_v32, 0.0  ;;  %v4035_v36 = vmul.f32 0.1, %v3971_v32  ;;  %v5086_v37 = vpop.f32.mrb[28].mxu1 }
 0x202   : > { %v4759_v38 = vpack.c.bf16 %v4066_v35, %v4066_v35  ;;  %v4064_v39 = vsel %vm4000_vm14, %v3968_v29, %v4032_v33  ;;  %vm4001_vm0 = vcmp.gt.f32.partialorder %v3969_v34, 0.0  ;;  %v4033_v40 = vmul.f32 0.1, %v3969_v34  ;;  %v5222_v41 = vpop.f32.mrb[28].mxu0  ;;  %v2462_v42 = vpop.f32.mrb[29].mxu1 }
 0x203   : > { %v4757_v43 = vpack.c.bf16 %v4064_v39, %v4064_v39  ;;  %v4067_v44 = vsel %vm4003_vm15, %v3971_v32, %v4035_v36  ;;  %v5254_v45 = vadd.f32 %v5222_v41, %v5086_v37  ;;  %v3890_v54 = vpop.f32.mrb[29].mxu0  ;;  %v5087_v46 = vpop.f32.mrb[30].mxu1 }
 0x204   : > { %4227 = vst.msk [vmem:[%s6185_s24 + $0x68] sm:$0xf] %vm4200_vm5, %v4759_v38  ;;  %v4760_v56 = vpack.c.bf16 %v4067_v44, %v4067_v44  ;;  %v4065_v57 = vsel %vm4001_vm0, %v3969_v34, %v4033_v40  ;;  %v5255_v47 = vadd.f32 %v3890_v54, %v2462_v42  ;;  %v5223_v58 = vpop.f32.mrb[30].mxu0  ;;  %v2465_v59 = vpop.f32.mrb[31].mxu1 }
 0x205   : > { %4225 = vst.msk [vmem:[%s6185_s24 + $0x60] sm:$0xf] %vm4200_vm5, %v4757_v43  ;;  %v4758_v60 = vpack.c.bf16 %v4065_v57, %v4065_v57  ;;  %v3974_v48 = vadd.f32 %v5254_v45, %v6175_v55  ;;  %v5256_v61 = vadd.f32 %v5223_v58, %v5087_v46  ;;  %v3893_v62 = vpop.f32.mrb[31].mxu0 }
 0x206   : > { %4228 = vst.msk [vmem:[%s6185_s24 + $0x6c] sm:$0xf] %vm4200_vm5, %v4760_v56  ;;  %v3972_v63 = vadd.f32 %v5255_v47, %v6175_v55  ;;  %v5257_v49 = vadd.f32 %v3893_v62, %v2465_v59 }
 0x207   : > { %4226 = vst.msk [vmem:[%s6185_s24 + $0x64] sm:$0xf] %vm4200_vm5, %v4758_v60  ;;  %vm4006_vm1 = vcmp.gt.f32.partialorder %v3974_v48, 0.0  ;;  %v4038_v8 = vmul.f32 0.1, %v3974_v48  ;;  %v3975_v0 = vadd.f32 %v5256_v61, %v6175_v55 }
 0x208   : > { %vm4004_vm2 = vcmp.gt.f32.partialorder %v3972_v63, 0.0  ;;  %v4036_v1 = vmul.f32 0.1, %v3972_v63  ;;  %v3973_v2 = vadd.f32 %v5257_v49, %v6175_v55 }
 0x209   : > { %v4070_v3 = vsel %vm4006_vm1, %v3974_v48, %v4038_v8  ;;  %vm4007_vm3 = vcmp.gt.f32.partialorder %v3975_v0, 0.0  ;;  %v4039_v5 = vmul.f32 0.1, %v3975_v0 }
 0x20a   : > { %v4763_v6 = vpack.c.bf16 %v4070_v3, %v4070_v3  ;;  %v4068_v7 = vsel %vm4004_vm2, %v3972_v63, %v4036_v1  ;;  %vm4005_vm4 = vcmp.gt.f32.partialorder %v3973_v2, 0.0  ;;  %v4037_v9 = vmul.f32 0.1, %v3973_v2 }
 0x20b   : > { %v4761_v10 = vpack.c.bf16 %v4068_v7, %v4068_v7  ;;  %v4071_v11 = vsel %vm4007_vm3, %v3975_v0, %v4039_v5 }
 0x20c   : > { %4231 = vst.msk [vmem:[%s6185_s24 + $0x78] sm:$0xf] %vm4200_vm5, %v4763_v6  ;;  %v4764_v12 = vpack.c.bf16 %v4071_v11, %v4071_v11  ;;  %v4069_v50 = vsel %vm4005_vm4, %v3973_v2, %v4037_v9 }
 0x20d   : > { %4229 = vst.msk [vmem:[%s6185_s24 + $0x70] sm:$0xf] %vm4200_vm5, %v4761_v10  ;;  %v4762_v13 = vpack.c.bf16 %v4069_v50, %v4069_v50 }
 0x20e   : > { %4232 = vst.msk [vmem:[%s6185_s24 + $0x7c] sm:$0xf] %vm4200_vm5, %v4764_v12 }
 0x20f   : > { %4230 = vst.msk [vmem:[%s6185_s24 + $0x74] sm:$0xf] %vm4200_vm5, %v4762_v13 }
 0x210 PF: > { %s29_s0 = sadd.s32 1, %s5641_s0  }
 0x211   : > { %p26_p4 = scmp.ge.s32.totalorder %s29_s0, 4  }
 0x213   :  { %28 = sbr.rel (!%p26_p4) target bundleno = 5 (0x5), region = 150 }

// kernel: yolov1_forward.31
= control target key start
LH: loop header
LB: loop body
LE: loop exit
PB: predicated region body
PF: predicated region fallthrough
CT: control target
= control target key end

     0   :  { %s768_s18 = smov 0   ;;  %s828_s0 = inlined_call_operand.vmem [shape: bf16[128,16], index: 0, kind: input, shape index: {}]   ;;  %s829_s1 = inlined_call_operand.vmem [shape: bf16[128,16], index: 1, kind: input, shape index: {}]   ;;  %s830_s2 = inlined_call_operand.vmem [shape: bf16[16,32], index: 2, kind: input, shape index: {}]   ;;  %s831_s3 = inlined_call_operand.vmem [shape: bf16[16,32], index: 3, kind: input, shape index: {}]   ;;  %s832_s4 = inlined_call_operand.vmem [shape: f32[1,32], index: 4, kind: input, shape index: {}]   ;;  %s833_s5 = inlined_call_operand.vmem [shape: bf16[128,32], index: 5, kind: output, shape index: {}]  }
   0x1 LB: > { %s626_s19 = sadd.s32 4294967295, %s736_s18   ;;  %p630_p0 = scmp.ge.s32.totalorder %s736_s18, 1  ;;  %s736_s18 = sphi %s768_s18, %s15_s18  }
   0x2   : > { %p199_p1 = scmp.lt.s32.totalorder %s736_s18, 3 }
   0x4   : > { %p200_p2 = pnand %p630_p0, %p199_p1 }
   0x5   : > { %v720_v0 = vld [vmem:[%s831_s3] sm:$0xff] (!%p200_p2)   ;;  %s631_s22 = sshll.u32 (!%p200_p2), %s626_s19, 3  ;;  %vm297_vm0 = vcmask (!%p200_p2), 130048   ;;  %vm549_vm3 = vcmask (!%p200_p2), 257024  }
   0x6   : > { %203 = sbr.rel (%p200_p2) target bundleno = 252 (0xfc), region = 40  ;;  %v721_v1 = vld [vmem:[%s830_s2] sm:$0xff] (!%p200_p2)   ;;  %p233_p3 = scmp.lt.s32.totalorder (!%p200_p2), %s631_s22, 15  ;;  %684 = vmatprep.subr.bf16.mxu1 (!%p200_p2), %v720_v0 }
   0x7   : > { %694 = vmatprep.subr.bf16.mxu0 (!%p200_p2), %v721_v1  ;;  %685 = vmatpush3.bf16.msra.mxu1 (!%p200_p2), %v720_v0  ;;  %v655_v12 = vld [vmem:[%s832_s4] ss:$0 sm:$0xff] (!%p200_p2) }
   0x8   : > { %695 = vmatpush3.bf16.msra.mxu0 (!%p200_p2), %v721_v1 }
   0xd   : > { %s835_s22 = smov (!%p233_p3, %s631_s22), 15 }
   0xe   : > { %s782_s25 = sshll.u32 %s835_s22, 2 }
   0xf   : > { %s242_s28 = scalar_lea.vmem %s829_s1, %s782_s25  ;;  %s236_s6 = scalar_lea.vmem %s828_s0, %s782_s25 }
  0x10   : > { %v722_v2 = vld [vmem:[%s242_s28] sm:$0xff]   ;;  %v724_v4 = vld [vmem:[%s242_s28 + $0x8] sm:$0xff]   ;;  %v726_v6 = vld [vmem:[%s242_s28 + $0x10] sm:$0xff]   ;;  %s807_s11 = scalar_lea.vmem %s833_s5, %s782_s25 }
  0x11   : > { %v723_v3 = vld [vmem:[%s236_s6] sm:$0xff]   ;;  %686 = vmatprep.mubr.msk.bf16.mxu1 %vm297_vm0, %v722_v2  ;;  %v725_v5 = vld [vmem:[%s236_s6 + $0x8] sm:$0xff]   ;;  %v727_v7 = vld [vmem:[%s236_s6 + $0x10] sm:$0xff]  }
  0x12   : > { %696 = vmatprep.mubr.msk.bf16.mxu0 %vm297_vm0, %v723_v3  ;;  %687 = vmatmul.mubr.msk.bf16.vlgmr.msra.gmra.mrb[0].mxu1 %vm297_vm0, %v724_v4  ;;  %v728_v8 = vld [vmem:[%s242_s28 + $0x18] sm:$0xff]  }
  0x13   : > { %697 = vmatmul.mubr.msk.bf16.vlgmr.msra.gmra.mrb[0].mxu0 %vm297_vm0, %v725_v5  ;;  %690 = vmatprep.mubr.msk.bf16.mxu1 %vm297_vm0, %v726_v6  ;;  %v729_v9 = vld [vmem:[%s236_s6 + $0x18] sm:$0xff]  }
  0x14   : > { %700 = vmatprep.mubr.msk.bf16.mxu0 %vm297_vm0, %v727_v7 }
  0x1a   : > { %691 = vmatmul.mubr.msk.bf16.gmra.mrb[4].mxu1 %vm297_vm0, %v728_v8 }
  0x1b   : > { %701 = vmatmul.mubr.msk.bf16.gmra.mrb[4].mxu0 %vm297_vm0, %v729_v9 }
  0xe5   : > { %v688_v10 = vpop.f32.mrb[0].mxu1 }
  0xe6   : > { %v698_v11 = vpop.f32.mrb[0].mxu0  ;;  %v344_v13 = vpop.f32.mrb[1].mxu1 }
  0xe7   : > { %v456_v14 = vadd.f32 %v698_v11, %v688_v10  ;;  %v447_v15 = vpop.f32.mrb[1].mxu0  ;;  %v689_v16 = vpop.f32.mrb[2].mxu1 }
  0xe8   : > { %v448_v17 = vadd.f32 %v447_v15, %v344_v13  ;;  %v699_v18 = vpop.f32.mrb[2].mxu0  ;;  %v347_v19 = vpop.f32.mrb[3].mxu1 }
  0xe9   : > { %v487_v20 = vadd.f32 %v655_v12, %v456_v14  ;;  %v459_v21 = vadd.f32 %v699_v18, %v689_v16  ;;  %v450_v22 = vpop.f32.mrb[3].mxu0 }
  0xea   : > { %v485_v23 = vadd.f32 %v655_v12, %v448_v17  ;;  %v451_v24 = vadd.f32 %v450_v22, %v347_v19 }
  0xeb   : > { %vm495_vm1 = vcmp.gt.f32.partialorder %v487_v20, 0.0  ;;  %v503_v25 = vmul.f32 0.1, %v487_v20  ;;  %v488_v26 = vadd.f32 %v655_v12, %v459_v21 }
  0xec   : > { %vm493_vm2 = vcmp.gt.f32.partialorder %v485_v23, 0.0  ;;  %v501_v27 = vmul.f32 0.1, %v485_v23  ;;  %v486_v28 = vadd.f32 %v655_v12, %v451_v24 }
  0xed   : > { %v511_v29 = vsel %vm495_vm1, %v487_v20, %v503_v25  ;;  %vm496_vm4 = vcmp.gt.f32.partialorder %v488_v26, 0.0  ;;  %v504_v30 = vmul.f32 0.1, %v488_v26  ;;  %v692_v31 = vpop.f32.mrb[4].mxu1 }
  0xee   : > { %v668_v32 = vpack.c.bf16 %v511_v29, %v511_v29  ;;  %v509_v33 = vsel %vm493_vm2, %v485_v23, %v501_v27  ;;  %vm494_vm5 = vcmp.gt.f32.partialorder %v486_v28, 0.0  ;;  %v502_v34 = vmul.f32 0.1, %v486_v28  ;;  %v702_v35 = vpop.f32.mrb[4].mxu0  ;;  %v360_v36 = vpop.f32.mrb[5].mxu1 }
  0xef   : > { %v666_v37 = vpack.c.bf16 %v509_v33, %v509_v33  ;;  %v512_v38 = vsel %vm496_vm4, %v488_v26, %v504_v30  ;;  %v472_v39 = vadd.f32 %v702_v35, %v692_v31  ;;  %v463_v40 = vpop.f32.mrb[5].mxu0  ;;  %v693_v41 = vpop.f32.mrb[6].mxu1 }
  0xf0   : > { %552 = vst.msk [vmem:[%s807_s11 + $0x8] sm:$0xf] %vm549_vm3, %v668_v32  ;;  %v669_v42 = vpack.c.bf16 %v512_v38, %v512_v38  ;;  %v510_v43 = vsel %vm494_vm5, %v486_v28, %v502_v34  ;;  %v464_v44 = vadd.f32 %v463_v40, %v360_v36  ;;  %v703_v45 = vpop.f32.mrb[6].mxu0  ;;  %v363_v46 = vpop.f32.mrb[7].mxu1 }
  0xf1   : > { %550 = vst.msk [vmem:[%s807_s11] sm:$0xf] %vm549_vm3, %v666_v37  ;;  %v667_v47 = vpack.c.bf16 %v510_v43, %v510_v43  ;;  %v491_v48 = vadd.f32 %v655_v12, %v472_v39  ;;  %v475_v49 = vadd.f32 %v703_v45, %v693_v41  ;;  %v466_v50 = vpop.f32.mrb[7].mxu0 }
  0xf2   : > { %553 = vst.msk [vmem:[%s807_s11 + $0xc] sm:$0xf] %vm549_vm3, %v669_v42  ;;  %v489_v51 = vadd.f32 %v655_v12, %v464_v44  ;;  %v467_v52 = vadd.f32 %v466_v50, %v363_v46 }
  0xf3   : > { %551 = vst.msk [vmem:[%s807_s11 + $0x4] sm:$0xf] %vm549_vm3, %v667_v47  ;;  %vm499_vm6 = vcmp.gt.f32.partialorder %v491_v48, 0.0  ;;  %v507_v53 = vmul.f32 0.1, %v491_v48  ;;  %v492_v54 = vadd.f32 %v655_v12, %v475_v49 }
  0xf4   : > { %vm497_vm7 = vcmp.gt.f32.partialorder %v489_v51, 0.0  ;;  %v505_v55 = vmul.f32 0.1, %v489_v51  ;;  %v490_v56 = vadd.f32 %v655_v12, %v467_v52 }
  0xf5   : > { %v515_v57 = vsel %vm499_vm6, %v491_v48, %v507_v53  ;;  %vm500_vm8 = vcmp.gt.f32.partialorder %v492_v54, 0.0  ;;  %v508_v58 = vmul.f32 0.1, %v492_v54 }
  0xf6   : > { %v672_v59 = vpack.c.bf16 %v515_v57, %v515_v57  ;;  %v513_v60 = vsel %vm497_vm7, %v489_v51, %v505_v55  ;;  %vm498_vm9 = vcmp.gt.f32.partialorder %v490_v56, 0.0  ;;  %v506_v61 = vmul.f32 0.1, %v490_v56 }
  0xf7   : > { %v670_v62 = vpack.c.bf16 %v513_v60, %v513_v60  ;;  %v516_v63 = vsel %vm500_vm8, %v492_v54, %v508_v58 }
  0xf8   : > { %556 = vst.msk [vmem:[%s807_s11 + $0x18] sm:$0xf] %vm549_vm3, %v672_v59  ;;  %v673_v0 = vpack.c.bf16 %v516_v63, %v516_v63  ;;  %v514_v1 = vsel %vm498_vm9, %v490_v56, %v506_v61 }
  0xf9   : > { %554 = vst.msk [vmem:[%s807_s11 + $0x10] sm:$0xf] %vm549_vm3, %v670_v62  ;;  %v671_v2 = vpack.c.bf16 %v514_v1, %v514_v1 }
  0xfa   : > { %557 = vst.msk [vmem:[%s807_s11 + $0x1c] sm:$0xf] %vm549_vm3, %v673_v0 }
  0xfb   : > { %555 = vst.msk [vmem:[%s807_s11 + $0x14] sm:$0xf] %vm549_vm3, %v671_v2 }
  0xfc PF: > { %s15_s18 = sadd.s32 1, %s736_s18  }
  0xfd   : > { %p12_p4 = scmp.ge.s32.totalorder %s15_s18, 4  }
  0xff   :  { %14 = sbr.rel (!%p12_p4) target bundleno = 1 (0x1), region = 73 }

// kernel: yolov1_forward.28
= control target key start
LH: loop header
LB: loop body
LE: loop exit
PB: predicated region body
PF: predicated region fallthrough
CT: control target
= control target key end

     0   :  { %s1593_s12 = smov 0   ;;  %s1852_s0 = inlined_call_operand.vmem [shape: bf16[2,10,10,16], index: 0, kind: input, shape index: {}]   ;;  %s1853_s1 = inlined_call_operand.vmem [shape: bf16[3,3,16,16], index: 1, kind: input, shape index: {}]   ;;  %s1854_s2 = inlined_call_operand.vmem [shape: f32[1,16], index: 2, kind: input, shape index: {}]   ;;  %s1855_s3 = inlined_call_operand.vmem [shape: bf16[2,8,8,16], index: 3, kind: output, shape index: {}]  }
   0x1 LB: > { %s1255_s13 = sadd.s32 4294967295, %s1571_s12   ;;  %p1259_p0 = scmp.ge.s32.totalorder %s1571_s12, 1  ;;  %s1571_s12 = sphi %s1593_s12, %s13_s12  }
   0x2   : > { %p137_p1 = scmp.lt.s32.totalorder %s1571_s12, 3 }
   0x4   : > { %p138_p2 = pnand %p1259_p0, %p137_p1 }
   0x5   : > { %v1547_v0 = vld [vmem:[%s1853_s1 + $0x8] sm:$0xff] (!%p138_p2)   ;;  %p161_p3 = scmp.lt.s32.totalorder (!%p138_p2), %s1255_s13, 1  ;;  %v1607_v1 = vld [vmem:[%s1853_s1 + $0x20] sm:$0xff] (!%p138_p2)   ;;  %vm234_vm0 = vcmask (!%p138_p2), 1046528   ;;  %vm280_vm1 = vcmask (!%p138_p2), 130048   ;;  %vm441_vm2 = vcmask (!%p138_p2), 1045504  }
   0x6   : > { %141 = sbr.rel (%p138_p2) target bundleno = 322 (0x142), region = 32  ;;  %1382 = vmatprep.subr.bf16.mxu1 (!%p138_p2), %v1547_v0  ;;  %1422 = vmatprep.subr.bf16.mxu0 (!%p138_p2), %v1607_v1  ;;  %v1615_v2 = vld [vmem:[%s1853_s1] sm:$0xff] (!%p138_p2)   ;;  %v1622_v3 = vld [vmem:[%s1853_s1 + $0x28] sm:$0xff] (!%p138_p2)   ;;  %v1686_v52 = vld [vmem:[%s1853_s1 + $0x10] sm:$0xff] (!%p138_p2)   ;;  %vm1191_vm5 = vcmask (!%p138_p2), 125952  }
   0x7   : > { %1383 = vmatpush3.bf16.msra.mxu1 (!%p138_p2), %v1547_v0  ;;  %1423 = vmatpush3.bf16.msra.mxu0 (!%p138_p2), %v1607_v1  ;;  %v1553_v61 = vld [vmem:[%s1853_s1 + $0x30] sm:$0xff] (!%p138_p2)  }
   0x8   : > { %1392 = vmatprep.subr.bf16.mxu1 (!%p138_p2), %v1615_v2  ;;  %1432 = vmatprep.subr.bf16.mxu0 (!%p138_p2), %v1622_v3 }
   0xd   : > { %s1857_s13 = smov (!%p161_p3, %s1255_s13), 1 }
   0xe   : > { %s1538_s20 = smul.u32 80, %s1857_s13  ;;  %s1336_s11 = sshll.u32 %s1857_s13, 5 }
   0xf   : > { %s1831_s16 = scalar_lea.vmem %s1855_s3, %s1336_s11 }
  0x10   : > { %s1628_s25 = scalar_lea.vmem %s1852_s0, %s1538_s20 }
  0x11   : > { %v1632_v4 = vld [vmem:[%s1628_s25] sm:$0xf]  ;;  %v1635_v5 = vld [vmem:[%s1628_s25 + $0x4] sm:$0x1]  ;;  %v1638_v6 = vld [vmem:[%s1628_s25 + $0x8] sm:$0xf] }
  0x12   : > { %v175_v7 = vld [vmem:[%s1628_s25 + $0xc] sm:$0x1]  ;;  %v192_v8 = vunpack.c.l.bf16 %v1632_v4  ;;  %v193_v9 = vunpack.c.l.bf16 %v1635_v5  ;;  %v194_v10 = vunpack.c.l.bf16 %v1638_v6  ;;  %v1645_v11 = vld [vmem:[%s1628_s25 + $0x10] sm:$0xf]  ;;  %v177_v12 = vld [vmem:[%s1628_s25 + $0x14] sm:$0x1] }
  0x13   : > { %v195_v13 = vunpack.c.l.bf16 %v175_v7  ;;  %v1649_v14 = vld [vmem:[%s1628_s25 + $0x18] sm:$0xf]  ;;  %v179_v15 = vld [vmem:[%s1628_s25 + $0x1c] sm:$0x1]  ;;  %v1653_v16 = vld [vmem:[%s1628_s25 + $0x20] sm:$0xf]  ;;  %v196_v17 = vunpack.c.l.bf16 %v1645_v11  ;;  %v197_v22 = vunpack.c.l.bf16 %v177_v12 }
  0x14   : > { %v235_v18 = vrot.slane %v192_v8, 1  ;;  %v236_v19 = vrot.slane %v193_v9, 1  ;;  %v238_v20 = vrot.slane %v194_v10, 1  ;;  %v181_v21 = vld [vmem:[%s1628_s25 + $0x24] sm:$0x1]  ;;  %v445_v24 = vrot.slane %v194_v10, 2 }
  0x15   : > { %v239_v23 = vrot.slane %v195_v13, 1  ;;  %v198_v26 = vunpack.c.l.bf16 %v1649_v14  ;;  %v199_v27 = vunpack.c.l.bf16 %v179_v15  ;;  %v200_v28 = vunpack.c.l.bf16 %v1653_v16  ;;  %v1666_v33 = vld [vmem:[%s1628_s25 + $0x28] sm:$0xf]  ;;  %v183_v38 = vld [vmem:[%s1628_s25 + $0x2c] sm:$0x1] }
  0x16   : > { %v237_v25 = vsel %vm234_vm0, %v235_v18, %v236_v19  ;;  %v446_v30 = vrot.slane %v195_v13, 2  ;;  %v201_v31 = vunpack.c.l.bf16 %v181_v21  ;;  %v241_v32 = vrot.slane %v196_v17, 1  ;;  %v1670_v39 = vld [vmem:[%s1628_s25 + $0x30] sm:$0xf]  ;;  %v185_v42 = vld [vmem:[%s1628_s25 + $0x34] sm:$0x1] }
  0x17   : > { %v240_v29 = vsel %vm234_vm0, %v238_v20, %v239_v23  ;;  %v242_v35 = vrot.slane %v197_v22, 1  ;;  %v244_v36 = vrot.slane %v198_v26, 1  ;;  %v245_v37 = vrot.slane %v199_v27, 1  ;;  %v1674_v43 = vld [vmem:[%s1628_s25 + $0x38] sm:$0xf] }
  0x18   : > { %v267_v34 = vpack.c.bf16 %v240_v29, %v237_v25  ;;  %v247_v40 = vrot.slane %v200_v28, 1  ;;  %v248_v41 = vrot.slane %v201_v31, 1  ;;  %v448_v46 = vrot.slane %v196_v17, 2  ;;  %v187_v51 = vld [vmem:[%s1628_s25 + $0x3c] sm:$0x1] }
  0x19   : > { %v243_v44 = vsel %vm234_vm0, %v241_v32, %v242_v35  ;;  %v246_v45 = vsel %vm234_vm0, %v244_v36, %v245_v37  ;;  %v449_v47 = vrot.slane %v197_v22, 2  ;;  %v451_v50 = vrot.slane %v198_v26, 2  ;;  %v1718_v23 = vld [vmem:[%s1628_s25 + $0x40] sm:$0xf] }
  0x1a   : > { %1384 = vmatprep.mubr.msk.bf16.mxu1 %vm280_vm1, %v267_v34  ;;  %v249_v48 = vsel %vm234_vm0, %v247_v40, %v248_v41  ;;  %v1680_v49 = vpack.c.bf16 %v246_v45, %v243_v44  ;;  %v452_v53 = vrot.slane %v199_v27, 2  ;;  %v676_v54 = vpack.c.bf16 %v243_v44, %v240_v29 }
  0x1b   : > { %v677_v55 = vpack.c.bf16 %v249_v48, %v246_v45  ;;  %v202_v56 = vunpack.c.l.bf16 %v1666_v33  ;;  %v203_v57 = vunpack.c.l.bf16 %v183_v38  ;;  %v204_v58 = vunpack.c.l.bf16 %v1670_v39 }
  0x1c   : > { %1385 = vmatmul.mubr.msk.bf16.vlgmr.msra.gmra.mrb[0].mxu1 %vm280_vm1, %v1680_v49  ;;  %v205_v59 = vunpack.c.l.bf16 %v185_v42  ;;  %v206_v60 = vunpack.c.l.bf16 %v1674_v43  ;;  %1424 = vmatprep.mubr.msk.bf16.mxu0 %vm280_vm1, %v676_v54  ;;  %v207_v63 = vunpack.c.l.bf16 %v187_v51  ;;  %v1699_v0 = vsel %vm441_vm2, %v445_v24, %v446_v30  ;;  %v1721_v24 = vld [vmem:[%s1628_s25 + $0x44] sm:$0x1] }
  0x1d   : > { %1393 = vmatpush3.bf16.msra.mxu1 %v1615_v2  ;;  %v250_v62 = vrot.slane %v202_v56, 1  ;;  %v1702_v7 = vsel %vm441_vm2, %v448_v46, %v449_v47  ;;  %1425 = vmatmul.mubr.msk.bf16.vlgmr.msra.gmra.mrb[0].mxu0 %vm280_vm1, %v677_v55  ;;  %v251_v10 = vrot.slane %v203_v57, 1  ;;  %v253_v12 = vrot.slane %v204_v58, 1  ;;  %v1558_v47 = vld [vmem:[%s1853_s1 + $0x38] sm:$0xff]  }
  0x1e   : > { %v254_v13 = vrot.slane %v205_v59, 1  ;;  %v256_v15 = vrot.slane %v206_v60, 1  ;;  %1402 = vmatprep.subr.bf16.mxu1 %v1686_v52  ;;  %v454_v17 = vrot.slane %v200_v28, 2  ;;  %v455_v2 = vrot.slane %v201_v31, 2  ;;  %1433 = vmatpush3.bf16.msra.mxu0 %v1622_v3 }
  0x1f   : > { %v257_v18 = vrot.slane %v207_v63, 1  ;;  %v778_v19 = vpack.c.bf16 %v1702_v7, %v1699_v0  ;;  %v1710_v20 = vsel %vm234_vm0, %v250_v62, %v251_v10  ;;  %1442 = vmatprep.subr.bf16.mxu0 %v1553_v61  ;;  %v1263_v22 = vcombine.low %v1632_v4, %v1638_v6 }
  0x20   : > { %v1713_v21 = vsel %vm234_vm0, %v253_v12, %v254_v13  ;;  %v1724_v3 = vpack.c.bf16 %v1710_v20, %v249_v48  ;;  %v457_v26 = vrot.slane %v202_v56, 2  ;;  %v458_v27 = vrot.slane %v203_v57, 2  ;;  %v1561_v56 = vld [vmem:[%s1853_s1 + $0x40] sm:$0xff]  }
  0x21   : > { %v1727_v25 = vsel %vm234_vm0, %v256_v15, %v257_v18  ;;  %1434 = vmatprep.mubr.msk.bf16.mxu0 %vm280_vm1, %v778_v19  ;;  %v460_v29 = vrot.slane %v204_v58, 2  ;;  %v461_v30 = vrot.slane %v205_v59, 2  ;;  %v453_v31 = vsel %vm441_vm2, %v451_v50, %v452_v53  ;;  %v1559_v53 = vld [vmem:[%s1853_s1 + $0x18] sm:$0xff]   ;;  %v190_v58 = vld [vmem:[%s1628_s25 + $0x48] sm:$0xf] }
  0x22   : > { %v1732_v28 = vpack.c.bf16 %v1727_v25, %v1713_v21  ;;  %1388 = vmatprep.mubr.msk.bf16.mxu1 %vm280_vm1, %v1724_v3  ;;  %v456_v32 = vsel %vm441_vm2, %v454_v17, %v455_v2  ;;  %v208_v34 = vunpack.c.l.bf16 %v1718_v23  ;;  %v209_v35 = vunpack.c.l.bf16 %v1721_v24 }
  0x23   : > { %v459_v36 = vsel %vm441_vm2, %v457_v26, %v458_v27  ;;  %v462_v37 = vsel %vm441_vm2, %v460_v29, %v461_v30  ;;  %v779_v38 = vpack.c.bf16 %v456_v32, %v453_v31  ;;  %v463_v40 = vrot.slane %v206_v60, 2 }
  0x24   : > { %1389 = vmatmul.mubr.msk.bf16.gmra.mrb[4].mxu1 %vm280_vm1, %v1732_v28  ;;  %v780_v41 = vpack.c.bf16 %v462_v37, %v459_v36  ;;  %v464_v42 = vrot.slane %v207_v63, 2  ;;  %v774_v44 = vrot.slane %v208_v34, 2  ;;  %v775_v45 = vrot.slane %v209_v35, 2 }
  0x25   : > { %1394 = vmatprep.mubr.msk.bf16.mxu1 %vm280_vm1, %v1263_v22  ;;  %v1264_v46 = vcombine.low %v1645_v11, %v1649_v14  ;;  %v1265_v48 = vcombine.low %v1653_v16, %v1666_v33  ;;  %v442_v50 = vrot.slane %v192_v8, 2  ;;  %v443_v51 = vrot.slane %v193_v9, 2 }
  0x26   : > { %v465_v54 = vsel %vm441_vm2, %v463_v40, %v464_v42  ;;  %v1763_v55 = vsel %vm441_vm2, %v774_v44, %v775_v45  ;;  %v1266_v8 = vcombine.low %v1670_v39, %v1674_v43  ;;  %v476_v57 = vpack.c.bf16 %v459_v36, %v456_v32 }
  0x27   : > { %v781_v4 = vpack.c.bf16 %v1763_v55, %v465_v54  ;;  %v444_v5 = vsel %vm441_vm2, %v442_v50, %v443_v51  ;;  %v1311_v59 = vcombine.low %v1718_v23, %v190_v58  ;;  %v477_v60 = vpack.c.bf16 %v465_v54, %v462_v37 }
  0x28   : > { %v474_v9 = vpack.c.bf16 %v1699_v0, %v444_v5  ;;  %v1286_v62 = vcombine.low %v1638_v6, %v1645_v11  ;;  %v210_v63 = vunpack.c.l.bf16 %v190_v58  ;;  %v672_v10 = vrot.slane %v208_v34, 1 }
  0x29   : > { %1435 = vmatmul.mubr.msk.bf16.vlgmr.msra.gmra.mrb[0].mxu0 %vm280_vm1, %v779_v38  ;;  %v673_v12 = vrot.slane %v209_v35, 1  ;;  %v1287_v15 = vcombine.low %v1649_v14, %v1653_v16  ;;  %v1288_v6 = vcombine.low %v1666_v33, %v1670_v39  ;;  %v1289_v16 = vcombine.low %v1674_v43, %v1718_v23  ;;  %v1333_v23 = vld [vmem:[%s1854_s2] ss:$0 sm:$0xff] }
  0x2a   : > { %1443 = vmatpush3.bf16.msra.mxu0 %v1553_v61  ;;  %1438 = vmatprep.mubr.msk.bf16.mxu0 %vm280_vm1, %v780_v41  ;;  %v191_v61 = vld [vmem:[%s1628_s25 + $0x4c] sm:$0x1]  ;;  %v678_v33 = vpack.c.bf16 %v1713_v21, %v1710_v20  ;;  %v1054_v39 = vrot.slane %v210_v63, 2 }
  0x2b   : > { %1452 = vmatprep.subr.bf16.mxu0 %v1558_v47  ;;  %v211_v0 = vunpack.c.l.bf16 %v191_v61  ;;  %v674_v11 = vsel %vm234_vm0, %v672_v10, %v673_v12 }
  0x2c   : > { %1395 = vmatmul.mubr.msk.bf16.vlgmr.msra.gmra.mrb[0].mxu1 %vm280_vm1, %v1264_v46  ;;  %v679_v43 = vpack.c.bf16 %v674_v11, %v1727_v25 }
  0x2d   : > { %1403 = vmatpush3.bf16.msra.mxu1 %v1686_v52  ;;  %1398 = vmatprep.mubr.msk.bf16.mxu1 %vm280_vm1, %v1265_v48  ;;  %v475_v52 = vpack.c.bf16 %v453_v31, %v1702_v7  ;;  %v964_v7 = vrot.slane %v210_v63, 1  ;;  %v965_v13 = vrot.slane %v211_v0, 1  ;;  %v1055_v17 = vrot.slane %v211_v0, 2 }
  0x2e   : > { %1412 = vmatprep.subr.bf16.mxu1 %v1559_v53 }
  0x31   : > { %1439 = vmatmul.mubr.msk.bf16.gmra.mrb[4].mxu0 %vm280_vm1, %v781_v4 }
  0x32   : > { %1444 = vmatprep.mubr.msk.bf16.mxu0 %vm280_vm1, %v1264_v46 }
  0x34   : > { %1399 = vmatmul.mubr.msk.bf16.gmra.mrb[4].mxu1 %vm280_vm1, %v1266_v8 }
  0x35   : > { %1404 = vmatprep.mubr.msk.bf16.mxu1 %vm280_vm1, %v474_v9 }
  0x39   : > { %1445 = vmatmul.mubr.msk.bf16.vlgmr.msra.gmra.mrb[0].mxu0 %vm280_vm1, %v1265_v48 }
  0x3a   : > { %1453 = vmatpush3.bf16.msra.mxu0 %v1558_v47  ;;  %1448 = vmatprep.mubr.msk.bf16.mxu0 %vm280_vm1, %v1266_v8 }
  0x3b   : > { %1462 = vmatprep.subr.bf16.mxu0 %v1561_v56 }
  0x3c   : > { %1405 = vmatmul.mubr.msk.bf16.vlgmr.msra.gmra.mrb[0].mxu1 %vm280_vm1, %v475_v52 }
  0x3d   : > { %1413 = vmatpush3.bf16.msra.mxu1 %v1559_v53  ;;  %1408 = vmatprep.mubr.msk.bf16.mxu1 %vm280_vm1, %v476_v57 }
  0x3e   : > { %1472 = vmatprep.subr.bf16.mxu1 %v1607_v1 }
  0x41   : > { %1449 = vmatmul.mubr.msk.bf16.gmra.mrb[4].mxu0 %vm280_vm1, %v1311_v59 }
  0x42   : > { %1454 = vmatprep.mubr.msk.bf16.mxu0 %vm280_vm1, %v1680_v49  ;;  %v966_v49 = vsel %vm234_vm0, %v964_v7, %v965_v13 }
  0x43   : > { %v968_v14 = vpack.c.bf16 %v966_v49, %v674_v11 }
  0x44   : > { %1409 = vmatmul.mubr.msk.bf16.gmra.mrb[4].mxu1 %vm280_vm1, %v477_v60 }
  0x45   : > { %1414 = vmatprep.mubr.msk.bf16.mxu1 %vm280_vm1, %v1286_v62 }
  0x49   : > { %1455 = vmatmul.mubr.msk.bf16.vlgmr.msra.gmra.mrb[0].mxu0 %vm280_vm1, %v1724_v3 }
  0x4a   : > { %1463 = vmatpush3.bf16.msra.mxu0 %v1561_v56  ;;  %1458 = vmatprep.mubr.msk.bf16.mxu0 %vm280_vm1, %v1732_v28 }
  0x4c   : > { %1415 = vmatmul.mubr.msk.bf16.vlgmr.msra.gmra.mrb[0].mxu1 %vm280_vm1, %v1287_v15 }
  0x4d   : > { %1473 = vmatpush3.bf16.msra.mxu1 %v1607_v1  ;;  %1418 = vmatprep.mubr.msk.bf16.mxu1 %vm280_vm1, %v1288_v6  ;;  %v1056_v1 = vsel %vm441_vm2, %v1054_v39, %v1055_v17 }
  0x4e   : > { %v1058_v2 = vpack.c.bf16 %v1056_v1, %v1763_v55 }
  0x51   : > { %1459 = vmatmul.mubr.msk.bf16.gmra.mrb[4].mxu0 %vm280_vm1, %v968_v14 }
  0x52   : > { %1464 = vmatprep.mubr.msk.bf16.mxu0 %vm280_vm1, %v475_v52 }
  0x54   : > { %1419 = vmatmul.mubr.msk.bf16.gmra.mrb[4].mxu1 %vm280_vm1, %v1289_v16 }
  0x55   : > { %1428 = vmatprep.mubr.msk.bf16.mxu1 %vm280_vm1, %v678_v33 }
  0x59   : > { %1465 = vmatmul.mubr.msk.bf16.vlgmr.msra.gmra.mrb[0].mxu0 %vm280_vm1, %v476_v57 }
  0x5a   : > { %1468 = vmatprep.mubr.msk.bf16.mxu0 %vm280_vm1, %v477_v60 }
  0x60   : > { %1429 = vmatmul.mubr.msk.bf16.vlgmr.msra.gmra.mrb[4].mxu1 %vm280_vm1, %v679_v43 }
  0x61   : > { %1469 = vmatmul.mubr.msk.bf16.gmra.mrb[4].mxu0 %vm280_vm1, %v1058_v2 }
 0x11f   : > { %v1416_v18 = vpop.f32.mrb[0].mxu1 }
 0x120   : > { %v631_v19 = vpop.f32.mrb[1].mxu1 }
 0x121   : > { %v1417_v20 = vpop.f32.mrb[2].mxu1 }
 0x122   : > { %v634_v21 = vpop.f32.mrb[3].mxu1 }
 0x12c   : > { %v1466_v22 = vpop.f32.mrb[0].mxu0 }
 0x12d   : > { %v1474_v24 = vadd.f32 %v1466_v22, %v1416_v18  ;;  %v1105_v3 = vpop.f32.mrb[1].mxu0 }
 0x12e   : > { %v1475_v26 = vadd.f32 %v1105_v3, %v631_v19  ;;  %v1467_v25 = vpop.f32.mrb[2].mxu0 }
 0x12f   : > { %v1153_v27 = vadd.f32 %v1474_v24, %v1333_v23  ;;  %v1476_v28 = vadd.f32 %v1467_v25, %v1417_v20  ;;  %v1108_v29 = vpop.f32.mrb[3].mxu0 }
 0x130   : > { %v1151_v30 = vadd.f32 %v1475_v26, %v1333_v23  ;;  %v1477_v31 = vadd.f32 %v1108_v29, %v634_v21 }
 0x131   : > { %vm1161_vm3 = vcmp.gt.f32.partialorder %v1153_v27, 0.0  ;;  %v1169_v32 = vmul.f32 0.1, %v1153_v27  ;;  %v1154_v34 = vadd.f32 %v1476_v28, %v1333_v23 }
 0x132   : > { %vm1159_vm4 = vcmp.gt.f32.partialorder %v1151_v30, 0.0  ;;  %v1167_v35 = vmul.f32 0.1, %v1151_v30  ;;  %v1152_v36 = vadd.f32 %v1477_v31, %v1333_v23 }
 0x133   : > { %v1430_v37 = vpop.f32.mrb[4].mxu1  ;;  %v1177_v38 = vsel %vm1161_vm3, %v1153_v27, %v1169_v32  ;;  %vm1162_vm6 = vcmp.gt.f32.partialorder %v1154_v34, 0.0  ;;  %v1170_v40 = vmul.f32 0.1, %v1154_v34 }
 0x134   : > { %v751_v41 = vpop.f32.mrb[5].mxu1  ;;  %v1185_v42 = vpack.c.bf16 %v1177_v38, %v1177_v38  ;;  %v1175_v44 = vsel %vm1159_vm4, %v1151_v30, %v1167_v35  ;;  %vm1160_vm7 = vcmp.gt.f32.partialorder %v1152_v36, 0.0  ;;  %v1168_v45 = vmul.f32 0.1, %v1152_v36  ;;  %v1470_v46 = vpop.f32.mrb[4].mxu0 }
 0x135   : > { %v1431_v47 = vpop.f32.mrb[6].mxu1  ;;  %v1183_v48 = vpack.c.bf16 %v1175_v44, %v1175_v44  ;;  %v1178_v50 = vsel %vm1162_vm6, %v1154_v34, %v1170_v40  ;;  %v1478_v51 = vadd.f32 %v1470_v46, %v1430_v37  ;;  %v1121_v53 = vpop.f32.mrb[5].mxu0 }
 0x136   : > { %v754_v54 = vpop.f32.mrb[7].mxu1  ;;  %1194 = vst.msk [vmem:[%s1831_s16 + $0x8] sm:$0xf] %vm1191_vm5, %v1185_v42  ;;  %v1186_v55 = vpack.c.bf16 %v1178_v50, %v1178_v50  ;;  %v1176_v4 = vsel %vm1160_vm7, %v1152_v36, %v1168_v45  ;;  %v1479_v5 = vadd.f32 %v1121_v53, %v751_v41  ;;  %v1471_v8 = vpop.f32.mrb[6].mxu0 }
 0x137   : > { %1192 = vst.msk [vmem:[%s1831_s16] sm:$0xf] %vm1191_vm5, %v1183_v48  ;;  %v1184_v9 = vpack.c.bf16 %v1176_v4, %v1176_v4  ;;  %v1157_v52 = vadd.f32 %v1478_v51, %v1333_v23  ;;  %v1480_v56 = vadd.f32 %v1471_v8, %v1431_v47  ;;  %v1124_v57 = vpop.f32.mrb[7].mxu0 }
 0x138   : > { %1195 = vst.msk [vmem:[%s1831_s16 + $0xc] sm:$0xf] %vm1191_vm5, %v1186_v55  ;;  %v1155_v58 = vadd.f32 %v1479_v5, %v1333_v23  ;;  %v1481_v59 = vadd.f32 %v1124_v57, %v754_v54 }
 0x139   : > { %1193 = vst.msk [vmem:[%s1831_s16 + $0x4] sm:$0xf] %vm1191_vm5, %v1184_v9  ;;  %vm1165_vm8 = vcmp.gt.f32.partialorder %v1157_v52, 0.0  ;;  %v1173_v60 = vmul.f32 0.1, %v1157_v52  ;;  %v1158_v61 = vadd.f32 %v1480_v56, %v1333_v23 }
 0x13a   : > { %vm1163_vm9 = vcmp.gt.f32.partialorder %v1155_v58, 0.0  ;;  %v1171_v62 = vmul.f32 0.1, %v1155_v58  ;;  %v1156_v63 = vadd.f32 %v1481_v59, %v1333_v23 }
 0x13b   : > { %v1181_v0 = vsel %vm1165_vm8, %v1157_v52, %v1173_v60  ;;  %vm1166_vm10 = vcmp.gt.f32.partialorder %v1158_v61, 0.0  ;;  %v1174_v7 = vmul.f32 0.1, %v1158_v61 }
 0x13c   : > { %v1189_v10 = vpack.c.bf16 %v1181_v0, %v1181_v0  ;;  %v1179_v12 = vsel %vm1163_vm9, %v1155_v58, %v1171_v62  ;;  %vm1164_vm11 = vcmp.gt.f32.partialorder %v1156_v63, 0.0  ;;  %v1172_v13 = vmul.f32 0.1, %v1156_v63 }
 0x13d   : > { %v1187_v15 = vpack.c.bf16 %v1179_v12, %v1179_v12  ;;  %v1182_v6 = vsel %vm1166_vm10, %v1158_v61, %v1174_v7 }
 0x13e   : > { %1198 = vst.msk [vmem:[%s1831_s16 + $0x18] sm:$0xf] %vm1191_vm5, %v1189_v10  ;;  %v1190_v11 = vpack.c.bf16 %v1182_v6, %v1182_v6  ;;  %v1180_v49 = vsel %vm1164_vm11, %v1156_v63, %v1172_v13 }
 0x13f   : > { %1196 = vst.msk [vmem:[%s1831_s16 + $0x10] sm:$0xf] %vm1191_vm5, %v1187_v15  ;;  %v1188_v14 = vpack.c.bf16 %v1180_v49, %v1180_v49 }
 0x140   : > { %1199 = vst.msk [vmem:[%s1831_s16 + $0x1c] sm:$0xf] %vm1191_vm5, %v1190_v11 }
 0x141   : > { %1197 = vst.msk [vmem:[%s1831_s16 + $0x14] sm:$0xf] %vm1191_vm5, %v1188_v14 }
 0x142 PF: > { %s13_s12 = sadd.s32 1, %s1571_s12  }
 0x143   : > { %p10_p4 = scmp.ge.s32.totalorder %s13_s12, 4  }
 0x145   :  { %12 = sbr.rel (!%p10_p4) target bundleno = 1 (0x1), region = 70 }

// kernel: yolov1_forward.32
= control target key start
LH: loop header
LB: loop body
LE: loop exit
PB: predicated region body
PF: predicated region fallthrough
CT: control target
= control target key end

     0   :  { %s611_s12 = smov 0   ;;  %s682_s0 = inlined_call_operand.vmem [shape: bf16[128,32], index: 0, kind: input, shape index: {}]   ;;  %s683_s1 = inlined_call_operand.vmem [shape: bf16[32,32], index: 1, kind: input, shape index: {}]   ;;  %s684_s2 = inlined_call_operand.vmem [shape: f32[1,32], index: 2, kind: input, shape index: {}]   ;;  %s685_s3 = inlined_call_operand.vmem [shape: bf16[128,32], index: 3, kind: output, shape index: {}]  }
   0x1 LB: > { %s465_s13 = sadd.s32 4294967295, %s589_s12   ;;  %p469_p0 = scmp.ge.s32.totalorder %s589_s12, 1  ;;  %s589_s12 = sphi %s611_s12, %s13_s12  }
   0x2   : > { %p138_p1 = scmp.lt.s32.totalorder %s589_s12, 3 }
   0x4   : > { %p139_p2 = pnand %p469_p0, %p138_p1 }
   0x5   : > { %v541_v0 = vld [vmem:[%s683_s1] sm:$0xff] (!%p139_p2)   ;;  %s470_s16 = sshll.u32 (!%p139_p2), %s465_s13, 3  ;;  %v542_v1 = vld [vmem:[%s683_s1 + $0x8] sm:$0xff] (!%p139_p2)   ;;  %vm226_vm0 = vcmask (!%p139_p2), 261120   ;;  %vm400_vm1 = vcmask (!%p139_p2), 257024  }
   0x6   : > { %142 = sbr.rel (%p139_p2) target bundleno = 270 (0x10e), region = 32  ;;  %p163_p3 = scmp.lt.s32.totalorder (!%p139_p2), %s470_s16, 15  ;;  %517 = vmatprep.subr.bf16.mxu0 (!%p139_p2), %v541_v0  ;;  %529 = vmatprep.subr.bf16.mxu1 (!%p139_p2), %v541_v0  ;;  %v474_v6 = vld [vmem:[%s684_s2] ss:$0 sm:$0xff] (!%p139_p2) }
   0x7   : > { %518 = vmatpush3.bf16.msra.mxu0 (!%p139_p2), %v541_v0  ;;  %531 = vmatpush3.bf16.msra.mxu1 (!%p139_p2), %v541_v0 }
   0x8   : > { %519 = vmatprep.subr.bf16.mxu0 (!%p139_p2), %v542_v1  ;;  %530 = vmatprep.subr.bf16.mxu1 (!%p139_p2), %v542_v1 }
   0xb   : > { %520 = vmatpush3.bf16.msra.mxu0 (!%p139_p2), %v542_v1  ;;  %532 = vmatpush3.bf16.msra.mxu1 (!%p139_p2), %v542_v1 }
   0xd   : > { %s687_s16 = smov (!%p163_p3, %s470_s16), 15 }
   0xe   : > { %s471_s19 = sshll.u32 %s687_s16, 2 }
   0xf   : > { %s166_s22 = scalar_lea.vmem %s682_s0, %s471_s19  ;;  %s658_s27 = scalar_lea.vmem %s685_s3, %s471_s19 }
  0x10   : > { %v633_v2 = vld [vmem:[%s166_s22] sm:$0xff]   ;;  %v635_v3 = vld [vmem:[%s166_s22 + $0x10] sm:$0xff]   ;;  %v637_v4 = vld [vmem:[%s166_s22 + $0x8] sm:$0xff]  }
  0x11   : > { %v639_v5 = vld [vmem:[%s166_s22 + $0x18] sm:$0xff]   ;;  %521 = vmatprep.mubr.msk.bf16.mxu0 %vm226_vm0, %v633_v2  ;;  %525 = vmatprep.mubr.msk.bf16.mxu1 %vm226_vm0, %v635_v3  ;;  %v354_v47 = vunpack.c.l.bf16 %v637_v4  ;;  %v352_v49 = vunpack.c.l.bf16 %v633_v2  ;;  %v356_v51 = vunpack.c.l.bf16 %v635_v3  ;;  %v355_v53 = vunpack.c.h.bf16 %v637_v4 }
  0x12   : > { %522 = vmatmul.mubr.msk.bf16.vlgmr.msra.gmra.mrb[0].mxu0 %vm226_vm0, %v637_v4  ;;  %526 = vmatmul.mubr.msk.bf16.vlgmr.msra.gmra.mrb[0].mxu1 %vm226_vm0, %v639_v5  ;;  %v358_v48 = vunpack.c.l.bf16 %v639_v5  ;;  %v359_v56 = vunpack.c.h.bf16 %v639_v5  ;;  %v353_v59 = vunpack.c.h.bf16 %v633_v2  ;;  %v357_v63 = vunpack.c.h.bf16 %v635_v3 }
  0xe5   : > { %v523_v7 = vpop.f32.mrb[0].mxu0  ;;  %v527_v9 = vpop.f32.mrb[0].mxu1 }
  0xe6   : > { %v282_v8 = vadd.f32 %v523_v7, %v474_v6  ;;  %v273_v10 = vpop.f32.mrb[1].mxu0  ;;  %v298_v11 = vadd.f32 %v527_v9, %v474_v6  ;;  %v289_v13 = vpop.f32.mrb[1].mxu1 }
  0xe7   : > { %v274_v12 = vadd.f32 %v474_v6, %v273_v10  ;;  %v524_v14 = vpop.f32.mrb[2].mxu0  ;;  %v290_v16 = vadd.f32 %v474_v6, %v289_v13  ;;  %v528_v18 = vpop.f32.mrb[2].mxu1 }
  0xe8   : > { %v487_v15 = vmul.f32 -1.442695, %v282_v8  ;;  %v285_v17 = vadd.f32 %v524_v14, %v474_v6  ;;  %v276_v19 = vpop.f32.mrb[3].mxu0  ;;  %v491_v20 = vmul.f32 -1.442695, %v298_v11  ;;  %v301_v22 = vadd.f32 %v528_v18, %v474_v6  ;;  %v292_v24 = vpop.f32.mrb[3].mxu1 }
  0xe9   : > { %v485_v21 = vmul.f32 -1.442695, %v274_v12  ;;  %v277_v23 = vadd.f32 %v474_v6, %v276_v19  ;;  %v489_v25 = vmul.f32 -1.442695, %v290_v16  ;;  %v293_v27 = vadd.f32 %v474_v6, %v292_v24 }
  0xea   : > { %551 = vpow2.f32 %v487_v15  ;;  %v488_v26 = vmul.f32 -1.442695, %v285_v17  ;;  %v492_v28 = vmul.f32 -1.442695, %v301_v22 }
  0xeb   : > { %553 = vpow2.f32 %v491_v20  ;;  %v486_v29 = vmul.f32 -1.442695, %v277_v23  ;;  %v490_v30 = vmul.f32 -1.442695, %v293_v27 }
  0xec   : > { %555 = vpow2.f32 %v485_v21 }
  0xed   : > { %557 = vpow2.f32 %v489_v25 }
  0xee   : > { %559 = vpow2.f32 %v488_v26 }
  0xef   : > { %561 = vpow2.f32 %v492_v28 }
  0xf0   : > { %563 = vpow2.f32 %v486_v29 }
  0xf1   : > { %565 = vpow2.f32 %v490_v30 }
  0xf4   : > { %v552_v31 = vpop.eup %551 }
  0xf5   : > { %v554_v32 = vpop.eup %553  ;;  %v330_v33 = vadd.f32 1.0, %v552_v31 }
  0xf6   : > { %v556_v34 = vpop.eup %555  ;;  %v334_v35 = vadd.f32 1.0, %v554_v32 }
  0xf7   : > { %v558_v36 = vpop.eup %557  ;;  %567 = vrcp.f32 %v330_v33  ;;  %v328_v37 = vadd.f32 1.0, %v556_v34 }
  0xf8   : > { %v560_v38 = vpop.eup %559  ;;  %569 = vrcp.f32 %v334_v35  ;;  %v332_v39 = vadd.f32 1.0, %v558_v36 }
  0xf9   : > { %v562_v40 = vpop.eup %561  ;;  %571 = vrcp.f32 %v328_v37  ;;  %v331_v41 = vadd.f32 1.0, %v560_v38 }
  0xfa   : > { %v564_v42 = vpop.eup %563  ;;  %573 = vrcp.f32 %v332_v39  ;;  %v335_v43 = vadd.f32 1.0, %v562_v40 }
  0xfb   : > { %v566_v44 = vpop.eup %565  ;;  %575 = vrcp.f32 %v331_v41  ;;  %v329_v45 = vadd.f32 1.0, %v564_v42 }
  0xfc   : > { %577 = vrcp.f32 %v335_v43  ;;  %v333_v46 = vadd.f32 1.0, %v566_v44 }
  0xfd   : > { %579 = vrcp.f32 %v329_v45 }
  0xfe   : > { %581 = vrcp.f32 %v333_v46 }
 0x101   : > { %v568_v50 = vpop.eup %567 }
 0x102   : > { %v570_v52 = vpop.eup %569  ;;  %v362_v54 = vmul.f32 %v568_v50, %v354_v47 }
 0x103   : > { %v572_v55 = vpop.eup %571  ;;  %v366_v57 = vmul.f32 %v570_v52, %v358_v48 }
 0x104   : > { %v574_v58 = vpop.eup %573  ;;  %v505_v60 = vpack.c.bf16 %v362_v54, %v362_v54  ;;  %v360_v61 = vmul.f32 %v572_v55, %v352_v49 }
 0x105   : > { %v576_v62 = vpop.eup %575  ;;  %v509_v0 = vpack.c.bf16 %v366_v57, %v366_v57  ;;  %v364_v1 = vmul.f32 %v574_v58, %v356_v51 }
 0x106   : > { %v578_v4 = vpop.eup %577  ;;  %403 = vst.msk [vmem:[%s658_s27 + $0x8] sm:$0xf] %vm400_vm1, %v505_v60  ;;  %v503_v5 = vpack.c.bf16 %v360_v61, %v360_v61  ;;  %v363_v6 = vmul.f32 %v576_v62, %v355_v53 }
 0x107   : > { %v580_v7 = vpop.eup %579  ;;  %407 = vst.msk [vmem:[%s658_s27 + $0x18] sm:$0xf] %vm400_vm1, %v509_v0  ;;  %v507_v2 = vpack.c.bf16 %v364_v1, %v364_v1  ;;  %v367_v8 = vmul.f32 %v578_v4, %v359_v56 }
 0x108   : > { %v582_v9 = vpop.eup %581  ;;  %401 = vst.msk [vmem:[%s658_s27] sm:$0xf] %vm400_vm1, %v503_v5  ;;  %v506_v3 = vpack.c.bf16 %v363_v6, %v363_v6  ;;  %v361_v10 = vmul.f32 %v580_v7, %v353_v59 }
 0x109   : > { %405 = vst.msk [vmem:[%s658_s27 + $0x10] sm:$0xf] %vm400_vm1, %v507_v2  ;;  %v510_v11 = vpack.c.bf16 %v367_v8, %v367_v8  ;;  %v365_v12 = vmul.f32 %v582_v9, %v357_v63 }
 0x10a   : > { %404 = vst.msk [vmem:[%s658_s27 + $0xc] sm:$0xf] %vm400_vm1, %v506_v3  ;;  %v504_v13 = vpack.c.bf16 %v361_v10, %v361_v10 }
 0x10b   : > { %408 = vst.msk [vmem:[%s658_s27 + $0x1c] sm:$0xf] %vm400_vm1, %v510_v11  ;;  %v508_v14 = vpack.c.bf16 %v365_v12, %v365_v12 }
 0x10c   : > { %402 = vst.msk [vmem:[%s658_s27 + $0x4] sm:$0xf] %vm400_vm1, %v504_v13 }
 0x10d   : > { %406 = vst.msk [vmem:[%s658_s27 + $0x14] sm:$0xf] %vm400_vm1, %v508_v14 }
 0x10e PF: > { %s13_s12 = sadd.s32 1, %s589_s12  }
 0x10f   : > { %p10_p4 = scmp.ge.s32.totalorder %s13_s12, 4  }
 0x111   :  { %12 = sbr.rel (!%p10_p4) target bundleno = 1 (0x1), region = 62 }

// kernel: yolov1_forward.43
= control target key start
LH: loop header
LB: loop body
LE: loop exit
PB: predicated region body
PF: predicated region fallthrough
CT: control target
= control target key end

     0   :  { %s455_s12 = smov 0   ;;  %s489_s0 = inlined_call_operand.vmem [shape: bf16[128,32], index: 0, kind: input, shape index: {}]   ;;  %s490_s1 = inlined_call_operand.vmem [shape: bf16[32,8], index: 1, kind: input, shape index: {}]   ;;  %s491_s2 = inlined_call_operand.vmem [shape: f32[1,8], index: 2, kind: input, shape index: {}]   ;;  %s492_s3 = inlined_call_operand.vmem [shape: f32[128,8], index: 3, kind: output, shape index: {}]  }
   0x1 LB: > { %s369_s13 = sadd.s32 4294967295, %s433_s12   ;;  %p373_p0 = scmp.ge.s32.totalorder %s433_s12, 1  ;;  %s433_s12 = sphi %s455_s12, %s13_s12  }
   0x2   : > { %p138_p1 = scmp.lt.s32.totalorder %s433_s12, 3 }
   0x4   : > { %p139_p2 = pnand %p373_p0, %p138_p1 }
   0x5   : > { %v421_v0 = vld [vmem:[%s490_s1] sm:$0xff] (!%p139_p2)   ;;  %s374_s16 = sshll.u32 (!%p139_p2), %s369_s13, 3  ;;  %v422_v1 = vld [vmem:[%s490_s1 + $0x8] sm:$0xff] (!%p139_p2)   ;;  %vm226_vm0 = vcmask (!%p139_p2), 261120   ;;  %vm304_vm1 = vcmask (!%p139_p2), 64512  }
   0x6   : > { %142 = sbr.rel (%p139_p2) target bundleno = 236 (0xec), region = 32  ;;  %p163_p3 = scmp.lt.s32.totalorder (!%p139_p2), %s374_s16, 15  ;;  %397 = vmatprep.subr.bf16.mxu0 (!%p139_p2), %v421_v0  ;;  %409 = vmatprep.subr.bf16.mxu1 (!%p139_p2), %v421_v0  ;;  %v378_v6 = vld [vmem:[%s491_s2] ss:$0 sm:$0xff] (!%p139_p2) }
   0x7   : > { %398 = vmatpush3.bf16.msra.mxu0 (!%p139_p2), %v421_v0  ;;  %411 = vmatpush3.bf16.msra.mxu1 (!%p139_p2), %v421_v0 }
   0x8   : > { %399 = vmatprep.subr.bf16.mxu0 (!%p139_p2), %v422_v1  ;;  %410 = vmatprep.subr.bf16.mxu1 (!%p139_p2), %v422_v1 }
   0xb   : > { %400 = vmatpush3.bf16.msra.mxu0 (!%p139_p2), %v422_v1  ;;  %412 = vmatpush3.bf16.msra.mxu1 (!%p139_p2), %v422_v1 }
   0xd   : > { %s494_s16 = smov (!%p163_p3, %s374_s16), 15 }
   0xe   : > { %s375_s19 = sshll.u32 %s494_s16, 2  ;;  %s377_s23 = sshll.u32 %s494_s16, 3 }
   0xf   : > { %s166_s22 = scalar_lea.vmem %s489_s0, %s375_s19  ;;  %s172_s28 = scalar_lea.vmem %s492_s3, %s377_s23 }
  0x10   : > { %v423_v2 = vld [vmem:[%s166_s22] sm:$0xff]   ;;  %v424_v3 = vld [vmem:[%s166_s22 + $0x10] sm:$0xff]   ;;  %v425_v4 = vld [vmem:[%s166_s22 + $0x8] sm:$0xff]  }
  0x11   : > { %401 = vmatprep.mubr.msk.bf16.mxu0 %vm226_vm0, %v423_v2  ;;  %405 = vmatprep.mubr.msk.bf16.mxu1 %vm226_vm0, %v424_v3  ;;  %v426_v5 = vld [vmem:[%s166_s22 + $0x18] sm:$0xff]  }
  0x12   : > { %402 = vmatmul.mubr.msk.bf16.vlgmr.msra.gmra.mrb[0].mxu0 %vm226_vm0, %v425_v4  ;;  %406 = vmatmul.mubr.msk.bf16.vlgmr.msra.gmra.mrb[0].mxu1 %vm226_vm0, %v426_v5 }
  0xe5   : > { %v403_v7 = vpop.f32.mrb[0].mxu0  ;;  %v407_v9 = vpop.f32.mrb[0].mxu1 }
  0xe6   : > { %v282_v8 = vadd.f32 %v403_v7, %v378_v6  ;;  %v273_v10 = vpop.f32.mrb[1].mxu0  ;;  %v298_v11 = vadd.f32 %v407_v9, %v378_v6  ;;  %v289_v13 = vpop.f32.mrb[1].mxu1 }
  0xe7   : > { %v274_v12 = vadd.f32 %v378_v6, %v273_v10  ;;  %v404_v14 = vpop.f32.mrb[2].mxu0  ;;  %v290_v15 = vadd.f32 %v378_v6, %v289_v13  ;;  %v408_v17 = vpop.f32.mrb[2].mxu1 }
  0xe8   : > { %307 = vst.msk [vmem:[%s172_s28 + $0x10] sm:$0xff] %vm304_vm1, %v282_v8  ;;  %v285_v16 = vadd.f32 %v404_v14, %v378_v6  ;;  %v276_v18 = vpop.f32.mrb[3].mxu0  ;;  %311 = vst.msk [vmem:[%s172_s28 + $0x30] sm:$0xff] %vm304_vm1, %v298_v11  ;;  %v301_v19 = vadd.f32 %v408_v17, %v378_v6  ;;  %v292_v21 = vpop.f32.mrb[3].mxu1 }
  0xe9   : > { %305 = vst.msk [vmem:[%s172_s28] sm:$0xff] %vm304_vm1, %v274_v12  ;;  %v277_v20 = vadd.f32 %v378_v6, %v276_v18  ;;  %309 = vst.msk [vmem:[%s172_s28 + $0x20] sm:$0xff] %vm304_vm1, %v290_v15  ;;  %v293_v22 = vadd.f32 %v378_v6, %v292_v21 }
  0xea   : > { %308 = vst.msk [vmem:[%s172_s28 + $0x18] sm:$0xff] %vm304_vm1, %v285_v16  ;;  %312 = vst.msk [vmem:[%s172_s28 + $0x38] sm:$0xff] %vm304_vm1, %v301_v19 }
  0xeb   : > { %306 = vst.msk [vmem:[%s172_s28 + $0x8] sm:$0xff] %vm304_vm1, %v277_v20  ;;  %310 = vst.msk [vmem:[%s172_s28 + $0x28] sm:$0xff] %vm304_vm1, %v293_v22 }
  0xec PF: > { %s13_s12 = sadd.s32 1, %s433_s12  }
  0xed   : > { %p10_p4 = scmp.ge.s32.totalorder %s13_s12, 4  }
  0xef   :  { %12 = sbr.rel (!%p10_p4) target bundleno = 1 (0x1), region = 62 }

</bundles_post_ra>
